<compile_context>
chip_gen: v7x
topology: tpu7x:2x2x1
jax: 0.10.0
libtpu: 0.0.40
codegen_flags: <defaults>
</compile_context>

<pallas_src>
import functools

import jax
import jax.numpy as jnp
from jax.experimental import pallas as pl
from jax.experimental.pallas import tpu as pltpu

LEAK = 0.1                 # nn.LeakyReLU(0.1)
BN_EPS = 1e-5              # nn.BatchNorm2d default eps
COL_OFF = 16               # column offset of conv1 output inside the padded
                           # scratch (multiple of 16 -> bf16 (16,128)-tile
                           # aligned interior stores)
MXU_DTYPE = jnp.bfloat16   # matmul-operand dtype (accumulation stays f32)


def _round_up(v, m):
    return ((v + m - 1) // m) * m


def _leaky_relu(v):
    # one VPU max instead of cmp+select
    return jnp.maximum(v, LEAK * v)


# ---------------------------------------------------------------------------
# Fused kernel: all repeats of [1x1 conv -> 3x3 conv (+ residual)].
#   x block : (Nb, H, W, C)   ->  out block : (Nb, H, W, C)
#   hp_ref  : VMEM scratch (Nb, H+2, Wp, Cmid), bf16, zero halo frame
# ---------------------------------------------------------------------------
def fused_residual_block_kernel(x_ref, w1_ref, b1_ref, w3_ref, b2_ref,
                                out_ref, hp_ref, *,
                                use_residual, num_repeats, h_tile):
    Nb, H, W, C = x_ref.shape
    Cmid = w1_ref.shape[2]
    _, Hp, Wp, _ = hp_ref.shape
    cdt = hp_ref.dtype
    n_tiles = H // h_tile

    # ---- zero ONLY the halo frame (interior is fully overwritten each repeat)
    hp_ref[:, 0:1, :, :] = jnp.zeros((Nb, 1, Wp, Cmid), cdt)
    hp_ref[:, Hp - 1:Hp, :, :] = jnp.zeros((Nb, 1, Wp, Cmid), cdt)
    hp_ref[:, :, 0:COL_OFF, :] = jnp.zeros((Nb, Hp, COL_OFF, Cmid), cdt)
    hp_ref[:, :, COL_OFF + W:Wp, :] = jnp.zeros(
        (Nb, Hp, Wp - (COL_OFF + W), Cmid), cdt)

    for r in range(num_repeats):
        # Activation stays resident in VMEM: x_ref for the first repeat, the
        # (already written) out_ref block afterwards.
        act_ref = x_ref if r == 0 else out_ref
        w1 = w1_ref[r]                               # (C, Cmid)        bf16
        b1 = b1_ref[r]                               # (1, Cmid)        f32
        b2 = b2_ref[r]                               # (1, C)           f32
        w3_dx = [w3_ref[r, dx] for dx in range(3)]   # 3 x (3*Cmid, C)  bf16

        # ---- stage A: 1x1 conv + shift + LeakyReLU -> padded scratch (bf16)
        # NOTE: the (Nb,Ht,W,*) <-> (Nb*Ht*W,*) reshapes are layout-free only
        # when W is a multiple of the sublane tile (perf hazard otherwise).
        for t in range(n_tiles):
            h0 = t * h_tile
            a = act_ref[:, h0:h0 + h_tile, :, :].astype(cdt)
            a = a.reshape(Nb * h_tile * W, C)
            h1 = jnp.dot(a, w1, preferred_element_type=jnp.float32)
            h1 = _leaky_relu(h1 + b1)
            hp_ref[:, 1 + h0:1 + h0 + h_tile, COL_OFF:COL_OFF + W, :] = (
                h1.reshape(Nb, h_tile, W, Cmid).astype(cdt))

        # ---- stage B: 3x3 conv (3 K-packed MXU dots) + shift + LeakyReLU + res
        for t in range(n_tiles):
            h0 = t * h_tile
            Mt = Nb * h_tile * W
            # Pack the 3 dy taps along K: (Nb, Ht, Wp, 3*Cmid). dy shifts are
            # free leading-dim slices of the scratch Ref.
            slab = jnp.concatenate(
                [hp_ref[:, h0 + dy:h0 + dy + h_tile, :, :] for dy in range(3)],
                axis=-1)
            acc = None
            for dx in range(3):
                cs = COL_OFF - 1 + dx
                patch = slab[:, :, cs:cs + W, :].reshape(Mt, 3 * Cmid)
                d = jnp.dot(patch, w3_dx[dx],
                            preferred_element_type=jnp.float32)
                acc = d if acc is None else acc + d   # chained, value-resident
            y = _leaky_relu(acc + b2)
            if use_residual:
                res = act_ref[:, h0:h0 + h_tile, :, :].astype(jnp.float32)
                y = y + res.reshape(Mt, C)
            out_ref[:, h0:h0 + h_tile, :, :] = (
                y.reshape(Nb, h_tile, W, C).astype(out_ref.dtype))


# ---------------------------------------------------------------------------
# Wrapper: one pallas_call for the whole ResidualBlock, grid over batch blocks.
# ---------------------------------------------------------------------------
def _vmem_limit_bytes():
    # <=48 MiB on v7x (64 MiB physical / TC), ~100 MiB on v5e/v6e (128 MiB).
    try:
        phys = int(getattr(pltpu.get_tpu_info(), "vmem_capacity_bytes", 0))
        if phys > 0:
            return max(32, min((phys >> 20) - 16, 100)) * 1024 * 1024
    except Exception:
        pass
    return 48 * 1024 * 1024


def _pick_batch_block(N, H, W, C, Cmid, itemsize, budget_bytes):
    Wp = COL_OFF + _round_up(W + 1, 8)
    per_img = 2 * 2 * H * W * C * itemsize          # double-buffered x + out
    per_img += (H + 2) * Wp * Cmid * 2              # bf16 padded scratch
    nb = int(max(1, min(N, budget_bytes // max(per_img, 1))))
    while N % nb:
        nb -= 1
    return nb


def _pick_h_tile(H, Nb, W, target_rows=512):
    ht = int(max(1, min(H, target_rows // max(Nb * W, 1))))
    while H % ht:
        ht -= 1
    return ht


def residual_block_forward(x_nchw, params, use_residual=True):
    """params = (w1s, b1s, w3s, b2s) stacked over repeats (prepare_kernel_params)."""
    w1s, b1s, w3s, b2s = params
    R, C, Cmid = w1s.shape
    x = jnp.transpose(x_nchw, (0, 2, 3, 1))          # NCHW -> NHWC (C -> lanes)
    N, H, W, _ = x.shape

    Hp = H + 2
    Wp = COL_OFF + _round_up(W + 1, 8)
    vmem_limit = _vmem_limit_bytes()
    Nb = _pick_batch_block(N, H, W, C, Cmid, x.dtype.itemsize, vmem_limit // 2)
    h_tile = _pick_h_tile(H, Nb, W)

    kernel = functools.partial(
        fused_residual_block_kernel,
        use_residual=use_residual, num_repeats=R, h_tile=h_tile)

    out = pl.pallas_call(
        kernel,
        out_shape=jax.ShapeDtypeStruct((N, H, W, C), x.dtype),
        grid_spec=pltpu.PrefetchScalarGridSpec(
            num_scalar_prefetch=0,
            grid=(N // Nb,),
            in_specs=[
                pl.BlockSpec((Nb, H, W, C), lambda n: (n, 0, 0, 0)),
                pl.BlockSpec((R, C, Cmid), lambda n: (0, 0, 0)),
                pl.BlockSpec((R, 1, Cmid), lambda n: (0, 0, 0)),
                pl.BlockSpec((R, 3, 3 * Cmid, C), lambda n: (0, 0, 0, 0)),
                pl.BlockSpec((R, 1, C), lambda n: (0, 0, 0)),
            ],
            out_specs=pl.BlockSpec((Nb, H, W, C), lambda n: (n, 0, 0, 0)),
            scratch_shapes=[pltpu.VMEM((Nb, Hp, Wp, Cmid), MXU_DTYPE)],
        ),
        compiler_params=pltpu.CompilerParams(
            dimension_semantics=("parallel",),
            vmem_limit_bytes=vmem_limit,
        ),
    )(x, w1s, b1s, w3s, b2s)
    return jnp.transpose(out, (0, 3, 1, 2))          # NHWC -> NCHW


# ---------------------------------------------------------------------------
# deterministic parameter init + eval-mode BN folding / packing / stacking
# ---------------------------------------------------------------------------
def _bn_scale_shift(gamma, beta, mean, var):
    scale = gamma / jnp.sqrt(var + BN_EPS)
    return scale, beta - mean * scale


def init_raw_params(key, channels, num_repeats):
    cmid = channels // 2
    raw = []
    for r in range(num_repeats):
        ks = jax.random.split(jax.random.fold_in(key, r), 10)
        # conv1: torch weight (cmid, channels, 1, 1) -> our (channels, cmid)
        w1 = 0.1 * jax.random.normal(ks[0], (channels, cmid), jnp.float32)
        g1 = 1.0 + 0.1 * jax.random.normal(ks[1], (cmid,), jnp.float32)
        be1 = 0.1 * jax.random.normal(ks[2], (cmid,), jnp.float32)
        m1 = 0.1 * jax.random.normal(ks[3], (cmid,), jnp.float32)
        v1 = 1.0 + 0.1 * jnp.abs(jax.random.normal(ks[4], (cmid,), jnp.float32))
        # conv3: torch weight (channels, cmid, 3, 3) -> our (3, 3, cmid, channels)
        w3 = 0.1 * jax.random.normal(ks[5], (3, 3, cmid, channels), jnp.float32)
        g2 = 1.0 + 0.1 * jax.random.normal(ks[6], (channels,), jnp.float32)
        be2 = 0.1 * jax.random.normal(ks[7], (channels,), jnp.float32)
        m2 = 0.1 * jax.random.normal(ks[8], (channels,), jnp.float32)
        v2 = 1.0 + 0.1 * jnp.abs(jax.random.normal(ks[9], (channels,), jnp.float32))
        raw.append(dict(w1=w1, g1=g1, b1=be1, m1=m1, v1=v1,
                        w3=w3, g2=g2, b2=be2, m2=m2, v2=v2))
    return raw


def prepare_kernel_params(raw_params):
    """Fold the eval-mode BN scale into the conv weights (bf16 for the MXU),
    keep per-channel shifts in f32, K-pack the 3x3 taps (dy along K) and stack
    everything over repeats for the single fused pallas_call."""
    w1_l, b1_l, w3_l, b2_l = [], [], [], []
    for p in raw_params:
        s1, sh1 = _bn_scale_shift(p["g1"], p["b1"], p["m1"], p["v1"])
        s2, sh2 = _bn_scale_shift(p["g2"], p["b2"], p["m2"], p["v2"])
        cmid, c = s1.shape[0], s2.shape[0]
        w1f = (p["w1"] * s1[None, :]).astype(MXU_DTYPE)                 # (C, Cmid)
        w3f = p["w3"] * s2[None, None, None, :]                         # (dy,dx,ci,co)
        w3p = jnp.transpose(w3f, (1, 0, 2, 3)).reshape(3, 3 * cmid, c)  # (dx, dy*ci, co)
        w1_l.append(w1f)
        b1_l.append(sh1[None, :].astype(jnp.float32))
        w3_l.append(w3p.astype(MXU_DTYPE))
        b2_l.append(sh2[None, :].astype(jnp.float32))
    return (jnp.stack(w1_l), jnp.stack(b1_l), jnp.stack(w3_l), jnp.stack(b2_l))


# ---------------------------------------------------------------------------
# pure-JAX reference (unfolded BN, f32) for the numerical check
# ---------------------------------------------------------------------------
def reference_forward(x_nchw, raw_params, use_residual=True):
    x = jnp.transpose(x_nchw, (0, 2, 3, 1))
    dn = ("NHWC", "HWIO", "NHWC")
    for p in raw_params:
        s1, sh1 = _bn_scale_shift(p["g1"], p["b1"], p["m1"], p["v1"])
        s2, sh2 = _bn_scale_shift(p["g2"], p["b2"], p["m2"], p["v2"])
        h = jax.lax.conv_general_dilated(
            x, p["w1"][None, None, :, :], (1, 1), "VALID",
            dimension_numbers=dn, precision=jax.lax.Precision.HIGHEST)
        h = _leaky_relu(h * s1 + sh1)
        y = jax.lax.conv_general_dilated(
            h, p["w3"], (1, 1), "SAME",
            dimension_numbers=dn, precision=jax.lax.Precision.HIGHEST)
        y = _leaky_relu(y * s2 + sh2)
        x = x + y if use_residual else y
    return jnp.transpose(x, (0, 3, 1, 2))


if __name__ == "__main__":
    N, C, H, W = 2, 8, 16, 16
    num_repeats = 2

    key = jax.random.PRNGKey(0)
    kx, kp = jax.random.split(key)
    x = jax.random.normal(kx, (N, C, H, W), jnp.float32)   # NCHW like PyTorch
    raw = init_raw_params(kp, C, num_repeats)
    params = prepare_kernel_params(raw)

    out = residual_block_forward(x, params, use_residual=True)
    out = jax.block_until_ready(out)

    ref = reference_forward(x, raw, use_residual=True)
    assert out.shape == (N, C, H, W), out.shape
    max_err = float(jnp.max(jnp.abs(out - ref)))
    # bf16 MXU operands (weights + activations) vs the f32 reference -> looser tol
    assert max_err < 5e-2, max_err

    print("KERNEL_OK")
</pallas_src>

<mosaic_0001>
module attributes {stable_mosaic.version = 11 : i64} {
  func.func @fused_residual_block_kernel(%arg0: i32, %arg1: memref<2x16x16x8xf32, #tpu.memory_space<vmem>>, %arg2: memref<2x8x4xbf16, #tpu.memory_space<vmem>>, %arg3: memref<2x1x4xf32, #tpu.memory_space<vmem>>, %arg4: memref<2x3x12x8xbf16, #tpu.memory_space<vmem>>, %arg5: memref<2x1x8xf32, #tpu.memory_space<vmem>>, %arg6: memref<2x16x16x8xf32, #tpu.memory_space<vmem>>, %arg7: memref<2x18x40x4xbf16, #tpu.memory_space<vmem>>) attributes {dimension_semantics = [#tpu.dimension_semantics<parallel>], iteration_bounds = array<i64: 1>, scalar_prefetch = 0 : i64, scratch_operands = 1 : i64, tpu.core_type = #tpu.core_type<tc>, window_params = [{transform_indices = @transform_0, window_bounds = array<i64: 2, 16, 16, 8>}, {pipeline_mode = #tpu.pipeline_mode<synchronous>, transform_indices = @transform_1, window_bounds = array<i64: 2, 8, 4>}, {pipeline_mode = #tpu.pipeline_mode<synchronous>, transform_indices = @transform_2, window_bounds = array<i64: 2, 1, 4>}, {pipeline_mode = #tpu.pipeline_mode<synchronous>, transform_indices = @transform_3, window_bounds = array<i64: 2, 3, 12, 8>}, {pipeline_mode = #tpu.pipeline_mode<synchronous>, transform_indices = @transform_4, window_bounds = array<i64: 2, 1, 8>}, {transform_indices = @transform_5, window_bounds = array<i64: 2, 16, 16, 8>}]} {
    %cst = arith.constant 0.000000e+00 : bf16
    %0 = vector.broadcast %cst : bf16 to vector<2x1x40x4xbf16>
    %c0 = arith.constant 0 : index
    %c0_0 = arith.constant 0 : index
    %c0_1 = arith.constant 0 : index
    %c0_2 = arith.constant 0 : index
    %1 = vector.load %arg7[%c0, %c0_0, %c0_1, %c0_2] : memref<2x18x40x4xbf16, #tpu.memory_space<vmem>>, vector<2x1x40x4xbf16>
    tpu.vector_store %arg7[%c0, %c0_0, %c0_1, %c0_2], %0 {strides = array<i32>} : memref<2x18x40x4xbf16, #tpu.memory_space<vmem>>, vector<2x1x40x4xbf16>,
    %cst_3 = arith.constant 0.000000e+00 : bf16
    %2 = vector.broadcast %cst_3 : bf16 to vector<2x1x40x4xbf16>
    %c0_4 = arith.constant 0 : index
    %c17 = arith.constant 17 : index
    %c0_5 = arith.constant 0 : index
    %c0_6 = arith.constant 0 : index
    %3 = vector.load %arg7[%c0_4, %c17, %c0_5, %c0_6] : memref<2x18x40x4xbf16, #tpu.memory_space<vmem>>, vector<2x1x40x4xbf16>
    tpu.vector_store %arg7[%c0_4, %c17, %c0_5, %c0_6], %2 {strides = array<i32>} : memref<2x18x40x4xbf16, #tpu.memory_space<vmem>>, vector<2x1x40x4xbf16>,
    %cst_7 = arith.constant 0.000000e+00 : bf16
    %4 = vector.broadcast %cst_7 : bf16 to vector<2x18x16x4xbf16>
    %c0_8 = arith.constant 0 : index
    %c0_9 = arith.constant 0 : index
    %c0_10 = arith.constant 0 : index
    %c0_11 = arith.constant 0 : index
    %5 = vector.load %arg7[%c0_8, %c0_9, %c0_10, %c0_11] : memref<2x18x40x4xbf16, #tpu.memory_space<vmem>>, vector<2x18x16x4xbf16>
    tpu.vector_store %arg7[%c0_8, %c0_9, %c0_10, %c0_11], %4 {strides = array<i32>} : memref<2x18x40x4xbf16, #tpu.memory_space<vmem>>, vector<2x18x16x4xbf16>,
    %cst_12 = arith.constant 0.000000e+00 : bf16
    %6 = vector.broadcast %cst_12 : bf16 to vector<2x18x8x4xbf16>
    %c0_13 = arith.constant 0 : index
    %c0_14 = arith.constant 0 : index
    %c32 = arith.constant 32 : index
    %c0_15 = arith.constant 0 : index
    %7 = vector.load %arg7[%c0_13, %c0_14, %c32, %c0_15] : memref<2x18x40x4xbf16, #tpu.memory_space<vmem>>, vector<2x18x8x4xbf16>
    tpu.vector_store %arg7[%c0_13, %c0_14, %c32, %c0_15], %6 {strides = array<i32>} : memref<2x18x40x4xbf16, #tpu.memory_space<vmem>>, vector<2x18x8x4xbf16>,
    %c0_16 = arith.constant 0 : index
    %c0_17 = arith.constant 0 : index
    %c0_18 = arith.constant 0 : index
    %8 = vector.load %arg2[%c0_16, %c0_17, %c0_18] : memref<2x8x4xbf16, #tpu.memory_space<vmem>>, vector<1x8x4xbf16>
    %9 = vector.shape_cast %8 : vector<1x8x4xbf16> to vector<8x4xbf16>
    %c0_19 = arith.constant 0 : index
    %c0_20 = arith.constant 0 : index
    %c0_21 = arith.constant 0 : index
    %10 = vector.load %arg3[%c0_19, %c0_20, %c0_21] : memref<2x1x4xf32, #tpu.memory_space<vmem>>, vector<1x1x4xf32>
    %11 = vector.shape_cast %10 : vector<1x1x4xf32> to vector<1x4xf32>
    %c0_22 = arith.constant 0 : index
    %c0_23 = arith.constant 0 : index
    %c0_24 = arith.constant 0 : index
    %12 = vector.load %arg5[%c0_22, %c0_23, %c0_24] : memref<2x1x8xf32, #tpu.memory_space<vmem>>, vector<1x1x8xf32>
    %13 = vector.shape_cast %12 : vector<1x1x8xf32> to vector<1x8xf32>
    %c0_25 = arith.constant 0 : index
    %c0_26 = arith.constant 0 : index
    %c0_27 = arith.constant 0 : index
    %c0_28 = arith.constant 0 : index
    %14 = vector.load %arg4[%c0_25, %c0_26, %c0_27, %c0_28] : memref<2x3x12x8xbf16, #tpu.memory_space<vmem>>, vector<1x1x12x8xbf16>
    %15 = vector.shape_cast %14 : vector<1x1x12x8xbf16> to vector<12x8xbf16>
    %c0_29 = arith.constant 0 : index
    %c1 = arith.constant 1 : index
    %c0_30 = arith.constant 0 : index
    %c0_31 = arith.constant 0 : index
    %16 = vector.load %arg4[%c0_29, %c1, %c0_30, %c0_31] : memref<2x3x12x8xbf16, #tpu.memory_space<vmem>>, vector<1x1x12x8xbf16>
    %17 = vector.shape_cast %16 : vector<1x1x12x8xbf16> to vector<12x8xbf16>
    %c0_32 = arith.constant 0 : index
    %c2 = arith.constant 2 : index
    %c0_33 = arith.constant 0 : index
    %c0_34 = arith.constant 0 : index
    %18 = vector.load %arg4[%c0_32, %c2, %c0_33, %c0_34] : memref<2x3x12x8xbf16, #tpu.memory_space<vmem>>, vector<1x1x12x8xbf16>
    %19 = vector.shape_cast %18 : vector<1x1x12x8xbf16> to vector<12x8xbf16>
    %c0_35 = arith.constant 0 : index
    %c0_36 = arith.constant 0 : index
    %c0_37 = arith.constant 0 : index
    %c0_38 = arith.constant 0 : index
    %20 = vector.load %arg1[%c0_35, %c0_36, %c0_37, %c0_38] : memref<2x16x16x8xf32, #tpu.memory_space<vmem>>, vector<2x16x16x8xf32>
    %21 = arith.truncf %20 : vector<2x16x16x8xf32> to vector<2x16x16x8xbf16>
    %22 = vector.shape_cast %21 : vector<2x16x16x8xbf16> to vector<512x8xbf16>
    %cst_39 = arith.constant dense<0.000000e+00> : vector<512x4xf32>
    %23 = tpu.matmul %22, %9, %cst_39 {dimension_numbers = #tpu.dot_dimension_numbers<[1], [0], [0], [1], [0, 0, 1, 1], [], []>} : vector<512x8xbf16>, vector<8x4xbf16>, vector<512x4xf32> -> vector<512x4xf32>
    %24 = vector.broadcast %11 : vector<1x4xf32> to vector<512x4xf32>
    %25 = arith.addf %23, %24 : vector<512x4xf32>
    %cst_40 = arith.constant 1.000000e-01 : f32
    %26 = vector.broadcast %cst_40 : f32 to vector<512x4xf32>
    %27 = arith.mulf %26, %25 : vector<512x4xf32>
    %28 = arith.maximumf %25, %27 : vector<512x4xf32>
    %29 = vector.shape_cast %28 : vector<512x4xf32> to vector<2x16x16x4xf32>
    %30 = arith.truncf %29 : vector<2x16x16x4xf32> to vector<2x16x16x4xbf16>
    %c0_41 = arith.constant 0 : index
    %c1_42 = arith.constant 1 : index
    %c16 = arith.constant 16 : index
    %c0_43 = arith.constant 0 : index
    %31 = vector.load %arg7[%c0_41, %c1_42, %c16, %c0_43] : memref<2x18x40x4xbf16, #tpu.memory_space<vmem>>, vector<2x16x16x4xbf16>
    tpu.vector_store %arg7[%c0_41, %c1_42, %c16, %c0_43], %30 {strides = array<i32>} : memref<2x18x40x4xbf16, #tpu.memory_space<vmem>>, vector<2x16x16x4xbf16>,
    %c0_44 = arith.constant 0 : index
    %c0_45 = arith.constant 0 : index
    %c0_46 = arith.constant 0 : index
    %c0_47 = arith.constant 0 : index
    %32 = vector.load %arg7[%c0_44, %c0_45, %c0_46, %c0_47] : memref<2x18x40x4xbf16, #tpu.memory_space<vmem>>, vector<2x16x40x4xbf16>
    %c0_48 = arith.constant 0 : index
    %c1_49 = arith.constant 1 : index
    %c0_50 = arith.constant 0 : index
    %c0_51 = arith.constant 0 : index
    %33 = vector.load %arg7[%c0_48, %c1_49, %c0_50, %c0_51] : memref<2x18x40x4xbf16, #tpu.memory_space<vmem>>, vector<2x16x40x4xbf16>
    %c0_52 = arith.constant 0 : index
    %c2_53 = arith.constant 2 : index
    %c0_54 = arith.constant 0 : index
    %c0_55 = arith.constant 0 : index
    %34 = vector.load %arg7[%c0_52, %c2_53, %c0_54, %c0_55] : memref<2x18x40x4xbf16, #tpu.memory_space<vmem>>, vector<2x16x40x4xbf16>
    %35 = tpu.concatenate %32, %33, %34 in 3 : vector<2x16x40x4xbf16>, vector<2x16x40x4xbf16>, vector<2x16x40x4xbf16> -> vector<2x16x40x12xbf16>
    %36 = vector.extract_strided_slice %35 {offsets = [0, 0, 15, 0], sizes = [2, 16, 16, 12], strides = [1, 1, 1, 1]} : vector<2x16x40x12xbf16> to vector<2x16x16x12xbf16>
    %37 = vector.shape_cast %36 : vector<2x16x16x12xbf16> to vector<512x12xbf16>
    %cst_56 = arith.constant dense<0.000000e+00> : vector<512x8xf32>
    %38 = tpu.matmul %37, %15, %cst_56 {dimension_numbers = #tpu.dot_dimension_numbers<[1], [0], [0], [1], [0, 0, 1, 1], [], []>} : vector<512x12xbf16>, vector<12x8xbf16>, vector<512x8xf32> -> vector<512x8xf32>
    %39 = vector.extract_strided_slice %35 {offsets = [0, 0, 16, 0], sizes = [2, 16, 16, 12], strides = [1, 1, 1, 1]} : vector<2x16x40x12xbf16> to vector<2x16x16x12xbf16>
    %40 = vector.shape_cast %39 : vector<2x16x16x12xbf16> to vector<512x12xbf16>
    %cst_57 = arith.constant dense<0.000000e+00> : vector<512x8xf32>
    %41 = tpu.matmul %40, %17, %cst_57 {dimension_numbers = #tpu.dot_dimension_numbers<[1], [0], [0], [1], [0, 0, 1, 1], [], []>} : vector<512x12xbf16>, vector<12x8xbf16>, vector<512x8xf32> -> vector<512x8xf32>
    %42 = arith.addf %38, %41 : vector<512x8xf32>
    %43 = vector.extract_strided_slice %35 {offsets = [0, 0, 17, 0], sizes = [2, 16, 16, 12], strides = [1, 1, 1, 1]} : vector<2x16x40x12xbf16> to vector<2x16x16x12xbf16>
    %44 = vector.shape_cast %43 : vector<2x16x16x12xbf16> to vector<512x12xbf16>
    %cst_58 = arith.constant dense<0.000000e+00> : vector<512x8xf32>
    %45 = tpu.matmul %44, %19, %cst_58 {dimension_numbers = #tpu.dot_dimension_numbers<[1], [0], [0], [1], [0, 0, 1, 1], [], []>} : vector<512x12xbf16>, vector<12x8xbf16>, vector<512x8xf32> -> vector<512x8xf32>
    %46 = arith.addf %42, %45 : vector<512x8xf32>
    %47 = vector.broadcast %13 : vector<1x8xf32> to vector<512x8xf32>
    %48 = arith.addf %46, %47 : vector<512x8xf32>
    %cst_59 = arith.constant 1.000000e-01 : f32
    %49 = vector.broadcast %cst_59 : f32 to vector<512x8xf32>
    %50 = arith.mulf %49, %48 : vector<512x8xf32>
    %51 = arith.maximumf %48, %50 : vector<512x8xf32>
    %c0_60 = arith.constant 0 : index
    %c0_61 = arith.constant 0 : index
    %c0_62 = arith.constant 0 : index
    %c0_63 = arith.constant 0 : index
    %52 = vector.load %arg1[%c0_60, %c0_61, %c0_62, %c0_63] : memref<2x16x16x8xf32, #tpu.memory_space<vmem>>, vector<2x16x16x8xf32>
    %53 = vector.shape_cast %52 : vector<2x16x16x8xf32> to vector<512x8xf32>
    %54 = arith.addf %51, %53 : vector<512x8xf32>
    %55 = vector.shape_cast %54 : vector<512x8xf32> to vector<2x16x16x8xf32>
    %c0_64 = arith.constant 0 : index
    %c0_65 = arith.constant 0 : index
    %c0_66 = arith.constant 0 : index
    %c0_67 = arith.constant 0 : index
    %56 = vector.load %arg6[%c0_64, %c0_65, %c0_66, %c0_67] : memref<2x16x16x8xf32, #tpu.memory_space<vmem>>, vector<2x16x16x8xf32>
    tpu.vector_store %arg6[%c0_64, %c0_65, %c0_66, %c0_67], %55 {strides = array<i32>} : memref<2x16x16x8xf32, #tpu.memory_space<vmem>>, vector<2x16x16x8xf32>,
    %c1_68 = arith.constant 1 : index
    %c0_69 = arith.constant 0 : index
    %c0_70 = arith.constant 0 : index
    %57 = vector.load %arg2[%c1_68, %c0_69, %c0_70] : memref<2x8x4xbf16, #tpu.memory_space<vmem>>, vector<1x8x4xbf16>
    %58 = vector.shape_cast %57 : vector<1x8x4xbf16> to vector<8x4xbf16>
    %c1_71 = arith.constant 1 : index
    %c0_72 = arith.constant 0 : index
    %c0_73 = arith.constant 0 : index
    %59 = vector.load %arg3[%c1_71, %c0_72, %c0_73] : memref<2x1x4xf32, #tpu.memory_space<vmem>>, vector<1x1x4xf32>
    %60 = vector.shape_cast %59 : vector<1x1x4xf32> to vector<1x4xf32>
    %c1_74 = arith.constant 1 : index
    %c0_75 = arith.constant 0 : index
    %c0_76 = arith.constant 0 : index
    %61 = vector.load %arg5[%c1_74, %c0_75, %c0_76] : memref<2x1x8xf32, #tpu.memory_space<vmem>>, vector<1x1x8xf32>
    %62 = vector.shape_cast %61 : vector<1x1x8xf32> to vector<1x8xf32>
    %c1_77 = arith.constant 1 : index
    %c0_78 = arith.constant 0 : index
    %c0_79 = arith.constant 0 : index
    %c0_80 = arith.constant 0 : index
    %63 = vector.load %arg4[%c1_77, %c0_78, %c0_79, %c0_80] : memref<2x3x12x8xbf16, #tpu.memory_space<vmem>>, vector<1x1x12x8xbf16>
    %64 = vector.shape_cast %63 : vector<1x1x12x8xbf16> to vector<12x8xbf16>
    %c1_81 = arith.constant 1 : index
    %c1_82 = arith.constant 1 : index
    %c0_83 = arith.constant 0 : index
    %c0_84 = arith.constant 0 : index
    %65 = vector.load %arg4[%c1_81, %c1_82, %c0_83, %c0_84] : memref<2x3x12x8xbf16, #tpu.memory_space<vmem>>, vector<1x1x12x8xbf16>
    %66 = vector.shape_cast %65 : vector<1x1x12x8xbf16> to vector<12x8xbf16>
    %c1_85 = arith.constant 1 : index
    %c2_86 = arith.constant 2 : index
    %c0_87 = arith.constant 0 : index
    %c0_88 = arith.constant 0 : index
    %67 = vector.load %arg4[%c1_85, %c2_86, %c0_87, %c0_88] : memref<2x3x12x8xbf16, #tpu.memory_space<vmem>>, vector<1x1x12x8xbf16>
    %68 = vector.shape_cast %67 : vector<1x1x12x8xbf16> to vector<12x8xbf16>
    %c0_89 = arith.constant 0 : index
    %c0_90 = arith.constant 0 : index
    %c0_91 = arith.constant 0 : index
    %c0_92 = arith.constant 0 : index
    %69 = vector.load %arg6[%c0_89, %c0_90, %c0_91, %c0_92] : memref<2x16x16x8xf32, #tpu.memory_space<vmem>>, vector<2x16x16x8xf32>
    %70 = arith.truncf %69 : vector<2x16x16x8xf32> to vector<2x16x16x8xbf16>
    %71 = vector.shape_cast %70 : vector<2x16x16x8xbf16> to vector<512x8xbf16>
    %cst_93 = arith.constant dense<0.000000e+00> : vector<512x4xf32>
    %72 = tpu.matmul %71, %58, %cst_93 {dimension_numbers = #tpu.dot_dimension_numbers<[1], [0], [0], [1], [0, 0, 1, 1], [], []>} : vector<512x8xbf16>, vector<8x4xbf16>, vector<512x4xf32> -> vector<512x4xf32>
    %73 = vector.broadcast %60 : vector<1x4xf32> to vector<512x4xf32>
    %74 = arith.addf %72, %73 : vector<512x4xf32>
    %cst_94 = arith.constant 1.000000e-01 : f32
    %75 = vector.broadcast %cst_94 : f32 to vector<512x4xf32>
    %76 = arith.mulf %75, %74 : vector<512x4xf32>
    %77 = arith.maximumf %74, %76 : vector<512x4xf32>
    %78 = vector.shape_cast %77 : vector<512x4xf32> to vector<2x16x16x4xf32>
    %79 = arith.truncf %78 : vector<2x16x16x4xf32> to vector<2x16x16x4xbf16>
    %c0_95 = arith.constant 0 : index
    %c1_96 = arith.constant 1 : index
    %c16_97 = arith.constant 16 : index
    %c0_98 = arith.constant 0 : index
    %80 = vector.load %arg7[%c0_95, %c1_96, %c16_97, %c0_98] : memref<2x18x40x4xbf16, #tpu.memory_space<vmem>>, vector<2x16x16x4xbf16>
    tpu.vector_store %arg7[%c0_95, %c1_96, %c16_97, %c0_98], %79 {strides = array<i32>} : memref<2x18x40x4xbf16, #tpu.memory_space<vmem>>, vector<2x16x16x4xbf16>,
    %c0_99 = arith.constant 0 : index
    %c0_100 = arith.constant 0 : index
    %c0_101 = arith.constant 0 : index
    %c0_102 = arith.constant 0 : index
    %81 = vector.load %arg7[%c0_99, %c0_100, %c0_101, %c0_102] : memref<2x18x40x4xbf16, #tpu.memory_space<vmem>>, vector<2x16x40x4xbf16>
    %c0_103 = arith.constant 0 : index
    %c1_104 = arith.constant 1 : index
    %c0_105 = arith.constant 0 : index
    %c0_106 = arith.constant 0 : index
    %82 = vector.load %arg7[%c0_103, %c1_104, %c0_105, %c0_106] : memref<2x18x40x4xbf16, #tpu.memory_space<vmem>>, vector<2x16x40x4xbf16>
    %c0_107 = arith.constant 0 : index
    %c2_108 = arith.constant 2 : index
    %c0_109 = arith.constant 0 : index
    %c0_110 = arith.constant 0 : index
    %83 = vector.load %arg7[%c0_107, %c2_108, %c0_109, %c0_110] : memref<2x18x40x4xbf16, #tpu.memory_space<vmem>>, vector<2x16x40x4xbf16>
    %84 = tpu.concatenate %81, %82, %83 in 3 : vector<2x16x40x4xbf16>, vector<2x16x40x4xbf16>, vector<2x16x40x4xbf16> -> vector<2x16x40x12xbf16>
    %85 = vector.extract_strided_slice %84 {offsets = [0, 0, 15, 0], sizes = [2, 16, 16, 12], strides = [1, 1, 1, 1]} : vector<2x16x40x12xbf16> to vector<2x16x16x12xbf16>
    %86 = vector.shape_cast %85 : vector<2x16x16x12xbf16> to vector<512x12xbf16>
    %cst_111 = arith.constant dense<0.000000e+00> : vector<512x8xf32>
    %87 = tpu.matmul %86, %64, %cst_111 {dimension_numbers = #tpu.dot_dimension_numbers<[1], [0], [0], [1], [0, 0, 1, 1], [], []>} : vector<512x12xbf16>, vector<12x8xbf16>, vector<512x8xf32> -> vector<512x8xf32>
    %88 = vector.extract_strided_slice %84 {offsets = [0, 0, 16, 0], sizes = [2, 16, 16, 12], strides = [1, 1, 1, 1]} : vector<2x16x40x12xbf16> to vector<2x16x16x12xbf16>
    %89 = vector.shape_cast %88 : vector<2x16x16x12xbf16> to vector<512x12xbf16>
    %cst_112 = arith.constant dense<0.000000e+00> : vector<512x8xf32>
    %90 = tpu.matmul %89, %66, %cst_112 {dimension_numbers = #tpu.dot_dimension_numbers<[1], [0], [0], [1], [0, 0, 1, 1], [], []>} : vector<512x12xbf16>, vector<12x8xbf16>, vector<512x8xf32> -> vector<512x8xf32>
    %91 = arith.addf %87, %90 : vector<512x8xf32>
    %92 = vector.extract_strided_slice %84 {offsets = [0, 0, 17, 0], sizes = [2, 16, 16, 12], strides = [1, 1, 1, 1]} : vector<2x16x40x12xbf16> to vector<2x16x16x12xbf16>
    %93 = vector.shape_cast %92 : vector<2x16x16x12xbf16> to vector<512x12xbf16>
    %cst_113 = arith.constant dense<0.000000e+00> : vector<512x8xf32>
    %94 = tpu.matmul %93, %68, %cst_113 {dimension_numbers = #tpu.dot_dimension_numbers<[1], [0], [0], [1], [0, 0, 1, 1], [], []>} : vector<512x12xbf16>, vector<12x8xbf16>, vector<512x8xf32> -> vector<512x8xf32>
    %95 = arith.addf %91, %94 : vector<512x8xf32>
    %96 = vector.broadcast %62 : vector<1x8xf32> to vector<512x8xf32>
    %97 = arith.addf %95, %96 : vector<512x8xf32>
    %cst_114 = arith.constant 1.000000e-01 : f32
    %98 = vector.broadcast %cst_114 : f32 to vector<512x8xf32>
    %99 = arith.mulf %98, %97 : vector<512x8xf32>
    %100 = arith.maximumf %97, %99 : vector<512x8xf32>
    %c0_115 = arith.constant 0 : index
    %c0_116 = arith.constant 0 : index
    %c0_117 = arith.constant 0 : index
    %c0_118 = arith.constant 0 : index
    %101 = vector.load %arg6[%c0_115, %c0_116, %c0_117, %c0_118] : memref<2x16x16x8xf32, #tpu.memory_space<vmem>>, vector<2x16x16x8xf32>
    %102 = vector.shape_cast %101 : vector<2x16x16x8xf32> to vector<512x8xf32>
    %103 = arith.addf %100, %102 : vector<512x8xf32>
    %104 = vector.shape_cast %103 : vector<512x8xf32> to vector<2x16x16x8xf32>
    %c0_119 = arith.constant 0 : index
    %c0_120 = arith.constant 0 : index
    %c0_121 = arith.constant 0 : index
    %c0_122 = arith.constant 0 : index
    %105 = vector.load %arg6[%c0_119, %c0_120, %c0_121, %c0_122] : memref<2x16x16x8xf32, #tpu.memory_space<vmem>>, vector<2x16x16x8xf32>
    tpu.vector_store %arg6[%c0_119, %c0_120, %c0_121, %c0_122], %104 {strides = array<i32>} : memref<2x16x16x8xf32, #tpu.memory_space<vmem>>, vector<2x16x16x8xf32>,
    return
  }
  func.func @transform_0(%arg0: i32) -> (i32, i32, i32, i32) {
    %c0_i32 = arith.constant 0 : i32
    %c0_i32_0 = arith.constant 0 : i32
    %c0_i32_1 = arith.constant 0 : i32
    %c0_i32_2 = arith.constant 0 : i32
    return %arg0, %c0_i32, %c0_i32_0, %c0_i32_1 : i32, i32, i32, i32
  }
  func.func @transform_1(%arg0: i32) -> (i32, i32, i32) {
    %c0_i32 = arith.constant 0 : i32
    %c0_i32_0 = arith.constant 0 : i32
    %c0_i32_1 = arith.constant 0 : i32
    %c0_i32_2 = arith.constant 0 : i32
    return %c0_i32, %c0_i32_0, %c0_i32_1 : i32, i32, i32
  }
  func.func @transform_2(%arg0: i32) -> (i32, i32, i32) {
    %c0_i32 = arith.constant 0 : i32
    %c0_i32_0 = arith.constant 0 : i32
    %c0_i32_1 = arith.constant 0 : i32
    %c0_i32_2 = arith.constant 0 : i32
    return %c0_i32, %c0_i32_0, %c0_i32_1 : i32, i32, i32
  }
  func.func @transform_3(%arg0: i32) -> (i32, i32, i32, i32) {
    %c0_i32 = arith.constant 0 : i32
    %c0_i32_0 = arith.constant 0 : i32
    %c0_i32_1 = arith.constant 0 : i32
    %c0_i32_2 = arith.constant 0 : i32
    %c0_i32_3 = arith.constant 0 : i32
    return %c0_i32, %c0_i32_0, %c0_i32_1, %c0_i32_2 : i32, i32, i32, i32
  }
  func.func @transform_4(%arg0: i32) -> (i32, i32, i32) {
    %c0_i32 = arith.constant 0 : i32
    %c0_i32_0 = arith.constant 0 : i32
    %c0_i32_1 = arith.constant 0 : i32
    %c0_i32_2 = arith.constant 0 : i32
    return %c0_i32, %c0_i32_0, %c0_i32_1 : i32, i32, i32
  }
  func.func @transform_5(%arg0: i32) -> (i32, i32, i32, i32) {
    %c0_i32 = arith.constant 0 : i32
    %c0_i32_0 = arith.constant 0 : i32
    %c0_i32_1 = arith.constant 0 : i32
    %c0_i32_2 = arith.constant 0 : i32
    return %arg0, %c0_i32, %c0_i32_0, %c0_i32_1 : i32, i32, i32, i32
  }
}

</mosaic_0001>

<bundles_post_ra>
// kernel: tpu_custom_call.1
= control target key start
LH: loop header
LB: loop body
LE: loop exit
PB: predicated region body
PF: predicated region fallthrough
CT: control target
= control target key end

     0   :  { %vm361_vm0 = vcmask 1043456   ;;  %vm264_vm1 = vcmask 64512   ;;  %vm4088_vm2 = vcmask 1045504   ;;  %vm21_vm3 = vcmask 27648   ;;  %s14235_s27 = smov 8   ;;  %s14236_s28 = smov 4   ;;  %s18445_s1 = inlined_call_operand.vmem [shape: bf16[2,8,4], index: 1, kind: input, shape index: {}]   ;;  %s18446_s0 = inlined_call_operand.vmem [shape: f32[2,16,16,8], index: 0, kind: input, shape index: {}]   ;;  %s18447_s3 = inlined_call_operand.vmem [shape: bf16[2,3,12,8], index: 3, kind: input, shape index: {}]   ;;  %s18448_s2 = inlined_call_operand.vmem [shape: f32[2,1,4], index: 2, kind: input, shape index: {}]   ;;  %s18449_s4 = inlined_call_operand.vmem [shape: f32[2,1,8], index: 4, kind: input, shape index: {}]   ;;  %s18450_s5 = inlined_call_operand.vmem [shape: f32[2,16,16,8], index: 5, kind: output, shape index: {}]  }
   0x1   :  { %v151_v0 = vld [vmem:[%s18445_s1] sm:$0xf]  ;;  %v163_v2 = vld [vmem:[%s18446_s0 + $0x8] sm:$0xff]  ;;  %v164_v5 = vld [vmem:[%s18446_s0 + $0x10] sm:$0xff]  ;;  %vm3216_vm4 = vcmask 31744   ;;  %vm4023_vm5 = vcmask 97280  }
   0x2   :  { %v162_v1 = vld [vmem:[%s18446_s0] sm:$0xff]  ;;  %13635 = vmatprep.subr.msk.bf16.mxu1 %vm361_vm0, %v151_v0  ;;  %v363_v3 = vsel %vm361_vm0, %v151_v0, 0  ;;  %v165_v6 = vld [vmem:[%s18446_s0 + $0x18] sm:$0xff]  ;;  %v167_v9 = vld [vmem:[%s18446_s0 + $0x28] sm:$0xff]  ;;  %vm3697_vm6 = vsmask.f32 256 }
   0x3   :  { %v226_v4 = vpack.c.bf16 %v163_v2, %v162_v1  ;;  %v166_v7 = vld [vmem:[%s18446_s0 + $0x20] sm:$0xff]  ;;  %12852 = vmatpush3.bf16.msra.mxu1 %v363_v3  ;;  %v227_v8 = vpack.c.bf16 %v165_v6, %v164_v5  ;;  %v168_v11 = vld [vmem:[%s18446_s0 + $0x30] sm:$0xff]  ;;  %v169_v12 = vld [vmem:[%s18446_s0 + $0x38] sm:$0xff]  ;;  %vm4774_vm7 = vsmask.f32 7424 }
   0x4   :  { %v228_v10 = vpack.c.bf16 %v167_v9, %v166_v7  ;;  %v170_v13 = vld [vmem:[%s18446_s0 + $0x40] sm:$0xff]  ;;  %v171_v14 = vld [vmem:[%s18446_s0 + $0x48] sm:$0xff]  ;;  %v229_v15 = vpack.c.bf16 %v169_v12, %v168_v11  ;;  %v172_v17 = vld [vmem:[%s18446_s0 + $0x50] sm:$0xff] }
   0x5   :  { %12853 = vmatprep.mubr.msk.bf16.mxu1 %vm264_vm1, %v226_v4  ;;  %v230_v16 = vpack.c.bf16 %v171_v14, %v170_v13  ;;  %v173_v18 = vld [vmem:[%s18446_s0 + $0x58] sm:$0xff]  ;;  %v174_v19 = vld [vmem:[%s18446_s0 + $0x60] sm:$0xff]  ;;  %v175_v20 = vld [vmem:[%s18446_s0 + $0x68] sm:$0xff] }
   0x6   :  { %12854 = vmatmul.mubr.msk.bf16.vlgmr.msra.gmra.mrb[0].mxu1 %vm264_vm1, %v227_v8  ;;  %v231_v21 = vpack.c.bf16 %v173_v18, %v172_v17  ;;  %v232_v22 = vpack.c.bf16 %v175_v20, %v174_v19  ;;  %v176_v23 = vld [vmem:[%s18446_s0 + $0x70] sm:$0xff]  ;;  %v177_v24 = vld [vmem:[%s18446_s0 + $0x78] sm:$0xff]  ;;  %v178_v25 = vld [vmem:[%s18446_s0 + $0x80] sm:$0xff] }
   0x7   :  { %12857 = vmatprep.mubr.msk.bf16.mxu1 %vm264_vm1, %v228_v10  ;;  %v179_v26 = vld [vmem:[%s18446_s0 + $0x88] sm:$0xff]  ;;  %v233_v27 = vpack.c.bf16 %v177_v24, %v176_v23  ;;  %v180_v29 = vld [vmem:[%s18446_s0 + $0x90] sm:$0xff]  ;;  %v181_v30 = vld [vmem:[%s18446_s0 + $0x98] sm:$0xff] }
   0x8   :  { %v234_v28 = vpack.c.bf16 %v179_v26, %v178_v25  ;;  %v182_v31 = vld [vmem:[%s18446_s0 + $0xa0] sm:$0xff]  ;;  %v183_v32 = vld [vmem:[%s18446_s0 + $0xa8] sm:$0xff]  ;;  %v235_v33 = vpack.c.bf16 %v181_v30, %v180_v29  ;;  %v184_v35 = vld [vmem:[%s18446_s0 + $0xb0] sm:$0xff] }
   0x9   :  { %v236_v34 = vpack.c.bf16 %v183_v32, %v182_v31  ;;  %v185_v36 = vld [vmem:[%s18446_s0 + $0xb8] sm:$0xff]  ;;  %v186_v37 = vld [vmem:[%s18446_s0 + $0xc0] sm:$0xff]  ;;  %v187_v38 = vld [vmem:[%s18446_s0 + $0xc8] sm:$0xff] }
   0xa   :  { %v237_v39 = vpack.c.bf16 %v185_v36, %v184_v35  ;;  %v238_v40 = vpack.c.bf16 %v187_v38, %v186_v37  ;;  %v188_v41 = vld [vmem:[%s18446_s0 + $0xd0] sm:$0xff]  ;;  %v189_v42 = vld [vmem:[%s18446_s0 + $0xd8] sm:$0xff]  ;;  %v190_v43 = vld [vmem:[%s18446_s0 + $0xe0] sm:$0xff]  ;;  %v14234_v36 = vmov 0  }
   0xb   :  { %v191_v44 = vld [vmem:[%s18446_s0 + $0xe8] sm:$0xff]  ;;  %v239_v45 = vpack.c.bf16 %v189_v42, %v188_v41  ;;  %v192_v47 = vld [vmem:[%s18446_s0 + $0xf0] sm:$0xff]  ;;  %v193_v48 = vld [vmem:[%s18446_s0 + $0xf8] sm:$0xff]  ;;  %35 = vst.msk [vmem:[#allocation2 + $0x15c] sm:$0xf] %vm21_vm3, %v14234_v36 }
   0xc   :  { %v240_v46 = vpack.c.bf16 %v191_v44, %v190_v43  ;;  %v194_v49 = vld [vmem:[%s18446_s0 + $0x100] sm:$0xff]  ;;  %v195_v50 = vld [vmem:[%s18446_s0 + $0x108] sm:$0xff]  ;;  %v241_v51 = vpack.c.bf16 %v193_v48, %v192_v47  ;;  %v196_v53 = vld [vmem:[%s18446_s0 + $0x110] sm:$0xff]  ;;  %36 = vst.msk [vmem:[#allocation2 + $0x160] sm:$0xf] %vm21_vm3, %v14234_v36 }
   0xd   :  { %v242_v52 = vpack.c.bf16 %v195_v50, %v194_v49  ;;  %v197_v54 = vld [vmem:[%s18446_s0 + $0x118] sm:$0xff]  ;;  %v198_v55 = vld [vmem:[%s18446_s0 + $0x120] sm:$0xff]  ;;  %v199_v56 = vld [vmem:[%s18446_s0 + $0x128] sm:$0xff]  ;;  %22 = vst.msk [vmem:[#allocation2] sm:$0xf] %vm21_vm3, %v14234_v36 }
   0xe   :  { %12858 = vmatmul.mubr.msk.bf16.gmra.mrb[4].mxu1 %vm264_vm1, %v229_v15  ;;  %v243_v57 = vpack.c.bf16 %v197_v54, %v196_v53  ;;  %v244_v58 = vpack.c.bf16 %v199_v56, %v198_v55  ;;  %v200_v59 = vld [vmem:[%s18446_s0 + $0x130] sm:$0xff]  ;;  %v201_v60 = vld [vmem:[%s18446_s0 + $0x138] sm:$0xff]  ;;  %v202_v61 = vld [vmem:[%s18446_s0 + $0x140] sm:$0xff]  ;;  %23 = vst.msk [vmem:[#allocation2 + $0x4] sm:$0xf] %vm21_vm3, %v14234_v36 }
   0xf   :  { %12861 = vmatprep.mubr.msk.bf16.mxu1 %vm264_vm1, %v230_v16  ;;  %v203_v62 = vld [vmem:[%s18446_s0 + $0x148] sm:$0xff]  ;;  %v245_v63 = vpack.c.bf16 %v201_v60, %v200_v59  ;;  %v204_v1 = vld [vmem:[%s18446_s0 + $0x150] sm:$0xff]  ;;  %v205_v2 = vld [vmem:[%s18446_s0 + $0x158] sm:$0xff]  ;;  %24 = vst.msk [vmem:[#allocation2 + $0x8] sm:$0xf] %vm21_vm3, %v14234_v36 }
  0x10   :  { %v246_v0 = vpack.c.bf16 %v203_v62, %v202_v61  ;;  %v206_v3 = vld [vmem:[%s18446_s0 + $0x160] sm:$0xff]  ;;  %v207_v4 = vld [vmem:[%s18446_s0 + $0x168] sm:$0xff]  ;;  %v247_v5 = vpack.c.bf16 %v205_v2, %v204_v1  ;;  %v208_v7 = vld [vmem:[%s18446_s0 + $0x170] sm:$0xff]  ;;  %25 = vst.msk [vmem:[#allocation2 + $0xc] sm:$0xf] %vm21_vm3, %v14234_v36 }
  0x11   :  { %v248_v6 = vpack.c.bf16 %v207_v4, %v206_v3  ;;  %v209_v8 = vld [vmem:[%s18446_s0 + $0x178] sm:$0xff]  ;;  %v210_v9 = vld [vmem:[%s18446_s0 + $0x180] sm:$0xff]  ;;  %v211_v10 = vld [vmem:[%s18446_s0 + $0x188] sm:$0xff]  ;;  %26 = vst.msk [vmem:[#allocation2 + $0x10] sm:$0xf] %vm21_vm3, %v14234_v36 }
  0x12   :  { %v249_v11 = vpack.c.bf16 %v209_v8, %v208_v7  ;;  %v250_v12 = vpack.c.bf16 %v211_v10, %v210_v9  ;;  %v212_v13 = vld [vmem:[%s18446_s0 + $0x190] sm:$0xff]  ;;  %v213_v14 = vld [vmem:[%s18446_s0 + $0x198] sm:$0xff]  ;;  %v214_v15 = vld [vmem:[%s18446_s0 + $0x1a0] sm:$0xff]  ;;  %27 = vst.msk [vmem:[#allocation2 + $0x168] sm:$0xf] %vm21_vm3, %v14234_v36 }
  0x13   :  { %v215_v16 = vld [vmem:[%s18446_s0 + $0x1a8] sm:$0xff]  ;;  %v251_v17 = vpack.c.bf16 %v213_v14, %v212_v13  ;;  %v216_v19 = vld [vmem:[%s18446_s0 + $0x1b0] sm:$0xff]  ;;  %v217_v20 = vld [vmem:[%s18446_s0 + $0x1b8] sm:$0xff]  ;;  %28 = vst.msk [vmem:[#allocation2 + $0x16c] sm:$0xf] %vm21_vm3, %v14234_v36 }
  0x14   :  { %v252_v18 = vpack.c.bf16 %v215_v16, %v214_v15  ;;  %v253_v23 = vpack.c.bf16 %v217_v20, %v216_v19  ;;  %v220_v25 = vld [vmem:[%s18446_s0 + $0x1d0] sm:$0xff]  ;;  %v221_v26 = vld [vmem:[%s18446_s0 + $0x1d8] sm:$0xff]  ;;  %29 = vst.msk [vmem:[#allocation2 + $0x170] sm:$0xf] %vm21_vm3, %v14234_v36  ;;  %30 = vst.msk [vmem:[#allocation2 + $0x174] sm:$0xf] %vm21_vm3, %v14234_v36 }
  0x15   :  { %v255_v29 = vpack.c.bf16 %v221_v26, %v220_v25  ;;  %v224_v31 = vld [vmem:[%s18446_s0 + $0x1f0] sm:$0xff]  ;;  %v225_v32 = vld [vmem:[%s18446_s0 + $0x1f8] sm:$0xff]  ;;  %31 = vst.msk [vmem:[#allocation2 + $0x178] sm:$0xf] %vm21_vm3, %v14234_v36  ;;  %33 = vst.msk [vmem:[#allocation2 + $0x154] sm:$0xf] %vm21_vm3, %v14234_v36 }
  0x16   :  { %12862 = vmatmul.mubr.msk.bf16.gmra.mrb[8].mxu1 %vm264_vm1, %v231_v21  ;;  %v218_v21 = vld [vmem:[%s18446_s0 + $0x1c0] sm:$0xff]  ;;  %v257_v35 = vpack.c.bf16 %v225_v32, %v224_v31  ;;  %34 = vst.msk [vmem:[#allocation2 + $0x158] sm:$0xf] %vm21_vm3, %v14234_v36  ;;  %37 = vst.msk [vmem:[#allocation2 + $0x164] sm:$0xf] %vm21_vm3, %v14234_v36 }
  0x17   :  { %12865 = vmatprep.mubr.msk.bf16.mxu1 %vm264_vm1, %v232_v22  ;;  %v219_v22 = vld [vmem:[%s18446_s0 + $0x1c8] sm:$0xff]  ;;  %38 = vst.msk [vmem:[#allocation2 + $0x2bc] sm:$0xf] %vm21_vm3, %v14234_v36  ;;  %39 = vst.msk [vmem:[#allocation2 + $0x2c0] sm:$0xf] %vm21_vm3, %v14234_v36 }
  0x18   :  { %v254_v24 = vpack.c.bf16 %v219_v22, %v218_v21  ;;  %40 = vst.msk [vmem:[#allocation2 + $0x2c4] sm:$0xf] %vm21_vm3, %v14234_v36  ;;  %41 = vst.msk [vmem:[#allocation2 + $0x2c8] sm:$0xf] %vm21_vm3, %v14234_v36  ;;  %v14760_v37 = vld [vmem:[%s18448_s2] ss:$0 sm:$0xff] }
  0x19   :  { %42 = vst.msk [vmem:[#allocation2 + $0x2cc] sm:$0xf] %vm21_vm3, %v14234_v36  ;;  %45 = vst.msk [vmem:[#allocation2 + $0x14] sm:$0xf] %vm21_vm3, %v14234_v36 }
  0x1a   :  { %46 = vst.msk [vmem:[#allocation2 + $0x18] sm:$0xf] %vm21_vm3, %v14234_v36  ;;  %47 = vst.msk [vmem:[#allocation2 + $0x28] sm:$0xf] %vm21_vm3, %v14234_v36 }
  0x1b   :  { %48 = vst.msk [vmem:[#allocation2 + $0x2c] sm:$0xf] %vm21_vm3, %v14234_v36  ;;  %49 = vst.msk [vmem:[#allocation2 + $0x3c] sm:$0xf] %vm21_vm3, %v14234_v36 }
  0x1c   :  { %50 = vst.msk [vmem:[#allocation2 + $0x40] sm:$0xf] %vm21_vm3, %v14234_v36  ;;  %51 = vst.msk [vmem:[#allocation2 + $0x50] sm:$0xf] %vm21_vm3, %v14234_v36 }
  0x1d   :  { %52 = vst.msk [vmem:[#allocation2 + $0x54] sm:$0xf] %vm21_vm3, %v14234_v36  ;;  %53 = vst.msk [vmem:[#allocation2 + $0x64] sm:$0xf] %vm21_vm3, %v14234_v36 }
  0x1e   :  { %12866 = vmatmul.mubr.msk.bf16.gmra.mrb[12].mxu1 %vm264_vm1, %v233_v27  ;;  %v222_v27 = vld [vmem:[%s18446_s0 + $0x1e0] sm:$0xff]  ;;  %54 = vst.msk [vmem:[#allocation2 + $0x68] sm:$0xf] %vm21_vm3, %v14234_v36  ;;  %55 = vst.msk [vmem:[#allocation2 + $0x78] sm:$0xf] %vm21_vm3, %v14234_v36 }
  0x1f   :  { %12869 = vmatprep.mubr.msk.bf16.mxu1 %vm264_vm1, %v234_v28  ;;  %v223_v28 = vld [vmem:[%s18446_s0 + $0x1e8] sm:$0xff]  ;;  %56 = vst.msk [vmem:[#allocation2 + $0x7c] sm:$0xf] %vm21_vm3, %v14234_v36  ;;  %57 = vst.msk [vmem:[#allocation2 + $0x8c] sm:$0xf] %vm21_vm3, %v14234_v36 }
  0x20   :  { %v256_v30 = vpack.c.bf16 %v223_v28, %v222_v27  ;;  %58 = vst.msk [vmem:[#allocation2 + $0x90] sm:$0xf] %vm21_vm3, %v14234_v36  ;;  %59 = vst.msk [vmem:[#allocation2 + $0xa0] sm:$0xf] %vm21_vm3, %v14234_v36 }
  0x21   :  { %60 = vst.msk [vmem:[#allocation2 + $0xa4] sm:$0xf] %vm21_vm3, %v14234_v36  ;;  %61 = vst.msk [vmem:[#allocation2 + $0xb4] sm:$0xf] %vm21_vm3, %v14234_v36 }
  0x22   :  { %62 = vst.msk [vmem:[#allocation2 + $0xb8] sm:$0xf] %vm21_vm3, %v14234_v36  ;;  %63 = vst.msk [vmem:[#allocation2 + $0xc8] sm:$0xf] %vm21_vm3, %v14234_v36 }
  0x23   :  { %64 = vst.msk [vmem:[#allocation2 + $0xcc] sm:$0xf] %vm21_vm3, %v14234_v36  ;;  %65 = vst.msk [vmem:[#allocation2 + $0xdc] sm:$0xf] %vm21_vm3, %v14234_v36 }
  0x24   :  { %66 = vst.msk [vmem:[#allocation2 + $0xe0] sm:$0xf] %vm21_vm3, %v14234_v36  ;;  %67 = vst.msk [vmem:[#allocation2 + $0xf0] sm:$0xf] %vm21_vm3, %v14234_v36 }
  0x25   :  { %68 = vst.msk [vmem:[#allocation2 + $0xf4] sm:$0xf] %vm21_vm3, %v14234_v36  ;;  %69 = vst.msk [vmem:[#allocation2 + $0x104] sm:$0xf] %vm21_vm3, %v14234_v36 }
  0x26   :  { %12870 = vmatmul.mubr.msk.bf16.gmra.mrb[16].mxu1 %vm264_vm1, %v235_v33  ;;  %v13646_v33 = vld [vmem:[%s18447_s3 + $0x8] sm:$0x3f]   ;;  %70 = vst.msk [vmem:[#allocation2 + $0x108] sm:$0xf] %vm21_vm3, %v14234_v36  ;;  %71 = vst.msk [vmem:[#allocation2 + $0x118] sm:$0xf] %vm21_vm3, %v14234_v36 }
  0x27   :  { %12873 = vmatprep.mubr.msk.bf16.mxu1 %vm264_vm1, %v236_v34  ;;  %13636 = vmatprep.subr.msk.bf16.mxu1 %vm4088_vm2, %v13646_v33  ;;  %v4090_v34 = vsel %vm4088_vm2, %v13646_v33, 0  ;;  %72 = vst.msk [vmem:[#allocation2 + $0x11c] sm:$0xf] %vm21_vm3, %v14234_v36  ;;  %73 = vst.msk [vmem:[#allocation2 + $0x12c] sm:$0xf] %vm21_vm3, %v14234_v36 }
  0x28   :  { %12918 = vmatpush3.bf16.msra.mxu1 %v4090_v34  ;;  %74 = vst.msk [vmem:[#allocation2 + $0x130] sm:$0xf] %vm21_vm3, %v14234_v36  ;;  %75 = vst.msk [vmem:[#allocation2 + $0x140] sm:$0xf] %vm21_vm3, %v14234_v36 }
  0x29   :  { %76 = vst.msk [vmem:[#allocation2 + $0x144] sm:$0xf] %vm21_vm3, %v14234_v36  ;;  %81 = vst.msk [vmem:[#allocation2 + $0x17c] sm:$0xf] %vm21_vm3, %v14234_v36 }
  0x2a   :  { %82 = vst.msk [vmem:[#allocation2 + $0x180] sm:$0xf] %vm21_vm3, %v14234_v36  ;;  %83 = vst.msk [vmem:[#allocation2 + $0x190] sm:$0xf] %vm21_vm3, %v14234_v36 }
  0x2b   :  { %84 = vst.msk [vmem:[#allocation2 + $0x194] sm:$0xf] %vm21_vm3, %v14234_v36  ;;  %85 = vst.msk [vmem:[#allocation2 + $0x1a4] sm:$0xf] %vm21_vm3, %v14234_v36 }
  0x2c   :  { %86 = vst.msk [vmem:[#allocation2 + $0x1a8] sm:$0xf] %vm21_vm3, %v14234_v36  ;;  %87 = vst.msk [vmem:[#allocation2 + $0x1b8] sm:$0xf] %vm21_vm3, %v14234_v36 }
  0x2d   :  { %88 = vst.msk [vmem:[#allocation2 + $0x1bc] sm:$0xf] %vm21_vm3, %v14234_v36  ;;  %89 = vst.msk [vmem:[#allocation2 + $0x1cc] sm:$0xf] %vm21_vm3, %v14234_v36 }
  0x2e   :  { %12874 = vmatmul.mubr.msk.bf16.gmra.mrb[20].mxu1 %vm264_vm1, %v237_v39  ;;  %90 = vst.msk [vmem:[#allocation2 + $0x1d0] sm:$0xf] %vm21_vm3, %v14234_v36  ;;  %91 = vst.msk [vmem:[#allocation2 + $0x1e0] sm:$0xf] %vm21_vm3, %v14234_v36 }
  0x2f   :  { %12877 = vmatprep.mubr.msk.bf16.mxu1 %vm264_vm1, %v238_v40  ;;  %92 = vst.msk [vmem:[#allocation2 + $0x1e4] sm:$0xf] %vm21_vm3, %v14234_v36  ;;  %93 = vst.msk [vmem:[#allocation2 + $0x1f4] sm:$0xf] %vm21_vm3, %v14234_v36 }
  0x30   :  { %94 = vst.msk [vmem:[#allocation2 + $0x1f8] sm:$0xf] %vm21_vm3, %v14234_v36  ;;  %95 = vst.msk [vmem:[#allocation2 + $0x208] sm:$0xf] %vm21_vm3, %v14234_v36 }
  0x31   :  { %96 = vst.msk [vmem:[#allocation2 + $0x20c] sm:$0xf] %vm21_vm3, %v14234_v36  ;;  %97 = vst.msk [vmem:[#allocation2 + $0x21c] sm:$0xf] %vm21_vm3, %v14234_v36 }
  0x32   :  { %98 = vst.msk [vmem:[#allocation2 + $0x220] sm:$0xf] %vm21_vm3, %v14234_v36  ;;  %99 = vst.msk [vmem:[#allocation2 + $0x230] sm:$0xf] %vm21_vm3, %v14234_v36 }
  0x33   :  { %100 = vst.msk [vmem:[#allocation2 + $0x234] sm:$0xf] %vm21_vm3, %v14234_v36  ;;  %101 = vst.msk [vmem:[#allocation2 + $0x244] sm:$0xf] %vm21_vm3, %v14234_v36 }
  0x34   :  { %102 = vst.msk [vmem:[#allocation2 + $0x248] sm:$0xf] %vm21_vm3, %v14234_v36  ;;  %103 = vst.msk [vmem:[#allocation2 + $0x258] sm:$0xf] %vm21_vm3, %v14234_v36 }
  0x35   :  { %104 = vst.msk [vmem:[#allocation2 + $0x25c] sm:$0xf] %vm21_vm3, %v14234_v36  ;;  %105 = vst.msk [vmem:[#allocation2 + $0x26c] sm:$0xf] %vm21_vm3, %v14234_v36 }
  0x36   :  { %12878 = vmatmul.mubr.msk.bf16.gmra.mrb[24].mxu1 %vm264_vm1, %v239_v45  ;;  %106 = vst.msk [vmem:[#allocation2 + $0x270] sm:$0xf] %vm21_vm3, %v14234_v36  ;;  %107 = vst.msk [vmem:[#allocation2 + $0x280] sm:$0xf] %vm21_vm3, %v14234_v36 }
  0x37   :  { %12881 = vmatprep.mubr.msk.bf16.mxu1 %vm264_vm1, %v240_v46  ;;  %108 = vst.msk [vmem:[#allocation2 + $0x284] sm:$0xf] %vm21_vm3, %v14234_v36  ;;  %109 = vst.msk [vmem:[#allocation2 + $0x294] sm:$0xf] %vm21_vm3, %v14234_v36 }
  0x38   :  { %110 = vst.msk [vmem:[#allocation2 + $0x298] sm:$0xf] %vm21_vm3, %v14234_v36  ;;  %111 = vst.msk [vmem:[#allocation2 + $0x2a8] sm:$0xf] %vm21_vm3, %v14234_v36 }
  0x39   :  { %112 = vst.msk [vmem:[#allocation2 + $0x2ac] sm:$0xf] %vm21_vm3, %v14234_v36  ;;  %116 = vst.msk [vmem:[#allocation2 + $0x24] sm:$0xf] %vm21_vm3, %v14234_v36 }
  0x3a   :  { %117 = vst.msk [vmem:[#allocation2 + $0x38] sm:$0xf] %vm21_vm3, %v14234_v36  ;;  %118 = vst.msk [vmem:[#allocation2 + $0x4c] sm:$0xf] %vm21_vm3, %v14234_v36 }
  0x3b   :  { %119 = vst.msk [vmem:[#allocation2 + $0x60] sm:$0xf] %vm21_vm3, %v14234_v36  ;;  %120 = vst.msk [vmem:[#allocation2 + $0x74] sm:$0xf] %vm21_vm3, %v14234_v36 }
  0x3c   :  { %121 = vst.msk [vmem:[#allocation2 + $0x88] sm:$0xf] %vm21_vm3, %v14234_v36  ;;  %122 = vst.msk [vmem:[#allocation2 + $0x9c] sm:$0xf] %vm21_vm3, %v14234_v36 }
  0x3d   :  { %123 = vst.msk [vmem:[#allocation2 + $0xb0] sm:$0xf] %vm21_vm3, %v14234_v36  ;;  %124 = vst.msk [vmem:[#allocation2 + $0xc4] sm:$0xf] %vm21_vm3, %v14234_v36 }
  0x3e   :  { %12882 = vmatmul.mubr.msk.bf16.gmra.mrb[28].mxu1 %vm264_vm1, %v241_v51  ;;  %125 = vst.msk [vmem:[#allocation2 + $0xd8] sm:$0xf] %vm21_vm3, %v14234_v36  ;;  %126 = vst.msk [vmem:[#allocation2 + $0xec] sm:$0xf] %vm21_vm3, %v14234_v36 }
  0x3f   :  { %12885 = vmatprep.mubr.msk.bf16.mxu1 %vm264_vm1, %v242_v52  ;;  %127 = vst.msk [vmem:[#allocation2 + $0x100] sm:$0xf] %vm21_vm3, %v14234_v36  ;;  %128 = vst.msk [vmem:[#allocation2 + $0x114] sm:$0xf] %vm21_vm3, %v14234_v36 }
  0x40   :  { %129 = vst.msk [vmem:[#allocation2 + $0x128] sm:$0xf] %vm21_vm3, %v14234_v36  ;;  %130 = vst.msk [vmem:[#allocation2 + $0x13c] sm:$0xf] %vm21_vm3, %v14234_v36 }
  0x41   :  { %131 = vst.msk [vmem:[#allocation2 + $0x150] sm:$0xf] %vm21_vm3, %v14234_v36  ;;  %134 = vst.msk [vmem:[#allocation2 + $0x18c] sm:$0xf] %vm21_vm3, %v14234_v36 }
  0x42   :  { %135 = vst.msk [vmem:[#allocation2 + $0x1a0] sm:$0xf] %vm21_vm3, %v14234_v36  ;;  %136 = vst.msk [vmem:[#allocation2 + $0x1b4] sm:$0xf] %vm21_vm3, %v14234_v36 }
  0x43   :  { %137 = vst.msk [vmem:[#allocation2 + $0x1c8] sm:$0xf] %vm21_vm3, %v14234_v36  ;;  %138 = vst.msk [vmem:[#allocation2 + $0x1dc] sm:$0xf] %vm21_vm3, %v14234_v36 }
  0x44   :  { %139 = vst.msk [vmem:[#allocation2 + $0x1f0] sm:$0xf] %vm21_vm3, %v14234_v36  ;;  %140 = vst.msk [vmem:[#allocation2 + $0x204] sm:$0xf] %vm21_vm3, %v14234_v36 }
  0x45   :  { %141 = vst.msk [vmem:[#allocation2 + $0x218] sm:$0xf] %vm21_vm3, %v14234_v36  ;;  %142 = vst.msk [vmem:[#allocation2 + $0x22c] sm:$0xf] %vm21_vm3, %v14234_v36 }
  0x46   :  { %12886 = vmatmul.mubr.msk.bf16.gmra.mrb[32].mxu1 %vm264_vm1, %v243_v57  ;;  %143 = vst.msk [vmem:[#allocation2 + $0x240] sm:$0xf] %vm21_vm3, %v14234_v36  ;;  %144 = vst.msk [vmem:[#allocation2 + $0x254] sm:$0xf] %vm21_vm3, %v14234_v36 }
  0x47   :  { %12889 = vmatprep.mubr.msk.bf16.mxu1 %vm264_vm1, %v244_v58  ;;  %145 = vst.msk [vmem:[#allocation2 + $0x268] sm:$0xf] %vm21_vm3, %v14234_v36  ;;  %146 = vst.msk [vmem:[#allocation2 + $0x27c] sm:$0xf] %vm21_vm3, %v14234_v36 }
  0x48   :  { %147 = vst.msk [vmem:[#allocation2 + $0x290] sm:$0xf] %vm21_vm3, %v14234_v36  ;;  %148 = vst.msk [vmem:[#allocation2 + $0x2a4] sm:$0xf] %vm21_vm3, %v14234_v36 }
  0x49   :  { %149 = vst.msk [vmem:[#allocation2 + $0x2b8] sm:$0xf] %vm21_vm3, %v14234_v36  ;;  %43 = vst.msk [vmem:[#allocation2] sm:$0xf] %vm21_vm3, %v14234_v36 }
  0x4a   :  { %44 = vst.msk [vmem:[#allocation2 + $0x4] sm:$0xf] %vm21_vm3, %v14234_v36  ;;  %77 = vst.msk [vmem:[#allocation2 + $0x154] sm:$0xf] %vm21_vm3, %v14234_v36 }
  0x4b   :  { %78 = vst.msk [vmem:[#allocation2 + $0x158] sm:$0xf] %vm21_vm3, %v14234_v36  ;;  %79 = vst.msk [vmem:[#allocation2 + $0x168] sm:$0xf] %vm21_vm3, %v14234_v36 }
  0x4c   :  { %80 = vst.msk [vmem:[#allocation2 + $0x16c] sm:$0xf] %vm21_vm3, %v14234_v36  ;;  %113 = vst.msk [vmem:[#allocation2 + $0x2bc] sm:$0xf] %vm21_vm3, %v14234_v36 }
  0x4d   :  { %114 = vst.msk [vmem:[#allocation2 + $0x2c0] sm:$0xf] %vm21_vm3, %v14234_v36  ;;  %115 = vst.msk [vmem:[#allocation2 + $0x10] sm:$0xf] %vm21_vm3, %v14234_v36 }
  0x4e   :  { %12890 = vmatmul.mubr.msk.bf16.gmra.mrb[36].mxu1 %vm264_vm1, %v245_v63  ;;  %132 = vst.msk [vmem:[#allocation2 + $0x164] sm:$0xf] %vm21_vm3, %v14234_v36  ;;  %133 = vst.msk [vmem:[#allocation2 + $0x178] sm:$0xf] %vm21_vm3, %v14234_v36 }
  0x4f   :  { %12893 = vmatprep.mubr.msk.bf16.mxu1 %vm264_vm1, %v246_v0  ;;  %150 = vst.msk [vmem:[#allocation2 + $0x2cc] sm:$0xf] %vm21_vm3, %v14234_v36 }
  0x56   :  { %12894 = vmatmul.mubr.msk.bf16.gmra.mrb[40].mxu1 %vm264_vm1, %v247_v5 }
  0x57   :  { %12897 = vmatprep.mubr.msk.bf16.mxu1 %vm264_vm1, %v248_v6 }
  0x5e   :  { %12898 = vmatmul.mubr.msk.bf16.gmra.mrb[44].mxu1 %vm264_vm1, %v249_v11 }
  0x5f   :  { %12901 = vmatprep.mubr.msk.bf16.mxu1 %vm264_vm1, %v250_v12 }
  0x66   :  { %12902 = vmatmul.mubr.msk.bf16.gmra.mrb[48].mxu1 %vm264_vm1, %v251_v17 }
  0x67   :  { %12905 = vmatprep.mubr.msk.bf16.mxu1 %vm264_vm1, %v252_v18 }
  0x6e   :  { %12906 = vmatmul.mubr.msk.bf16.gmra.mrb[52].mxu1 %vm264_vm1, %v253_v23 }
  0x6f   :  { %12909 = vmatprep.mubr.msk.bf16.mxu1 %vm264_vm1, %v254_v24 }
  0x76   :  { %12910 = vmatmul.mubr.msk.bf16.gmra.mrb[56].mxu1 %vm264_vm1, %v255_v29 }
  0x77   :  { %12913 = vmatprep.mubr.msk.bf16.mxu1 %vm264_vm1, %v256_v30 }
  0x7e   :  { %12914 = vmatmul.mubr.msk.bf16.gmra.mrb[60].mxu1 %vm264_vm1, %v257_v35 }
  0xd9   :  { %v12855_v38 = vpop.f32.mrb[0].mxu1 }
  0xda   :  { %v408_v39 = vadd.f32 %v12855_v38, %v14760_v37  ;;  %v399_v40 = vpop.f32.mrb[1].mxu1 }
  0xdb   :  { %v400_v41 = vadd.f32 %v14760_v37, %v399_v40  ;;  %v12856_v42 = vpop.f32.mrb[2].mxu1 }
  0xdc   :  { %v656_v43 = vmul.f32 0.1, %v408_v39  ;;  %v411_v44 = vadd.f32 %v12856_v42, %v14760_v37  ;;  %v402_v45 = vpop.f32.mrb[3].mxu1 }
  0xdd   :  { %v654_v46 = vmul.f32 0.1, %v400_v41  ;;  %v403_v47 = vadd.f32 %v14760_v37, %v402_v45 }
  0xde   :  { %v720_v48 = vmax.f32 %v408_v39, %v656_v43  ;;  %v657_v49 = vmul.f32 0.1, %v411_v44 }
  0xdf   :  { %v718_v50 = vmax.f32 %v400_v41, %v654_v46  ;;  %v655_v51 = vmul.f32 0.1, %v403_v47 }
  0xe0   :  { %v12461_v52 = vpack.c.bf16 %v720_v48, %v720_v48  ;;  %v721_v53 = vmax.f32 %v411_v44, %v657_v49 }
  0xe1   :  { %v12459_v54 = vpack.c.bf16 %v718_v50, %v718_v50  ;;  %v719_v55 = vmax.f32 %v403_v47, %v655_v51  ;;  %v12859_v56 = vpop.f32.mrb[4].mxu1 }
  0xe2   :  { %1041 = vst.msk [vmem:[#allocation2 + $0x30] sm:$0xf] %vm21_vm3, %v12461_v52  ;;  %v12462_v57 = vpack.c.bf16 %v721_v53, %v721_v53  ;;  %v424_v58 = vadd.f32 %v12859_v56, %v14760_v37  ;;  %v415_v59 = vpop.f32.mrb[5].mxu1 }
  0xe3   :  { %1039 = vst.msk [vmem:[#allocation2 + $0x1c] sm:$0xf] %vm21_vm3, %v12459_v54  ;;  %v12460_v60 = vpack.c.bf16 %v719_v55, %v719_v55  ;;  %v416_v61 = vadd.f32 %v14760_v37, %v415_v59  ;;  %v12860_v62 = vpop.f32.mrb[6].mxu1  ;;  %v13714_v55 = vld [vmem:[%s18447_s3] sm:$0x3f]  }
  0xe4   :  { %1042 = vst.msk [vmem:[#allocation2 + $0x34] sm:$0xf] %vm21_vm3, %v12462_v57  ;;  %v660_v63 = vmul.f32 0.1, %v424_v58  ;;  %v427_v0 = vadd.f32 %v12860_v62, %v14760_v37  ;;  %v418_v1 = vpop.f32.mrb[7].mxu1  ;;  %13637 = vmatprep.subr.msk.bf16.mxu1 %vm4088_vm2, %v13714_v55 }
  0xe5   :  { %1040 = vst.msk [vmem:[#allocation2 + $0x20] sm:$0xf] %vm21_vm3, %v12460_v60  ;;  %v658_v2 = vmul.f32 0.1, %v416_v61  ;;  %v419_v3 = vadd.f32 %v14760_v37, %v418_v1 }
  0xe6   :  { %v724_v4 = vmax.f32 %v424_v58, %v660_v63  ;;  %v661_v5 = vmul.f32 0.1, %v427_v0 }
  0xe7   :  { %v722_v6 = vmax.f32 %v416_v61, %v658_v2  ;;  %v659_v7 = vmul.f32 0.1, %v419_v3 }
  0xe8   :  { %v12465_v8 = vpack.c.bf16 %v724_v4, %v724_v4  ;;  %v725_v9 = vmax.f32 %v427_v0, %v661_v5 }
  0xe9   :  { %v12463_v10 = vpack.c.bf16 %v722_v6, %v722_v6  ;;  %v723_v11 = vmax.f32 %v419_v3, %v659_v7  ;;  %v12863_v12 = vpop.f32.mrb[8].mxu1 }
  0xea   :  { %1045 = vst.msk [vmem:[#allocation2 + $0x58] sm:$0xf] %vm21_vm3, %v12465_v8  ;;  %v12466_v13 = vpack.c.bf16 %v725_v9, %v725_v9  ;;  %v440_v14 = vadd.f32 %v12863_v12, %v14760_v37  ;;  %v431_v15 = vpop.f32.mrb[9].mxu1 }
  0xeb   :  { %1043 = vst.msk [vmem:[#allocation2 + $0x44] sm:$0xf] %vm21_vm3, %v12463_v10  ;;  %v12464_v16 = vpack.c.bf16 %v723_v11, %v723_v11  ;;  %v432_v17 = vadd.f32 %v14760_v37, %v431_v15  ;;  %v12864_v18 = vpop.f32.mrb[10].mxu1  ;;  %v13647_v19 = vld [vmem:[#allocation2 + $0x30] sm:$0xff]  }
  0xec   :  { %1046 = vst.msk [vmem:[#allocation2 + $0x5c] sm:$0xf] %vm21_vm3, %v12466_v13  ;;  %v664_v20 = vmul.f32 0.1, %v440_v14  ;;  %v443_v21 = vadd.f32 %v12864_v18, %v14760_v37  ;;  %v434_v22 = vpop.f32.mrb[11].mxu1  ;;  %v13648_v23 = vld [vmem:[#allocation2 + $0x30] sm:$0xff]   ;;  %3026 = vrot.lane.b32.xlu1 %v13647_v19, %s14235_s27 }
  0xed   :  { %1044 = vst.msk [vmem:[#allocation2 + $0x48] sm:$0xf] %vm21_vm3, %v12464_v16  ;;  %v662_v24 = vmul.f32 0.1, %v432_v17  ;;  %v435_v25 = vadd.f32 %v14760_v37, %v434_v22  ;;  %2424 = vrot.lane.b32.xlu0 %v13648_v23, %s14236_s28  ;;  %v13649_v32 = vld [vmem:[#allocation2 + $0x1c] sm:$0xff]  }
  0xee   :  { %v728_v26 = vmax.f32 %v440_v14, %v664_v20  ;;  %v665_v27 = vmul.f32 0.1, %v443_v21 }
  0xef   :  { %v726_v28 = vmax.f32 %v432_v17, %v662_v24  ;;  %v663_v29 = vmul.f32 0.1, %v435_v25 }
  0xf0   :  { %v12469_v30 = vpack.c.bf16 %v728_v26, %v728_v26  ;;  %v729_v31 = vmax.f32 %v443_v21, %v665_v27 }
  0xf1   :  { %v12467_v33 = vpack.c.bf16 %v726_v28, %v726_v28  ;;  %v727_v34 = vmax.f32 %v435_v25, %v663_v29  ;;  %v12867_v35 = vpop.f32.mrb[12].mxu1  ;;  %2418 = vrot.lane.b32.xlu0 %v13649_v32, %s14236_s28 }
  0xf2   :  { %1049 = vst.msk [vmem:[#allocation2 + $0x80] sm:$0xf] %vm21_vm3, %v12469_v30  ;;  %v12470_v36 = vpack.c.bf16 %v729_v31, %v729_v31  ;;  %v456_v38 = vadd.f32 %v12867_v35, %v14760_v37  ;;  %v447_v39 = vpop.f32.mrb[13].mxu1 }
  0xf3   :  { %1047 = vst.msk [vmem:[#allocation2 + $0x6c] sm:$0xf] %vm21_vm3, %v12467_v33  ;;  %v12468_v40 = vpack.c.bf16 %v727_v34, %v727_v34  ;;  %v448_v41 = vadd.f32 %v14760_v37, %v447_v39  ;;  %v12868_v42 = vpop.f32.mrb[14].mxu1  ;;  %v13650_v43 = vld [vmem:[#allocation2 + $0x58] sm:$0xff]  }
  0xf4   :  { %1050 = vst.msk [vmem:[#allocation2 + $0x84] sm:$0xf] %vm21_vm3, %v12470_v36  ;;  %v668_v44 = vmul.f32 0.1, %v456_v38  ;;  %v459_v45 = vadd.f32 %v12868_v42, %v14760_v37  ;;  %v450_v46 = vpop.f32.mrb[15].mxu1  ;;  %v13651_v47 = vld [vmem:[#allocation2 + $0x58] sm:$0xff]   ;;  %2436 = vrot.lane.b32.xlu1 %v13650_v43, %s14236_s28 }
  0xf5   :  { %1048 = vst.msk [vmem:[#allocation2 + $0x70] sm:$0xf] %vm21_vm3, %v12468_v40  ;;  %v666_v48 = vmul.f32 0.1, %v448_v41  ;;  %v451_v49 = vadd.f32 %v14760_v37, %v450_v46  ;;  %3038 = vrot.lane.b32.xlu0 %v13651_v47, %s14235_s27  ;;  %v13652_v54 = vld [vmem:[#allocation2 + $0x44] sm:$0xff]  }
  0xf6   :  { %v732_v50 = vmax.f32 %v456_v38, %v668_v44  ;;  %v669_v51 = vmul.f32 0.1, %v459_v45  ;;  %v13653_v58 = vld [vmem:[#allocation2 + $0x44] sm:$0xff]  }
  0xf7   :  { %v730_v52 = vmax.f32 %v448_v41, %v666_v48  ;;  %v667_v53 = vmul.f32 0.1, %v451_v49 }
  0xf8   :  { %v12473_v56 = vpack.c.bf16 %v732_v50, %v732_v50  ;;  %v733_v57 = vmax.f32 %v459_v45, %v669_v51  ;;  %3032 = vrot.lane.b32.xlu1 %v13652_v54, %s14235_s27 }
  0xf9   :  { %v12471_v59 = vpack.c.bf16 %v730_v52, %v730_v52  ;;  %v731_v60 = vmax.f32 %v451_v49, %v667_v53  ;;  %v12871_v61 = vpop.f32.mrb[16].mxu1  ;;  %2430 = vrot.lane.b32.xlu0 %v13653_v58, %s14236_s28 }
  0xfa   :  { %1053 = vst.msk [vmem:[#allocation2 + $0xa8] sm:$0xf] %vm21_vm3, %v12473_v56  ;;  %v12474_v62 = vpack.c.bf16 %v733_v57, %v733_v57  ;;  %v472_v63 = vadd.f32 %v12871_v61, %v14760_v37  ;;  %v463_v0 = vpop.f32.mrb[17].mxu1 }
  0xfb   :  { %1051 = vst.msk [vmem:[#allocation2 + $0x94] sm:$0xf] %vm21_vm3, %v12471_v59  ;;  %v12472_v1 = vpack.c.bf16 %v731_v60, %v731_v60  ;;  %v464_v2 = vadd.f32 %v14760_v37, %v463_v0  ;;  %v12872_v3 = vpop.f32.mrb[18].mxu1  ;;  %v13654_v4 = vld [vmem:[#allocation2 + $0x80] sm:$0xff]  }
  0xfc   :  { %1054 = vst.msk [vmem:[#allocation2 + $0xac] sm:$0xf] %vm21_vm3, %v12474_v62  ;;  %v672_v5 = vmul.f32 0.1, %v472_v63  ;;  %v475_v6 = vadd.f32 %v12872_v3, %v14760_v37  ;;  %v466_v7 = vpop.f32.mrb[19].mxu1  ;;  %v13655_v8 = vld [vmem:[#allocation2 + $0x80] sm:$0xff]   ;;  %2448 = vrot.lane.b32.xlu1 %v13654_v4, %s14236_s28 }
  0xfd   :  { %1052 = vst.msk [vmem:[#allocation2 + $0x98] sm:$0xf] %vm21_vm3, %v12472_v1  ;;  %v670_v9 = vmul.f32 0.1, %v464_v2  ;;  %v467_v10 = vadd.f32 %v14760_v37, %v466_v7  ;;  %3050 = vrot.lane.b32.xlu0 %v13655_v8, %s14235_s27  ;;  %v13656_v15 = vld [vmem:[#allocation2 + $0x6c] sm:$0xff]  }
  0xfe   :  { %v736_v11 = vmax.f32 %v472_v63, %v672_v5  ;;  %v673_v12 = vmul.f32 0.1, %v475_v6  ;;  %v13657_v18 = vld [vmem:[#allocation2 + $0x6c] sm:$0xff]  }
  0xff   :  { %v734_v13 = vmax.f32 %v464_v2, %v670_v9  ;;  %v671_v14 = vmul.f32 0.1, %v467_v10 }
 0x100   :  { %v12477_v16 = vpack.c.bf16 %v736_v11, %v736_v11  ;;  %v737_v17 = vmax.f32 %v475_v6, %v673_v12  ;;  %3044 = vrot.lane.b32.xlu1 %v13656_v15, %s14235_s27 }
 0x101   :  { %v12475_v19 = vpack.c.bf16 %v734_v13, %v734_v13  ;;  %v735_v20 = vmax.f32 %v467_v10, %v671_v14  ;;  %v12875_v21 = vpop.f32.mrb[20].mxu1  ;;  %2442 = vrot.lane.b32.xlu0 %v13657_v18, %s14236_s28 }
 0x102   :  { %1057 = vst.msk [vmem:[#allocation2 + $0xd0] sm:$0xf] %vm21_vm3, %v12477_v16  ;;  %v12478_v22 = vpack.c.bf16 %v737_v17, %v737_v17  ;;  %v488_v23 = vadd.f32 %v12875_v21, %v14760_v37  ;;  %v479_v24 = vpop.f32.mrb[21].mxu1 }
 0x103   :  { %1055 = vst.msk [vmem:[#allocation2 + $0xbc] sm:$0xf] %vm21_vm3, %v12475_v19  ;;  %v12476_v25 = vpack.c.bf16 %v735_v20, %v735_v20  ;;  %v480_v26 = vadd.f32 %v14760_v37, %v479_v24  ;;  %v12876_v27 = vpop.f32.mrb[22].mxu1  ;;  %v13658_v28 = vld [vmem:[#allocation2 + $0xa8] sm:$0xff]  }
 0x104   :  { %1058 = vst.msk [vmem:[#allocation2 + $0xd4] sm:$0xf] %vm21_vm3, %v12478_v22  ;;  %v676_v29 = vmul.f32 0.1, %v488_v23  ;;  %v491_v30 = vadd.f32 %v12876_v27, %v14760_v37  ;;  %v482_v31 = vpop.f32.mrb[23].mxu1  ;;  %v13659_v32 = vld [vmem:[#allocation2 + $0xa8] sm:$0xff]   ;;  %2460 = vrot.lane.b32.xlu1 %v13658_v28, %s14236_s28 }
 0x105   :  { %1056 = vst.msk [vmem:[#allocation2 + $0xc0] sm:$0xf] %vm21_vm3, %v12476_v25  ;;  %v674_v33 = vmul.f32 0.1, %v480_v26  ;;  %v483_v34 = vadd.f32 %v14760_v37, %v482_v31  ;;  %3062 = vrot.lane.b32.xlu0 %v13659_v32, %s14235_s27  ;;  %v13660_v40 = vld [vmem:[#allocation2 + $0x94] sm:$0xff]  }
 0x106   :  { %v740_v35 = vmax.f32 %v488_v23, %v676_v29  ;;  %v677_v36 = vmul.f32 0.1, %v491_v30  ;;  %v13661_v43 = vld [vmem:[#allocation2 + $0x94] sm:$0xff]  }
 0x107   :  { %v738_v38 = vmax.f32 %v480_v26, %v674_v33  ;;  %v675_v39 = vmul.f32 0.1, %v483_v34 }
 0x108   :  { %v12481_v41 = vpack.c.bf16 %v740_v35, %v740_v35  ;;  %v741_v42 = vmax.f32 %v491_v30, %v677_v36  ;;  %3056 = vrot.lane.b32.xlu1 %v13660_v40, %s14235_s27 }
 0x109   :  { %v12479_v44 = vpack.c.bf16 %v738_v38, %v738_v38  ;;  %v739_v45 = vmax.f32 %v483_v34, %v675_v39  ;;  %v12879_v46 = vpop.f32.mrb[24].mxu1  ;;  %2454 = vrot.lane.b32.xlu0 %v13661_v43, %s14236_s28 }
 0x10a   :  { %1061 = vst.msk [vmem:[#allocation2 + $0xf8] sm:$0xf] %vm21_vm3, %v12481_v41  ;;  %v12482_v47 = vpack.c.bf16 %v741_v42, %v741_v42  ;;  %v504_v48 = vadd.f32 %v12879_v46, %v14760_v37  ;;  %v495_v49 = vpop.f32.mrb[25].mxu1 }
 0x10b   :  { %1059 = vst.msk [vmem:[#allocation2 + $0xe4] sm:$0xf] %vm21_vm3, %v12479_v44  ;;  %v12480_v50 = vpack.c.bf16 %v739_v45, %v739_v45  ;;  %v496_v51 = vadd.f32 %v14760_v37, %v495_v49  ;;  %v12880_v52 = vpop.f32.mrb[26].mxu1  ;;  %v13662_v53 = vld [vmem:[#allocation2 + $0xd0] sm:$0xff]  }
 0x10c   :  { %1062 = vst.msk [vmem:[#allocation2 + $0xfc] sm:$0xf] %vm21_vm3, %v12482_v47  ;;  %v680_v54 = vmul.f32 0.1, %v504_v48  ;;  %v507_v55 = vadd.f32 %v12880_v52, %v14760_v37  ;;  %v498_v56 = vpop.f32.mrb[27].mxu1  ;;  %v13663_v57 = vld [vmem:[#allocation2 + $0xd0] sm:$0xff]   ;;  %2472 = vrot.lane.b32.xlu1 %v13662_v53, %s14236_s28 }
 0x10d   :  { %1060 = vst.msk [vmem:[#allocation2 + $0xe8] sm:$0xf] %vm21_vm3, %v12480_v50  ;;  %v678_v58 = vmul.f32 0.1, %v496_v51  ;;  %v499_v59 = vadd.f32 %v14760_v37, %v498_v56  ;;  %3074 = vrot.lane.b32.xlu0 %v13663_v57, %s14235_s27  ;;  %v13664_v0 = vld [vmem:[#allocation2 + $0xbc] sm:$0xff]  }
 0x10e   :  { %v744_v60 = vmax.f32 %v504_v48, %v680_v54  ;;  %v681_v61 = vmul.f32 0.1, %v507_v55  ;;  %v13665_v3 = vld [vmem:[#allocation2 + $0xbc] sm:$0xff]  }
 0x10f   :  { %v742_v62 = vmax.f32 %v496_v51, %v678_v58  ;;  %v679_v63 = vmul.f32 0.1, %v499_v59 }
 0x110   :  { %v12485_v1 = vpack.c.bf16 %v744_v60, %v744_v60  ;;  %v745_v2 = vmax.f32 %v507_v55, %v681_v61  ;;  %3068 = vrot.lane.b32.xlu1 %v13664_v0, %s14235_s27 }
 0x111   :  { %v12483_v4 = vpack.c.bf16 %v742_v62, %v742_v62  ;;  %v743_v5 = vmax.f32 %v499_v59, %v679_v63  ;;  %v12883_v6 = vpop.f32.mrb[28].mxu1  ;;  %2466 = vrot.lane.b32.xlu0 %v13665_v3, %s14236_s28 }
 0x112   :  { %1065 = vst.msk [vmem:[#allocation2 + $0x120] sm:$0xf] %vm21_vm3, %v12485_v1  ;;  %v12486_v7 = vpack.c.bf16 %v745_v2, %v745_v2  ;;  %v520_v8 = vadd.f32 %v12883_v6, %v14760_v37  ;;  %v511_v9 = vpop.f32.mrb[29].mxu1 }
 0x113   :  { %1063 = vst.msk [vmem:[#allocation2 + $0x10c] sm:$0xf] %vm21_vm3, %v12483_v4  ;;  %v12484_v10 = vpack.c.bf16 %v743_v5, %v743_v5  ;;  %v512_v11 = vadd.f32 %v14760_v37, %v511_v9  ;;  %v12884_v12 = vpop.f32.mrb[30].mxu1  ;;  %v13666_v13 = vld [vmem:[#allocation2 + $0xf8] sm:$0xff]  }
 0x114   :  { %1066 = vst.msk [vmem:[#allocation2 + $0x124] sm:$0xf] %vm21_vm3, %v12486_v7  ;;  %v684_v14 = vmul.f32 0.1, %v520_v8  ;;  %v523_v15 = vadd.f32 %v12884_v12, %v14760_v37  ;;  %v514_v16 = vpop.f32.mrb[31].mxu1  ;;  %v13667_v17 = vld [vmem:[#allocation2 + $0xf8] sm:$0xff]   ;;  %2484 = vrot.lane.b32.xlu1 %v13666_v13, %s14236_s28 }
 0x115   :  { %1064 = vst.msk [vmem:[#allocation2 + $0x110] sm:$0xf] %vm21_vm3, %v12484_v10  ;;  %v682_v18 = vmul.f32 0.1, %v512_v11  ;;  %v515_v19 = vadd.f32 %v14760_v37, %v514_v16  ;;  %3086 = vrot.lane.b32.xlu0 %v13667_v17, %s14235_s27  ;;  %v13668_v24 = vld [vmem:[#allocation2 + $0xe4] sm:$0xff]   ;;  %v13678_v16 = vld [vmem:[#allocation2 + $0x15c] sm:$0xff]  }
 0x116   :  { %v748_v20 = vmax.f32 %v520_v8, %v684_v14  ;;  %v685_v21 = vmul.f32 0.1, %v523_v15  ;;  %v13669_v27 = vld [vmem:[#allocation2 + $0xe4] sm:$0xff]  }
 0x117   :  { %v746_v22 = vmax.f32 %v512_v11, %v682_v18  ;;  %v683_v23 = vmul.f32 0.1, %v515_v19 }
 0x118   :  { %v12489_v25 = vpack.c.bf16 %v748_v20, %v748_v20  ;;  %v749_v26 = vmax.f32 %v523_v15, %v685_v21  ;;  %3080 = vrot.lane.b32.xlu1 %v13668_v24, %s14235_s27 }
 0x119   :  { %v12487_v28 = vpack.c.bf16 %v746_v22, %v746_v22  ;;  %v747_v29 = vmax.f32 %v515_v19, %v683_v23  ;;  %v12887_v30 = vpop.f32.mrb[32].mxu1  ;;  %2478 = vrot.lane.b32.xlu0 %v13669_v27, %s14236_s28 }
 0x11a   :  { %1069 = vst.msk [vmem:[#allocation2 + $0x148] sm:$0xf] %vm21_vm3, %v12489_v25  ;;  %v12490_v31 = vpack.c.bf16 %v749_v26, %v749_v26  ;;  %v536_v32 = vadd.f32 %v12887_v30, %v14760_v37  ;;  %v527_v33 = vpop.f32.mrb[33].mxu1 }
 0x11b   :  { %1067 = vst.msk [vmem:[#allocation2 + $0x134] sm:$0xf] %vm21_vm3, %v12487_v28  ;;  %v12488_v34 = vpack.c.bf16 %v747_v29, %v747_v29  ;;  %v528_v35 = vadd.f32 %v14760_v37, %v527_v33  ;;  %v12888_v36 = vpop.f32.mrb[34].mxu1  ;;  %v13670_v38 = vld [vmem:[#allocation2 + $0x120] sm:$0xff]  }
 0x11c   :  { %1070 = vst.msk [vmem:[#allocation2 + $0x14c] sm:$0xf] %vm21_vm3, %v12490_v31  ;;  %v688_v39 = vmul.f32 0.1, %v536_v32  ;;  %v539_v40 = vadd.f32 %v12888_v36, %v14760_v37  ;;  %v530_v41 = vpop.f32.mrb[35].mxu1  ;;  %v13671_v42 = vld [vmem:[#allocation2 + $0x120] sm:$0xff]   ;;  %2496 = vrot.lane.b32.xlu1 %v13670_v38, %s14236_s28 }
 0x11d   :  { %1068 = vst.msk [vmem:[#allocation2 + $0x138] sm:$0xf] %vm21_vm3, %v12488_v34  ;;  %v686_v43 = vmul.f32 0.1, %v528_v35  ;;  %v531_v44 = vadd.f32 %v14760_v37, %v530_v41  ;;  %3098 = vrot.lane.b32.xlu0 %v13671_v42, %s14235_s27  ;;  %v13672_v49 = vld [vmem:[#allocation2 + $0x10c] sm:$0xff]  }
 0x11e   :  { %v752_v45 = vmax.f32 %v536_v32, %v688_v39  ;;  %v689_v46 = vmul.f32 0.1, %v539_v40  ;;  %v13673_v52 = vld [vmem:[#allocation2 + $0x10c] sm:$0xff]  }
 0x11f   :  { %v750_v47 = vmax.f32 %v528_v35, %v686_v43  ;;  %v687_v48 = vmul.f32 0.1, %v531_v44 }
 0x120   :  { %v12493_v50 = vpack.c.bf16 %v752_v45, %v752_v45  ;;  %v753_v51 = vmax.f32 %v539_v40, %v689_v46  ;;  %3092 = vrot.lane.b32.xlu1 %v13672_v49, %s14235_s27 }
 0x121   :  { %v12491_v53 = vpack.c.bf16 %v750_v47, %v750_v47  ;;  %v751_v54 = vmax.f32 %v531_v44, %v687_v48  ;;  %v12891_v55 = vpop.f32.mrb[36].mxu1  ;;  %2490 = vrot.lane.b32.xlu0 %v13673_v52, %s14236_s28 }
 0x122   :  { %1073 = vst.msk [vmem:[#allocation2 + $0x198] sm:$0xf] %vm21_vm3, %v12493_v50  ;;  %v12494_v56 = vpack.c.bf16 %v753_v51, %v753_v51  ;;  %v552_v57 = vadd.f32 %v12891_v55, %v14760_v37  ;;  %v543_v58 = vpop.f32.mrb[37].mxu1 }
 0x123   :  { %1071 = vst.msk [vmem:[#allocation2 + $0x184] sm:$0xf] %vm21_vm3, %v12491_v53  ;;  %v12492_v59 = vpack.c.bf16 %v751_v54, %v751_v54  ;;  %v544_v60 = vadd.f32 %v14760_v37, %v543_v58  ;;  %v12892_v61 = vpop.f32.mrb[38].mxu1  ;;  %v13674_v62 = vld [vmem:[#allocation2 + $0x148] sm:$0xff]  }
 0x124   :  { %1074 = vst.msk [vmem:[#allocation2 + $0x19c] sm:$0xf] %vm21_vm3, %v12494_v56  ;;  %v692_v63 = vmul.f32 0.1, %v552_v57  ;;  %v555_v0 = vadd.f32 %v12892_v61, %v14760_v37  ;;  %v546_v1 = vpop.f32.mrb[39].mxu1  ;;  %v13675_v2 = vld [vmem:[#allocation2 + $0x148] sm:$0xff]   ;;  %2508 = vrot.lane.b32.xlu1 %v13674_v62, %s14236_s28 }
 0x125   :  { %1072 = vst.msk [vmem:[#allocation2 + $0x188] sm:$0xf] %vm21_vm3, %v12492_v59  ;;  %v690_v3 = vmul.f32 0.1, %v544_v60  ;;  %v547_v4 = vadd.f32 %v14760_v37, %v546_v1  ;;  %3110 = vrot.lane.b32.xlu0 %v13675_v2, %s14235_s27  ;;  %v13676_v9 = vld [vmem:[#allocation2 + $0x134] sm:$0xff]  }
 0x126   :  { %v756_v5 = vmax.f32 %v552_v57, %v692_v63  ;;  %v693_v6 = vmul.f32 0.1, %v555_v0  ;;  %v13677_v12 = vld [vmem:[#allocation2 + $0x134] sm:$0xff]   ;;  %v14900_v1 = vld [vmem:[%s18448_s2] ss:$0 sm:$0xff] }
 0x127   :  { %v754_v7 = vmax.f32 %v544_v60, %v690_v3  ;;  %v691_v8 = vmul.f32 0.1, %v547_v4 }
 0x128   :  { %v12497_v10 = vpack.c.bf16 %v756_v5, %v756_v5  ;;  %v757_v11 = vmax.f32 %v555_v0, %v693_v6  ;;  %3104 = vrot.lane.b32.xlu1 %v13676_v9, %s14235_s27 }
 0x129   :  { %v12495_v13 = vpack.c.bf16 %v754_v7, %v754_v7  ;;  %v755_v14 = vmax.f32 %v547_v4, %v691_v8  ;;  %v12895_v15 = vpop.f32.mrb[40].mxu1  ;;  %2502 = vrot.lane.b32.xlu0 %v13677_v12, %s14236_s28 }
 0x12a   :  { %1077 = vst.msk [vmem:[#allocation2 + $0x1c0] sm:$0xf] %vm21_vm3, %v12497_v10  ;;  %v12498_v17 = vpack.c.bf16 %v757_v11, %v757_v11  ;;  %v568_v18 = vadd.f32 %v12895_v15, %v14760_v37  ;;  %v559_v19 = vpop.f32.mrb[41].mxu1 }
 0x12b   :  { %1075 = vst.msk [vmem:[#allocation2 + $0x1ac] sm:$0xf] %vm21_vm3, %v12495_v13  ;;  %v12496_v20 = vpack.c.bf16 %v755_v14, %v755_v14  ;;  %v560_v21 = vadd.f32 %v14760_v37, %v559_v19  ;;  %v12896_v22 = vpop.f32.mrb[42].mxu1  ;;  %v13679_v23 = vld [vmem:[#allocation2 + $0x198] sm:$0xff]  }
 0x12c   :  { %1078 = vst.msk [vmem:[#allocation2 + $0x1c4] sm:$0xf] %vm21_vm3, %v12498_v17  ;;  %v696_v24 = vmul.f32 0.1, %v568_v18  ;;  %v571_v25 = vadd.f32 %v12896_v22, %v14760_v37  ;;  %v562_v26 = vpop.f32.mrb[43].mxu1  ;;  %3116 = vrot.lane.b32.xlu1 %v13678_v16, %s14235_s27  ;;  %v13680_v33 = vld [vmem:[#allocation2 + $0x198] sm:$0xff]  }
 0x12d   :  { %1076 = vst.msk [vmem:[#allocation2 + $0x1b0] sm:$0xf] %vm21_vm3, %v12496_v20  ;;  %v694_v27 = vmul.f32 0.1, %v560_v21  ;;  %v563_v28 = vadd.f32 %v14760_v37, %v562_v26  ;;  %3122 = vrot.lane.b32.xlu0 %v13679_v23, %s14235_s27  ;;  %v13681_v34 = vld [vmem:[#allocation2 + $0x184] sm:$0xff]  }
 0x12e   :  { %v760_v29 = vmax.f32 %v568_v18, %v696_v24  ;;  %v697_v30 = vmul.f32 0.1, %v571_v25 }
 0x12f   :  { %v758_v31 = vmax.f32 %v560_v21, %v694_v27  ;;  %v695_v32 = vmul.f32 0.1, %v563_v28 }
 0x130   :  { %v12501_v35 = vpack.c.bf16 %v760_v29, %v760_v29  ;;  %v761_v36 = vmax.f32 %v571_v25, %v697_v30  ;;  %2520 = vrot.lane.b32.xlu1 %v13680_v33, %s14236_s28 }
 0x131   :  { %v12499_v38 = vpack.c.bf16 %v758_v31, %v758_v31  ;;  %v759_v39 = vmax.f32 %v563_v28, %v695_v32  ;;  %v12899_v40 = vpop.f32.mrb[44].mxu1  ;;  %2514 = vrot.lane.b32.xlu0 %v13681_v34, %s14236_s28 }
 0x132   :  { %1081 = vst.msk [vmem:[#allocation2 + $0x1e8] sm:$0xf] %vm21_vm3, %v12501_v35  ;;  %v12502_v41 = vpack.c.bf16 %v761_v36, %v761_v36  ;;  %v584_v42 = vadd.f32 %v12899_v40, %v14760_v37  ;;  %v575_v43 = vpop.f32.mrb[45].mxu1 }
 0x133   :  { %1079 = vst.msk [vmem:[#allocation2 + $0x1d4] sm:$0xf] %vm21_vm3, %v12499_v38  ;;  %v12500_v44 = vpack.c.bf16 %v759_v39, %v759_v39  ;;  %v576_v45 = vadd.f32 %v14760_v37, %v575_v43  ;;  %v12900_v46 = vpop.f32.mrb[46].mxu1  ;;  %v13682_v47 = vld [vmem:[#allocation2 + $0x1c0] sm:$0xff]  }
 0x134   :  { %1082 = vst.msk [vmem:[#allocation2 + $0x1ec] sm:$0xf] %vm21_vm3, %v12502_v41  ;;  %v700_v48 = vmul.f32 0.1, %v584_v42  ;;  %v587_v49 = vadd.f32 %v12900_v46, %v14760_v37  ;;  %v578_v50 = vpop.f32.mrb[47].mxu1  ;;  %v13683_v51 = vld [vmem:[#allocation2 + $0x1c0] sm:$0xff]   ;;  %2532 = vrot.lane.b32.xlu1 %v13682_v47, %s14236_s28 }
 0x135   :  { %1080 = vst.msk [vmem:[#allocation2 + $0x1d8] sm:$0xf] %vm21_vm3, %v12500_v44  ;;  %v698_v52 = vmul.f32 0.1, %v576_v45  ;;  %v579_v53 = vadd.f32 %v14760_v37, %v578_v50  ;;  %3134 = vrot.lane.b32.xlu0 %v13683_v51, %s14235_s27  ;;  %v13684_v58 = vld [vmem:[#allocation2 + $0x1ac] sm:$0xff]  }
 0x136   :  { %v764_v54 = vmax.f32 %v584_v42, %v700_v48  ;;  %v701_v55 = vmul.f32 0.1, %v587_v49  ;;  %v13685_v61 = vld [vmem:[#allocation2 + $0x1ac] sm:$0xff]  }
 0x137   :  { %v762_v56 = vmax.f32 %v576_v45, %v698_v52  ;;  %v699_v57 = vmul.f32 0.1, %v579_v53 }
 0x138   :  { %v12505_v59 = vpack.c.bf16 %v764_v54, %v764_v54  ;;  %v765_v60 = vmax.f32 %v587_v49, %v701_v55  ;;  %3128 = vrot.lane.b32.xlu1 %v13684_v58, %s14235_s27 }
 0x139   :  { %v12503_v62 = vpack.c.bf16 %v762_v56, %v762_v56  ;;  %v763_v63 = vmax.f32 %v579_v53, %v699_v57  ;;  %v12903_v0 = vpop.f32.mrb[48].mxu1  ;;  %2526 = vrot.lane.b32.xlu0 %v13685_v61, %s14236_s28 }
 0x13a   :  { %1085 = vst.msk [vmem:[#allocation2 + $0x210] sm:$0xf] %vm21_vm3, %v12505_v59  ;;  %v12506_v37 = vpack.c.bf16 %v765_v60, %v765_v60  ;;  %v600_v2 = vadd.f32 %v14900_v1, %v12903_v0  ;;  %v591_v3 = vpop.f32.mrb[49].mxu1 }
 0x13b   :  { %1083 = vst.msk [vmem:[#allocation2 + $0x1fc] sm:$0xf] %vm21_vm3, %v12503_v62  ;;  %v12504_v4 = vpack.c.bf16 %v763_v63, %v763_v63  ;;  %v592_v5 = vadd.f32 %v14900_v1, %v591_v3  ;;  %v12904_v6 = vpop.f32.mrb[50].mxu1  ;;  %v13686_v7 = vld [vmem:[#allocation2 + $0x1e8] sm:$0xff]  }
 0x13c   :  { %1086 = vst.msk [vmem:[#allocation2 + $0x214] sm:$0xf] %vm21_vm3, %v12506_v37  ;;  %v704_v8 = vmul.f32 0.1, %v600_v2  ;;  %v603_v9 = vadd.f32 %v14900_v1, %v12904_v6  ;;  %v594_v10 = vpop.f32.mrb[51].mxu1  ;;  %v13687_v11 = vld [vmem:[#allocation2 + $0x1e8] sm:$0xff]   ;;  %2544 = vrot.lane.b32.xlu1 %v13686_v7, %s14236_s28 }
 0x13d   :  { %1084 = vst.msk [vmem:[#allocation2 + $0x200] sm:$0xf] %vm21_vm3, %v12504_v4  ;;  %v702_v12 = vmul.f32 0.1, %v592_v5  ;;  %v595_v13 = vadd.f32 %v14900_v1, %v594_v10  ;;  %3146 = vrot.lane.b32.xlu0 %v13687_v11, %s14235_s27  ;;  %v13688_v18 = vld [vmem:[#allocation2 + $0x1d4] sm:$0xff]  }
 0x13e   :  { %v768_v14 = vmax.f32 %v600_v2, %v704_v8  ;;  %v705_v15 = vmul.f32 0.1, %v603_v9  ;;  %v13689_v21 = vld [vmem:[#allocation2 + $0x1d4] sm:$0xff]  }
 0x13f   :  { %v766_v16 = vmax.f32 %v592_v5, %v702_v12  ;;  %v703_v17 = vmul.f32 0.1, %v595_v13 }
 0x140   :  { %v12509_v19 = vpack.c.bf16 %v768_v14, %v768_v14  ;;  %v769_v20 = vmax.f32 %v603_v9, %v705_v15  ;;  %3140 = vrot.lane.b32.xlu1 %v13688_v18, %s14235_s27 }
 0x141   :  { %v12507_v22 = vpack.c.bf16 %v766_v16, %v766_v16  ;;  %v767_v23 = vmax.f32 %v595_v13, %v703_v17  ;;  %v12907_v24 = vpop.f32.mrb[52].mxu1  ;;  %2538 = vrot.lane.b32.xlu0 %v13689_v21, %s14236_s28 }
 0x142   :  { %1089 = vst.msk [vmem:[#allocation2 + $0x238] sm:$0xf] %vm21_vm3, %v12509_v19  ;;  %v12510_v25 = vpack.c.bf16 %v769_v20, %v769_v20  ;;  %v616_v26 = vadd.f32 %v14900_v1, %v12907_v24  ;;  %v607_v27 = vpop.f32.mrb[53].mxu1 }
 0x143   :  { %1087 = vst.msk [vmem:[#allocation2 + $0x224] sm:$0xf] %vm21_vm3, %v12507_v22  ;;  %v12508_v28 = vpack.c.bf16 %v767_v23, %v767_v23  ;;  %v608_v29 = vadd.f32 %v14900_v1, %v607_v27  ;;  %v12908_v30 = vpop.f32.mrb[54].mxu1  ;;  %v13690_v31 = vld [vmem:[#allocation2 + $0x210] sm:$0xff]  }
 0x144   :  { %1090 = vst.msk [vmem:[#allocation2 + $0x23c] sm:$0xf] %vm21_vm3, %v12510_v25  ;;  %v708_v32 = vmul.f32 0.1, %v616_v26  ;;  %v619_v33 = vadd.f32 %v14900_v1, %v12908_v30  ;;  %v610_v34 = vpop.f32.mrb[55].mxu1  ;;  %v13691_v35 = vld [vmem:[#allocation2 + $0x210] sm:$0xff]   ;;  %2556 = vrot.lane.b32.xlu1 %v13690_v31, %s14236_s28 }
 0x145   :  { %1088 = vst.msk [vmem:[#allocation2 + $0x228] sm:$0xf] %vm21_vm3, %v12508_v28  ;;  %v706_v36 = vmul.f32 0.1, %v608_v29  ;;  %v611_v38 = vadd.f32 %v14900_v1, %v610_v34  ;;  %3158 = vrot.lane.b32.xlu0 %v13691_v35, %s14235_s27  ;;  %v13692_v43 = vld [vmem:[#allocation2 + $0x1fc] sm:$0xff]  }
 0x146   :  { %v772_v39 = vmax.f32 %v616_v26, %v708_v32  ;;  %v709_v40 = vmul.f32 0.1, %v619_v33  ;;  %v13693_v46 = vld [vmem:[#allocation2 + $0x1fc] sm:$0xff]  }
 0x147   :  { %v770_v41 = vmax.f32 %v608_v29, %v706_v36  ;;  %v707_v42 = vmul.f32 0.1, %v611_v38 }
 0x148   :  { %v12513_v44 = vpack.c.bf16 %v772_v39, %v772_v39  ;;  %v773_v45 = vmax.f32 %v619_v33, %v709_v40  ;;  %3152 = vrot.lane.b32.xlu1 %v13692_v43, %s14235_s27  ;;  %v13707_v40 = vld [vmem:[#allocation2 + $0x8] sm:$0xff]  }
 0x149   :  { %v12511_v47 = vpack.c.bf16 %v770_v41, %v770_v41  ;;  %v771_v48 = vmax.f32 %v611_v38, %v707_v42  ;;  %v12911_v49 = vpop.f32.mrb[56].mxu1  ;;  %2550 = vrot.lane.b32.xlu0 %v13693_v46, %s14236_s28 }
 0x14a   :  { %1093 = vst.msk [vmem:[#allocation2 + $0x260] sm:$0xf] %vm21_vm3, %v12513_v44  ;;  %v12514_v50 = vpack.c.bf16 %v773_v45, %v773_v45  ;;  %v632_v51 = vadd.f32 %v14900_v1, %v12911_v49  ;;  %v623_v52 = vpop.f32.mrb[57].mxu1 }
 0x14b   :  { %1091 = vst.msk [vmem:[#allocation2 + $0x24c] sm:$0xf] %vm21_vm3, %v12511_v47  ;;  %v12512_v53 = vpack.c.bf16 %v771_v48, %v771_v48  ;;  %v624_v54 = vadd.f32 %v14900_v1, %v623_v52  ;;  %v12912_v55 = vpop.f32.mrb[58].mxu1  ;;  %v13694_v56 = vld [vmem:[#allocation2 + $0x238] sm:$0xff]  }
 0x14c   :  { %1094 = vst.msk [vmem:[#allocation2 + $0x264] sm:$0xf] %vm21_vm3, %v12514_v50  ;;  %v712_v57 = vmul.f32 0.1, %v632_v51  ;;  %v635_v58 = vadd.f32 %v14900_v1, %v12912_v55  ;;  %v626_v59 = vpop.f32.mrb[59].mxu1  ;;  %v13695_v60 = vld [vmem:[#allocation2 + $0x238] sm:$0xff]   ;;  %2568 = vrot.lane.b32.xlu1 %v13694_v56, %s14236_s28 }
 0x14d   :  { %1092 = vst.msk [vmem:[#allocation2 + $0x250] sm:$0xf] %vm21_vm3, %v12512_v53  ;;  %v710_v61 = vmul.f32 0.1, %v624_v54  ;;  %v627_v62 = vadd.f32 %v14900_v1, %v626_v59  ;;  %3170 = vrot.lane.b32.xlu0 %v13695_v60, %s14235_s27  ;;  %v13696_v3 = vld [vmem:[#allocation2 + $0x224] sm:$0xff]   ;;  %v13712_v47 = vld [vmem:[#allocation2 + $0x14] sm:$0xff]  }
 0x14e   :  { %v776_v63 = vmax.f32 %v632_v51, %v712_v57  ;;  %v713_v0 = vmul.f32 0.1, %v635_v58  ;;  %v13697_v6 = vld [vmem:[#allocation2 + $0x224] sm:$0xff]   ;;  %v13704_v51 = vld [vmem:[#allocation2 + $0x1c] sm:$0xff]  }
 0x14f   :  { %v774_v37 = vmax.f32 %v624_v54, %v710_v61  ;;  %v711_v2 = vmul.f32 0.1, %v627_v62  ;;  %v13715_v53 = vld [vmem:[#allocation2 + $0x2c4] sm:$0xff]  }
 0x150   :  { %v12517_v4 = vpack.c.bf16 %v776_v63, %v776_v63  ;;  %v777_v5 = vmax.f32 %v635_v58, %v713_v0  ;;  %3164 = vrot.lane.b32.xlu1 %v13696_v3, %s14235_s27  ;;  %v14229_v54 = vld [vmem:[%s18447_s3] sm:$0x3f]   ;;  %v13713_v58 = vld [vmem:[#allocation2 + $0x30] sm:$0xff]   ;;  %v13718_v3 = vld [vmem:[#allocation2 + $0x28] sm:$0xff]  }
 0x151   :  { %v12515_v7 = vpack.c.bf16 %v774_v37, %v774_v37  ;;  %v775_v8 = vmax.f32 %v627_v62, %v711_v2  ;;  %v12915_v9 = vpop.f32.mrb[60].mxu1  ;;  %2562 = vrot.lane.b32.xlu0 %v13697_v6, %s14236_s28  ;;  %v4483_v55 = vsel %vm4088_vm2, %v14229_v54, 0 }
 0x152   :  { %1097 = vst.msk [vmem:[#allocation2 + $0x288] sm:$0xf] %vm21_vm3, %v12517_v4  ;;  %v12518_v10 = vpack.c.bf16 %v777_v5, %v777_v5  ;;  %v648_v11 = vadd.f32 %v14900_v1, %v12915_v9  ;;  %v639_v12 = vpop.f32.mrb[61].mxu1  ;;  %v13719_v5 = vld [vmem:[#allocation2 + $0x28] sm:$0xff]  }
 0x153   :  { %1095 = vst.msk [vmem:[#allocation2 + $0x274] sm:$0xf] %vm21_vm3, %v12515_v7  ;;  %v12516_v13 = vpack.c.bf16 %v775_v8, %v775_v8  ;;  %v640_v14 = vadd.f32 %v14900_v1, %v639_v12  ;;  %v12916_v15 = vpop.f32.mrb[62].mxu1  ;;  %v13698_v16 = vld [vmem:[#allocation2 + $0x260] sm:$0xff]  }
 0x154   :  { %1098 = vst.msk [vmem:[#allocation2 + $0x28c] sm:$0xf] %vm21_vm3, %v12518_v10  ;;  %v716_v17 = vmul.f32 0.1, %v648_v11  ;;  %v651_v18 = vadd.f32 %v14900_v1, %v12916_v15  ;;  %v642_v19 = vpop.f32.mrb[63].mxu1  ;;  %v13699_v20 = vld [vmem:[#allocation2 + $0x260] sm:$0xff]   ;;  %2580 = vrot.lane.b32.xlu1 %v13698_v16, %s14236_s28 }
 0x155   :  { %1096 = vst.msk [vmem:[#allocation2 + $0x278] sm:$0xf] %vm21_vm3, %v12516_v13  ;;  %v714_v21 = vmul.f32 0.1, %v640_v14  ;;  %v643_v22 = vadd.f32 %v14900_v1, %v642_v19  ;;  %3182 = vrot.lane.b32.xlu0 %v13699_v20, %s14235_s27  ;;  %v13700_v27 = vld [vmem:[#allocation2 + $0x24c] sm:$0xff]   ;;  %v13710_v10 = vld [vmem:[#allocation2 + $0x44] sm:$0xff]  }
 0x156   :  { %v780_v23 = vmax.f32 %v648_v11, %v716_v17  ;;  %v717_v24 = vmul.f32 0.1, %v651_v18  ;;  %v13701_v30 = vld [vmem:[#allocation2 + $0x24c] sm:$0xff]   ;;  %v13721_v12 = vld [vmem:[#allocation2 + $0x3c] sm:$0xff]  }
 0x157   :  { %v778_v25 = vmax.f32 %v640_v14, %v714_v21  ;;  %v715_v26 = vmul.f32 0.1, %v643_v22  ;;  %v13813_v13 = vld [vmem:[%s18447_s3 + $0x10] sm:$0x3f]   ;;  %v13722_v17 = vld [vmem:[#allocation2 + $0x3c] sm:$0xff]  }
 0x158   :  { %v12521_v28 = vpack.c.bf16 %v780_v23, %v780_v23  ;;  %v781_v29 = vmax.f32 %v651_v18, %v717_v24  ;;  %3176 = vrot.lane.b32.xlu1 %v13700_v27, %s14235_s27  ;;  %v13720_v21 = vld [vmem:[#allocation2 + $0x58] sm:$0xff]   ;;  %v13724_v24 = vld [vmem:[#allocation2 + $0x50] sm:$0xff]  }
 0x159   :  { %v12519_v31 = vpack.c.bf16 %v778_v25, %v778_v25  ;;  %v779_v32 = vmax.f32 %v643_v22, %v715_v26  ;;  %2574 = vrot.lane.b32.xlu0 %v13701_v30, %s14236_s28  ;;  %v13725_v27 = vld [vmem:[#allocation2 + $0x50] sm:$0xff]  }
 0x15a   :  { %1101 = vst.msk [vmem:[#allocation2 + $0x2b0] sm:$0xf] %vm21_vm3, %v12521_v28  ;;  %v12522_v33 = vpack.c.bf16 %v781_v29, %v781_v29  ;;  %v13717_v29 = vld [vmem:[#allocation2 + $0x6c] sm:$0xff]  }
 0x15b   :  { %1099 = vst.msk [vmem:[#allocation2 + $0x29c] sm:$0xf] %vm21_vm3, %v12519_v31  ;;  %v12520_v1 = vpack.c.bf16 %v779_v32, %v779_v32  ;;  %v13702_v34 = vld [vmem:[#allocation2 + $0x288] sm:$0xff]  }
 0x15c   :  { %1102 = vst.msk [vmem:[#allocation2 + $0x2b4] sm:$0xf] %vm21_vm3, %v12522_v33  ;;  %v13703_v35 = vld [vmem:[#allocation2 + $0x288] sm:$0xff]   ;;  %2592 = vrot.lane.b32.xlu1 %v13702_v34, %s14236_s28  ;;  %v13705_v36 = vld [vmem:[#allocation2 + $0x274] sm:$0xff]  }
 0x15d   :  { %1100 = vst.msk [vmem:[#allocation2 + $0x2a0] sm:$0xf] %vm21_vm3, %v12520_v1  ;;  %3194 = vrot.lane.b32.xlu0 %v13703_v35, %s14235_s27  ;;  %v13706_v39 = vld [vmem:[#allocation2 + $0x274] sm:$0xff]   ;;  %v13727_v34 = vld [vmem:[#allocation2 + $0x64] sm:$0xff]  }
 0x15e   :  { %v3027_v41 = vpop.permute.xlu1 %3026  ;;  %v13728_v35 = vld [vmem:[#allocation2 + $0x64] sm:$0xff]  }
 0x15f   :  { %v2425_v38 = vpop.permute.xlu0 %2424 }
 0x160   :  { %3188 = vrot.lane.b32.xlu1 %v13705_v36, %s14235_s27  ;;  %v3231_v60 = vsel %vm3216_vm4, %v13704_v51, %v2425_v38  ;;  %v13731_v51 = vld [vmem:[#allocation2 + $0x78] sm:$0xff]  }
 0x161   :  { %2586 = vrot.lane.b32.xlu0 %v13706_v39, %s14236_s28 }
 0x163   :  { %v13708_v42 = vld [vmem:[#allocation2 + $0x2b0] sm:$0xff]   ;;  %v2419_v43 = vpop.permute.xlu0 %2418 }
 0x164   :  { %v13709_v44 = vld [vmem:[#allocation2 + $0x2b0] sm:$0xff]   ;;  %v3222_v45 = vsel %vm3216_vm4, %v13707_v40, %v2419_v43  ;;  %2604 = vrot.lane.b32.xlu1 %v13708_v42, %s14236_s28  ;;  %v13711_v50 = vld [vmem:[#allocation2 + $0x29c] sm:$0xff]  }
 0x165   :  { %3206 = vrot.lane.b32.xlu0 %v13709_v44, %s14235_s27  ;;  %v14962_v46 = vsel %vm264_vm1, %v3222_v45, %v3027_v41  ;;  %v13716_v59 = vld [vmem:[#allocation2 + $0x29c] sm:$0xff]  }
 0x166   :  { %v18491_v48 = vshll.u32 %v14962_v46, 16  ;;  %12919 = vmatprep.mubr.msk.bf16.mxu1 %vm4023_vm5, %v14962_v46  ;;  %v2437_v49 = vpop.permute.xlu1 %2436  ;;  %v18494_v56 = vshrl.u32 %v14962_v46, 16  ;;  %v13726_v43 = vld [vmem:[#allocation2 + $0x80] sm:$0xff]  }
 0x167   :  { %v3039_v52 = vpop.permute.xlu0 %3038  ;;  %v3249_v18 = vsel %vm3216_vm4, %v13710_v10, %v2437_v49  ;;  %v13732_v10 = vld [vmem:[#allocation2 + $0xa8] sm:$0xff]  }
 0x168   :  { %v4775_v57 = vrot.slane %v18491_v48, 1  ;;  %3200 = vrot.lane.b32.xlu1 %v13711_v50, %s14235_s27  ;;  %v13780_v48 = vld [vmem:[#allocation2 + $0x210] sm:$0xff]  }
 0x169   :  { %2416 = vrot.lane.b32.xlu0 %v13712_v47, %s14236_s28  ;;  %v13730_v47 = vld [vmem:[#allocation2 + $0x78] sm:$0xff]  }
 0x16a   :  { %v14979_v61 = vor.u32 %v4775_v57, %v18494_v56  ;;  %v3033_v62 = vpop.permute.xlu1 %3032 }
 0x16b   :  { %v14982_v63 = vsel %vm264_vm1, %v3231_v60, %v3033_v62  ;;  %v2431_v0 = vpop.permute.xlu0 %2430  ;;  %v13733_v60 = vld [vmem:[#allocation2 + $0x8c] sm:$0xff]  }
 0x16c   :  { %v18486_v37 = vshll.u32 %v14982_v63, 16  ;;  %v3240_v2 = vsel %vm3216_vm4, %v13713_v58, %v2431_v0  ;;  %3212 = vrot.lane.b32.xlu1 %v13715_v53, %s14235_s27  ;;  %12920 = vmatmul.mubr.msk.bf16.vlgmr.msra.gmra.mrb[64].mxu1 %vm4023_vm5, %v14982_v63  ;;  %v18493_v6 = vshrl.u32 %v14982_v63, 16  ;;  %v13723_v53 = vld [vmem:[#allocation2 + $0x94] sm:$0xff]   ;;  %v13734_v62 = vld [vmem:[#allocation2 + $0x8c] sm:$0xff]  }
 0x16d   :  { %2598 = vrot.lane.b32.xlu0 %v13716_v59, %s14236_s28  ;;  %v14991_v4 = vsel %vm264_vm1, %v3240_v2, %v3039_v52  ;;  %12984 = vmatpush3.bf16.msra.mxu1 %v4483_v55 }
 0x16e   :  { %v4781_v7 = vrot.slane %v18486_v37, 1  ;;  %v18483_v8 = vshll.u32 %v14991_v4, 16  ;;  %12923 = vmatprep.mubr.msk.bf16.mxu1 %vm4023_vm5, %v14991_v4  ;;  %v2449_v9 = vpop.permute.xlu1 %2448  ;;  %v18490_v15 = vshrl.u32 %v14991_v4, 16  ;;  %13638 = vmatprep.subr.msk.bf16.mxu1 %vm4088_vm2, %v13813_v13  ;;  %v13736_v13 = vld [vmem:[#allocation2 + $0xa0] sm:$0xff]  }
 0x16f   :  { %v3051_v11 = vpop.permute.xlu0 %3050  ;;  %v3267_v40 = vsel %vm3216_vm4, %v13717_v29, %v2449_v9 }
 0x170   :  { %v15004_v14 = vor.u32 %v4781_v7, %v18493_v6  ;;  %v4787_v16 = vrot.slane %v18483_v8, 1  ;;  %2422 = vrot.lane.b32.xlu1 %v13718_v3, %s14236_s28  ;;  %v13774_v8 = vld [vmem:[#allocation2 + $0x1e8] sm:$0xff]  }
 0x171   :  { %3024 = vrot.lane.b32.xlu0 %v13719_v5, %s14235_s27  ;;  %v13784_v6 = vld [vmem:[#allocation2 + $0x208] sm:$0xff]  }
 0x172   :  { %v15015_v19 = vor.u32 %v4787_v16, %v18490_v15  ;;  %v3045_v20 = vpop.permute.xlu1 %3044 }
 0x173   :  { %v15018_v22 = vsel %vm264_vm1, %v3249_v18, %v3045_v20  ;;  %v2443_v23 = vpop.permute.xlu0 %2442  ;;  %v13737_v18 = vld [vmem:[#allocation2 + $0xa0] sm:$0xff]  }
 0x174   :  { %v18482_v25 = vshll.u32 %v15018_v22, 16  ;;  %v3258_v26 = vsel %vm3216_vm4, %v13720_v21, %v2443_v23  ;;  %3030 = vrot.lane.b32.xlu1 %v13721_v12, %s14235_s27  ;;  %12924 = vmatmul.mubr.msk.bf16.gmra.mrb[68].mxu1 %vm4023_vm5, %v15018_v22  ;;  %v18485_v30 = vshrl.u32 %v15018_v22, 16  ;;  %v13729_v21 = vld [vmem:[#allocation2 + $0xbc] sm:$0xff]  }
 0x175   :  { %2428 = vrot.lane.b32.xlu0 %v13722_v17, %s14236_s28  ;;  %v15027_v28 = vsel %vm264_vm1, %v3258_v26, %v3051_v11 }
 0x176   :  { %v4793_v31 = vrot.slane %v18482_v25, 1  ;;  %v18475_v32 = vshll.u32 %v15027_v28, 16  ;;  %12927 = vmatprep.mubr.msk.bf16.mxu1 %vm4023_vm5, %v15027_v28  ;;  %v2461_v33 = vpop.permute.xlu1 %2460  ;;  %v18478_v38 = vshrl.u32 %v15027_v28, 16 }
 0x177   :  { %v3063_v1 = vpop.permute.xlu0 %3062  ;;  %v3285_v5 = vsel %vm3216_vm4, %v13723_v53, %v2461_v33  ;;  %v13740_v33 = vld [vmem:[#allocation2 + $0xb4] sm:$0xff]  }
 0x178   :  { %v15037_v36 = vor.u32 %v4793_v31, %v18485_v30  ;;  %v4799_v39 = vrot.slane %v18475_v32, 1  ;;  %2434 = vrot.lane.b32.xlu1 %v13724_v24, %s14236_s28  ;;  %v13739_v31 = vld [vmem:[#allocation2 + $0xb4] sm:$0xff]   ;;  %v13768_v32 = vld [vmem:[#allocation2 + $0x1c0] sm:$0xff]  }
 0x179   :  { %3036 = vrot.lane.b32.xlu0 %v13725_v27, %s14235_s27  ;;  %v13778_v30 = vld [vmem:[#allocation2 + $0x1e0] sm:$0xff]  }
 0x17a   :  { %v15047_v41 = vor.u32 %v4799_v39, %v18478_v38  ;;  %v3057_v42 = vpop.permute.xlu1 %3056 }
 0x17b   :  { %v15050_v44 = vsel %vm264_vm1, %v3267_v40, %v3057_v42  ;;  %v2455_v45 = vpop.permute.xlu0 %2454 }
 0x17c   :  { %v18474_v49 = vshll.u32 %v15050_v44, 16  ;;  %v3276_v50 = vsel %vm3216_vm4, %v13726_v43, %v2455_v45  ;;  %3042 = vrot.lane.b32.xlu1 %v13727_v34, %s14235_s27  ;;  %12928 = vmatmul.mubr.msk.bf16.gmra.mrb[72].mxu1 %vm4023_vm5, %v15050_v44  ;;  %v18477_v54 = vshrl.u32 %v15050_v44, 16  ;;  %v13738_v43 = vld [vmem:[#allocation2 + $0xd0] sm:$0xff]  }
 0x17d   :  { %2440 = vrot.lane.b32.xlu0 %v13728_v35, %s14236_s28  ;;  %v15059_v52 = vsel %vm264_vm1, %v3276_v50, %v3063_v1  ;;  %v13742_v50 = vld [vmem:[#allocation2 + $0xc8] sm:$0xff]  }
 0x17e   :  { %v4805_v55 = vrot.slane %v18474_v49, 1  ;;  %v18468_v57 = vshll.u32 %v15059_v52, 16  ;;  %12931 = vmatprep.mubr.msk.bf16.mxu1 %vm4023_vm5, %v15059_v52  ;;  %v2473_v58 = vpop.permute.xlu1 %2472  ;;  %v18470_v2 = vshrl.u32 %v15059_v52, 16 }
 0x17f   :  { %v3075_v59 = vpop.permute.xlu0 %3074  ;;  %v3303_v39 = vsel %vm3216_vm4, %v13729_v21, %v2473_v58 }
 0x180   :  { %v15069_v0 = vor.u32 %v4805_v55, %v18477_v54  ;;  %v4811_v3 = vrot.slane %v18468_v57, 1  ;;  %2446 = vrot.lane.b32.xlu1 %v13730_v47, %s14236_s28  ;;  %v13743_v55 = vld [vmem:[#allocation2 + $0xc8] sm:$0xff]   ;;  %v13772_v54 = vld [vmem:[#allocation2 + $0x1b8] sm:$0xff]  }
 0x181   :  { %3048 = vrot.lane.b32.xlu0 %v13731_v51, %s14235_s27 }
 0x182   :  { %v15079_v7 = vor.u32 %v4811_v3, %v18470_v2  ;;  %v3069_v9 = vpop.permute.xlu1 %3068 }
 0x183   :  { %v15082_v11 = vsel %vm264_vm1, %v3285_v5, %v3069_v9  ;;  %v2467_v12 = vpop.permute.xlu0 %2466 }
 0x184   :  { %v18467_v16 = vshll.u32 %v15082_v11, 16  ;;  %v3294_v17 = vsel %vm3216_vm4, %v13732_v10, %v2467_v12  ;;  %3054 = vrot.lane.b32.xlu1 %v13733_v60, %s14235_s27  ;;  %12932 = vmatmul.mubr.msk.bf16.gmra.mrb[76].mxu1 %vm4023_vm5, %v15082_v11  ;;  %v18469_v23 = vshrl.u32 %v15082_v11, 16  ;;  %v13745_v10 = vld [vmem:[#allocation2 + $0xdc] sm:$0xff]  }
 0x185   :  { %2452 = vrot.lane.b32.xlu0 %v13734_v62, %s14236_s28  ;;  %v15091_v20 = vsel %vm264_vm1, %v3294_v17, %v3075_v59  ;;  %v13735_v59 = vld [vmem:[#allocation2 + $0xe4] sm:$0xff]   ;;  %v13746_v12 = vld [vmem:[#allocation2 + $0xdc] sm:$0xff]  }
 0x186   :  { %v4817_v24 = vrot.slane %v18467_v16, 1  ;;  %v18460_v26 = vshll.u32 %v15091_v20, 16  ;;  %12935 = vmatprep.mubr.msk.bf16.mxu1 %vm4023_vm5, %v15091_v20  ;;  %v2485_v27 = vpop.permute.xlu1 %2484  ;;  %v18465_v34 = vshrl.u32 %v15091_v20, 16 }
 0x187   :  { %v3087_v29 = vpop.permute.xlu0 %3086  ;;  %v3321_v21 = vsel %vm3216_vm4, %v13735_v59, %v2485_v27  ;;  %v13749_v27 = vld [vmem:[#allocation2 + $0xf0] sm:$0xff]  }
 0x188   :  { %v15101_v1 = vor.u32 %v4817_v24, %v18469_v23  ;;  %v4823_v35 = vrot.slane %v18460_v26, 1  ;;  %2458 = vrot.lane.b32.xlu1 %v13736_v13, %s14236_s28  ;;  %v13760_v26 = vld [vmem:[#allocation2 + $0x140] sm:$0xff]   ;;  %v13766_v23 = vld [vmem:[#allocation2 + $0x190] sm:$0xff]  }
 0x189   :  { %3060 = vrot.lane.b32.xlu0 %v13737_v18, %s14235_s27 }
 0x18a   :  { %v15111_v40 = vor.u32 %v4823_v35, %v18465_v34  ;;  %v3081_v42 = vpop.permute.xlu1 %3080 }
 0x18b   :  { %v15114_v45 = vsel %vm264_vm1, %v3303_v39, %v3081_v42  ;;  %v2479_v47 = vpop.permute.xlu0 %2478  ;;  %v13748_v39 = vld [vmem:[#allocation2 + $0xf0] sm:$0xff]  }
 0x18c   :  { %v18459_v51 = vshll.u32 %v15114_v45, 16  ;;  %v3312_v53 = vsel %vm3216_vm4, %v13738_v43, %v2479_v47  ;;  %3066 = vrot.lane.b32.xlu1 %v13739_v31, %s14235_s27  ;;  %12936 = vmatmul.mubr.msk.bf16.gmra.mrb[80].mxu1 %vm4023_vm5, %v15114_v45  ;;  %v18464_v60 = vshrl.u32 %v15114_v45, 16  ;;  %v13744_v31 = vld [vmem:[#allocation2 + $0xf8] sm:$0xff]  }
 0x18d   :  { %2464 = vrot.lane.b32.xlu0 %v13740_v33, %s14236_s28  ;;  %v15123_v58 = vsel %vm264_vm1, %v3312_v53, %v3087_v29 }
 0x18e   :  { %v4829_v62 = vrot.slane %v18459_v51, 1  ;;  %v18452_v3 = vshll.u32 %v15123_v58, 16  ;;  %12939 = vmatprep.mubr.msk.bf16.mxu1 %vm4023_vm5, %v15123_v58  ;;  %v2497_v5 = vpop.permute.xlu1 %2496  ;;  %v18454_v17 = vshrl.u32 %v15123_v58, 16 }
 0x18f   :  { %v3099_v9 = vpop.permute.xlu0 %3098 }
 0x190   :  { %v15133_v13 = vor.u32 %v4829_v62, %v18464_v60  ;;  %v4835_v18 = vrot.slane %v18452_v3, 1  ;;  %2470 = vrot.lane.b32.xlu1 %v13742_v50, %s14236_s28  ;;  %v13741_v50 = vld [vmem:[#allocation2 + $0x10c] sm:$0xff]   ;;  %v13750_v3 = vld [vmem:[#allocation2 + $0x120] sm:$0xff]  }
 0x191   :  { %3072 = vrot.lane.b32.xlu0 %v13743_v55, %s14235_s27  ;;  %v13764_v60 = vld [vmem:[#allocation2 + $0x17c] sm:$0xff]  }
 0x192   :  { %18576 = vst [vmem:[#allocation3_spill] sm:$0xff] %v15133_v13  ;;  %v15143_v24 = vor.u32 %v4835_v18, %v18454_v17  ;;  %v3093_v29 = vpop.permute.xlu1 %3092  ;;  %v13751_v18 = vld [vmem:[#allocation2 + $0x104] sm:$0xff]   ;;  %v13753_v17 = vld [vmem:[#allocation2 + $0x118] sm:$0xff]  }
 0x193   :  { %v15146_v33 = vsel %vm264_vm1, %v3321_v21, %v3093_v29  ;;  %v2491_v35 = vpop.permute.xlu0 %2490  ;;  %v13752_v21 = vld [vmem:[#allocation2 + $0x104] sm:$0xff]  }
 0x194   :  { %18577 = vst [vmem:[#allocation4_spill] sm:$0xff] %v15143_v24  ;;  %v18451_v42 = vshll.u32 %v15146_v33, 16  ;;  %v3330_v43 = vsel %vm3216_vm4, %v13744_v31, %v2491_v35  ;;  %3078 = vrot.lane.b32.xlu1 %v13745_v10, %s14235_s27  ;;  %12940 = vmatmul.mubr.msk.bf16.gmra.mrb[84].mxu1 %vm4023_vm5, %v15146_v33  ;;  %v18453_v53 = vshrl.u32 %v15146_v33, 16  ;;  %v3339_v31 = vsel %vm3216_vm4, %v13741_v50, %v2497_v5  ;;  %v13754_v5 = vld [vmem:[#allocation2 + $0x118] sm:$0xff]  }
 0x195   :  { %2476 = vrot.lane.b32.xlu0 %v13746_v12, %s14236_s28  ;;  %v15155_v47 = vsel %vm264_vm1, %v3330_v43, %v3099_v9  ;;  %v13747_v43 = vld [vmem:[#allocation2 + $0x134] sm:$0xff]   ;;  %v13811_v24 = vld [vmem:[#allocation2 + $0x2bc] sm:$0xff]  }
 0x196   :  { %v4841_v55 = vrot.slane %v18451_v42, 1  ;;  %v18455_v59 = vshll.u32 %v15155_v47, 16  ;;  %12943 = vmatprep.mubr.msk.bf16.mxu1 %vm4023_vm5, %v15155_v47  ;;  %v2509_v62 = vpop.permute.xlu1 %2508  ;;  %v18457_v9 = vshrl.u32 %v15155_v47, 16 }
 0x197   :  { %v3111_v10 = vpop.permute.xlu0 %3110 }
 0x198   :  { %v15165_v12 = vor.u32 %v4841_v55, %v18453_v53  ;;  %v4847_v29 = vrot.slane %v18455_v59, 1  ;;  %2482 = vrot.lane.b32.xlu1 %v13748_v39, %s14236_s28 }
 0x199   :  { %3084 = vrot.lane.b32.xlu0 %v13749_v27, %s14235_s27 }
 0x19a   :  { %18578 = vst [vmem:[#allocation5_spill] sm:$0xff] %v15165_v12  ;;  %v15175_v35 = vor.u32 %v4847_v29, %v18457_v9  ;;  %v3105_v42 = vpop.permute.xlu1 %3104 }
 0x19b   :  { %v15178_v55 = vsel %vm264_vm1, %v3339_v31, %v3105_v42  ;;  %v2503_v53 = vpop.permute.xlu0 %2502  ;;  %v3357_v42 = vsel %vm3216_vm4, %v13747_v43, %v2509_v62  ;;  %v13756_v31 = vld [vmem:[#allocation2 + $0x170] sm:$0xff]  }
 0x19c   :  { %18579 = vst [vmem:[#allocation6_spill] sm:$0xff] %v15175_v35  ;;  %v18456_v59 = vshll.u32 %v15178_v55, 16  ;;  %v3348_v39 = vsel %vm3216_vm4, %v13750_v3, %v2503_v53  ;;  %3090 = vrot.lane.b32.xlu1 %v13751_v18, %s14235_s27  ;;  %12944 = vmatmul.mubr.msk.bf16.gmra.mrb[88].mxu1 %vm4023_vm5, %v15178_v55  ;;  %v18458_v50 = vshrl.u32 %v15178_v55, 16 }
 0x19d   :  { %2488 = vrot.lane.b32.xlu0 %v13752_v21, %s14236_s28  ;;  %v15187_v27 = vsel %vm264_vm1, %v3348_v39, %v3111_v10  ;;  %v13757_v10 = vld [vmem:[#allocation2 + $0x12c] sm:$0xff]  }
 0x19e   :  { %v4853_v29 = vrot.slane %v18456_v59, 1  ;;  %v18461_v3 = vshll.u32 %v15187_v27, 16  ;;  %12947 = vmatprep.mubr.msk.bf16.mxu1 %vm4023_vm5, %v15187_v27  ;;  %v3117_v53 = vpop.permute.xlu1 %3116  ;;  %v18463_v43 = vshrl.u32 %v15187_v27, 16 }
 0x19f   :  { %v15197_v18 = vsel %vm264_vm1, %v3357_v42, %v3117_v53  ;;  %v3123_v21 = vpop.permute.xlu0 %3122  ;;  %v13758_v42 = vld [vmem:[#allocation2 + $0x12c] sm:$0xff]  }
 0x1a0   :  { %v15201_v62 = vor.u32 %v4853_v29, %v18458_v50  ;;  %v4859_v39 = vrot.slane %v18461_v3, 1  ;;  %2494 = vrot.lane.b32.xlu1 %v13753_v17, %s14236_s28  ;;  %v18462_v59 = vshll.u32 %v15197_v18, 16  ;;  %v18466_v29 = vshrl.u32 %v15197_v18, 16  ;;  %v13761_v3 = vld [vmem:[#allocation2 + $0x140] sm:$0xff]  }
 0x1a1   :  { %3096 = vrot.lane.b32.xlu0 %v13754_v5, %s14235_s27 }
 0x1a2   :  { %18580 = vst [vmem:[#allocation7_spill] sm:$0xff] %v15201_v62  ;;  %v15211_v53 = vor.u32 %v4859_v39, %v18463_v43  ;;  %v2521_v9 = vpop.permute.xlu1 %2520  ;;  %v4865_v50 = vrot.slane %v18462_v59, 1  ;;  %v13755_v59 = vld [vmem:[#allocation2 + $0x184] sm:$0xff]  }
 0x1a3   :  { %v2515_v51 = vpop.permute.xlu0 %2514 }
 0x1a4   :  { %18581 = vst [vmem:[#allocation8_spill] sm:$0xff] %v15211_v53  ;;  %v3366_v17 = vsel %vm3216_vm4, %v13756_v31, %v2515_v51  ;;  %3102 = vrot.lane.b32.xlu1 %v13757_v10, %s14235_s27  ;;  %12948 = vmatmul.mubr.msk.bf16.gmra.mrb[92].mxu1 %vm4023_vm5, %v15197_v18  ;;  %v15222_v5 = vor.u32 %v4865_v50, %v18466_v29  ;;  %v13763_v10 = vld [vmem:[#allocation2 + $0x154] sm:$0xff]  }
 0x1a5   :  { %2500 = vrot.lane.b32.xlu0 %v13758_v42, %s14236_s28  ;;  %v15226_v39 = vsel %vm264_vm1, %v3366_v17, %v3123_v21  ;;  %v3375_v21 = vsel %vm3216_vm4, %v13755_v59, %v2521_v9  ;;  %v13762_v29 = vld [vmem:[#allocation2 + $0x198] sm:$0xff]   ;;  %v13759_v9 = vld [vmem:[#allocation2 + $0x1ac] sm:$0xff]  }
 0x1a6   :  { %18582 = vst [vmem:[#allocation9_spill] sm:$0xff] %v15222_v5  ;;  %v18471_v43 = vshll.u32 %v15226_v39, 16  ;;  %12951 = vmatprep.mubr.msk.bf16.mxu1 %vm4023_vm5, %v15226_v39  ;;  %v2533_v51 = vpop.permute.xlu1 %2532  ;;  %v18473_v34 = vshrl.u32 %v15226_v39, 16  ;;  %v13804_v5 = vld [vmem:[#allocation2 + $0x14] sm:$0xff]  }
 0x1a7   :  { %v3135_v31 = vpop.permute.xlu0 %3134 }
 0x1a8   :  { %v4871_v50 = vrot.slane %v18471_v43, 1  ;;  %2506 = vrot.lane.b32.xlu1 %v13760_v26, %s14236_s28  ;;  %v13767_v26 = vld [vmem:[#allocation2 + $0x190] sm:$0xff]  }
 0x1a9   :  { %3108 = vrot.lane.b32.xlu0 %v13761_v3, %s14235_s27 }
 0x1aa   :  { %v15239_v42 = vor.u32 %v4871_v50, %v18473_v34  ;;  %v3129_v17 = vpop.permute.xlu1 %3128 }
 0x1ab   :  { %v15242_v16 = vsel %vm264_vm1, %v3375_v21, %v3129_v17  ;;  %v2527_v57 = vpop.permute.xlu0 %2526  ;;  %v13770_v17 = vld [vmem:[#allocation2 + $0x1a4] sm:$0xff]  }
 0x1ac   :  { %18583 = vst [vmem:[#allocation10_spill] sm:$0xff] %v15239_v42  ;;  %v18472_v2 = vshll.u32 %v15242_v16, 16  ;;  %v3384_v43 = vsel %vm3216_vm4, %v13762_v29, %v2527_v57  ;;  %3114 = vrot.lane.b32.xlu1 %v13763_v10, %s14235_s27  ;;  %12952 = vmatmul.mubr.msk.bf16.gmra.mrb[96].mxu1 %vm4023_vm5, %v15242_v16  ;;  %v18476_v3 = vshrl.u32 %v15242_v16, 16  ;;  %v13769_v10 = vld [vmem:[#allocation2 + $0x1a4] sm:$0xff]  }
 0x1ad   :  { %2512 = vrot.lane.b32.xlu0 %v13764_v60, %s14236_s28  ;;  %v15251_v59 = vsel %vm264_vm1, %v3384_v43, %v3135_v31 }
 0x1ae   :  { %v4877_v50 = vrot.slane %v18472_v2, 1  ;;  %v18479_v21 = vshll.u32 %v15251_v59, 16  ;;  %12955 = vmatprep.mubr.msk.bf16.mxu1 %vm4023_vm5, %v15251_v59  ;;  %v2545_v57 = vpop.permute.xlu1 %2544  ;;  %v18481_v43 = vshrl.u32 %v15251_v59, 16  ;;  %v3393_v2 = vsel %vm3216_vm4, %v13759_v9, %v2533_v51 }
 0x1af   :  { %v3147_v29 = vpop.permute.xlu0 %3146 }
 0x1b0   :  { %v15261_v60 = vor.u32 %v4877_v50, %v18476_v3  ;;  %v4883_v31 = vrot.slane %v18479_v21, 1  ;;  %2518 = vrot.lane.b32.xlu1 %v13766_v23, %s14236_s28  ;;  %v13773_v23 = vld [vmem:[#allocation2 + $0x1b8] sm:$0xff]  }
 0x1b1   :  { %3120 = vrot.lane.b32.xlu0 %v13767_v26, %s14235_s27  ;;  %v13765_v26 = vld [vmem:[#allocation2 + $0x1d4] sm:$0xff]  }
 0x1b2   :  { %18584 = vst [vmem:[#allocation11_spill] sm:$0xff] %v15261_v60  ;;  %v15271_v34 = vor.u32 %v4883_v31, %v18481_v43  ;;  %v3141_v49 = vpop.permute.xlu1 %3140  ;;  %v13776_v31 = vld [vmem:[#allocation2 + $0x1cc] sm:$0xff]  }
 0x1b3   :  { %v15274_v50 = vsel %vm264_vm1, %v3393_v2, %v3141_v49  ;;  %v2539_v3 = vpop.permute.xlu0 %2538 }
 0x1b4   :  { %18585 = vst [vmem:[#allocation12_spill] sm:$0xff] %v15271_v34  ;;  %v18480_v38 = vshll.u32 %v15274_v50, 16  ;;  %v3402_v21 = vsel %vm3216_vm4, %v13768_v32, %v2539_v3  ;;  %3126 = vrot.lane.b32.xlu1 %v13769_v10, %s14235_s27  ;;  %12956 = vmatmul.mubr.msk.bf16.gmra.mrb[100].mxu1 %vm4023_vm5, %v15274_v50  ;;  %v18484_v49 = vshrl.u32 %v15274_v50, 16  ;;  %v13775_v10 = vld [vmem:[#allocation2 + $0x1cc] sm:$0xff]  }
 0x1b5   :  { %2524 = vrot.lane.b32.xlu0 %v13770_v17, %s14236_s28  ;;  %v15283_v51 = vsel %vm264_vm1, %v3402_v21, %v3147_v29 }
 0x1b6   :  { %v4889_v2 = vrot.slane %v18480_v38, 1  ;;  %v18487_v9 = vshll.u32 %v15283_v51, 16  ;;  %12959 = vmatprep.mubr.msk.bf16.mxu1 %vm4023_vm5, %v15283_v51  ;;  %v2557_v32 = vpop.permute.xlu1 %2556  ;;  %v18489_v21 = vshrl.u32 %v15283_v51, 16  ;;  %v3411_v38 = vsel %vm3216_vm4, %v13765_v26, %v2545_v57 }
 0x1b7   :  { %v3159_v3 = vpop.permute.xlu0 %3158 }
 0x1b8   :  { %v15293_v17 = vor.u32 %v4889_v2, %v18484_v49  ;;  %v4895_v29 = vrot.slane %v18487_v9, 1  ;;  %2530 = vrot.lane.b32.xlu1 %v13772_v54, %s14236_s28  ;;  %v13779_v54 = vld [vmem:[#allocation2 + $0x1e0] sm:$0xff]  }
 0x1b9   :  { %3132 = vrot.lane.b32.xlu0 %v13773_v23, %s14235_s27  ;;  %v13771_v23 = vld [vmem:[#allocation2 + $0x1fc] sm:$0xff]  }
 0x1ba   :  { %18586 = vst [vmem:[#allocation13_spill] sm:$0xff] %v15293_v17  ;;  %v15303_v43 = vor.u32 %v4895_v29, %v18489_v21  ;;  %v3153_v25 = vpop.permute.xlu1 %3152  ;;  %v13782_v29 = vld [vmem:[#allocation2 + $0x1f4] sm:$0xff]   ;;  %v13792_v17 = vld [vmem:[#allocation2 + $0x260] sm:$0xff]  }
 0x1bb   :  { %v15306_v2 = vsel %vm264_vm1, %v3411_v38, %v3153_v25  ;;  %v2551_v49 = vpop.permute.xlu0 %2550 }
 0x1bc   :  { %18587 = vst [vmem:[#allocation14_spill] sm:$0xff] %v15303_v43  ;;  %v18488_v37 = vshll.u32 %v15306_v2, 16  ;;  %v3420_v9 = vsel %vm3216_vm4, %v13774_v8, %v2551_v49  ;;  %3138 = vrot.lane.b32.xlu1 %v13775_v10, %s14235_s27  ;;  %12960 = vmatmul.mubr.msk.bf16.gmra.mrb[104].mxu1 %vm4023_vm5, %v15306_v2  ;;  %v18492_v25 = vshrl.u32 %v15306_v2, 16  ;;  %v13781_v10 = vld [vmem:[#allocation2 + $0x1f4] sm:$0xff]  }
 0x1bd   :  { %2536 = vrot.lane.b32.xlu0 %v13776_v31, %s14236_s28  ;;  %v15315_v57 = vsel %vm264_vm1, %v3420_v9, %v3159_v3 }
 0x1be   :  { %v4901_v38 = vrot.slane %v18488_v37, 1  ;;  %v18495_v26 = vshll.u32 %v15315_v57, 16  ;;  %12963 = vmatprep.mubr.msk.bf16.mxu1 %vm4023_vm5, %v15315_v57  ;;  %v2569_v8 = vpop.permute.xlu1 %2568  ;;  %v18497_v9 = vshrl.u32 %v15315_v57, 16  ;;  %v3429_v37 = vsel %vm3216_vm4, %v13771_v23, %v2557_v32 }
 0x1bf   :  { %v3171_v49 = vpop.permute.xlu0 %3170 }
 0x1c0   :  { %v15325_v31 = vor.u32 %v4901_v38, %v18492_v25  ;;  %v4907_v3 = vrot.slane %v18495_v26, 1  ;;  %2542 = vrot.lane.b32.xlu1 %v13778_v30, %s14236_s28  ;;  %v13785_v30 = vld [vmem:[#allocation2 + $0x208] sm:$0xff]  }
 0x1c1   :  { %3144 = vrot.lane.b32.xlu0 %v13779_v54, %s14235_s27  ;;  %v13777_v54 = vld [vmem:[#allocation2 + $0x224] sm:$0xff]  }
 0x1c2   :  { %18588 = vst [vmem:[#allocation15_spill] sm:$0xff] %v15325_v31  ;;  %v15335_v21 = vor.u32 %v4907_v3, %v18497_v9  ;;  %v3165_v15 = vpop.permute.xlu1 %3164  ;;  %v13788_v3 = vld [vmem:[#allocation2 + $0x21c] sm:$0xff]  }
 0x1c3   :  { %v15338_v38 = vsel %vm264_vm1, %v3429_v37, %v3165_v15  ;;  %v2563_v25 = vpop.permute.xlu0 %2562  ;;  %v13786_v31 = vld [vmem:[#allocation2 + $0x238] sm:$0xff]  }
 0x1c4   :  { %18589 = vst [vmem:[#allocation16_spill] sm:$0xff] %v15335_v21  ;;  %v18496_v56 = vshll.u32 %v15338_v38, 16  ;;  %v3438_v26 = vsel %vm3216_vm4, %v13780_v48, %v2563_v25  ;;  %3150 = vrot.lane.b32.xlu1 %v13781_v10, %s14235_s27  ;;  %12964 = vmatmul.mubr.msk.bf16.gmra.mrb[108].mxu1 %vm4023_vm5, %v15338_v38  ;;  %v18498_v37 = vshrl.u32 %v15338_v38, 16  ;;  %v13787_v10 = vld [vmem:[#allocation2 + $0x21c] sm:$0xff]  }
 0x1c5   :  { %2548 = vrot.lane.b32.xlu0 %v13782_v29, %s14236_s28  ;;  %v15347_v32 = vsel %vm264_vm1, %v3438_v26, %v3171_v49 }
 0x1c6   :  { %v4913_v15 = vrot.slane %v18496_v56, 1  ;;  %v18499_v23 = vshll.u32 %v15347_v32, 16  ;;  %12967 = vmatprep.mubr.msk.bf16.mxu1 %vm4023_vm5, %v15347_v32  ;;  %v2581_v48 = vpop.permute.xlu1 %2580  ;;  %v18501_v26 = vshrl.u32 %v15347_v32, 16  ;;  %v3447_v56 = vsel %vm3216_vm4, %v13777_v54, %v2569_v8 }
 0x1c7   :  { %v3183_v25 = vpop.permute.xlu0 %3182 }
 0x1c8   :  { %v15357_v29 = vor.u32 %v4913_v15, %v18498_v37  ;;  %v4919_v49 = vrot.slane %v18499_v23, 1  ;;  %2554 = vrot.lane.b32.xlu1 %v13784_v6, %s14236_s28  ;;  %v13791_v6 = vld [vmem:[#allocation2 + $0x230] sm:$0xff]  }
 0x1c9   :  { %3156 = vrot.lane.b32.xlu0 %v13785_v30, %s14235_s27  ;;  %v13783_v30 = vld [vmem:[#allocation2 + $0x24c] sm:$0xff]  }
 0x1ca   :  { %18590 = vst [vmem:[#allocation17_spill] sm:$0xff] %v15357_v29  ;;  %v15367_v9 = vor.u32 %v4919_v49, %v18501_v26  ;;  %v3177_v21 = vpop.permute.xlu1 %3176  ;;  %v13790_v29 = vld [vmem:[#allocation2 + $0x230] sm:$0xff]   ;;  %v13794_v49 = vld [vmem:[#allocation2 + $0x244] sm:$0xff]  }
 0x1cb   :  { %v15370_v15 = vsel %vm264_vm1, %v3447_v56, %v3177_v21  ;;  %v2575_v37 = vpop.permute.xlu0 %2574 }
 0x1cc   :  { %18591 = vst [vmem:[#allocation18_spill] sm:$0xff] %v15367_v9  ;;  %v18500_v43 = vshll.u32 %v15370_v15, 16  ;;  %v3456_v23 = vsel %vm3216_vm4, %v13786_v31, %v2575_v37  ;;  %3162 = vrot.lane.b32.xlu1 %v13787_v10, %s14235_s27  ;;  %12968 = vmatmul.mubr.msk.bf16.gmra.mrb[112].mxu1 %vm4023_vm5, %v15370_v15  ;;  %v18502_v56 = vshrl.u32 %v15370_v15, 16  ;;  %v13793_v10 = vld [vmem:[#allocation2 + $0x244] sm:$0xff]  }
 0x1cd   :  { %2560 = vrot.lane.b32.xlu0 %v13788_v3, %s14236_s28  ;;  %v15379_v8 = vsel %vm264_vm1, %v3456_v23, %v3183_v25 }
 0x1ce   :  { %v4925_v21 = vrot.slane %v18500_v43, 1  ;;  %v18503_v54 = vshll.u32 %v15379_v8, 16  ;;  %12971 = vmatprep.mubr.msk.bf16.mxu1 %vm4023_vm5, %v15379_v8  ;;  %v2593_v31 = vpop.permute.xlu1 %2592  ;;  %v18505_v23 = vshrl.u32 %v15379_v8, 16  ;;  %v3465_v43 = vsel %vm3216_vm4, %v13783_v30, %v2581_v48  ;;  %v13797_v48 = vld [vmem:[#allocation2 + $0x258] sm:$0xff]  }
 0x1cf   :  { %v3195_v37 = vpop.permute.xlu0 %3194 }
 0x1d0   :  { %v15389_v3 = vor.u32 %v4925_v21, %v18502_v56  ;;  %v4931_v25 = vrot.slane %v18503_v54, 1  ;;  %2566 = vrot.lane.b32.xlu1 %v13790_v29, %s14236_s28 }
 0x1d1   :  { %3168 = vrot.lane.b32.xlu0 %v13791_v6, %s14235_s27  ;;  %v13789_v6 = vld [vmem:[#allocation2 + $0x274] sm:$0xff]  }
 0x1d2   :  { %18592 = vst [vmem:[#allocation19_spill] sm:$0xff] %v15389_v3  ;;  %v15399_v26 = vor.u32 %v4931_v25, %v18505_v23  ;;  %v3189_v9 = vpop.permute.xlu1 %3188  ;;  %v13796_v3 = vld [vmem:[#allocation2 + $0x258] sm:$0xff]   ;;  %v13800_v25 = vld [vmem:[#allocation2 + $0x26c] sm:$0xff]  }
 0x1d3   :  { %v15402_v21 = vsel %vm264_vm1, %v3465_v43, %v3189_v9  ;;  %v2587_v56 = vpop.permute.xlu0 %2586 }
 0x1d4   :  { %18593 = vst [vmem:[#allocation20_spill] sm:$0xff] %v15399_v26  ;;  %v18504_v34 = vshll.u32 %v15402_v21, 16  ;;  %v3474_v54 = vsel %vm3216_vm4, %v13792_v17, %v2587_v56  ;;  %3174 = vrot.lane.b32.xlu1 %v13793_v10, %s14235_s27  ;;  %12972 = vmatmul.mubr.msk.bf16.gmra.mrb[116].mxu1 %vm4023_vm5, %v15402_v21  ;;  %v18506_v43 = vshrl.u32 %v15402_v21, 16  ;;  %v13799_v10 = vld [vmem:[#allocation2 + $0x26c] sm:$0xff]   ;;  %v13795_v26 = vld [vmem:[#allocation2 + $0x29c] sm:$0xff]  }
 0x1d5   :  { %2572 = vrot.lane.b32.xlu0 %v13794_v49, %s14236_s28  ;;  %v15411_v29 = vsel %vm264_vm1, %v3474_v54, %v3195_v37 }
 0x1d6   :  { %v4937_v9 = vrot.slane %v18504_v34, 1  ;;  %v18507_v30 = vshll.u32 %v15411_v29, 16  ;;  %12975 = vmatprep.mubr.msk.bf16.mxu1 %vm4023_vm5, %v15411_v29  ;;  %v2605_v17 = vpop.permute.xlu1 %2604  ;;  %v18508_v54 = vshrl.u32 %v15411_v29, 16  ;;  %v3483_v34 = vsel %vm3216_vm4, %v13789_v6, %v2593_v31  ;;  %v13801_v31 = vld [vmem:[#allocation2 + $0x288] sm:$0xff]  }
 0x1d7   :  { %v3207_v56 = vpop.permute.xlu0 %3206 }
 0x1d8   :  { %v15421_v49 = vor.u32 %v4937_v9, %v18506_v43  ;;  %v4943_v37 = vrot.slane %v18507_v30, 1  ;;  %2578 = vrot.lane.b32.xlu1 %v13796_v3, %s14236_s28  ;;  %v13803_v3 = vld [vmem:[#allocation2 + $0x280] sm:$0xff]  }
 0x1d9   :  { %3180 = vrot.lane.b32.xlu0 %v13797_v48, %s14235_s27  ;;  %v3501_v48 = vsel %vm3216_vm4, %v13795_v26, %v2605_v17  ;;  %v13806_v26 = vld [vmem:[#allocation2 + $0x294] sm:$0xff]  }
 0x1da   :  { %18594 = vst [vmem:[#allocation21_spill] sm:$0xff] %v15421_v49  ;;  %v15431_v23 = vor.u32 %v4943_v37, %v18508_v54  ;;  %v3201_v60 = vpop.permute.xlu1 %3200  ;;  %v13802_v49 = vld [vmem:[#allocation2 + $0x280] sm:$0xff]   ;;  %v13805_v54 = vld [vmem:[#allocation2 + $0x294] sm:$0xff]  }
 0x1db   :  { %v15434_v9 = vsel %vm264_vm1, %v3483_v34, %v3201_v60  ;;  %v2417_v43 = vpop.permute.xlu0 %2416  ;;  %v13798_v37 = vld [vmem:[#allocation2] sm:$0xff]  }
 0x1dc   :  { %18595 = vst [vmem:[#allocation22_spill] sm:$0xff] %v15431_v23  ;;  %v18509_v42 = vshll.u32 %v15434_v9, 16  ;;  %3186 = vrot.lane.b32.xlu1 %v13799_v10, %s14235_s27  ;;  %12976 = vmatmul.mubr.msk.bf16.gmra.mrb[120].mxu1 %vm4023_vm5, %v15434_v9  ;;  %v18510_v6 = vshrl.u32 %v15434_v9, 16 }
 0x1dd   :  { %2584 = vrot.lane.b32.xlu0 %v13800_v25, %s14236_s28 }
 0x1de   :  { %v4949_v34 = vrot.slane %v18509_v42, 1  ;;  %v3213_v60 = vpop.permute.xlu1 %3212  ;;  %v13808_v42 = vld [vmem:[#allocation2 + $0x2a8] sm:$0xff]  }
 0x1df   :  { %v15446_v30 = vsel %vm264_vm1, %v3501_v48, %v3213_v60  ;;  %v2599_v10 = vpop.permute.xlu0 %2598 }
 0x1e0   :  { %v15450_v23 = vor.u32 %v4949_v34, %v18510_v6  ;;  %v18511_v25 = vshll.u32 %v15446_v30, 16  ;;  %2590 = vrot.lane.b32.xlu1 %v13802_v49, %s14236_s28  ;;  %v3492_v17 = vsel %vm3216_vm4, %v13801_v31, %v2599_v10  ;;  %v18597_v6 = vshrl.u32 %v14962_v46, 16  ;;  %v13807_v10 = vld [vmem:[#allocation2 + $0x28] sm:$0xff]  }
 0x1e1   :  { %3192 = vrot.lane.b32.xlu0 %v13803_v3, %s14235_s27  ;;  %v15460_v60 = vsel %vm264_vm1, %v3492_v17, %v3207_v56  ;;  %v3219_v49 = vsel %vm3216_vm4, %v13798_v37, %v2417_v43  ;;  %v18598_v56 = vshrl.u32 %v15446_v30, 16  ;;  %v18600_v43 = vshrl.u32 %v14982_v63, 16 }
 0x1e2   :  { %18596 = vst [vmem:[#allocation23_spill] sm:$0xff] %v15450_v23  ;;  %v4961_v48 = vrot.slane %v18511_v25, 1  ;;  %v2423_v34 = vpop.permute.xlu1 %2422  ;;  %v3703_v23 = vrot.slane %v18597_v6, 7  ;;  %v18512_v31 = vshll.u32 %v15460_v60, 16  ;;  %12979 = vmatprep.mubr.msk.bf16.mxu1 %vm4023_vm5, %v15460_v60  ;;  %v13809_v25 = vld [vmem:[#allocation2 + $0x2a8] sm:$0xff]   ;;  %v4001_v37 = vshrl.u32 %v15460_v60, 16 }
 0x1e3   :  { %v3025_v3 = vpop.permute.xlu0 %3024  ;;  %v3713_v6 = vrot.slane %v18600_v43, 7 }
 0x1e4   :  { %v15470_v17 = vor.u32 %v4961_v48, %v18598_v56  ;;  %v3506_v53 = vsel %vm264_vm1, %v3219_v49, %v3025_v3  ;;  %3198 = vrot.lane.b32.xlu1 %v13805_v54, %s14235_s27  ;;  %12980 = vmatmul.mubr.msk.bf16.gmra.mrb[124].mxu1 %vm4023_vm5, %v15446_v30  ;;  %v4955_v62 = vrot.slane %v18512_v31, 1  ;;  %v3228_v48 = vsel %vm3216_vm4, %v13804_v5, %v2423_v34  ;;  %v13810_v5 = vld [vmem:[#allocation2 + $0x3c] sm:$0xff]  }
 0x1e5   :  { %v3698_v35 = vshrl.u32 %v3506_v53, 16  ;;  %2596 = vrot.lane.b32.xlu0 %v13806_v26, %s14236_s28  ;;  %v18601_v49 = vshll.u32 %v14962_v46, 16  ;;  %v18602_v31 = vshrl.u32 %v14991_v4, 16  ;;  %v13812_v26 = vld [vmem:[#allocation2 + $0x24] ss:$0 sps:$4 sm:$0xff]  }
 0x1e6   :  { %18599 = vst [vmem:[#allocation24_spill] sm:$0xff] %v15470_v17  ;;  %v3031_v56 = vpop.permute.xlu1 %3030  ;;  %v15487_v3 = vor.u32 %v4955_v62, %v4001_v37 }
 0x1e7   :  { %v3706_v54 = vor.u32 %v18601_v49, %v3703_v23  ;;  %v3700_v17 = vrot.slane %v3698_v35, 7  ;;  %v3512_v43 = vsel %vm264_vm1, %v3228_v48, %v3031_v56  ;;  %v2429_v12 = vpop.permute.xlu0 %2428  ;;  %v3723_v53 = vrot.slane %v18602_v31, 7  ;;  %v14230_v31 = vld [vmem:[%s18447_s3 + $0x10] sm:$0x3f]   ;;  %v13816_v49 = vld [vmem:[#allocation2 + $0x38] ss:$0 sps:$4 sm:$0xff]  }
 0x1e8   :  { %v3708_v13 = vshrl.u32 %v3512_v43, 16  ;;  %2602 = vrot.lane.b32.xlu1 %v13808_v42, %s14236_s28  ;;  %v3237_v46 = vsel %vm3216_vm4, %v13807_v10, %v2429_v12  ;;  %v18603_v35 = vshll.u32 %v14982_v63, 16  ;;  %v5069_v42 = vsel %vm4088_vm2, %v14230_v31, 0  ;;  %v13814_v10 = vld [vmem:[#allocation2 + $0x50] sm:$0xff]   ;;  %v13815_v63 = vld [vmem:[#allocation2 + $0x38] ss:$0 sps:$4 sm:$0xff]  }
 0x1e9   :  { %3204 = vrot.lane.b32.xlu0 %v13809_v25, %s14235_s27  ;;  %v3707_v62 = vsel %vm3697_vm6, %v3700_v17, %v3706_v54  ;;  %v13819_v31 = vld [vmem:[#allocation2 + $0x4c] ss:$0 sps:$4 sm:$0xff]  }
 0x1ea   :  { %v3716_v23 = vor.u32 %v18603_v35, %v3713_v6  ;;  %v3710_v34 = vrot.slane %v3708_v13, 7  ;;  %12985 = vmatprep.mubr.msk.bf16.mxu1 %vm4023_vm5, %v3707_v62  ;;  %v2435_v48 = vpop.permute.xlu1 %2434  ;;  %v18604_v13 = vshrl.u32 %v15018_v22, 16  ;;  %v13818_v62 = vld [vmem:[#allocation2 + $0x4c] ss:$0 sps:$4 sm:$0xff]  }
 0x1eb   :  { %v3037_v56 = vpop.permute.xlu0 %3036  ;;  %v3246_v54 = vsel %vm3216_vm4, %v13810_v5, %v2435_v48  ;;  %v18606_v48 = vshll.u32 %v15018_v22, 16  ;;  %v18608_v22 = vshrl.u32 %v15050_v44, 16 }
 0x1ec   :  { %v3717_v12 = vsel %vm3697_vm6, %v3710_v34, %v3716_v23  ;;  %v3518_v25 = vsel %vm264_vm1, %v3237_v46, %v3037_v56  ;;  %3210 = vrot.lane.b32.xlu1 %v13811_v24, %s14235_s27  ;;  %v3733_v17 = vrot.slane %v18604_v13, 7  ;;  %v18605_v46 = vshll.u32 %v14991_v4, 16 }
 0x1ed   :  { %v3718_v6 = vshrl.u32 %v3518_v25, 16  ;;  %2420 = vrot.lane.b32.xlu0 %v13812_v26, %s14236_s28  ;;  %12986 = vmatmul.mubr.msk.bf16.vlgmr.msra.gmra.mrb[64].mxu1 %vm4023_vm5, %v3717_v12  ;;  %v18607_v4 = vshrl.u32 %v15027_v28, 16  ;;  %v13817_v25 = vld [vmem:[#allocation2 + $0x64] sm:$0xff]  }
 0x1ee   :  { %13050 = vmatpush3.bf16.msra.mxu1 %v5069_v42  ;;  %v3043_v43 = vpop.permute.xlu1 %3042  ;;  %v3726_v35 = vor.u32 %v18605_v46, %v3723_v53  ;;  %v3736_v42 = vor.u32 %v18606_v48, %v3733_v17  ;;  %v3753_v17 = vrot.slane %v18608_v22, 7  ;;  %v13825_v48 = vld [vmem:[#allocation2 + $0x74] ss:$0 sps:$4 sm:$0xff]  }
 0x1ef   :  { %v3720_v24 = vrot.slane %v3718_v6, 7  ;;  %v3524_v23 = vsel %vm264_vm1, %v3246_v54, %v3043_v43  ;;  %v2441_v34 = vpop.permute.xlu0 %2440  ;;  %v3743_v53 = vrot.slane %v18607_v4, 7  ;;  %v13821_v6 = vld [vmem:[#allocation2 + $0x60] ss:$0 sps:$4 sm:$0xff]  }
 0x1f0   :  { %v3728_v56 = vshrl.u32 %v3524_v23, 16  ;;  %2426 = vrot.lane.b32.xlu1 %v13815_v63, %s14236_s28  ;;  %v3255_v26 = vsel %vm3216_vm4, %v13814_v10, %v2441_v34  ;;  %v13820_v63 = vld [vmem:[#allocation2 + $0x78] sm:$0xff]   ;;  %v13822_v43 = vld [vmem:[#allocation2 + $0x60] ss:$0 sps:$4 sm:$0xff]   ;;  %v13824_v23 = vld [vmem:[#allocation2 + $0x74] ss:$0 sps:$4 sm:$0xff]  }
 0x1f1   :  { %3028 = vrot.lane.b32.xlu0 %v13816_v49, %s14235_s27  ;;  %v3727_v5 = vsel %vm3697_vm6, %v3720_v24, %v3726_v35  ;;  %v18609_v34 = vshll.u32 %v15027_v28, 16  ;;  %v18611_v28 = vshrl.u32 %v15059_v52, 16 }
 0x1f2   :  { %v3730_v12 = vrot.slane %v3728_v56, 7  ;;  %12989 = vmatprep.mubr.msk.bf16.mxu1 %vm4023_vm5, %v3727_v5  ;;  %v2447_v13 = vpop.permute.xlu1 %2446 }
 0x1f3   :  { %v3049_v54 = vpop.permute.xlu0 %3048  ;;  %v3264_v35 = vsel %vm3216_vm4, %v13817_v25, %v2447_v13  ;;  %v3746_v56 = vor.u32 %v18609_v34, %v3743_v53  ;;  %v3763_v53 = vrot.slane %v18611_v28, 7 }
 0x1f4   :  { %v3530_v10 = vsel %vm264_vm1, %v3255_v26, %v3049_v54  ;;  %3034 = vrot.lane.b32.xlu1 %v13818_v62, %s14235_s27  ;;  %v3737_v49 = vsel %vm3697_vm6, %v3730_v12, %v3736_v42  ;;  %v18610_v12 = vshll.u32 %v15050_v44, 16  ;;  %v13823_v54 = vld [vmem:[#allocation2 + $0x8c] sm:$0xff]   ;;  %v18612_v44 = vshrl.u32 %v15082_v11, 16 }
 0x1f5   :  { %v3738_v46 = vshrl.u32 %v3530_v10, 16  ;;  %2432 = vrot.lane.b32.xlu0 %v13819_v31, %s14236_s28  ;;  %12990 = vmatmul.mubr.msk.bf16.gmra.mrb[68].mxu1 %vm4023_vm5, %v3737_v49  ;;  %v13827_v49 = vld [vmem:[#allocation2 + $0x88] ss:$0 sps:$4 sm:$0xff]  }
 0x1f6   :  { %v3055_v24 = vpop.permute.xlu1 %3054  ;;  %v3756_v25 = vor.u32 %v18610_v12, %v3753_v17  ;;  %v3773_v17 = vrot.slane %v18612_v44, 7 }
 0x1f7   :  { %v3740_v26 = vrot.slane %v3738_v46, 7  ;;  %v3536_v62 = vsel %vm264_vm1, %v3264_v35, %v3055_v24  ;;  %v2453_v5 = vpop.permute.xlu0 %2452  ;;  %v13828_v46 = vld [vmem:[#allocation2 + $0x88] ss:$0 sps:$4 sm:$0xff]  }
 0x1f8   :  { %v3748_v42 = vshrl.u32 %v3536_v62, 16  ;;  %2438 = vrot.lane.b32.xlu1 %v13821_v6, %s14236_s28  ;;  %v3273_v4 = vsel %vm3216_vm4, %v13820_v63, %v2453_v5  ;;  %v13826_v6 = vld [vmem:[#allocation2 + $0xa0] sm:$0xff]  }
 0x1f9   :  { %3040 = vrot.lane.b32.xlu0 %v13822_v43, %s14235_s27  ;;  %v3747_v31 = vsel %vm3697_vm6, %v3740_v26, %v3746_v56  ;;  %v13830_v56 = vld [vmem:[#allocation2 + $0x9c] ss:$0 sps:$4 sm:$0xff]   ;;  %v18613_v26 = vshll.u32 %v15059_v52, 16  ;;  %v18615_v52 = vshrl.u32 %v15091_v20, 16 }
 0x1fa   :  { %v3750_v13 = vrot.slane %v3748_v42, 7  ;;  %12993 = vmatprep.mubr.msk.bf16.mxu1 %vm4023_vm5, %v3747_v31  ;;  %v2459_v10 = vpop.permute.xlu1 %2458 }
 0x1fb   :  { %v3061_v22 = vpop.permute.xlu0 %3060  ;;  %v3282_v24 = vsel %vm3216_vm4, %v13823_v54, %v2459_v10  ;;  %v3766_v62 = vor.u32 %v18613_v26, %v3763_v53  ;;  %v3783_v53 = vrot.slane %v18615_v52, 7  ;;  %v13829_v54 = vld [vmem:[#allocation2 + $0xb4] sm:$0xff]   ;;  %v18617_v26 = vshll.u32 %v15091_v20, 16 }
 0x1fc   :  { %v3542_v63 = vsel %vm264_vm1, %v3273_v4, %v3061_v22  ;;  %3046 = vrot.lane.b32.xlu1 %v13824_v23, %s14235_s27  ;;  %v3757_v43 = vsel %vm3697_vm6, %v3750_v13, %v3756_v25  ;;  %v13831_v4 = vld [vmem:[#allocation2 + $0x9c] ss:$0 sps:$4 sm:$0xff]   ;;  %v18614_v25 = vshll.u32 %v15082_v11, 16  ;;  %v13833_v22 = vld [vmem:[#allocation2 + $0xb0] ss:$0 sps:$4 sm:$0xff]   ;;  %v18616_v11 = vshrl.u32 %v15114_v45, 16 }
 0x1fd   :  { %v3758_v35 = vshrl.u32 %v3542_v63, 16  ;;  %2444 = vrot.lane.b32.xlu0 %v13825_v48, %s14236_s28  ;;  %12994 = vmatmul.mubr.msk.bf16.gmra.mrb[72].mxu1 %vm4023_vm5, %v3757_v43  ;;  %v13834_v43 = vld [vmem:[#allocation2 + $0xb0] ss:$0 sps:$4 sm:$0xff]   ;;  %v18619_v20 = vshrl.u32 %v15123_v58, 16 }
 0x1fe   :  { %v3067_v34 = vpop.permute.xlu1 %3066  ;;  %v3776_v28 = vor.u32 %v18614_v25, %v3773_v17  ;;  %v3793_v44 = vrot.slane %v18616_v11, 7 }
 0x1ff   :  { %v3760_v5 = vrot.slane %v3758_v35, 7  ;;  %v3548_v23 = vsel %vm264_vm1, %v3282_v24, %v3067_v34  ;;  %v2465_v42 = vpop.permute.xlu0 %2464  ;;  %v13836_v34 = vld [vmem:[#allocation2 + $0xc4] ss:$0 sps:$4 sm:$0xff]  }
 0x200   :  { %v3768_v31 = vshrl.u32 %v3548_v23, 16  ;;  %2450 = vrot.lane.b32.xlu1 %v13827_v49, %s14236_s28  ;;  %v3291_v12 = vsel %vm3216_vm4, %v13826_v6, %v2465_v42  ;;  %v13832_v49 = vld [vmem:[#allocation2 + $0xc8] sm:$0xff]   ;;  %v13837_v42 = vld [vmem:[#allocation2 + $0xc4] ss:$0 sps:$4 sm:$0xff]  }
 0x201   :  { %3052 = vrot.lane.b32.xlu0 %v13828_v46, %s14235_s27  ;;  %v3767_v48 = vsel %vm3697_vm6, %v3760_v5, %v3766_v62  ;;  %v3786_v62 = vor.u32 %v18617_v26, %v3783_v53  ;;  %v13835_v53 = vld [vmem:[#allocation2 + $0xdc] sm:$0xff]  }
 0x202   :  { %v3770_v13 = vrot.slane %v3768_v31, 7  ;;  %12997 = vmatprep.mubr.msk.bf16.mxu1 %vm4023_vm5, %v3767_v48  ;;  %v2471_v10 = vpop.permute.xlu1 %2470  ;;  %v18618_v48 = vshll.u32 %v15114_v45, 16  ;;  %v18620_v45 = vshrl.u32 %v15146_v33, 16 }
 0x203   :  { %v3073_v63 = vpop.permute.xlu0 %3072  ;;  %v3300_v35 = vsel %vm3216_vm4, %v13829_v54, %v2471_v10  ;;  %v13839_v54 = vld [vmem:[#allocation2 + $0xd8] ss:$0 sps:$4 sm:$0xff]  }
 0x204   :  { %v3554_v6 = vsel %vm264_vm1, %v3291_v12, %v3073_v63  ;;  %3058 = vrot.lane.b32.xlu1 %v13830_v56, %s14235_s27  ;;  %v3777_v46 = vsel %vm3697_vm6, %v3770_v13, %v3776_v28  ;;  %v3796_v25 = vor.u32 %v18618_v48, %v3793_v44  ;;  %v3803_v28 = vrot.slane %v18619_v20, 7  ;;  %v13840_v63 = vld [vmem:[#allocation2 + $0xd8] ss:$0 sps:$4 sm:$0xff]  }
 0x205   :  { %v3778_v17 = vshrl.u32 %v3554_v6, 16  ;;  %2456 = vrot.lane.b32.xlu0 %v13831_v4, %s14236_s28  ;;  %12998 = vmatmul.mubr.msk.bf16.gmra.mrb[76].mxu1 %vm4023_vm5, %v3777_v46  ;;  %v3813_v6 = vrot.slane %v18620_v45, 7  ;;  %v13848_v45 = vld [vmem:[#allocation2 + $0x114] ss:$0 sps:$4 sm:$0xff]  }
 0x206   :  { %v3079_v24 = vpop.permute.xlu1 %3078 }
 0x207   :  { %v3780_v5 = vrot.slane %v3778_v17, 7  ;;  %v3560_v56 = vsel %vm264_vm1, %v3300_v35, %v3079_v24  ;;  %v2477_v23 = vpop.permute.xlu0 %2476  ;;  %v13842_v17 = vld [vmem:[#allocation2 + $0xec] ss:$0 sps:$4 sm:$0xff]   ;;  %v18621_v35 = vshll.u32 %v15123_v58, 16  ;;  %v18623_v58 = vshrl.u32 %v15155_v47, 16 }
 0x208   :  { %v3788_v31 = vshrl.u32 %v3560_v56, 16  ;;  %2462 = vrot.lane.b32.xlu1 %v13833_v22, %s14236_s28  ;;  %v3309_v12 = vsel %vm3216_vm4, %v13832_v49, %v2477_v23  ;;  %v13838_v22 = vld [vmem:[#allocation2 + $0xf0] sm:$0xff]  }
 0x209   :  { %3064 = vrot.lane.b32.xlu0 %v13834_v43, %s14235_s27  ;;  %v3787_v4 = vsel %vm3697_vm6, %v3780_v5, %v3786_v62  ;;  %v3806_v24 = vor.u32 %v18621_v35, %v3803_v28  ;;  %v13843_v5 = vld [vmem:[#allocation2 + $0xec] ss:$0 sps:$4 sm:$0xff]   ;;  %v13845_v28 = vld [vmem:[#allocation2 + $0x100] ss:$0 sps:$4 sm:$0xff]   ;;  %v13849_v35 = vld [vmem:[#allocation2 + $0x114] ss:$0 sps:$4 sm:$0xff]  }
 0x20a   :  { %v3790_v52 = vrot.slane %v3788_v31, 7  ;;  %13001 = vmatprep.mubr.msk.bf16.mxu1 %vm4023_vm5, %v3787_v4  ;;  %v2483_v13 = vpop.permute.xlu1 %2482  ;;  %v18622_v31 = vshll.u32 %v15146_v33, 16  ;;  %v3823_v4 = vrot.slane %v18623_v58, 7  ;;  %v18624_v33 = vshrl.u32 %v15178_v55, 16 }
 0x20b   :  { %v3085_v10 = vpop.permute.xlu0 %3084  ;;  %v3318_v11 = vsel %vm3216_vm4, %v13835_v53, %v2483_v13  ;;  %v13844_v53 = vld [vmem:[#allocation2 + $0x118] sm:$0xff]   ;;  %v13846_v13 = vld [vmem:[#allocation2 + $0x100] ss:$0 sps:$4 sm:$0xff]  }
 0x20c   :  { %v3566_v49 = vsel %vm264_vm1, %v3309_v12, %v3085_v10  ;;  %3070 = vrot.lane.b32.xlu1 %v13836_v34, %s14235_s27  ;;  %v3797_v43 = vsel %vm3697_vm6, %v3790_v52, %v3796_v25  ;;  %v3816_v12 = vor.u32 %v18622_v31, %v3813_v6  ;;  %v13841_v25 = vld [vmem:[#allocation2 + $0x104] sm:$0xff]   ;;  %v18625_v6 = vshll.u32 %v15155_v47, 16 }
 0x20d   :  { %v3798_v46 = vshrl.u32 %v3566_v49, 16  ;;  %2468 = vrot.lane.b32.xlu0 %v13837_v42, %s14236_s28  ;;  %13002 = vmatmul.mubr.msk.bf16.gmra.mrb[80].mxu1 %vm4023_vm5, %v3797_v43  ;;  %v18627_v47 = vshrl.u32 %v15187_v27, 16 }
 0x20e   :  { %v3091_v44 = vpop.permute.xlu1 %3090 }
 0x20f   :  { %v3800_v26 = vrot.slane %v3798_v46, 7  ;;  %v3572_v34 = vsel %vm264_vm1, %v3318_v11, %v3091_v44  ;;  %v2489_v62 = vpop.permute.xlu0 %2488  ;;  %v3826_v46 = vor.u32 %v18625_v6, %v3823_v4  ;;  %v13850_v4 = vld [vmem:[#allocation2 + $0x168] sm:$0xff]  }
 0x210   :  { %v3808_v56 = vshrl.u32 %v3572_v34, 16  ;;  %2474 = vrot.lane.b32.xlu1 %v13839_v54, %s14236_s28  ;;  %v3327_v23 = vsel %vm3216_vm4, %v13838_v22, %v2489_v62  ;;  %v3833_v22 = vrot.slane %v18624_v33, 7  ;;  %v18626_v62 = vshll.u32 %v15178_v55, 16 }
 0x211   :  { %3076 = vrot.lane.b32.xlu0 %v13840_v63, %s14235_s27  ;;  %v3807_v42 = vsel %vm3697_vm6, %v3800_v26, %v3806_v24  ;;  %v18628_v55 = vshrl.u32 %v15197_v18, 16 }
 0x212   :  { %v3810_v48 = vrot.slane %v3808_v56, 7  ;;  %13005 = vmatprep.mubr.msk.bf16.mxu1 %vm4023_vm5, %v3807_v42  ;;  %v2495_v20 = vpop.permute.xlu1 %2494  ;;  %v3843_v56 = vrot.slane %v18627_v47, 7  ;;  %v13847_v42 = vld [vmem:[#allocation2 + $0x12c] sm:$0xff]  }
 0x213   :  { %v3097_v52 = vpop.permute.xlu0 %3096  ;;  %v3336_v49 = vsel %vm3216_vm4, %v13841_v25, %v2495_v20  ;;  %v13858_v47 = vld [vmem:[#allocation2 + $0x150] ss:$0 sps:$4 sm:$0xff]  }
 0x214   :  { %v3578_v54 = vsel %vm264_vm1, %v3327_v23, %v3097_v52  ;;  %3082 = vrot.lane.b32.xlu1 %v13842_v17, %s14235_s27  ;;  %v3817_v10 = vsel %vm3697_vm6, %v3810_v48, %v3816_v12  ;;  %v13851_v12 = vld [vmem:[#allocation2 + $0x128] ss:$0 sps:$4 sm:$0xff]  }
 0x215   :  { %v3818_v63 = vshrl.u32 %v3578_v54, 16  ;;  %2480 = vrot.lane.b32.xlu0 %v13843_v5, %s14236_s28  ;;  %13006 = vmatmul.mubr.msk.bf16.gmra.mrb[84].mxu1 %vm4023_vm5, %v3817_v10  ;;  %v3836_v5 = vor.u32 %v18626_v62, %v3833_v22  ;;  %v13852_v48 = vld [vmem:[#allocation2 + $0x128] ss:$0 sps:$4 sm:$0xff]   ;;  %v13854_v54 = vld [vmem:[#allocation2 + $0x13c] ss:$0 sps:$4 sm:$0xff]   ;;  %v18629_v10 = vshll.u32 %v15187_v27, 16 }
 0x216   :  { %v3103_v43 = vpop.permute.xlu1 %3102  ;;  %v18631_v27 = vshrl.u32 %v15226_v39, 16 }
 0x217   :  { %v3820_v11 = vrot.slane %v3818_v63, 7  ;;  %v3584_v44 = vsel %vm264_vm1, %v3336_v49, %v3103_v43  ;;  %v2501_v17 = vpop.permute.xlu0 %2500  ;;  %v3846_v33 = vor.u32 %v18629_v10, %v3843_v56  ;;  %v13855_v43 = vld [vmem:[#allocation2 + $0x13c] ss:$0 sps:$4 sm:$0xff]   ;;  %v18634_v10 = vshll.u32 %v15242_v16, 16 }
 0x218   :  { %v3828_v24 = vshrl.u32 %v3584_v44, 16  ;;  %2486 = vrot.lane.b32.xlu1 %v13845_v28, %s14236_s28  ;;  %v3345_v26 = vsel %vm3216_vm4, %v13844_v53, %v2501_v17  ;;  %v3853_v28 = vrot.slane %v18628_v55, 7  ;;  %v3863_v17 = vrot.slane %v18631_v27, 7 }
 0x219   :  { %3088 = vrot.lane.b32.xlu0 %v13846_v13, %s14235_s27  ;;  %v3827_v34 = vsel %vm3697_vm6, %v3820_v11, %v3826_v46  ;;  %v18630_v11 = vshll.u32 %v15197_v18, 16  ;;  %v18632_v18 = vshrl.u32 %v15242_v16, 16  ;;  %v18636_v16 = vshrl.u32 %v15274_v50, 16 }
 0x21a   :  { %v3830_v23 = vrot.slane %v3828_v24, 7  ;;  %13009 = vmatprep.mubr.msk.bf16.mxu1 %vm4023_vm5, %v3827_v34  ;;  %v2507_v31 = vpop.permute.xlu1 %2506  ;;  %v13853_v24 = vld [vmem:[#allocation2 + $0x17c] sm:$0xff]   ;;  %v13857_v34 = vld [vmem:[#allocation2 + $0x150] ss:$0 sps:$4 sm:$0xff]  }
 0x21b   :  { %v3109_v58 = vpop.permute.xlu0 %3108  ;;  %v3354_v53 = vsel %vm3216_vm4, %v13847_v42, %v2507_v31  ;;  %v3856_v44 = vor.u32 %v18630_v11, %v3853_v28  ;;  %v3873_v42 = vrot.slane %v18632_v18, 7  ;;  %v13864_v11 = vld [vmem:[#allocation2 + $0x1a0] ss:$0 sps:$4 sm:$0xff]   ;;  %v13867_v18 = vld [vmem:[#allocation2 + $0x1b4] ss:$0 sps:$4 sm:$0xff]  }
 0x21c   :  { %v3590_v25 = vsel %vm264_vm1, %v3345_v26, %v3109_v58  ;;  %3094 = vrot.lane.b32.xlu1 %v13848_v45, %s14235_s27  ;;  %v3837_v20 = vsel %vm3697_vm6, %v3830_v23, %v3836_v5  ;;  %v13856_v5 = vld [vmem:[#allocation2 + $0x190] sm:$0xff]  }
 0x21d   :  { %v3838_v52 = vshrl.u32 %v3590_v25, 16  ;;  %2492 = vrot.lane.b32.xlu0 %v13849_v35, %s14236_s28  ;;  %13010 = vmatmul.mubr.msk.bf16.gmra.mrb[88].mxu1 %vm4023_vm5, %v3837_v20 }
 0x21e   :  { %v3115_v13 = vpop.permute.xlu1 %3114 }
 0x21f   :  { %v3840_v22 = vrot.slane %v3838_v52, 7  ;;  %v3596_v63 = vsel %vm264_vm1, %v3354_v53, %v3115_v13  ;;  %v2513_v49 = vpop.permute.xlu0 %2512  ;;  %v13861_v52 = vld [vmem:[#allocation2 + $0x18c] ss:$0 sps:$4 sm:$0xff]  }
 0x220   :  { %v3848_v45 = vshrl.u32 %v3596_v63, 16  ;;  %2498 = vrot.lane.b32.xlu1 %v13851_v12, %s14236_s28  ;;  %v3363_v6 = vsel %vm3216_vm4, %v13850_v4, %v2513_v49  ;;  %v13860_v4 = vld [vmem:[#allocation2 + $0x164] ss:$0 sps:$4 sm:$0xff]  }
 0x221   :  { %3100 = vrot.lane.b32.xlu0 %v13852_v48, %s14235_s27  ;;  %v3847_v46 = vsel %vm3697_vm6, %v3840_v22, %v3846_v33  ;;  %v18633_v48 = vshll.u32 %v15226_v39, 16  ;;  %v3876_v33 = vor.u32 %v18634_v10, %v3873_v42  ;;  %v18635_v39 = vshrl.u32 %v15251_v59, 16  ;;  %v13859_v49 = vld [vmem:[#allocation2 + $0x1a4] sm:$0xff]  }
 0x222   :  { %v3850_v35 = vrot.slane %v3848_v45, 7  ;;  %13013 = vmatprep.mubr.msk.bf16.mxu1 %vm4023_vm5, %v3847_v46  ;;  %v2519_v26 = vpop.permute.xlu1 %2518  ;;  %v13863_v45 = vld [vmem:[#allocation2 + $0x1a0] ss:$0 sps:$4 sm:$0xff]   ;;  %v13862_v46 = vld [vmem:[#allocation2 + $0x1b8] sm:$0xff]  }
 0x223   :  { %v3121_v62 = vpop.permute.xlu0 %3120  ;;  %v3372_v12 = vsel %vm3216_vm4, %v13853_v24, %v2519_v26  ;;  %v3866_v25 = vor.u32 %v18633_v48, %v3863_v17  ;;  %v3883_v22 = vrot.slane %v18635_v39, 7  ;;  %v3893_v17 = vrot.slane %v18636_v16, 7 }
 0x224   :  { %v3602_v56 = vsel %vm264_vm1, %v3363_v6, %v3121_v62  ;;  %3106 = vrot.lane.b32.xlu1 %v13854_v54, %s14235_s27  ;;  %v3857_v23 = vsel %vm3697_vm6, %v3850_v35, %v3856_v44  ;;  %v18637_v62 = vshll.u32 %v15251_v59, 16  ;;  %v18639_v59 = vshrl.u32 %v15283_v51, 16 }
 0x225   :  { %v3858_v31 = vshrl.u32 %v3602_v56, 16  ;;  %2504 = vrot.lane.b32.xlu0 %v13855_v43, %s14236_s28  ;;  %13014 = vmatmul.mubr.msk.bf16.gmra.mrb[92].mxu1 %vm4023_vm5, %v3857_v23 }
 0x226   :  { %v3127_v58 = vpop.permute.xlu1 %3126  ;;  %v3903_v48 = vrot.slane %v18639_v59, 7 }
 0x227   :  { %v3860_v20 = vrot.slane %v3858_v31, 7  ;;  %v3608_v55 = vsel %vm264_vm1, %v3372_v12, %v3127_v58  ;;  %v2525_v28 = vpop.permute.xlu0 %2524  ;;  %v18638_v58 = vshll.u32 %v15274_v50, 16  ;;  %v18640_v50 = vshrl.u32 %v15306_v2, 16 }
 0x228   :  { %v3868_v53 = vshrl.u32 %v3608_v55, 16  ;;  %2510 = vrot.lane.b32.xlu1 %v13857_v34, %s14236_s28  ;;  %v3381_v13 = vsel %vm3216_vm4, %v13856_v5, %v2525_v28  ;;  %v13866_v34 = vld [vmem:[#allocation2 + $0x1b4] ss:$0 sps:$4 sm:$0xff]   ;;  %v3886_v5 = vor.u32 %v18637_v62, %v3883_v22  ;;  %v13869_v28 = vld [vmem:[#allocation2 + $0x1c8] ss:$0 sps:$4 sm:$0xff]  }
 0x229   :  { %3112 = vrot.lane.b32.xlu0 %v13858_v47, %s14235_s27  ;;  %v3867_v54 = vsel %vm3697_vm6, %v3860_v20, %v3866_v25  ;;  %v13865_v20 = vld [vmem:[#allocation2 + $0x1cc] sm:$0xff]   ;;  %v13871_v62 = vld [vmem:[#allocation2 + $0x1f4] sm:$0xff]  }
 0x22a   :  { %v3870_v63 = vrot.slane %v3868_v53, 7  ;;  %13017 = vmatprep.mubr.msk.bf16.mxu1 %vm4023_vm5, %v3867_v54  ;;  %v2531_v43 = vpop.permute.xlu1 %2530  ;;  %v13868_v53 = vld [vmem:[#allocation2 + $0x1e0] sm:$0xff]  }
 0x22b   :  { %v3133_v6 = vpop.permute.xlu0 %3132  ;;  %v3390_v24 = vsel %vm3216_vm4, %v13859_v49, %v2531_v43  ;;  %v13872_v49 = vld [vmem:[#allocation2 + $0x1dc] ss:$0 sps:$4 sm:$0xff]   ;;  %v18641_v43 = vshll.u32 %v15283_v51, 16  ;;  %v18643_v51 = vshrl.u32 %v15315_v57, 16 }
 0x22c   :  { %v3614_v44 = vsel %vm264_vm1, %v3381_v13, %v3133_v6  ;;  %3118 = vrot.lane.b32.xlu1 %v13860_v4, %s14235_s27  ;;  %v3877_v27 = vsel %vm3697_vm6, %v3870_v63, %v3876_v33  ;;  %v3896_v4 = vor.u32 %v18638_v58, %v3893_v17  ;;  %v13870_v13 = vld [vmem:[#allocation2 + $0x1c8] ss:$0 sps:$4 sm:$0xff]   ;;  %v3913_v33 = vrot.slane %v18640_v50, 7 }
 0x22d   :  { %v3878_v35 = vshrl.u32 %v3614_v44, 16  ;;  %2516 = vrot.lane.b32.xlu0 %v13861_v52, %s14236_s28  ;;  %13018 = vmatmul.mubr.msk.bf16.gmra.mrb[96].mxu1 %vm4023_vm5, %v3877_v27  ;;  %v13873_v44 = vld [vmem:[#allocation2 + $0x1dc] ss:$0 sps:$4 sm:$0xff]   ;;  %v18646_v50 = vshll.u32 %v15338_v38, 16 }
 0x22e   :  { %v3139_v26 = vpop.permute.xlu1 %3138 }
 0x22f   :  { %v3880_v47 = vrot.slane %v3878_v35, 7  ;;  %v3620_v56 = vsel %vm264_vm1, %v3390_v24, %v3139_v26  ;;  %v2537_v23 = vpop.permute.xlu0 %2536  ;;  %v18642_v35 = vshll.u32 %v15306_v2, 16  ;;  %v3923_v26 = vrot.slane %v18643_v51, 7 }
 0x230   :  { %v3888_v42 = vshrl.u32 %v3620_v56, 16  ;;  %2522 = vrot.lane.b32.xlu1 %v13863_v45, %s14236_s28  ;;  %v3399_v31 = vsel %vm3216_vm4, %v13862_v46, %v2537_v23  ;;  %v3906_v45 = vor.u32 %v18641_v43, %v3903_v48  ;;  %v13874_v23 = vld [vmem:[#allocation2 + $0x208] sm:$0xff]   ;;  %v18644_v2 = vshrl.u32 %v15338_v38, 16  ;;  %v13878_v48 = vld [vmem:[#allocation2 + $0x204] ss:$0 sps:$4 sm:$0xff]   ;;  %v13880_v38 = vld [vmem:[#allocation2 + $0x230] sm:$0xff]  }
 0x231   :  { %3124 = vrot.lane.b32.xlu0 %v13864_v11, %s14235_s27  ;;  %v3887_v12 = vsel %vm3697_vm6, %v3880_v47, %v3886_v5  ;;  %v3916_v24 = vor.u32 %v18642_v35, %v3913_v33  ;;  %v13875_v47 = vld [vmem:[#allocation2 + $0x1f0] ss:$0 sps:$4 sm:$0xff]  }
 0x232   :  { %v3890_v25 = vrot.slane %v3888_v42, 7  ;;  %13021 = vmatprep.mubr.msk.bf16.mxu1 %vm4023_vm5, %v3887_v12  ;;  %v2543_v55 = vpop.permute.xlu1 %2542  ;;  %v3933_v12 = vrot.slane %v18644_v2, 7  ;;  %v13883_v2 = vld [vmem:[#allocation2 + $0x244] sm:$0xff]  }
 0x233   :  { %v3145_v52 = vpop.permute.xlu0 %3144  ;;  %v3408_v22 = vsel %vm3216_vm4, %v13865_v20, %v2543_v55 }
 0x234   :  { %v3626_v54 = vsel %vm264_vm1, %v3399_v31, %v3145_v52  ;;  %3130 = vrot.lane.b32.xlu1 %v13866_v34, %s14235_s27  ;;  %v3897_v10 = vsel %vm3697_vm6, %v3890_v25, %v3896_v4  ;;  %v18645_v25 = vshll.u32 %v15315_v57, 16  ;;  %v3936_v33 = vor.u32 %v18646_v50, %v3933_v12  ;;  %v13877_v57 = vld [vmem:[#allocation2 + $0x21c] sm:$0xff]  }
 0x235   :  { %v3898_v39 = vshrl.u32 %v3626_v54, 16  ;;  %2528 = vrot.lane.b32.xlu0 %v13867_v18, %s14236_s28  ;;  %13022 = vmatmul.mubr.msk.bf16.gmra.mrb[100].mxu1 %vm4023_vm5, %v3897_v10  ;;  %v13876_v18 = vld [vmem:[#allocation2 + $0x1f0] ss:$0 sps:$4 sm:$0xff]   ;;  %v13879_v10 = vld [vmem:[#allocation2 + $0x204] ss:$0 sps:$4 sm:$0xff]  }
 0x236   :  { %v3151_v63 = vpop.permute.xlu1 %3150  ;;  %v3926_v20 = vor.u32 %v18645_v25, %v3923_v26 }
 0x237   :  { %v3900_v6 = vrot.slane %v3898_v39, 7  ;;  %v3632_v46 = vsel %vm264_vm1, %v3408_v22, %v3151_v63  ;;  %v2549_v11 = vpop.permute.xlu0 %2548  ;;  %v18647_v63 = vshrl.u32 %v15347_v32, 16 }
 0x238   :  { %v3908_v27 = vshrl.u32 %v3632_v46, 16  ;;  %2534 = vrot.lane.b32.xlu1 %v13869_v28, %s14236_s28  ;;  %v3417_v16 = vsel %vm3216_vm4, %v13868_v53, %v2549_v11  ;;  %v13881_v46 = vld [vmem:[#allocation2 + $0x218] ss:$0 sps:$4 sm:$0xff]  }
 0x239   :  { %3136 = vrot.lane.b32.xlu0 %v13870_v13, %s14235_s27  ;;  %v3907_v17 = vsel %vm3697_vm6, %v3900_v6, %v3906_v45 }
 0x23a   :  { %v3910_v34 = vrot.slane %v3908_v27, 7  ;;  %13025 = vmatprep.mubr.msk.bf16.mxu1 %vm4023_vm5, %v3907_v17  ;;  %v2555_v5 = vpop.permute.xlu1 %2554  ;;  %v18648_v27 = vshrl.u32 %v15370_v15, 16 }
 0x23b   :  { %v3157_v56 = vpop.permute.xlu0 %3156  ;;  %v3426_v4 = vsel %vm3216_vm4, %v13871_v62, %v2555_v5 }
 0x23c   :  { %v3638_v42 = vsel %vm264_vm1, %v3417_v16, %v3157_v56  ;;  %3142 = vrot.lane.b32.xlu1 %v13872_v49, %s14235_s27  ;;  %v3917_v31 = vsel %vm3697_vm6, %v3910_v34, %v3916_v24  ;;  %v3943_v49 = vrot.slane %v18647_v63, 7  ;;  %v3953_v16 = vrot.slane %v18648_v27, 7  ;;  %v13890_v63 = vld [vmem:[#allocation2 + $0x254] ss:$0 sps:$4 sm:$0xff]  }
 0x23d   :  { %v3918_v58 = vshrl.u32 %v3638_v42, 16  ;;  %2540 = vrot.lane.b32.xlu0 %v13873_v44, %s14236_s28  ;;  %13026 = vmatmul.mubr.msk.bf16.gmra.mrb[104].mxu1 %vm4023_vm5, %v3917_v31  ;;  %v13882_v44 = vld [vmem:[#allocation2 + $0x218] ss:$0 sps:$4 sm:$0xff]   ;;  %v18649_v24 = vshll.u32 %v15347_v32, 16  ;;  %v18650_v42 = vshll.u32 %v15370_v15, 16 }
 0x23e   :  { %v3163_v59 = vpop.permute.xlu1 %3162  ;;  %v13886_v15 = vld [vmem:[#allocation2 + $0x258] sm:$0xff]  }
 0x23f   :  { %v3920_v55 = vrot.slane %v3918_v58, 7  ;;  %v3644_v28 = vsel %vm264_vm1, %v3426_v4, %v3163_v59  ;;  %v2561_v52 = vpop.permute.xlu0 %2560  ;;  %v3946_v51 = vor.u32 %v18649_v24, %v3943_v49  ;;  %v3956_v31 = vor.u32 %v18650_v42, %v3953_v16  ;;  %v13893_v24 = vld [vmem:[#allocation2 + $0x268] ss:$0 sps:$4 sm:$0xff]  }
 0x240   :  { %v3928_v53 = vshrl.u32 %v3644_v28, 16  ;;  %2546 = vrot.lane.b32.xlu1 %v13875_v47, %s14236_s28  ;;  %v3435_v13 = vsel %vm3216_vm4, %v13874_v23, %v2561_v52  ;;  %v13884_v47 = vld [vmem:[#allocation2 + $0x22c] ss:$0 sps:$4 sm:$0xff]   ;;  %v18651_v58 = vshrl.u32 %v15379_v8, 16  ;;  %v13888_v28 = vld [vmem:[#allocation2 + $0x240] ss:$0 sps:$4 sm:$0xff]  }
 0x241   :  { %3148 = vrot.lane.b32.xlu0 %v13876_v18, %s14235_s27  ;;  %v3927_v54 = vsel %vm3697_vm6, %v3920_v55, %v3926_v20  ;;  %v13885_v18 = vld [vmem:[#allocation2 + $0x22c] ss:$0 sps:$4 sm:$0xff]   ;;  %v13887_v20 = vld [vmem:[#allocation2 + $0x240] ss:$0 sps:$4 sm:$0xff]   ;;  %v18652_v52 = vshrl.u32 %v15402_v21, 16 }
 0x242   :  { %v3930_v39 = vrot.slane %v3928_v53, 7  ;;  %13029 = vmatprep.mubr.msk.bf16.mxu1 %vm4023_vm5, %v3927_v54  ;;  %v2567_v22 = vpop.permute.xlu1 %2566  ;;  %v3963_v4 = vrot.slane %v18651_v58, 7 }
 0x243   :  { %v3169_v43 = vpop.permute.xlu0 %3168  ;;  %v3444_v17 = vsel %vm3216_vm4, %v13877_v57, %v2567_v22  ;;  %v3973_v53 = vrot.slane %v18652_v52, 7 }
 0x244   :  { %v3650_v45 = vsel %vm264_vm1, %v3435_v13, %v3169_v43  ;;  %3154 = vrot.lane.b32.xlu1 %v13878_v48, %s14235_s27  ;;  %v3937_v6 = vsel %vm3697_vm6, %v3930_v39, %v3936_v33 }
 0x245   :  { %v3938_v11 = vshrl.u32 %v3650_v45, 16  ;;  %2552 = vrot.lane.b32.xlu0 %v13879_v10, %s14236_s28  ;;  %13030 = vmatmul.mubr.msk.bf16.gmra.mrb[108].mxu1 %vm4023_vm5, %v3937_v6  ;;  %v18653_v10 = vshll.u32 %v15379_v8, 16  ;;  %v13891_v45 = vld [vmem:[#allocation2 + $0x254] ss:$0 sps:$4 sm:$0xff]   ;;  %v18654_v6 = vshll.u32 %v15402_v21, 16  ;;  %v13892_v21 = vld [vmem:[#allocation2 + $0x280] sm:$0xff]  }
 0x246   :  { %v3175_v35 = vpop.permute.xlu1 %3174 }
 0x247   :  { %v3940_v26 = vrot.slane %v3938_v11, 7  ;;  %v3656_v34 = vsel %vm264_vm1, %v3444_v17, %v3175_v35  ;;  %v2573_v62 = vpop.permute.xlu0 %2572  ;;  %v3966_v50 = vor.u32 %v18653_v10, %v3963_v4  ;;  %v13889_v11 = vld [vmem:[#allocation2 + $0x26c] sm:$0xff]   ;;  %v13897_v4 = vld [vmem:[#allocation2 + $0x27c] ss:$0 sps:$4 sm:$0xff]   ;;  %v18659_v10 = vshrl.u32 %v15446_v30, 16 }
 0x248   :  { %v3948_v5 = vshrl.u32 %v3656_v34, 16  ;;  %2558 = vrot.lane.b32.xlu1 %v13881_v46, %s14236_s28  ;;  %v3453_v56 = vsel %vm3216_vm4, %v13880_v38, %v2573_v62  ;;  %v3976_v46 = vor.u32 %v18654_v6, %v3973_v53  ;;  %v18656_v34 = vshrl.u32 %v15434_v9, 16  ;;  %v13899_v53 = vld [vmem:[#allocation2 + $0x290] ss:$0 sps:$4 sm:$0xff]  }
 0x249   :  { %3160 = vrot.lane.b32.xlu0 %v13882_v44, %s14235_s27  ;;  %v3947_v23 = vsel %vm3697_vm6, %v3940_v26, %v3946_v51  ;;  %v18655_v44 = vshrl.u32 %v15411_v29, 16  ;;  %v13894_v26 = vld [vmem:[#allocation2 + $0x268] ss:$0 sps:$4 sm:$0xff]  }
 0x24a   :  { %v3950_v32 = vrot.slane %v3948_v5, 7  ;;  %13033 = vmatprep.mubr.msk.bf16.mxu1 %vm4023_vm5, %v3947_v23  ;;  %v2579_v12 = vpop.permute.xlu1 %2578  ;;  %v3993_v62 = vrot.slane %v18656_v34, 7 }
 0x24b   :  { %v3181_v59 = vpop.permute.xlu0 %3180  ;;  %v3462_v13 = vsel %vm3216_vm4, %v13883_v2, %v2579_v12  ;;  %v3983_v27 = vrot.slane %v18655_v44, 7  ;;  %v13896_v2 = vld [vmem:[#allocation2 + $0x27c] ss:$0 sps:$4 sm:$0xff]   ;;  %v13901_v44 = vld [vmem:[#allocation2 + $0x24] ss:$0 sps:$4 sm:$0xff]  }
 0x24c   :  { %v3662_v48 = vsel %vm264_vm1, %v3453_v56, %v3181_v59  ;;  %3166 = vrot.lane.b32.xlu1 %v13884_v47, %s14235_s27  ;;  %v3957_v25 = vsel %vm3697_vm6, %v3950_v32, %v3956_v31  ;;  %v18657_v56 = vshll.u32 %v15411_v29, 16  ;;  %v18658_v59 = vshll.u32 %v15434_v9, 16  ;;  %v13898_v9 = vld [vmem:[#allocation2 + $0x10] ss:$0 sps:$4 sm:$0xff]  }
 0x24d   :  { %v3958_v55 = vshrl.u32 %v3662_v48, 16  ;;  %2564 = vrot.lane.b32.xlu0 %v13885_v18, %s14236_s28  ;;  %13034 = vmatmul.mubr.msk.bf16.gmra.mrb[112].mxu1 %vm4023_vm5, %v3957_v25  ;;  %v13895_v25 = vld [vmem:[#allocation2 + $0x294] sm:$0xff]  }
 0x24e   :  { %v3187_v54 = vpop.permute.xlu1 %3186  ;;  %v3986_v23 = vor.u32 %v18657_v56, %v3983_v27  ;;  %v3996_v48 = vor.u32 %v18658_v59, %v3993_v62 }
 0x24f   :  { %v3960_v33 = vrot.slane %v3958_v55, 7  ;;  %v3668_v39 = vsel %vm264_vm1, %v3462_v13, %v3187_v54  ;;  %v2585_v57 = vpop.permute.xlu0 %2584  ;;  %v4003_v55 = vrot.slane %v4001_v37, 7  ;;  %v13900_v54 = vld [vmem:[#allocation2 + $0x290] ss:$0 sps:$4 sm:$0xff]  }
 0x250   :  { %v3968_v22 = vshrl.u32 %v3668_v39, 16  ;;  %2570 = vrot.lane.b32.xlu1 %v13887_v20, %s14236_s28  ;;  %v3471_v49 = vsel %vm3216_vm4, %v13886_v15, %v2585_v57  ;;  %v18660_v39 = vshll.u32 %v15460_v60, 16 }
 0x251   :  { %3172 = vrot.lane.b32.xlu0 %v13888_v28, %s14235_s27  ;;  %v3967_v43 = vsel %vm3697_vm6, %v3960_v33, %v3966_v50  ;;  %v4013_v50 = vrot.slane %v18659_v10, 7 }
 0x252   :  { %v3970_v8 = vrot.slane %v3968_v22, 7  ;;  %13037 = vmatprep.mubr.msk.bf16.mxu1 %vm4023_vm5, %v3967_v43  ;;  %v2591_v38 = vpop.permute.xlu1 %2590  ;;  %v4006_v57 = vor.u32 %v18660_v39, %v4003_v55 }
 0x253   :  { %v3193_v16 = vpop.permute.xlu0 %3192  ;;  %v3480_v5 = vsel %vm3216_vm4, %v13889_v11, %v2591_v38  ;;  %v18661_v11 = vshll.u32 %v15446_v30, 16  ;;  %v13904_v30 = vld [vmem:[#allocation2 + $0x38] ss:$0 sps:$4 sm:$0xff]  }
 0x254   :  { %v3674_v17 = vsel %vm264_vm1, %v3471_v49, %v3193_v16  ;;  %3178 = vrot.lane.b32.xlu1 %v13890_v63, %s14235_s27  ;;  %v3977_v35 = vsel %vm3697_vm6, %v3970_v8, %v3976_v46  ;;  %v13903_v8 = vld [vmem:[#allocation2 + $0x2a4] ss:$0 sps:$4 sm:$0xff]  }
 0x255   :  { %v3978_v51 = vshrl.u32 %v3674_v17, 16  ;;  %2576 = vrot.lane.b32.xlu0 %v13891_v45, %s14236_s28  ;;  %13038 = vmatmul.mubr.msk.bf16.gmra.mrb[116].mxu1 %vm4023_vm5, %v3977_v35  ;;  %v13902_v45 = vld [vmem:[#allocation2 + $0x2a4] ss:$0 sps:$4 sm:$0xff]   ;;  %v4016_v38 = vor.u32 %v18661_v11, %v4013_v50 }
 0x256   :  { %v3199_v47 = vpop.permute.xlu1 %3198 }
 0x257   :  { %v3980_v18 = vrot.slane %v3978_v51, 7  ;;  %v3680_v42 = vsel %vm264_vm1, %v3480_v5, %v3199_v47  ;;  %v2597_v31 = vpop.permute.xlu0 %2596 }
 0x258   :  { %v3988_v32 = vshrl.u32 %v3680_v42, 16  ;;  %2582 = vrot.lane.b32.xlu1 %v13893_v24, %s14236_s28  ;;  %v3489_v12 = vsel %vm3216_vm4, %v13892_v21, %v2597_v31  ;;  %v13905_v24 = vld [vmem:[#allocation2 + $0x2b8] ss:$0 sps:$4 sm:$0xff]  }
 0x259   :  { %3184 = vrot.lane.b32.xlu0 %v13894_v26, %s14235_s27  ;;  %v3987_v58 = vsel %vm3697_vm6, %v3980_v18, %v3986_v23  ;;  %v13906_v21 = vld [vmem:[#allocation2 + $0x2b8] ss:$0 sps:$4 sm:$0xff]   ;;  %v13908_v23 = vld [vmem:[#allocation2 + $0x2cc] ss:$0 sps:$4 sm:$0xff]  }
 0x25a   :  { %v3990_v29 = vrot.slane %v3988_v32, 7  ;;  %13041 = vmatprep.mubr.msk.bf16.mxu1 %vm4023_vm5, %v3987_v58  ;;  %v2603_v20 = vpop.permute.xlu1 %2602  ;;  %v13907_v32 = vld [vmem:[#allocation2 + $0x4c] ss:$0 sps:$4 sm:$0xff]  }
 0x25b   :  { %v3205_v15 = vpop.permute.xlu0 %3204  ;;  %v3498_v37 = vsel %vm3216_vm4, %v13895_v25, %v2603_v20 }
 0x25c   :  { %v3686_v28 = vsel %vm264_vm1, %v3489_v12, %v3205_v15  ;;  %3190 = vrot.lane.b32.xlu1 %v13896_v2, %s14235_s27  ;;  %v3997_v52 = vsel %vm3697_vm6, %v3990_v29, %v3996_v48  ;;  %v13909_v48 = vld [vmem:[#allocation2 + $0x60] ss:$0 sps:$4 sm:$0xff]  }
 0x25d   :  { %v3998_v13 = vshrl.u32 %v3686_v28, 16  ;;  %2588 = vrot.lane.b32.xlu0 %v13897_v4, %s14236_s28  ;;  %13042 = vmatmul.mubr.msk.bf16.gmra.mrb[120].mxu1 %vm4023_vm5, %v3997_v52 }
 0x25e   :  { %v3211_v33 = vpop.permute.xlu1 %3210 }
 0x25f   :  { %v4000_v22 = vrot.slane %v3998_v13, 7  ;;  %v3692_v63 = vsel %vm264_vm1, %v3498_v37, %v3211_v33  ;;  %v2421_v49 = vpop.permute.xlu0 %2420  ;;  %v13911_v37 = vld [vmem:[#allocation2 + $0x88] ss:$0 sps:$4 sm:$0xff]  }
 0x260   :  { %v4008_v43 = vshrl.u32 %v3692_v63, 16  ;;  %2594 = vrot.lane.b32.xlu1 %v13899_v53, %s14236_s28  ;;  %v3225_v6 = vsel %vm3216_vm4, %v13898_v9, %v2421_v49  ;;  %v13910_v53 = vld [vmem:[#allocation2 + $0x74] ss:$0 sps:$4 sm:$0xff]  }
 0x261   :  { %3196 = vrot.lane.b32.xlu0 %v13900_v54, %s14235_s27  ;;  %v4007_v46 = vsel %vm3697_vm6, %v4000_v22, %v4006_v57 }
 0x262   :  { %v4010_v60 = vrot.slane %v4008_v43, 7  ;;  %13045 = vmatprep.mubr.msk.bf16.mxu1 %vm4023_vm5, %v4007_v46  ;;  %v2427_v27 = vpop.permute.xlu1 %2426 }
 0x263   :  { %v3029_v16 = vpop.permute.xlu0 %3028  ;;  %v3234_v26 = vsel %vm3216_vm4, %v13901_v44, %v2427_v27 }
 0x264   :  { %v3510_v17 = vsel %vm264_vm1, %v3225_v6, %v3029_v16  ;;  %3202 = vrot.lane.b32.xlu1 %v13902_v45, %s14235_s27  ;;  %v4017_v35 = vsel %vm3697_vm6, %v4010_v60, %v4016_v38  ;;  %v13913_v60 = vld [vmem:[#allocation2 + $0xb0] ss:$0 sps:$4 sm:$0xff]  }
 0x265   :  { %v4777_v51 = vshll.u32 %v3510_v17, 16  ;;  %2600 = vrot.lane.b32.xlu0 %v13903_v8, %s14236_s28  ;;  %13046 = vmatmul.mubr.msk.bf16.gmra.mrb[124].mxu1 %vm4023_vm5, %v4017_v35 }
 0x266   :  { %v3035_v34 = vpop.permute.xlu1 %3034 }
 0x267   :  { %v4779_v62 = vrot.slane %v4777_v51, 1  ;;  %v3516_v5 = vsel %vm264_vm1, %v3234_v26, %v3035_v34  ;;  %v2433_v47 = vpop.permute.xlu0 %2432 }
 0x268   :  { %v4783_v56 = vshll.u32 %v3516_v5, 16  ;;  %2606 = vrot.lane.b32.xlu1 %v13905_v24, %s14236_s28  ;;  %v3243_v18 = vsel %vm3216_vm4, %v13904_v30, %v2433_v47  ;;  %v13915_v47 = vld [vmem:[#allocation2 + $0xd8] ss:$0 sps:$4 sm:$0xff]  }
 0x269   :  { %3208 = vrot.lane.b32.xlu0 %v13906_v21, %s14235_s27  ;;  %v4780_v42 = vsel %vm4774_vm7, %v14979_v61, %v4779_v62 }
 0x26a   :  { %v4785_v31 = vrot.slane %v4783_v56, 1  ;;  %13051 = vmatprep.mubr.msk.bf16.mxu1 %vm4023_vm5, %v4780_v42  ;;  %v2439_v2 = vpop.permute.xlu1 %2438 }
 0x26b   :  { %v3041_v12 = vpop.permute.xlu0 %3040  ;;  %v3252_v29 = vsel %vm3216_vm4, %v13907_v32, %v2439_v2 }
 0x26c   :  { %v4786_v58 = vsel %vm4774_vm7, %v15004_v14, %v4785_v31  ;;  %v3522_v4 = vsel %vm264_vm1, %v3243_v18, %v3041_v12  ;;  %3214 = vrot.lane.b32.xlu1 %v13908_v23, %s14235_s27 }
 0x26d   :  { %v4789_v59 = vshll.u32 %v3522_v4, 16  ;;  %13052 = vmatmul.mubr.msk.bf16.vlgmr.msra.gmra.mrb[64].mxu1 %vm4023_vm5, %v4786_v58 }
 0x26e   :  { %v3047_v61 = vpop.permute.xlu1 %3046 }
 0x26f   :  { %v4791_v25 = vrot.slane %v4789_v59, 1  ;;  %v3528_v20 = vsel %vm264_vm1, %v3252_v29, %v3047_v61  ;;  %v2445_v55 = vpop.permute.xlu0 %2444 }
 0x270   :  { %v4795_v15 = vshll.u32 %v3528_v20, 16  ;;  %v3261_v28 = vsel %vm3216_vm4, %v13909_v48, %v2445_v55  ;;  %v18662_v48 = vld [vmem:[#allocation3_spill] sm:$0xff] }
 0x271   :  { %v4792_v14 = vsel %vm4774_vm7, %v15015_v19, %v4791_v25  ;;  %v13917_v25 = vld [vmem:[#allocation2 + $0x100] ss:$0 sps:$4 sm:$0xff]  }
 0x272   :  { %v4797_v52 = vrot.slane %v4795_v15, 1  ;;  %13055 = vmatprep.mubr.msk.bf16.mxu1 %vm4023_vm5, %v4792_v14  ;;  %v2451_v13 = vpop.permute.xlu1 %2450 }
 0x273   :  { %v3053_v9 = vpop.permute.xlu0 %3052  ;;  %v3270_v33 = vsel %vm3216_vm4, %v13910_v53, %v2451_v13  ;;  %v18663_v53 = vld [vmem:[#allocation4_spill] sm:$0xff] }
 0x274   :  { %v3534_v54 = vsel %vm264_vm1, %v3261_v28, %v3053_v9  ;;  %v4798_v10 = vsel %vm4774_vm7, %v15037_v36, %v4797_v52  ;;  %v13912_v36 = vld [vmem:[#allocation2 + $0x9c] ss:$0 sps:$4 sm:$0xff]  }
 0x275   :  { %v4801_v50 = vshll.u32 %v3534_v54, 16  ;;  %13056 = vmatmul.mubr.msk.bf16.gmra.mrb[68].mxu1 %vm4023_vm5, %v4798_v10  ;;  %v13918_v54 = vld [vmem:[#allocation2 + $0x114] ss:$0 sps:$4 sm:$0xff]  }
 0x276   :  { %v3059_v39 = vpop.permute.xlu1 %3058 }
 0x277   :  { %v4803_v57 = vrot.slane %v4801_v50, 1  ;;  %v3540_v19 = vsel %vm264_vm1, %v3270_v33, %v3059_v39  ;;  %v2457_v22 = vpop.permute.xlu0 %2456  ;;  %v18664_v33 = vld [vmem:[#allocation5_spill] sm:$0xff] }
 0x278   :  { %v4807_v63 = vshll.u32 %v3540_v19, 16  ;;  %v3279_v49 = vsel %vm3216_vm4, %v13911_v37, %v2457_v22  ;;  %v13919_v19 = vld [vmem:[#allocation2 + $0x128] ss:$0 sps:$4 sm:$0xff]  }
 0x279   :  { %v4804_v43 = vsel %vm4774_vm7, %v15047_v41, %v4803_v57 }
 0x27a   :  { %v4809_v45 = vrot.slane %v4807_v63, 1  ;;  %13059 = vmatprep.mubr.msk.bf16.mxu1 %vm4023_vm5, %v4804_v43  ;;  %v2463_v6 = vpop.permute.xlu1 %2462 }
 0x27b   :  { %v3065_v46 = vpop.permute.xlu0 %3064  ;;  %v3288_v44 = vsel %vm3216_vm4, %v13912_v36, %v2463_v6 }
 0x27c   :  { %v3546_v8 = vsel %vm264_vm1, %v3279_v49, %v3065_v46  ;;  %v4810_v11 = vsel %vm4774_vm7, %v15069_v0, %v4809_v45  ;;  %v13914_v0 = vld [vmem:[#allocation2 + $0xc4] ss:$0 sps:$4 sm:$0xff]   ;;  %v18665_v46 = vld [vmem:[#allocation6_spill] sm:$0xff] }
 0x27d   :  { %v4813_v38 = vshll.u32 %v3546_v8, 16  ;;  %13060 = vmatmul.mubr.msk.bf16.gmra.mrb[72].mxu1 %vm4023_vm5, %v4810_v11 }
 0x27e   :  { %v3071_v27 = vpop.permute.xlu1 %3070 }
 0x27f   :  { %v4815_v16 = vrot.slane %v4813_v38, 1  ;;  %v3552_v41 = vsel %vm264_vm1, %v3288_v44, %v3071_v27  ;;  %v2469_v17 = vpop.permute.xlu0 %2468  ;;  %v13920_v38 = vld [vmem:[#allocation2 + $0x13c] ss:$0 sps:$4 sm:$0xff]  }
 0x280   :  { %v4819_v35 = vshll.u32 %v3552_v41, 16  ;;  %v3297_v24 = vsel %vm3216_vm4, %v13913_v60, %v2469_v17 }
 0x281   :  { %v4816_v51 = vsel %vm4774_vm7, %v15079_v7, %v4815_v16  ;;  %v18666_v16 = vld [vmem:[#allocation7_spill] sm:$0xff] }
 0x282   :  { %v4821_v30 = vrot.slane %v4819_v35, 1  ;;  %13063 = vmatprep.mubr.msk.bf16.mxu1 %vm4023_vm5, %v4816_v51  ;;  %v2475_v21 = vpop.permute.xlu1 %2474  ;;  %v13921_v35 = vld [vmem:[#allocation2 + $0x178] ss:$0 sps:$4 sm:$0xff]  }
 0x283   :  { %v3077_v26 = vpop.permute.xlu0 %3076  ;;  %v3306_v56 = vsel %vm3216_vm4, %v13914_v0, %v2475_v21 }
 0x284   :  { %v3558_v34 = vsel %vm264_vm1, %v3297_v24, %v3077_v26  ;;  %v4822_v62 = vsel %vm4774_vm7, %v15101_v1, %v4821_v30  ;;  %v13916_v1 = vld [vmem:[#allocation2 + $0xec] ss:$0 sps:$4 sm:$0xff]  }
 0x285   :  { %v4825_v5 = vshll.u32 %v3558_v34, 16  ;;  %13064 = vmatmul.mubr.msk.bf16.gmra.mrb[76].mxu1 %vm4023_vm5, %v4822_v62  ;;  %v18667_v62 = vld [vmem:[#allocation8_spill] sm:$0xff] }
 0x286   :  { %v3083_v23 = vpop.permute.xlu1 %3082 }
 0x287   :  { %v4827_v18 = vrot.slane %v4825_v5, 1  ;;  %v3564_v7 = vsel %vm264_vm1, %v3306_v56, %v3083_v23  ;;  %v2481_v42 = vpop.permute.xlu0 %2480  ;;  %v13922_v56 = vld [vmem:[#allocation2 + $0x18c] ss:$0 sps:$4 sm:$0xff]  }
 0x288   :  { %v4831_v31 = vshll.u32 %v3564_v7, 16  ;;  %v3315_v32 = vsel %vm3216_vm4, %v13915_v47, %v2481_v42  ;;  %v18668_v42 = vld [vmem:[#allocation9_spill] sm:$0xff] }
 0x289   :  { %v4828_v2 = vsel %vm4774_vm7, %v15111_v40, %v4827_v18 }
 0x28a   :  { %v4833_v12 = vrot.slane %v4831_v31, 1  ;;  %13067 = vmatprep.mubr.msk.bf16.mxu1 %vm4023_vm5, %v4828_v2  ;;  %v2487_v58 = vpop.permute.xlu1 %2486  ;;  %v13923_v2 = vld [vmem:[#allocation2 + $0x1a0] ss:$0 sps:$4 sm:$0xff]  }
 0x28b   :  { %v3089_v4 = vpop.permute.xlu0 %3088  ;;  %v3324_v20 = vsel %vm3216_vm4, %v13916_v1, %v2487_v58 }
 0x28c   :  { %v3570_v59 = vsel %vm264_vm1, %v3315_v32, %v3089_v4  ;;  %v4834_v29 = vsel %vm4774_vm7, %v18662_v48, %v4833_v12 }
 0x28d   :  { %v4837_v61 = vshll.u32 %v3570_v59, 16  ;;  %13068 = vmatmul.mubr.msk.bf16.gmra.mrb[80].mxu1 %vm4023_vm5, %v4834_v29 }
 0x28e   :  { %v3095_v55 = vpop.permute.xlu1 %3094 }
 0x28f   :  { %v4839_v15 = vrot.slane %v4837_v61, 1  ;;  %v3576_v40 = vsel %vm264_vm1, %v3324_v20, %v3095_v55  ;;  %v2493_v28 = vpop.permute.xlu0 %2492  ;;  %v18669_v61 = vld [vmem:[#allocation10_spill] sm:$0xff]  ;;  %v13924_v55 = vld [vmem:[#allocation2 + $0x1b4] ss:$0 sps:$4 sm:$0xff]  }
 0x290   :  { %v4843_v14 = vshll.u32 %v3576_v40, 16  ;;  %v3333_v52 = vsel %vm3216_vm4, %v13917_v25, %v2493_v28 }
 0x291   :  { %v4840_v13 = vsel %vm4774_vm7, %v18663_v53, %v4839_v15 }
 0x292   :  { %v4845_v9 = vrot.slane %v4843_v14, 1  ;;  %13071 = vmatprep.mubr.msk.bf16.mxu1 %vm4023_vm5, %v4840_v13  ;;  %v2499_v10 = vpop.permute.xlu1 %2498  ;;  %v18670_v14 = vld [vmem:[#allocation11_spill] sm:$0xff]  ;;  %v13925_v13 = vld [vmem:[#allocation2 + $0x1c8] ss:$0 sps:$4 sm:$0xff]  }
 0x293   :  { %v3101_v50 = vpop.permute.xlu0 %3100  ;;  %v3342_v22 = vsel %vm3216_vm4, %v13918_v54, %v2499_v10 }
 0x294   :  { %v3582_v37 = vsel %vm264_vm1, %v3333_v52, %v3101_v50  ;;  %v4846_v39 = vsel %vm4774_vm7, %v18664_v33, %v4845_v9 }
 0x295   :  { %v4849_v57 = vshll.u32 %v3582_v37, 16  ;;  %13072 = vmatmul.mubr.msk.bf16.gmra.mrb[84].mxu1 %vm4023_vm5, %v4846_v39 }
 0x296   :  { %v3107_v63 = vpop.permute.xlu1 %3106 }
 0x297   :  { %v4851_v49 = vrot.slane %v4849_v57, 1  ;;  %v3588_v43 = vsel %vm264_vm1, %v3342_v22, %v3107_v63  ;;  %v2505_v45 = vpop.permute.xlu0 %2504  ;;  %v18671_v57 = vld [vmem:[#allocation12_spill] sm:$0xff] }
 0x298   :  { %v4855_v36 = vshll.u32 %v3588_v43, 16  ;;  %v3351_v6 = vsel %vm3216_vm4, %v13919_v19, %v2505_v45  ;;  %v13926_v63 = vld [vmem:[#allocation2 + $0x1dc] ss:$0 sps:$4 sm:$0xff]  }
 0x299   :  { %v4852_v8 = vsel %vm4774_vm7, %v18665_v46, %v4851_v49 }
 0x29a   :  { %v4857_v11 = vrot.slane %v4855_v36, 1  ;;  %13075 = vmatprep.mubr.msk.bf16.mxu1 %vm4023_vm5, %v4852_v8  ;;  %v2511_v60 = vpop.permute.xlu1 %2510  ;;  %v18672_v36 = vld [vmem:[#allocation13_spill] sm:$0xff]  ;;  %v13927_v8 = vld [vmem:[#allocation2 + $0x1f0] ss:$0 sps:$4 sm:$0xff]  }
 0x29b   :  { %v3113_v44 = vpop.permute.xlu0 %3112  ;;  %v3360_v24 = vsel %vm3216_vm4, %v13920_v38, %v2511_v60 }
 0x29c   :  { %v3594_v27 = vsel %vm264_vm1, %v3351_v6, %v3113_v44  ;;  %v4858_v41 = vsel %vm4774_vm7, %v18666_v16, %v4857_v11 }
 0x29d   :  { %v4861_v17 = vshll.u32 %v3594_v27, 16  ;;  %13076 = vmatmul.mubr.msk.bf16.gmra.mrb[88].mxu1 %vm4023_vm5, %v4858_v41 }
 0x29e   :  { %v3119_v51 = vpop.permute.xlu1 %3118 }
 0x29f   :  { %v4863_v30 = vrot.slane %v4861_v17, 1  ;;  %v3600_v0 = vsel %vm264_vm1, %v3360_v24, %v3119_v51  ;;  %v2517_v21 = vpop.permute.xlu0 %2516  ;;  %v18673_v17 = vld [vmem:[#allocation14_spill] sm:$0xff]  ;;  %v13928_v51 = vld [vmem:[#allocation2 + $0x204] ss:$0 sps:$4 sm:$0xff]  }
 0x2a0   :  { %v4867_v26 = vshll.u32 %v3600_v0, 16  ;;  %v3369_v34 = vsel %vm3216_vm4, %v13921_v35, %v2517_v21 }
 0x2a1   :  { %v4864_v5 = vsel %vm4774_vm7, %v18667_v62, %v4863_v30 }
 0x2a2   :  { %v4869_v47 = vrot.slane %v4867_v26, 1  ;;  %13079 = vmatprep.mubr.msk.bf16.mxu1 %vm4023_vm5, %v4864_v5  ;;  %v2523_v23 = vpop.permute.xlu1 %2522  ;;  %v18674_v26 = vld [vmem:[#allocation15_spill] sm:$0xff]  ;;  %v13929_v5 = vld [vmem:[#allocation2 + $0x218] ss:$0 sps:$4 sm:$0xff]  }
 0x2a3   :  { %v3125_v18 = vpop.permute.xlu0 %3124  ;;  %v3378_v12 = vsel %vm3216_vm4, %v13922_v56, %v2523_v23 }
 0x2a4   :  { %v3606_v7 = vsel %vm264_vm1, %v3369_v34, %v3125_v18  ;;  %v4870_v31 = vsel %vm4774_vm7, %v18668_v42, %v4869_v47 }
 0x2a5   :  { %v4873_v32 = vshll.u32 %v3606_v7, 16  ;;  %13080 = vmatmul.mubr.msk.bf16.gmra.mrb[92].mxu1 %vm4023_vm5, %v4870_v31 }
 0x2a6   :  { %v3131_v1 = vpop.permute.xlu1 %3130 }
 0x2a7   :  { %v4875_v58 = vrot.slane %v4873_v32, 1  ;;  %v3612_v4 = vsel %vm264_vm1, %v3378_v12, %v3131_v1  ;;  %v2529_v59 = vpop.permute.xlu0 %2528  ;;  %v18675_v32 = vld [vmem:[#allocation16_spill] sm:$0xff]  ;;  %v13930_v1 = vld [vmem:[#allocation2 + $0x22c] ss:$0 sps:$4 sm:$0xff]  }
 0x2a8   :  { %v4879_v48 = vshll.u32 %v3612_v4, 16  ;;  %v3387_v29 = vsel %vm3216_vm4, %v13923_v2, %v2529_v59 }
 0x2a9   :  { %v4876_v25 = vsel %vm4774_vm7, %v18669_v61, %v4875_v58 }
 0x2aa   :  { %v4881_v20 = vrot.slane %v4879_v48, 1  ;;  %13083 = vmatprep.mubr.msk.bf16.mxu1 %vm4023_vm5, %v4876_v25  ;;  %v2535_v15 = vpop.permute.xlu1 %2534  ;;  %v18676_v48 = vld [vmem:[#allocation17_spill] sm:$0xff] }
 0x2ab   :  { %v3137_v40 = vpop.permute.xlu0 %3136  ;;  %v3396_v9 = vsel %vm3216_vm4, %v13924_v55, %v2535_v15  ;;  %v13931_v25 = vld [vmem:[#allocation2 + $0x240] ss:$0 sps:$4 sm:$0xff]  }
 0x2ac   :  { %v3618_v28 = vsel %vm264_vm1, %v3387_v29, %v3137_v40  ;;  %v4882_v52 = vsel %vm4774_vm7, %v18670_v14, %v4881_v20 }
 0x2ad   :  { %v4885_v53 = vshll.u32 %v3618_v28, 16  ;;  %13084 = vmatmul.mubr.msk.bf16.gmra.mrb[96].mxu1 %vm4023_vm5, %v4882_v52 }
 0x2ae   :  { %v3143_v54 = vpop.permute.xlu1 %3142 }
 0x2af   :  { %v4887_v10 = vrot.slane %v4885_v53, 1  ;;  %v3624_v50 = vsel %vm264_vm1, %v3396_v9, %v3143_v54  ;;  %v2541_v37 = vpop.permute.xlu0 %2540  ;;  %v18677_v53 = vld [vmem:[#allocation18_spill] sm:$0xff]  ;;  %v13932_v54 = vld [vmem:[#allocation2 + $0x254] ss:$0 sps:$4 sm:$0xff]  }
 0x2b0   :  { %v4891_v33 = vshll.u32 %v3624_v50, 16  ;;  %v3405_v39 = vsel %vm3216_vm4, %v13925_v13, %v2541_v37 }
 0x2b1   :  { %v4888_v19 = vsel %vm4774_vm7, %v18671_v57, %v4887_v10 }
 0x2b2   :  { %v4893_v22 = vrot.slane %v4891_v33, 1  ;;  %13087 = vmatprep.mubr.msk.bf16.mxu1 %vm4023_vm5, %v4888_v19  ;;  %v2547_v49 = vpop.permute.xlu1 %2546  ;;  %v18678_v33 = vld [vmem:[#allocation19_spill] sm:$0xff]  ;;  %v13933_v19 = vld [vmem:[#allocation2 + $0x268] ss:$0 sps:$4 sm:$0xff]  }
 0x2b3   :  { %v3149_v43 = vpop.permute.xlu0 %3148  ;;  %v3414_v11 = vsel %vm3216_vm4, %v13926_v63, %v2547_v49 }
 0x2b4   :  { %v3630_v45 = vsel %vm264_vm1, %v3405_v39, %v3149_v43  ;;  %v4894_v6 = vsel %vm4774_vm7, %v18672_v36, %v4893_v22 }
 0x2b5   :  { %v4897_v46 = vshll.u32 %v3630_v45, 16  ;;  %13088 = vmatmul.mubr.msk.bf16.gmra.mrb[100].mxu1 %vm4023_vm5, %v4894_v6 }
 0x2b6   :  { %v3155_v38 = vpop.permute.xlu1 %3154 }
 0x2b7   :  { %v4899_v60 = vrot.slane %v4897_v46, 1  ;;  %v3636_v44 = vsel %vm264_vm1, %v3414_v11, %v3155_v38  ;;  %v2553_v27 = vpop.permute.xlu0 %2552  ;;  %v18679_v46 = vld [vmem:[#allocation20_spill] sm:$0xff] }
 0x2b8   :  { %v4903_v16 = vshll.u32 %v3636_v44, 16  ;;  %v3423_v41 = vsel %vm3216_vm4, %v13927_v8, %v2553_v27  ;;  %v13934_v38 = vld [vmem:[#allocation2 + $0x27c] ss:$0 sps:$4 sm:$0xff]  }
 0x2b9   :  { %v4900_v35 = vsel %vm4774_vm7, %v18673_v17, %v4899_v60 }
 0x2ba   :  { %v4905_v24 = vrot.slane %v4903_v16, 1  ;;  %13091 = vmatprep.mubr.msk.bf16.mxu1 %vm4023_vm5, %v4900_v35  ;;  %v2559_v30 = vpop.permute.xlu1 %2558  ;;  %v18680_v16 = vld [vmem:[#allocation21_spill] sm:$0xff]  ;;  %v13935_v35 = vld [vmem:[#allocation2 + $0x290] ss:$0 sps:$4 sm:$0xff]  }
 0x2bb   :  { %v3161_v0 = vpop.permute.xlu0 %3160  ;;  %v3432_v47 = vsel %vm3216_vm4, %v13928_v51, %v2559_v30 }
 0x2bc   :  { %v3642_v21 = vsel %vm264_vm1, %v3423_v41, %v3161_v0  ;;  %v4906_v34 = vsel %vm4774_vm7, %v18674_v26, %v4905_v24 }
 0x2bd   :  { %v4909_v62 = vshll.u32 %v3642_v21, 16  ;;  %13092 = vmatmul.mubr.msk.bf16.gmra.mrb[104].mxu1 %vm4023_vm5, %v4906_v34 }
 0x2be   :  { %v3167_v56 = vpop.permute.xlu1 %3166 }
 0x2bf   :  { %v4911_v23 = vrot.slane %v4909_v62, 1  ;;  %v3648_v18 = vsel %vm264_vm1, %v3432_v47, %v3167_v56  ;;  %v2565_v7 = vpop.permute.xlu0 %2564  ;;  %v18681_v62 = vld [vmem:[#allocation22_spill] sm:$0xff]  ;;  %v13936_v56 = vld [vmem:[#allocation2 + $0x2a4] ss:$0 sps:$4 sm:$0xff]  }
 0x2c0   :  { %v4915_v42 = vshll.u32 %v3648_v18, 16  ;;  %v3441_v31 = vsel %vm3216_vm4, %v13929_v5, %v2565_v7 }
 0x2c1   :  { %v4912_v2 = vsel %vm4774_vm7, %v18675_v32, %v4911_v23  ;;  %v11965_v32 = vld [vmem:[%s18445_s1 + $0x4] sm:$0xf] }
 0x2c2   :  { %v4917_v12 = vrot.slane %v4915_v42, 1  ;;  %13095 = vmatprep.mubr.msk.bf16.mxu1 %vm4023_vm5, %v4912_v2  ;;  %v2571_v58 = vpop.permute.xlu1 %2570  ;;  %v18682_v42 = vld [vmem:[#allocation23_spill] sm:$0xff]  ;;  %13639 = vmatprep.subr.msk.bf16.mxu0 %vm361_vm0, %v11965_v32 }
 0x2c3   :  { %v3173_v4 = vpop.permute.xlu0 %3172  ;;  %v3450_v20 = vsel %vm3216_vm4, %v13930_v1, %v2571_v58 }
 0x2c4   :  { %v3654_v59 = vsel %vm264_vm1, %v3441_v31, %v3173_v4  ;;  %v4918_v29 = vsel %vm4774_vm7, %v18676_v48, %v4917_v12  ;;  %v6028_v12 = vsel %vm361_vm0, %v11965_v32, 0 }
 0x2c5   :  { %v4921_v61 = vshll.u32 %v3654_v59, 16  ;;  %13096 = vmatmul.mubr.msk.bf16.gmra.mrb[108].mxu1 %vm4023_vm5, %v4918_v29  ;;  %13116 = vmatpush3.bf16.msra.mxu0 %v6028_v12 }
 0x2c6   :  { %v3179_v55 = vpop.permute.xlu1 %3178 }
 0x2c7   :  { %v4923_v15 = vrot.slane %v4921_v61, 1  ;;  %v3660_v40 = vsel %vm264_vm1, %v3450_v20, %v3179_v55  ;;  %v2577_v28 = vpop.permute.xlu0 %2576  ;;  %v15975_v55 = vld [vmem:[%s18449_s4] ss:$0 sm:$0xff] }
 0x2c8   :  { %v4927_v14 = vshll.u32 %v3660_v40, 16  ;;  %v3459_v52 = vsel %vm3216_vm4, %v13931_v25, %v2577_v28  ;;  %v18683_v25 = vld [vmem:[#allocation24_spill] sm:$0xff] }
 0x2c9   :  { %v4924_v13 = vsel %vm4774_vm7, %v18677_v53, %v4923_v15 }
 0x2ca   :  { %v4929_v9 = vrot.slane %v4927_v14, 1  ;;  %13099 = vmatprep.mubr.msk.bf16.mxu1 %vm4023_vm5, %v4924_v13  ;;  %v2583_v10 = vpop.permute.xlu1 %2582 }
 0x2cb   :  { %v3185_v50 = vpop.permute.xlu0 %3184  ;;  %v3468_v22 = vsel %vm3216_vm4, %v13932_v54, %v2583_v10 }
 0x2cc   :  { %v3666_v37 = vsel %vm264_vm1, %v3459_v52, %v3185_v50  ;;  %v4930_v39 = vsel %vm4774_vm7, %v18678_v33, %v4929_v9  ;;  %v5624_v9 = vld [vmem:[%s18446_s0 + $0x10] sm:$0xff] }
 0x2cd   :  { %v4933_v57 = vshll.u32 %v3666_v37, 16  ;;  %13100 = vmatmul.mubr.msk.bf16.gmra.mrb[112].mxu1 %vm4023_vm5, %v4930_v39  ;;  %v5622_v37 = vld [vmem:[%s18446_s0] sm:$0xff] }
 0x2ce   :  { %v3191_v63 = vpop.permute.xlu1 %3190 }
 0x2cf   :  { %v4935_v49 = vrot.slane %v4933_v57, 1  ;;  %v3672_v43 = vsel %vm264_vm1, %v3468_v22, %v3191_v63  ;;  %v2589_v45 = vpop.permute.xlu0 %2588  ;;  %v5625_v57 = vld [vmem:[%s18446_s0 + $0x18] sm:$0xff] }
 0x2d0   :  { %v4939_v36 = vshll.u32 %v3672_v43, 16  ;;  %v3477_v6 = vsel %vm3216_vm4, %v13933_v19, %v2589_v45 }
 0x2d1   :  { %v4936_v8 = vsel %vm4774_vm7, %v18679_v46, %v4935_v49  ;;  %v5623_v49 = vld [vmem:[%s18446_s0 + $0x8] sm:$0xff] }
 0x2d2   :  { %v4941_v11 = vrot.slane %v4939_v36, 1  ;;  %13103 = vmatprep.mubr.msk.bf16.mxu1 %vm4023_vm5, %v4936_v8  ;;  %v2595_v60 = vpop.permute.xlu1 %2594 }
 0x2d3   :  { %v3197_v44 = vpop.permute.xlu0 %3196  ;;  %v3486_v24 = vsel %vm3216_vm4, %v13934_v38, %v2595_v60 }
 0x2d4   :  { %v3678_v27 = vsel %vm264_vm1, %v3477_v6, %v3197_v44  ;;  %v4942_v41 = vsel %vm4774_vm7, %v18680_v16, %v4941_v11 }
 0x2d5   :  { %v4945_v17 = vshll.u32 %v3678_v27, 16  ;;  %13104 = vmatmul.mubr.msk.bf16.gmra.mrb[116].mxu1 %vm4023_vm5, %v4942_v41  ;;  %v5628_v41 = vld [vmem:[%s18446_s0 + $0x30] sm:$0xff] }
 0x2d6   :  { %v3203_v51 = vpop.permute.xlu1 %3202 }
 0x2d7   :  { %v4947_v30 = vrot.slane %v4945_v17, 1  ;;  %v3684_v0 = vsel %vm264_vm1, %v3486_v24, %v3203_v51  ;;  %v2601_v21 = vpop.permute.xlu0 %2600  ;;  %v5626_v51 = vld [vmem:[%s18446_s0 + $0x20] sm:$0xff] }
 0x2d8   :  { %v4951_v26 = vshll.u32 %v3684_v0, 16  ;;  %v3495_v34 = vsel %vm3216_vm4, %v13935_v35, %v2601_v21  ;;  %v5629_v21 = vld [vmem:[%s18446_s0 + $0x38] sm:$0xff] }
 0x2d9   :  { %v4948_v5 = vsel %vm4774_vm7, %v18681_v62, %v4947_v30 }
 0x2da   :  { %v4953_v47 = vrot.slane %v4951_v26, 1  ;;  %13107 = vmatprep.mubr.msk.bf16.mxu1 %vm4023_vm5, %v4948_v5  ;;  %v2607_v23 = vpop.permute.xlu1 %2606  ;;  %v5627_v5 = vld [vmem:[%s18446_s0 + $0x28] sm:$0xff] }
 0x2db   :  { %v3209_v18 = vpop.permute.xlu0 %3208  ;;  %v3504_v1 = vsel %vm3216_vm4, %v13936_v56, %v2607_v23 }
 0x2dc   :  { %v3690_v7 = vsel %vm264_vm1, %v3495_v34, %v3209_v18  ;;  %v4954_v31 = vsel %vm4774_vm7, %v18682_v42, %v4953_v47 }
 0x2dd   :  { %v4957_v2 = vshll.u32 %v3690_v7, 16  ;;  %13108 = vmatmul.mubr.msk.bf16.gmra.mrb[120].mxu1 %vm4023_vm5, %v4954_v31 }
 0x2de   :  { %v3215_v58 = vpop.permute.xlu1 %3214 }
 0x2df   :  { %v4959_v4 = vrot.slane %v4957_v2, 1  ;;  %v3696_v59 = vsel %vm264_vm1, %v3504_v1, %v3215_v58 }
 0x2e0   :  { %v4963_v48 = vshll.u32 %v3696_v59, 16 }
 0x2e1   :  { %v4960_v29 = vsel %vm4774_vm7, %v15487_v3, %v4959_v4 }
 0x2e2   :  { %v4965_v61 = vrot.slane %v4963_v48, 1  ;;  %13111 = vmatprep.mubr.msk.bf16.mxu1 %vm4023_vm5, %v4960_v29  ;;  %v5632_v29 = vld [vmem:[%s18446_s0 + $0x50] sm:$0xff] }
 0x2e4   :  { %v4966_v20 = vsel %vm4774_vm7, %v18683_v25, %v4965_v61 }
 0x2e5   :  { %13112 = vmatmul.mubr.msk.bf16.gmra.mrb[124].mxu1 %vm4023_vm5, %v4966_v20 }
 0x340   :  { %v13053_v15 = vpop.f32.mrb[64].mxu1 }
 0x341   :  { %v5432_v40 = vadd.f32 %v13053_v15, %v15975_v55  ;;  %v5105_v28 = vpop.f32.mrb[65].mxu1 }
 0x342   :  { %v5430_v14 = vadd.f32 %v15975_v55, %v5105_v28  ;;  %v13054_v3 = vpop.f32.mrb[66].mxu1  ;;  %v5630_v28 = vld [vmem:[%s18446_s0 + $0x40] sm:$0xff] }
 0x343   :  { %v5496_v52 = vmul.f32 0.1, %v5432_v40  ;;  %v5433_v53 = vadd.f32 %v13054_v3, %v15975_v55  ;;  %v5108_v13 = vpop.f32.mrb[67].mxu1 }
 0x344   :  { %v5494_v54 = vmul.f32 0.1, %v5430_v14  ;;  %v5431_v10 = vadd.f32 %v15975_v55, %v5108_v13 }
 0x345   :  { %v5560_v50 = vmax.f32 %v5432_v40, %v5496_v52  ;;  %v5497_v33 = vmul.f32 0.1, %v5433_v53 }
 0x346   :  { %v5558_v39 = vmax.f32 %v5430_v14, %v5494_v54  ;;  %v5495_v19 = vmul.f32 0.1, %v5431_v10 }
 0x347   :  { %v5688_v22 = vadd.f32 %v5624_v9, %v5560_v50  ;;  %v5561_v63 = vmax.f32 %v5433_v53, %v5497_v33  ;;  %v5633_v53 = vld [vmem:[%s18446_s0 + $0x58] sm:$0xff] }
 0x348   :  { %v5686_v43 = vadd.f32 %v5622_v37, %v5558_v39  ;;  %v5559_v45 = vmax.f32 %v5431_v10, %v5495_v19  ;;  %v13057_v36 = vpop.f32.mrb[68].mxu1  ;;  %v5631_v10 = vld [vmem:[%s18446_s0 + $0x48] sm:$0xff] }
 0x349   :  { %5752 = vst.msk [vmem:[%s18450_s5 + $0x10] sm:$0xff] %vm264_vm1, %v5688_v22  ;;  %v5689_v6 = vadd.f32 %v5625_v57, %v5561_v63  ;;  %v5436_v46 = vadd.f32 %v13057_v36, %v15975_v55  ;;  %v5121_v8 = vpop.f32.mrb[69].mxu1 }
 0x34a   :  { %5750 = vst.msk [vmem:[%s18450_s5] sm:$0xff] %vm264_vm1, %v5686_v43  ;;  %v5687_v11 = vadd.f32 %v5623_v49, %v5559_v45  ;;  %v5434_v38 = vadd.f32 %v15975_v55, %v5121_v8  ;;  %v13058_v60 = vpop.f32.mrb[70].mxu1 }
 0x34b   :  { %5753 = vst.msk [vmem:[%s18450_s5 + $0x18] sm:$0xff] %vm264_vm1, %v5689_v6  ;;  %v5500_v44 = vmul.f32 0.1, %v5436_v46  ;;  %v5437_v27 = vadd.f32 %v13058_v60, %v15975_v55  ;;  %v5124_v16 = vpop.f32.mrb[71].mxu1 }
 0x34c   :  { %5751 = vst.msk [vmem:[%s18450_s5 + $0x8] sm:$0xff] %vm264_vm1, %v5687_v11  ;;  %v5498_v17 = vmul.f32 0.1, %v5434_v38  ;;  %v5435_v35 = vadd.f32 %v15975_v55, %v5124_v16  ;;  %v5636_v11 = vld [vmem:[%s18446_s0 + $0x70] sm:$0xff] }
 0x34d   :  { %v5564_v24 = vmax.f32 %v5436_v46, %v5500_v44  ;;  %v5501_v30 = vmul.f32 0.1, %v5437_v27 }
 0x34e   :  { %v5562_v0 = vmax.f32 %v5434_v38, %v5498_v17  ;;  %v5499_v26 = vmul.f32 0.1, %v5435_v35 }
 0x34f   :  { %v5692_v34 = vadd.f32 %v5628_v41, %v5564_v24  ;;  %v5565_v62 = vmax.f32 %v5437_v27, %v5501_v30  ;;  %v5634_v41 = vld [vmem:[%s18446_s0 + $0x60] sm:$0xff] }
 0x350   :  { %v5690_v47 = vadd.f32 %v5626_v51, %v5562_v0  ;;  %v5563_v56 = vmax.f32 %v5435_v35, %v5499_v26  ;;  %v13061_v23 = vpop.f32.mrb[72].mxu1  ;;  %v5831_v15 = vld [vmem:[%s18450_s5 + $0x10] sm:$0xff]  ;;  %v5637_v51 = vld [vmem:[%s18446_s0 + $0x78] sm:$0xff]  ;;  %v5635_v26 = vld [vmem:[%s18446_s0 + $0x68] sm:$0xff] }
 0x351   :  { %5756 = vst.msk [vmem:[%s18450_s5 + $0x30] sm:$0xff] %vm264_vm1, %v5692_v34  ;;  %v5693_v18 = vadd.f32 %v5629_v21, %v5565_v62  ;;  %v5440_v7 = vadd.f32 %v13061_v23, %v15975_v55  ;;  %v5137_v42 = vpop.f32.mrb[73].mxu1  ;;  %v5829_v59 = vld [vmem:[%s18450_s5] sm:$0xff] }
 0x352   :  { %5754 = vst.msk [vmem:[%s18450_s5 + $0x20] sm:$0xff] %vm264_vm1, %v5690_v47  ;;  %v5691_v31 = vadd.f32 %v5627_v5, %v5563_v56  ;;  %v5438_v32 = vadd.f32 %v15975_v55, %v5137_v42  ;;  %v13062_v2 = vpop.f32.mrb[74].mxu1  ;;  %v5832_v12 = vld [vmem:[%s18450_s5 + $0x18] sm:$0xff] }
 0x353   :  { %5757 = vst.msk [vmem:[%s18450_s5 + $0x38] sm:$0xff] %vm264_vm1, %v5693_v18  ;;  %v5504_v1 = vmul.f32 0.1, %v5440_v7  ;;  %v5441_v58 = vadd.f32 %v13062_v2, %v15975_v55  ;;  %v5140_v4 = vpop.f32.mrb[75].mxu1  ;;  %v5830_v48 = vld [vmem:[%s18450_s5 + $0x8] sm:$0xff]  ;;  %v5894_v3 = vpack.c.bf16 %v5832_v12, %v5831_v15 }
 0x354   :  { %5755 = vst.msk [vmem:[%s18450_s5 + $0x28] sm:$0xff] %vm264_vm1, %v5691_v31  ;;  %v5502_v61 = vmul.f32 0.1, %v5438_v32  ;;  %v5439_v25 = vadd.f32 %v15975_v55, %v5140_v4  ;;  %v5893_v20 = vpack.c.bf16 %v5830_v48, %v5829_v59  ;;  %v5640_v4 = vld [vmem:[%s18446_s0 + $0x90] sm:$0xff] }
 0x355   :  { %v5568_v40 = vmax.f32 %v5440_v7, %v5504_v1  ;;  %v5505_v14 = vmul.f32 0.1, %v5441_v58 }
 0x356   :  { %v5566_v52 = vmax.f32 %v5438_v32, %v5502_v61  ;;  %v5503_v13 = vmul.f32 0.1, %v5439_v25  ;;  %13117 = vmatprep.mubr.msk.bf16.mxu0 %vm264_vm1, %v5893_v20  ;;  %v5638_v20 = vld [vmem:[%s18446_s0 + $0x80] sm:$0xff] }
 0x357   :  { %v5696_v9 = vadd.f32 %v5632_v29, %v5568_v40  ;;  %v5569_v54 = vmax.f32 %v5441_v58, %v5505_v14  ;;  %13118 = vmatmul.mubr.msk.bf16.vlgmr.msra.gmra.mrb[0].mxu0 %vm264_vm1, %v5894_v3  ;;  %v5641_v14 = vld [vmem:[%s18446_s0 + $0x98] sm:$0xff] }
 0x358   :  { %v5694_v50 = vadd.f32 %v5630_v28, %v5566_v52  ;;  %v5567_v37 = vmax.f32 %v5439_v25, %v5503_v13  ;;  %v13065_v33 = vpop.f32.mrb[76].mxu1  ;;  %v5835_v27 = vld [vmem:[%s18450_s5 + $0x30] sm:$0xff]  ;;  %v5639_v13 = vld [vmem:[%s18446_s0 + $0x88] sm:$0xff] }
 0x359   :  { %5760 = vst.msk [vmem:[%s18450_s5 + $0x50] sm:$0xff] %vm264_vm1, %v5696_v9  ;;  %v5697_v39 = vadd.f32 %v5633_v53, %v5569_v54  ;;  %v5444_v57 = vadd.f32 %v13065_v33, %v15975_v55  ;;  %v5153_v19 = vpop.f32.mrb[77].mxu1  ;;  %v5833_v46 = vld [vmem:[%s18450_s5 + $0x20] sm:$0xff] }
 0x35a   :  { %5758 = vst.msk [vmem:[%s18450_s5 + $0x40] sm:$0xff] %vm264_vm1, %v5694_v50  ;;  %v5695_v22 = vadd.f32 %v5631_v10, %v5567_v37  ;;  %v5442_v63 = vadd.f32 %v15975_v55, %v5153_v19  ;;  %v13066_v49 = vpop.f32.mrb[78].mxu1  ;;  %v5836_v43 = vld [vmem:[%s18450_s5 + $0x38] sm:$0xff] }
 0x35b   :  { %5761 = vst.msk [vmem:[%s18450_s5 + $0x58] sm:$0xff] %vm264_vm1, %v5697_v39  ;;  %v5508_v45 = vmul.f32 0.1, %v5444_v57  ;;  %v5445_v36 = vadd.f32 %v13066_v49, %v15975_v55  ;;  %v5156_v6 = vpop.f32.mrb[79].mxu1  ;;  %v5834_v8 = vld [vmem:[%s18450_s5 + $0x28] sm:$0xff]  ;;  %v5896_v35 = vpack.c.bf16 %v5836_v43, %v5835_v27 }
 0x35c   :  { %5759 = vst.msk [vmem:[%s18450_s5 + $0x48] sm:$0xff] %vm264_vm1, %v5695_v22  ;;  %v5506_v38 = vmul.f32 0.1, %v5442_v63  ;;  %v5443_v60 = vadd.f32 %v15975_v55, %v5156_v6  ;;  %v5895_v44 = vpack.c.bf16 %v5834_v8, %v5833_v46  ;;  %v5644_v6 = vld [vmem:[%s18446_s0 + $0xb0] sm:$0xff] }
 0x35d   :  { %v5572_v16 = vmax.f32 %v5444_v57, %v5508_v45  ;;  %v5509_v17 = vmul.f32 0.1, %v5445_v36 }
 0x35e   :  { %v5570_v24 = vmax.f32 %v5442_v63, %v5506_v38  ;;  %v5507_v30 = vmul.f32 0.1, %v5443_v60  ;;  %13121 = vmatprep.mubr.msk.bf16.mxu0 %vm264_vm1, %v5895_v44  ;;  %v5642_v44 = vld [vmem:[%s18446_s0 + $0xa0] sm:$0xff] }
 0x35f   :  { %v5700_v0 = vadd.f32 %v5636_v11, %v5572_v16  ;;  %v5573_v21 = vmax.f32 %v5445_v36, %v5509_v17  ;;  %13122 = vmatmul.mubr.msk.bf16.gmra.mrb[4].mxu0 %vm264_vm1, %v5896_v35  ;;  %v5645_v17 = vld [vmem:[%s18446_s0 + $0xb8] sm:$0xff] }
 0x360   :  { %v5698_v34 = vadd.f32 %v5634_v41, %v5570_v24  ;;  %v5571_v62 = vmax.f32 %v5443_v60, %v5507_v30  ;;  %v13069_v5 = vpop.f32.mrb[80].mxu1  ;;  %v5839_v61 = vld [vmem:[%s18450_s5 + $0x50] sm:$0xff]  ;;  %v5643_v30 = vld [vmem:[%s18446_s0 + $0xa8] sm:$0xff] }
 0x361   :  { %5764 = vst.msk [vmem:[%s18450_s5 + $0x70] sm:$0xff] %vm264_vm1, %v5700_v0  ;;  %v5701_v47 = vadd.f32 %v5637_v51, %v5573_v21  ;;  %v5448_v56 = vadd.f32 %v13069_v5, %v15975_v55  ;;  %v5169_v23 = vpop.f32.mrb[81].mxu1  ;;  %v5837_v1 = vld [vmem:[%s18450_s5 + $0x40] sm:$0xff] }
 0x362   :  { %5762 = vst.msk [vmem:[%s18450_s5 + $0x60] sm:$0xff] %vm264_vm1, %v5698_v34  ;;  %v5699_v18 = vadd.f32 %v5635_v26, %v5571_v62  ;;  %v5446_v7 = vadd.f32 %v15975_v55, %v5169_v23  ;;  %v13070_v42 = vpop.f32.mrb[82].mxu1  ;;  %v5840_v31 = vld [vmem:[%s18450_s5 + $0x58] sm:$0xff] }
 0x363   :  { %5765 = vst.msk [vmem:[%s18450_s5 + $0x78] sm:$0xff] %vm264_vm1, %v5701_v47  ;;  %v5512_v32 = vmul.f32 0.1, %v5448_v56  ;;  %v5449_v2 = vadd.f32 %v13070_v42, %v15975_v55  ;;  %v5172_v12 = vpop.f32.mrb[83].mxu1  ;;  %v5838_v58 = vld [vmem:[%s18450_s5 + $0x48] sm:$0xff]  ;;  %v5898_v40 = vpack.c.bf16 %v5840_v31, %v5839_v61 }
 0x364   :  { %5763 = vst.msk [vmem:[%s18450_s5 + $0x68] sm:$0xff] %vm264_vm1, %v5699_v18  ;;  %v5510_v59 = vmul.f32 0.1, %v5446_v7  ;;  %v5447_v48 = vadd.f32 %v15975_v55, %v5172_v12  ;;  %v5897_v29 = vpack.c.bf16 %v5838_v58, %v5837_v1  ;;  %v5648_v12 = vld [vmem:[%s18446_s0 + $0xd0] sm:$0xff] }
 0x365   :  { %v5576_v25 = vmax.f32 %v5448_v56, %v5512_v32  ;;  %v5513_v15 = vmul.f32 0.1, %v5449_v2 }
 0x366   :  { %v5574_v28 = vmax.f32 %v5446_v7, %v5510_v59  ;;  %v5511_v3 = vmul.f32 0.1, %v5447_v48  ;;  %13125 = vmatprep.mubr.msk.bf16.mxu0 %vm264_vm1, %v5897_v29  ;;  %v5646_v29 = vld [vmem:[%s18446_s0 + $0xc0] sm:$0xff] }
 0x367   :  { %v5704_v52 = vadd.f32 %v5640_v4, %v5576_v25  ;;  %v5577_v53 = vmax.f32 %v5449_v2, %v5513_v15  ;;  %13126 = vmatmul.mubr.msk.bf16.gmra.mrb[8].mxu0 %vm264_vm1, %v5898_v40  ;;  %v5649_v15 = vld [vmem:[%s18446_s0 + $0xd8] sm:$0xff] }
 0x368   :  { %v5702_v9 = vadd.f32 %v5638_v20, %v5574_v28  ;;  %v5575_v54 = vmax.f32 %v5447_v48, %v5511_v3  ;;  %v13073_v10 = vpop.f32.mrb[84].mxu1  ;;  %v5843_v38 = vld [vmem:[%s18450_s5 + $0x70] sm:$0xff]  ;;  %v5647_v3 = vld [vmem:[%s18446_s0 + $0xc8] sm:$0xff] }
 0x369   :  { %5768 = vst.msk [vmem:[%s18450_s5 + $0x90] sm:$0xff] %vm264_vm1, %v5704_v52  ;;  %v5705_v50 = vadd.f32 %v5641_v14, %v5577_v53  ;;  %v5452_v37 = vadd.f32 %v13073_v10, %v15975_v55  ;;  %v5185_v33 = vpop.f32.mrb[85].mxu1  ;;  %v5841_v45 = vld [vmem:[%s18450_s5 + $0x60] sm:$0xff] }
 0x36a   :  { %5766 = vst.msk [vmem:[%s18450_s5 + $0x80] sm:$0xff] %vm264_vm1, %v5702_v9  ;;  %v5703_v39 = vadd.f32 %v5639_v13, %v5575_v54  ;;  %v5450_v57 = vadd.f32 %v15975_v55, %v5185_v33  ;;  %v13074_v19 = vpop.f32.mrb[86].mxu1  ;;  %v5844_v22 = vld [vmem:[%s18450_s5 + $0x78] sm:$0xff] }
 0x36b   :  { %5769 = vst.msk [vmem:[%s18450_s5 + $0x98] sm:$0xff] %vm264_vm1, %v5705_v50  ;;  %v5516_v63 = vmul.f32 0.1, %v5452_v37  ;;  %v5453_v49 = vadd.f32 %v13074_v19, %v15975_v55  ;;  %v5188_v43 = vpop.f32.mrb[87].mxu1  ;;  %v5842_v36 = vld [vmem:[%s18450_s5 + $0x68] sm:$0xff]  ;;  %v5900_v16 = vpack.c.bf16 %v5844_v22, %v5843_v38 }
 0x36c   :  { %5767 = vst.msk [vmem:[%s18450_s5 + $0x88] sm:$0xff] %vm264_vm1, %v5703_v39  ;;  %v5514_v46 = vmul.f32 0.1, %v5450_v57  ;;  %v5451_v8 = vadd.f32 %v15975_v55, %v5188_v43  ;;  %v5899_v11 = vpack.c.bf16 %v5842_v36, %v5841_v45  ;;  %v5652_v43 = vld [vmem:[%s18446_s0 + $0xf0] sm:$0xff] }
 0x36d   :  { %v5580_v60 = vmax.f32 %v5452_v37, %v5516_v63  ;;  %v5517_v27 = vmul.f32 0.1, %v5453_v49 }
 0x36e   :  { %v5578_v41 = vmax.f32 %v5450_v57, %v5514_v46  ;;  %v5515_v35 = vmul.f32 0.1, %v5451_v8  ;;  %13129 = vmatprep.mubr.msk.bf16.mxu0 %vm264_vm1, %v5899_v11  ;;  %v5650_v11 = vld [vmem:[%s18446_s0 + $0xe0] sm:$0xff] }
 0x36f   :  { %v5708_v24 = vadd.f32 %v5644_v6, %v5580_v60  ;;  %v5581_v51 = vmax.f32 %v5453_v49, %v5517_v27  ;;  %13130 = vmatmul.mubr.msk.bf16.gmra.mrb[12].mxu0 %vm264_vm1, %v5900_v16  ;;  %v5653_v27 = vld [vmem:[%s18446_s0 + $0xf8] sm:$0xff] }
 0x370   :  { %v5706_v0 = vadd.f32 %v5642_v44, %v5578_v41  ;;  %v5579_v21 = vmax.f32 %v5451_v8, %v5515_v35  ;;  %v13077_v26 = vpop.f32.mrb[88].mxu1  ;;  %v5847_v59 = vld [vmem:[%s18450_s5 + $0x90] sm:$0xff]  ;;  %v5651_v35 = vld [vmem:[%s18446_s0 + $0xe8] sm:$0xff] }
 0x371   :  { %5772 = vst.msk [vmem:[%s18450_s5 + $0xb0] sm:$0xff] %vm264_vm1, %v5708_v24  ;;  %v5709_v34 = vadd.f32 %v5645_v17, %v5581_v51  ;;  %v5456_v62 = vadd.f32 %v13077_v26, %v15975_v55  ;;  %v5201_v5 = vpop.f32.mrb[89].mxu1  ;;  %v5845_v32 = vld [vmem:[%s18450_s5 + $0x80] sm:$0xff] }
 0x372   :  { %5770 = vst.msk [vmem:[%s18450_s5 + $0xa0] sm:$0xff] %vm264_vm1, %v5706_v0  ;;  %v5707_v47 = vadd.f32 %v5643_v30, %v5579_v21  ;;  %v5454_v56 = vadd.f32 %v15975_v55, %v5201_v5  ;;  %v13078_v23 = vpop.f32.mrb[90].mxu1  ;;  %v5848_v18 = vld [vmem:[%s18450_s5 + $0x98] sm:$0xff] }
 0x373   :  { %5773 = vst.msk [vmem:[%s18450_s5 + $0xb8] sm:$0xff] %vm264_vm1, %v5709_v34  ;;  %v5520_v7 = vmul.f32 0.1, %v5456_v62  ;;  %v5457_v42 = vadd.f32 %v13078_v23, %v15975_v55  ;;  %v5204_v31 = vpop.f32.mrb[91].mxu1  ;;  %v5846_v2 = vld [vmem:[%s18450_s5 + $0x88] sm:$0xff]  ;;  %v5902_v25 = vpack.c.bf16 %v5848_v18, %v5847_v59 }
 0x374   :  { %5771 = vst.msk [vmem:[%s18450_s5 + $0xa8] sm:$0xff] %vm264_vm1, %v5707_v47  ;;  %v5518_v1 = vmul.f32 0.1, %v5454_v56  ;;  %v5455_v58 = vadd.f32 %v15975_v55, %v5204_v31  ;;  %v5901_v4 = vpack.c.bf16 %v5846_v2, %v5845_v32  ;;  %v5656_v31 = vld [vmem:[%s18446_s0 + $0x110] sm:$0xff] }
 0x375   :  { %v5584_v48 = vmax.f32 %v5456_v62, %v5520_v7  ;;  %v5521_v61 = vmul.f32 0.1, %v5457_v42 }
 0x376   :  { %v5582_v20 = vmax.f32 %v5454_v56, %v5518_v1  ;;  %v5519_v40 = vmul.f32 0.1, %v5455_v58  ;;  %13133 = vmatprep.mubr.msk.bf16.mxu0 %vm264_vm1, %v5901_v4  ;;  %v5654_v4 = vld [vmem:[%s18446_s0 + $0x100] sm:$0xff] }
 0x377   :  { %v5712_v28 = vadd.f32 %v5648_v12, %v5584_v48  ;;  %v5585_v14 = vmax.f32 %v5457_v42, %v5521_v61  ;;  %13134 = vmatmul.mubr.msk.bf16.gmra.mrb[16].mxu0 %vm264_vm1, %v5902_v25  ;;  %v5657_v61 = vld [vmem:[%s18446_s0 + $0x118] sm:$0xff] }
 0x378   :  { %v5710_v52 = vadd.f32 %v5646_v29, %v5582_v20  ;;  %v5583_v53 = vmax.f32 %v5455_v58, %v5519_v40  ;;  %v13081_v13 = vpop.f32.mrb[92].mxu1  ;;  %v5851_v46 = vld [vmem:[%s18450_s5 + $0xb0] sm:$0xff]  ;;  %v5655_v40 = vld [vmem:[%s18446_s0 + $0x108] sm:$0xff] }
 0x379   :  { %5776 = vst.msk [vmem:[%s18450_s5 + $0xd0] sm:$0xff] %vm264_vm1, %v5712_v28  ;;  %v5713_v9 = vadd.f32 %v5649_v15, %v5585_v14  ;;  %v5460_v54 = vadd.f32 %v13081_v13, %v15975_v55  ;;  %v5217_v10 = vpop.f32.mrb[93].mxu1  ;;  %v5849_v63 = vld [vmem:[%s18450_s5 + $0xa0] sm:$0xff] }
 0x37a   :  { %5774 = vst.msk [vmem:[%s18450_s5 + $0xc0] sm:$0xff] %vm264_vm1, %v5710_v52  ;;  %v5711_v50 = vadd.f32 %v5647_v3, %v5583_v53  ;;  %v5458_v37 = vadd.f32 %v15975_v55, %v5217_v10  ;;  %v13082_v33 = vpop.f32.mrb[94].mxu1  ;;  %v5852_v39 = vld [vmem:[%s18450_s5 + $0xb8] sm:$0xff] }
 0x37b   :  { %5777 = vst.msk [vmem:[%s18450_s5 + $0xd8] sm:$0xff] %vm264_vm1, %v5713_v9  ;;  %v5524_v57 = vmul.f32 0.1, %v5460_v54  ;;  %v5461_v19 = vadd.f32 %v13082_v33, %v15975_v55  ;;  %v5220_v22 = vpop.f32.mrb[95].mxu1  ;;  %v5850_v49 = vld [vmem:[%s18450_s5 + $0xa8] sm:$0xff]  ;;  %v5904_v60 = vpack.c.bf16 %v5852_v39, %v5851_v46 }
 0x37c   :  { %5775 = vst.msk [vmem:[%s18450_s5 + $0xc8] sm:$0xff] %vm264_vm1, %v5711_v50  ;;  %v5522_v45 = vmul.f32 0.1, %v5458_v37  ;;  %v5459_v36 = vadd.f32 %v15975_v55, %v5220_v22  ;;  %v5903_v6 = vpack.c.bf16 %v5850_v49, %v5849_v63  ;;  %v5660_v22 = vld [vmem:[%s18446_s0 + $0x130] sm:$0xff] }
 0x37d   :  { %v5588_v8 = vmax.f32 %v5460_v54, %v5524_v57  ;;  %v5525_v38 = vmul.f32 0.1, %v5461_v19 }
 0x37e   :  { %v5586_v44 = vmax.f32 %v5458_v37, %v5522_v45  ;;  %v5523_v16 = vmul.f32 0.1, %v5459_v36  ;;  %13137 = vmatprep.mubr.msk.bf16.mxu0 %vm264_vm1, %v5903_v6  ;;  %v5658_v6 = vld [vmem:[%s18446_s0 + $0x120] sm:$0xff] }
 0x37f   :  { %v5716_v41 = vadd.f32 %v5652_v43, %v5588_v8  ;;  %v5589_v17 = vmax.f32 %v5461_v19, %v5525_v38  ;;  %13138 = vmatmul.mubr.msk.bf16.gmra.mrb[20].mxu0 %vm264_vm1, %v5904_v60  ;;  %v5661_v38 = vld [vmem:[%s18446_s0 + $0x138] sm:$0xff] }
 0x380   :  { %v5714_v24 = vadd.f32 %v5650_v11, %v5586_v44  ;;  %v5587_v51 = vmax.f32 %v5459_v36, %v5523_v16  ;;  %v13085_v30 = vpop.f32.mrb[96].mxu1  ;;  %v5855_v1 = vld [vmem:[%s18450_s5 + $0xd0] sm:$0xff]  ;;  %v5659_v16 = vld [vmem:[%s18446_s0 + $0x128] sm:$0xff] }
 0x381   :  { %5780 = vst.msk [vmem:[%s18450_s5 + $0xf0] sm:$0xff] %vm264_vm1, %v5716_v41  ;;  %v5717_v0 = vadd.f32 %v5653_v27, %v5589_v17  ;;  %v5464_v21 = vadd.f32 %v13085_v30, %v15975_v55  ;;  %v5233_v26 = vpop.f32.mrb[97].mxu1  ;;  %v5853_v7 = vld [vmem:[%s18450_s5 + $0xc0] sm:$0xff] }
 0x382   :  { %5778 = vst.msk [vmem:[%s18450_s5 + $0xe0] sm:$0xff] %vm264_vm1, %v5714_v24  ;;  %v5715_v34 = vadd.f32 %v5651_v35, %v5587_v51  ;;  %v5462_v62 = vadd.f32 %v15975_v55, %v5233_v26  ;;  %v13086_v5 = vpop.f32.mrb[98].mxu1  ;;  %v5856_v47 = vld [vmem:[%s18450_s5 + $0xd8] sm:$0xff] }
 0x383   :  { %5781 = vst.msk [vmem:[%s18450_s5 + $0xf8] sm:$0xff] %vm264_vm1, %v5717_v0  ;;  %v5528_v56 = vmul.f32 0.1, %v5464_v21  ;;  %v5465_v23 = vadd.f32 %v13086_v5, %v15975_v55  ;;  %v5236_v18 = vpop.f32.mrb[99].mxu1  ;;  %v5854_v42 = vld [vmem:[%s18450_s5 + $0xc8] sm:$0xff]  ;;  %v5906_v48 = vpack.c.bf16 %v5856_v47, %v5855_v1 }
 0x384   :  { %5779 = vst.msk [vmem:[%s18450_s5 + $0xe8] sm:$0xff] %vm264_vm1, %v5715_v34  ;;  %v5526_v32 = vmul.f32 0.1, %v5462_v62  ;;  %v5463_v2 = vadd.f32 %v15975_v55, %v5236_v18  ;;  %v5905_v12 = vpack.c.bf16 %v5854_v42, %v5853_v7  ;;  %v5664_v18 = vld [vmem:[%s18446_s0 + $0x150] sm:$0xff] }
 0x385   :  { %v5592_v58 = vmax.f32 %v5464_v21, %v5528_v56  ;;  %v5529_v59 = vmul.f32 0.1, %v5465_v23 }
 0x386   :  { %v5590_v29 = vmax.f32 %v5462_v62, %v5526_v32  ;;  %v5527_v25 = vmul.f32 0.1, %v5463_v2  ;;  %13141 = vmatprep.mubr.msk.bf16.mxu0 %vm264_vm1, %v5905_v12  ;;  %v5662_v12 = vld [vmem:[%s18446_s0 + $0x140] sm:$0xff] }
 0x387   :  { %v5720_v20 = vadd.f32 %v5656_v31, %v5592_v58  ;;  %v5593_v15 = vmax.f32 %v5465_v23, %v5529_v59  ;;  %13142 = vmatmul.mubr.msk.bf16.gmra.mrb[24].mxu0 %vm264_vm1, %v5906_v48  ;;  %v5665_v59 = vld [vmem:[%s18446_s0 + $0x158] sm:$0xff] }
 0x388   :  { %v5718_v28 = vadd.f32 %v5654_v4, %v5590_v29  ;;  %v5591_v14 = vmax.f32 %v5463_v2, %v5527_v25  ;;  %v13089_v3 = vpop.f32.mrb[100].mxu1  ;;  %v5859_v45 = vld [vmem:[%s18450_s5 + $0xf0] sm:$0xff]  ;;  %v5663_v25 = vld [vmem:[%s18446_s0 + $0x148] sm:$0xff] }
 0x389   :  { %5784 = vst.msk [vmem:[%s18450_s5 + $0x110] sm:$0xff] %vm264_vm1, %v5720_v20  ;;  %v5721_v52 = vadd.f32 %v5657_v61, %v5593_v15  ;;  %v5468_v53 = vadd.f32 %v13089_v3, %v15975_v55  ;;  %v5249_v13 = vpop.f32.mrb[101].mxu1  ;;  %v5857_v57 = vld [vmem:[%s18450_s5 + $0xe0] sm:$0xff] }
 0x38a   :  { %5782 = vst.msk [vmem:[%s18450_s5 + $0x100] sm:$0xff] %vm264_vm1, %v5718_v28  ;;  %v5719_v9 = vadd.f32 %v5655_v40, %v5591_v14  ;;  %v5466_v54 = vadd.f32 %v15975_v55, %v5249_v13  ;;  %v13090_v10 = vpop.f32.mrb[102].mxu1  ;;  %v5860_v50 = vld [vmem:[%s18450_s5 + $0xf8] sm:$0xff] }
 0x38b   :  { %5785 = vst.msk [vmem:[%s18450_s5 + $0x118] sm:$0xff] %vm264_vm1, %v5721_v52  ;;  %v5532_v37 = vmul.f32 0.1, %v5468_v53  ;;  %v5469_v33 = vadd.f32 %v13090_v10, %v15975_v55  ;;  %v5252_v39 = vpop.f32.mrb[103].mxu1  ;;  %v5858_v19 = vld [vmem:[%s18450_s5 + $0xe8] sm:$0xff]  ;;  %v5908_v8 = vpack.c.bf16 %v5860_v50, %v5859_v45 }
 0x38c   :  { %5783 = vst.msk [vmem:[%s18450_s5 + $0x108] sm:$0xff] %vm264_vm1, %v5719_v9  ;;  %v5530_v63 = vmul.f32 0.1, %v5466_v54  ;;  %v5467_v49 = vadd.f32 %v15975_v55, %v5252_v39  ;;  %v5907_v43 = vpack.c.bf16 %v5858_v19, %v5857_v57  ;;  %v5668_v39 = vld [vmem:[%s18446_s0 + $0x170] sm:$0xff] }
 0x38d   :  { %v5596_v36 = vmax.f32 %v5468_v53, %v5532_v37  ;;  %v5533_v46 = vmul.f32 0.1, %v5469_v33 }
 0x38e   :  { %v5594_v11 = vmax.f32 %v5466_v54, %v5530_v63  ;;  %v5531_v60 = vmul.f32 0.1, %v5467_v49  ;;  %13145 = vmatprep.mubr.msk.bf16.mxu0 %vm264_vm1, %v5907_v43  ;;  %v5666_v43 = vld [vmem:[%s18446_s0 + $0x160] sm:$0xff] }
 0x38f   :  { %v5724_v44 = vadd.f32 %v5660_v22, %v5596_v36  ;;  %v5597_v27 = vmax.f32 %v5469_v33, %v5533_v46  ;;  %13146 = vmatmul.mubr.msk.bf16.gmra.mrb[28].mxu0 %vm264_vm1, %v5908_v8  ;;  %v5669_v46 = vld [vmem:[%s18446_s0 + $0x178] sm:$0xff] }
 0x390   :  { %v5722_v41 = vadd.f32 %v5658_v6, %v5594_v11  ;;  %v5595_v17 = vmax.f32 %v5467_v49, %v5531_v60  ;;  %v13093_v35 = vpop.f32.mrb[104].mxu1  ;;  %v5863_v32 = vld [vmem:[%s18450_s5 + $0x110] sm:$0xff]  ;;  %v5667_v60 = vld [vmem:[%s18446_s0 + $0x168] sm:$0xff] }
 0x391   :  { %5788 = vst.msk [vmem:[%s18450_s5 + $0x130] sm:$0xff] %vm264_vm1, %v5724_v44  ;;  %v5725_v24 = vadd.f32 %v5661_v38, %v5597_v27  ;;  %v5472_v51 = vadd.f32 %v13093_v35, %v15975_v55  ;;  %v5265_v30 = vpop.f32.mrb[105].mxu1  ;;  %v5861_v56 = vld [vmem:[%s18450_s5 + $0x100] sm:$0xff] }
 0x392   :  { %5786 = vst.msk [vmem:[%s18450_s5 + $0x120] sm:$0xff] %vm264_vm1, %v5722_v41  ;;  %v5723_v0 = vadd.f32 %v5659_v16, %v5595_v17  ;;  %v5470_v21 = vadd.f32 %v15975_v55, %v5265_v30  ;;  %v13094_v26 = vpop.f32.mrb[106].mxu1  ;;  %v5864_v34 = vld [vmem:[%s18450_s5 + $0x118] sm:$0xff] }
 0x393   :  { %5789 = vst.msk [vmem:[%s18450_s5 + $0x138] sm:$0xff] %vm264_vm1, %v5725_v24  ;;  %v5536_v62 = vmul.f32 0.1, %v5472_v51  ;;  %v5473_v5 = vadd.f32 %v13094_v26, %v15975_v55  ;;  %v5268_v47 = vpop.f32.mrb[107].mxu1  ;;  %v5862_v23 = vld [vmem:[%s18450_s5 + $0x108] sm:$0xff]  ;;  %v5910_v58 = vpack.c.bf16 %v5864_v34, %v5863_v32 }
 0x394   :  { %5787 = vst.msk [vmem:[%s18450_s5 + $0x128] sm:$0xff] %vm264_vm1, %v5723_v0  ;;  %v5534_v7 = vmul.f32 0.1, %v5470_v21  ;;  %v5471_v42 = vadd.f32 %v15975_v55, %v5268_v47  ;;  %v5909_v31 = vpack.c.bf16 %v5862_v23, %v5861_v56  ;;  %v5672_v47 = vld [vmem:[%s18446_s0 + $0x190] sm:$0xff] }
 0x395   :  { %v5600_v2 = vmax.f32 %v5472_v51, %v5536_v62  ;;  %v5537_v1 = vmul.f32 0.1, %v5473_v5 }
 0x396   :  { %v5598_v4 = vmax.f32 %v5470_v21, %v5534_v7  ;;  %v5535_v48 = vmul.f32 0.1, %v5471_v42  ;;  %13149 = vmatprep.mubr.msk.bf16.mxu0 %vm264_vm1, %v5909_v31  ;;  %v5670_v31 = vld [vmem:[%s18446_s0 + $0x180] sm:$0xff] }
 0x397   :  { %v5728_v29 = vadd.f32 %v5664_v18, %v5600_v2  ;;  %v5601_v61 = vmax.f32 %v5473_v5, %v5537_v1  ;;  %13150 = vmatmul.mubr.msk.bf16.gmra.mrb[32].mxu0 %vm264_vm1, %v5910_v58  ;;  %v5673_v1 = vld [vmem:[%s18446_s0 + $0x198] sm:$0xff] }
 0x398   :  { %v5726_v20 = vadd.f32 %v5662_v12, %v5598_v4  ;;  %v5599_v15 = vmax.f32 %v5471_v42, %v5535_v48  ;;  %v13097_v40 = vpop.f32.mrb[108].mxu1  ;;  %v5867_v63 = vld [vmem:[%s18450_s5 + $0x130] sm:$0xff]  ;;  %v5671_v48 = vld [vmem:[%s18446_s0 + $0x188] sm:$0xff] }
 0x399   :  { %5792 = vst.msk [vmem:[%s18450_s5 + $0x150] sm:$0xff] %vm264_vm1, %v5728_v29  ;;  %v5729_v28 = vadd.f32 %v5665_v59, %v5601_v61  ;;  %v5476_v14 = vadd.f32 %v13097_v40, %v15975_v55  ;;  %v5281_v3 = vpop.f32.mrb[109].mxu1  ;;  %v5865_v37 = vld [vmem:[%s18450_s5 + $0x120] sm:$0xff] }
 0x39a   :  { %5790 = vst.msk [vmem:[%s18450_s5 + $0x140] sm:$0xff] %vm264_vm1, %v5726_v20  ;;  %v5727_v52 = vadd.f32 %v5663_v25, %v5599_v15  ;;  %v5474_v53 = vadd.f32 %v15975_v55, %v5281_v3  ;;  %v13098_v13 = vpop.f32.mrb[110].mxu1  ;;  %v5868_v9 = vld [vmem:[%s18450_s5 + $0x138] sm:$0xff] }
 0x39b   :  { %5793 = vst.msk [vmem:[%s18450_s5 + $0x158] sm:$0xff] %vm264_vm1, %v5729_v28  ;;  %v5540_v54 = vmul.f32 0.1, %v5476_v14  ;;  %v5477_v10 = vadd.f32 %v13098_v13, %v15975_v55  ;;  %v5284_v50 = vpop.f32.mrb[111].mxu1  ;;  %v5866_v33 = vld [vmem:[%s18450_s5 + $0x128] sm:$0xff]  ;;  %v5912_v36 = vpack.c.bf16 %v5868_v9, %v5867_v63 }
 0x39c   :  { %5791 = vst.msk [vmem:[%s18450_s5 + $0x148] sm:$0xff] %vm264_vm1, %v5727_v52  ;;  %v5538_v57 = vmul.f32 0.1, %v5474_v53  ;;  %v5475_v19 = vadd.f32 %v15975_v55, %v5284_v50  ;;  %v5911_v22 = vpack.c.bf16 %v5866_v33, %v5865_v37  ;;  %v5676_v50 = vld [vmem:[%s18446_s0 + $0x1b0] sm:$0xff] }
 0x39d   :  { %v5604_v49 = vmax.f32 %v5476_v14, %v5540_v54  ;;  %v5541_v45 = vmul.f32 0.1, %v5477_v10 }
 0x39e   :  { %v5602_v6 = vmax.f32 %v5474_v53, %v5538_v57  ;;  %v5539_v8 = vmul.f32 0.1, %v5475_v19  ;;  %13153 = vmatprep.mubr.msk.bf16.mxu0 %vm264_vm1, %v5911_v22  ;;  %v5674_v22 = vld [vmem:[%s18446_s0 + $0x1a0] sm:$0xff] }
 0x39f   :  { %v5732_v11 = vadd.f32 %v5668_v39, %v5604_v49  ;;  %v5605_v38 = vmax.f32 %v5477_v10, %v5541_v45  ;;  %13154 = vmatmul.mubr.msk.bf16.gmra.mrb[36].mxu0 %vm264_vm1, %v5912_v36  ;;  %v5677_v45 = vld [vmem:[%s18446_s0 + $0x1b8] sm:$0xff] }
 0x3a0   :  { %v5730_v44 = vadd.f32 %v5666_v43, %v5602_v6  ;;  %v5603_v27 = vmax.f32 %v5475_v19, %v5539_v8  ;;  %v13101_v16 = vpop.f32.mrb[112].mxu1  ;;  %v5871_v7 = vld [vmem:[%s18450_s5 + $0x150] sm:$0xff]  ;;  %v5675_v8 = vld [vmem:[%s18446_s0 + $0x1a8] sm:$0xff] }
 0x3a1   :  { %5796 = vst.msk [vmem:[%s18450_s5 + $0x170] sm:$0xff] %vm264_vm1, %v5732_v11  ;;  %v5733_v41 = vadd.f32 %v5669_v46, %v5605_v38  ;;  %v5480_v17 = vadd.f32 %v13101_v16, %v15975_v55  ;;  %v5297_v35 = vpop.f32.mrb[113].mxu1  ;;  %v5869_v62 = vld [vmem:[%s18450_s5 + $0x140] sm:$0xff] }
 0x3a2   :  { %5794 = vst.msk [vmem:[%s18450_s5 + $0x160] sm:$0xff] %vm264_vm1, %v5730_v44  ;;  %v5731_v24 = vadd.f32 %v5667_v60, %v5603_v27  ;;  %v5478_v51 = vadd.f32 %v15975_v55, %v5297_v35  ;;  %v13102_v30 = vpop.f32.mrb[114].mxu1  ;;  %v5872_v0 = vld [vmem:[%s18450_s5 + $0x158] sm:$0xff] }
 0x3a3   :  { %5797 = vst.msk [vmem:[%s18450_s5 + $0x178] sm:$0xff] %vm264_vm1, %v5733_v41  ;;  %v5544_v21 = vmul.f32 0.1, %v5480_v17  ;;  %v5481_v26 = vadd.f32 %v13102_v30, %v15975_v55  ;;  %v5300_v34 = vpop.f32.mrb[115].mxu1  ;;  %v5870_v5 = vld [vmem:[%s18450_s5 + $0x148] sm:$0xff]  ;;  %v5914_v2 = vpack.c.bf16 %v5872_v0, %v5871_v7 }
 0x3a4   :  { %5795 = vst.msk [vmem:[%s18450_s5 + $0x168] sm:$0xff] %vm264_vm1, %v5731_v24  ;;  %v5542_v56 = vmul.f32 0.1, %v5478_v51  ;;  %v5479_v23 = vadd.f32 %v15975_v55, %v5300_v34  ;;  %v5913_v18 = vpack.c.bf16 %v5870_v5, %v5869_v62  ;;  %v5680_v34 = vld [vmem:[%s18446_s0 + $0x1d0] sm:$0xff] }
 0x3a5   :  { %v5608_v42 = vmax.f32 %v5480_v17, %v5544_v21  ;;  %v5545_v32 = vmul.f32 0.1, %v5481_v26 }
 0x3a6   :  { %v5606_v12 = vmax.f32 %v5478_v51, %v5542_v56  ;;  %v5543_v58 = vmul.f32 0.1, %v5479_v23  ;;  %13157 = vmatprep.mubr.msk.bf16.mxu0 %vm264_vm1, %v5913_v18  ;;  %v5678_v18 = vld [vmem:[%s18446_s0 + $0x1c0] sm:$0xff] }
 0x3a7   :  { %v5736_v4 = vadd.f32 %v5672_v47, %v5608_v42  ;;  %v5609_v59 = vmax.f32 %v5481_v26, %v5545_v32  ;;  %13158 = vmatmul.mubr.msk.bf16.gmra.mrb[40].mxu0 %vm264_vm1, %v5914_v2  ;;  %v5681_v32 = vld [vmem:[%s18446_s0 + $0x1d8] sm:$0xff] }
 0x3a8   :  { %v5734_v29 = vadd.f32 %v5670_v31, %v5606_v12  ;;  %v5607_v61 = vmax.f32 %v5479_v23, %v5543_v58  ;;  %v13105_v25 = vpop.f32.mrb[116].mxu1  ;;  %v5875_v57 = vld [vmem:[%s18450_s5 + $0x170] sm:$0xff] }
 0x3a9   :  { %5800 = vst.msk [vmem:[%s18450_s5 + $0x190] sm:$0xff] %vm264_vm1, %v5736_v4  ;;  %v5737_v20 = vadd.f32 %v5673_v1, %v5609_v59  ;;  %v5484_v15 = vadd.f32 %v13105_v25, %v15975_v55  ;;  %v5313_v40 = vpop.f32.mrb[117].mxu1  ;;  %v5873_v54 = vld [vmem:[%s18450_s5 + $0x160] sm:$0xff]  ;;  %v5679_v1 = vld [vmem:[%s18446_s0 + $0x1c8] sm:$0xff] }
 0x3aa   :  { %5798 = vst.msk [vmem:[%s18450_s5 + $0x180] sm:$0xff] %vm264_vm1, %v5734_v29  ;;  %v5735_v28 = vadd.f32 %v5671_v48, %v5607_v61  ;;  %v5482_v14 = vadd.f32 %v15975_v55, %v5313_v40  ;;  %v13106_v3 = vpop.f32.mrb[118].mxu1  ;;  %v5876_v52 = vld [vmem:[%s18450_s5 + $0x178] sm:$0xff]  ;;  %v14231_v29 = vld [vmem:[%s18449_s4] ss:$0 sm:$0xff] }
 0x3ab   :  { %5801 = vst.msk [vmem:[%s18450_s5 + $0x198] sm:$0xff] %vm264_vm1, %v5737_v20  ;;  %v5548_v53 = vmul.f32 0.1, %v5484_v15  ;;  %v5485_v13 = vadd.f32 %v13106_v3, %v15975_v55  ;;  %v5316_v9 = vpop.f32.mrb[119].mxu1  ;;  %v5874_v10 = vld [vmem:[%s18450_s5 + $0x168] sm:$0xff]  ;;  %v5916_v49 = vpack.c.bf16 %v5876_v52, %v5875_v57 }
 0x3ac   :  { %5799 = vst.msk [vmem:[%s18450_s5 + $0x188] sm:$0xff] %vm264_vm1, %v5735_v28  ;;  %v5546_v37 = vmul.f32 0.1, %v5482_v14  ;;  %v5483_v33 = vadd.f32 %v15975_v55, %v5316_v9  ;;  %v5915_v39 = vpack.c.bf16 %v5874_v10, %v5873_v54  ;;  %v5684_v9 = vld [vmem:[%s18446_s0 + $0x1f0] sm:$0xff] }
 0x3ad   :  { %v5612_v19 = vmax.f32 %v5484_v15, %v5548_v53  ;;  %v5549_v63 = vmul.f32 0.1, %v5485_v13 }
 0x3ae   :  { %v5610_v43 = vmax.f32 %v5482_v14, %v5546_v37  ;;  %v5547_v36 = vmul.f32 0.1, %v5483_v33  ;;  %13161 = vmatprep.mubr.msk.bf16.mxu0 %vm264_vm1, %v5915_v39  ;;  %v5682_v39 = vld [vmem:[%s18446_s0 + $0x1e0] sm:$0xff] }
 0x3af   :  { %v5740_v6 = vadd.f32 %v5676_v50, %v5612_v19  ;;  %v5613_v46 = vmax.f32 %v5485_v13, %v5549_v63  ;;  %13162 = vmatmul.mubr.msk.bf16.gmra.mrb[44].mxu0 %vm264_vm1, %v5916_v49  ;;  %v5685_v63 = vld [vmem:[%s18446_s0 + $0x1f8] sm:$0xff] }
 0x3b0   :  { %v5738_v11 = vadd.f32 %v5674_v22, %v5610_v43  ;;  %v5611_v38 = vmax.f32 %v5483_v33, %v5547_v36  ;;  %v13109_v60 = vpop.f32.mrb[120].mxu1  ;;  %v5879_v56 = vld [vmem:[%s18450_s5 + $0x190] sm:$0xff]  ;;  %v5683_v36 = vld [vmem:[%s18446_s0 + $0x1e8] sm:$0xff] }
 0x3b1   :  { %5804 = vst.msk [vmem:[%s18450_s5 + $0x1b0] sm:$0xff] %vm264_vm1, %v5740_v6  ;;  %v5741_v44 = vadd.f32 %v5677_v45, %v5613_v46  ;;  %v5488_v27 = vadd.f32 %v13109_v60, %v15975_v55  ;;  %v5329_v16 = vpop.f32.mrb[121].mxu1  ;;  %v5877_v21 = vld [vmem:[%s18450_s5 + $0x180] sm:$0xff] }
 0x3b2   :  { %5802 = vst.msk [vmem:[%s18450_s5 + $0x1a0] sm:$0xff] %vm264_vm1, %v5738_v11  ;;  %v5739_v41 = vadd.f32 %v5675_v8, %v5611_v38  ;;  %v5486_v17 = vadd.f32 %v15975_v55, %v5329_v16  ;;  %v13110_v35 = vpop.f32.mrb[122].mxu1  ;;  %v5880_v24 = vld [vmem:[%s18450_s5 + $0x198] sm:$0xff] }
 0x3b3   :  { %5805 = vst.msk [vmem:[%s18450_s5 + $0x1b8] sm:$0xff] %vm264_vm1, %v5741_v44  ;;  %v5552_v51 = vmul.f32 0.1, %v5488_v27  ;;  %v5489_v30 = vadd.f32 %v13110_v35, %v15975_v55  ;;  %v5332_v0 = vpop.f32.mrb[123].mxu1  ;;  %v5878_v26 = vld [vmem:[%s18450_s5 + $0x188] sm:$0xff]  ;;  %v5918_v42 = vpack.c.bf16 %v5880_v24, %v5879_v56 }
 0x3b4   :  { %5803 = vst.msk [vmem:[%s18450_s5 + $0x1a8] sm:$0xff] %vm264_vm1, %v5739_v41  ;;  %v5550_v62 = vmul.f32 0.1, %v5486_v17  ;;  %v5487_v5 = vadd.f32 %v15975_v55, %v5332_v0  ;;  %v5917_v47 = vpack.c.bf16 %v5878_v26, %v5877_v21 }
 0x3b5   :  { %v5616_v23 = vmax.f32 %v5488_v27, %v5552_v51  ;;  %v5553_v7 = vmul.f32 0.1, %v5489_v30 }
 0x3b6   :  { %v5614_v31 = vmax.f32 %v5486_v17, %v5550_v62  ;;  %v5551_v2 = vmul.f32 0.1, %v5487_v5  ;;  %13165 = vmatprep.mubr.msk.bf16.mxu0 %vm264_vm1, %v5917_v47  ;;  %v13937_v17 = vld [vmem:[%s18447_s3 + $0x20] sm:$0x3f]  }
 0x3b7   :  { %v5744_v55 = vadd.f32 %v5680_v34, %v5616_v23  ;;  %v5617_v12 = vmax.f32 %v5489_v30, %v5553_v7  ;;  %13166 = vmatmul.mubr.msk.bf16.gmra.mrb[48].mxu0 %vm264_vm1, %v5918_v42  ;;  %13640 = vmatprep.subr.msk.bf16.mxu0 %vm4088_vm2, %v13937_v17  ;;  %v9749_v35 = vsel %vm4088_vm2, %v13937_v17, 0  ;;  %v16720_v34 = vld [vmem:[%s18448_s2 + $0x1] ss:$0 sm:$0xff] }
 0x3b8   :  { %v5742_v58 = vadd.f32 %v5678_v18, %v5614_v31  ;;  %v5615_v4 = vmax.f32 %v5487_v5, %v5551_v2  ;;  %v13113_v59 = vpop.f32.mrb[124].mxu1  ;;  %v5883_v37 = vld [vmem:[%s18450_s5 + $0x1b0] sm:$0xff]  ;;  %13182 = vmatpush3.bf16.msra.mxu0 %v9749_v35 }
 0x3b9   :  { %5808 = vst.msk [vmem:[%s18450_s5 + $0x1d0] sm:$0xff] %vm264_vm1, %v5744_v55  ;;  %v5745_v48 = vadd.f32 %v5681_v32, %v5617_v12  ;;  %v5492_v61 = vadd.f32 %v14231_v29, %v13113_v59  ;;  %v5345_v25 = vpop.f32.mrb[125].mxu1  ;;  %v5881_v53 = vld [vmem:[%s18450_s5 + $0x1a0] sm:$0xff] }
 0x3ba   :  { %5806 = vst.msk [vmem:[%s18450_s5 + $0x1c0] sm:$0xff] %vm264_vm1, %v5742_v58  ;;  %v5743_v20 = vadd.f32 %v5679_v1, %v5615_v4  ;;  %v5490_v15 = vadd.f32 %v14231_v29, %v5345_v25  ;;  %v13114_v40 = vpop.f32.mrb[126].mxu1  ;;  %v5884_v28 = vld [vmem:[%s18450_s5 + $0x1b8] sm:$0xff] }
 0x3bb   :  { %5809 = vst.msk [vmem:[%s18450_s5 + $0x1d8] sm:$0xff] %vm264_vm1, %v5745_v48  ;;  %v5556_v14 = vmul.f32 0.1, %v5492_v61  ;;  %v5493_v3 = vadd.f32 %v14231_v29, %v13114_v40  ;;  %v5348_v52 = vpop.f32.mrb[127].mxu1  ;;  %v5882_v13 = vld [vmem:[%s18450_s5 + $0x1a8] sm:$0xff]  ;;  %v5920_v19 = vpack.c.bf16 %v5884_v28, %v5883_v37 }
 0x3bc   :  { %5807 = vst.msk [vmem:[%s18450_s5 + $0x1c8] sm:$0xff] %vm264_vm1, %v5743_v20  ;;  %v5554_v54 = vmul.f32 0.1, %v5490_v15  ;;  %v5491_v10 = vadd.f32 %v14231_v29, %v5348_v52  ;;  %v5919_v50 = vpack.c.bf16 %v5882_v13, %v5881_v53 }
 0x3bd   :  { %v5620_v33 = vmax.f32 %v5492_v61, %v5556_v14  ;;  %v5557_v57 = vmul.f32 0.1, %v5493_v3 }
 0x3be   :  { %v5618_v22 = vmax.f32 %v5490_v15, %v5554_v54  ;;  %v5555_v49 = vmul.f32 0.1, %v5491_v10  ;;  %13169 = vmatprep.mubr.msk.bf16.mxu0 %vm264_vm1, %v5919_v50 }
 0x3bf   :  { %v5748_v43 = vadd.f32 %v5684_v9, %v5620_v33  ;;  %v5621_v45 = vmax.f32 %v5493_v3, %v5557_v57  ;;  %13170 = vmatmul.mubr.msk.bf16.gmra.mrb[52].mxu0 %vm264_vm1, %v5920_v19 }
 0x3c0   :  { %v5746_v6 = vadd.f32 %v5682_v39, %v5618_v22  ;;  %v5619_v46 = vmax.f32 %v5491_v10, %v5555_v49  ;;  %v5887_v16 = vld [vmem:[%s18450_s5 + $0x1d0] sm:$0xff] }
 0x3c1   :  { %5812 = vst.msk [vmem:[%s18450_s5 + $0x1f0] sm:$0xff] %vm264_vm1, %v5748_v43  ;;  %v5749_v8 = vadd.f32 %v5685_v63, %v5621_v45  ;;  %v5885_v60 = vld [vmem:[%s18450_s5 + $0x1c0] sm:$0xff] }
 0x3c2   :  { %5810 = vst.msk [vmem:[%s18450_s5 + $0x1e0] sm:$0xff] %vm264_vm1, %v5746_v6  ;;  %v5747_v11 = vadd.f32 %v5683_v36, %v5619_v46  ;;  %v5888_v38 = vld [vmem:[%s18450_s5 + $0x1d8] sm:$0xff] }
 0x3c3   :  { %5813 = vst.msk [vmem:[%s18450_s5 + $0x1f8] sm:$0xff] %vm264_vm1, %v5749_v8  ;;  %v5886_v44 = vld [vmem:[%s18450_s5 + $0x1c8] sm:$0xff]  ;;  %v5922_v41 = vpack.c.bf16 %v5888_v38, %v5887_v16 }
 0x3c4   :  { %5811 = vst.msk [vmem:[%s18450_s5 + $0x1e8] sm:$0xff] %vm264_vm1, %v5747_v11  ;;  %v5921_v27 = vpack.c.bf16 %v5886_v44, %v5885_v60 }
 0x3c6   :  { %13173 = vmatprep.mubr.msk.bf16.mxu0 %vm264_vm1, %v5921_v27 }
 0x3c7   :  { %13174 = vmatmul.mubr.msk.bf16.gmra.mrb[56].mxu0 %vm264_vm1, %v5922_v41 }
 0x3c8   :  { %v5891_v21 = vld [vmem:[%s18450_s5 + $0x1f0] sm:$0xff] }
 0x3c9   :  { %v5889_v51 = vld [vmem:[%s18450_s5 + $0x1e0] sm:$0xff] }
 0x3ca   :  { %v5892_v24 = vld [vmem:[%s18450_s5 + $0x1f8] sm:$0xff] }
 0x3cb   :  { %v5890_v30 = vld [vmem:[%s18450_s5 + $0x1e8] sm:$0xff]  ;;  %v5924_v26 = vpack.c.bf16 %v5892_v24, %v5891_v21 }
 0x3cc   :  { %v5923_v0 = vpack.c.bf16 %v5890_v30, %v5889_v51 }
 0x3ce   :  { %13177 = vmatprep.mubr.msk.bf16.mxu0 %vm264_vm1, %v5923_v0 }
 0x3cf   :  { %13178 = vmatmul.mubr.msk.bf16.gmra.mrb[60].mxu0 %vm264_vm1, %v5924_v26 }
 0x42a   :  { %v13119_v62 = vpop.f32.mrb[0].mxu0 }
 0x42b   :  { %v6073_v5 = vadd.f32 %v13119_v62, %v16720_v34  ;;  %v6064_v47 = vpop.f32.mrb[1].mxu0 }
 0x42c   :  { %v6065_v56 = vadd.f32 %v16720_v34, %v6064_v47  ;;  %v13120_v23 = vpop.f32.mrb[2].mxu0 }
 0x42d   :  { %v6321_v18 = vmul.f32 0.1, %v6073_v5  ;;  %v6076_v7 = vadd.f32 %v13120_v23, %v16720_v34  ;;  %v6067_v42 = vpop.f32.mrb[3].mxu0 }
 0x42e   :  { %v6319_v31 = vmul.f32 0.1, %v6065_v56  ;;  %v6068_v32 = vadd.f32 %v16720_v34, %v6067_v42 }
 0x42f   :  { %v6385_v2 = vmax.f32 %v6073_v5, %v6321_v18  ;;  %v6322_v55 = vmul.f32 0.1, %v6076_v7 }
 0x430   :  { %v6383_v12 = vmax.f32 %v6065_v56, %v6319_v31  ;;  %v6320_v1 = vmul.f32 0.1, %v6068_v32 }
 0x431   :  { %v12525_v58 = vpack.c.bf16 %v6385_v2, %v6385_v2  ;;  %v6386_v4 = vmax.f32 %v6076_v7, %v6322_v55 }
 0x432   :  { %v12523_v59 = vpack.c.bf16 %v6383_v12, %v6383_v12  ;;  %v6384_v48 = vmax.f32 %v6068_v32, %v6320_v1  ;;  %v13123_v29 = vpop.f32.mrb[4].mxu0 }
 0x433   :  { %6705 = vst.msk [vmem:[#allocation2 + $0x30] sm:$0xf] %vm21_vm3, %v12525_v58  ;;  %v12526_v61 = vpack.c.bf16 %v6386_v4, %v6386_v4  ;;  %v6089_v25 = vadd.f32 %v13123_v29, %v16720_v34  ;;  %v6080_v20 = vpop.f32.mrb[5].mxu0 }
 0x434   :  { %6703 = vst.msk [vmem:[#allocation2 + $0x1c] sm:$0xf] %vm21_vm3, %v12523_v59  ;;  %v12524_v15 = vpack.c.bf16 %v6384_v48, %v6384_v48  ;;  %v6081_v40 = vadd.f32 %v16720_v34, %v6080_v20  ;;  %v13124_v28 = vpop.f32.mrb[6].mxu0  ;;  %v14005_v48 = vld [vmem:[%s18447_s3 + $0x18] sm:$0x3f]  }
 0x435   :  { %6706 = vst.msk [vmem:[#allocation2 + $0x34] sm:$0xf] %vm21_vm3, %v12526_v61  ;;  %v6325_v14 = vmul.f32 0.1, %v6089_v25  ;;  %v6092_v3 = vadd.f32 %v13124_v28, %v16720_v34  ;;  %v6083_v52 = vpop.f32.mrb[7].mxu0  ;;  %13641 = vmatprep.subr.msk.bf16.mxu0 %vm4088_vm2, %v14005_v48 }
 0x436   :  { %6704 = vst.msk [vmem:[#allocation2 + $0x20] sm:$0xf] %vm21_vm3, %v12524_v15  ;;  %v6323_v53 = vmul.f32 0.1, %v6081_v40  ;;  %v6084_v13 = vadd.f32 %v16720_v34, %v6083_v52 }
 0x437   :  { %v6389_v9 = vmax.f32 %v6089_v25, %v6325_v14  ;;  %v6326_v54 = vmul.f32 0.1, %v6092_v3 }
 0x438   :  { %v6387_v10 = vmax.f32 %v6081_v40, %v6323_v53  ;;  %v6324_v50 = vmul.f32 0.1, %v6084_v13 }
 0x439   :  { %v12529_v37 = vpack.c.bf16 %v6389_v9, %v6389_v9  ;;  %v6390_v33 = vmax.f32 %v6092_v3, %v6326_v54 }
 0x43a   :  { %v12527_v39 = vpack.c.bf16 %v6387_v10, %v6387_v10  ;;  %v6388_v57 = vmax.f32 %v6084_v13, %v6324_v50  ;;  %v13127_v19 = vpop.f32.mrb[8].mxu0 }
 0x43b   :  { %6709 = vst.msk [vmem:[#allocation2 + $0x58] sm:$0xf] %vm21_vm3, %v12529_v37  ;;  %v12530_v22 = vpack.c.bf16 %v6390_v33, %v6390_v33  ;;  %v6105_v63 = vadd.f32 %v13127_v19, %v16720_v34  ;;  %v6096_v49 = vpop.f32.mrb[9].mxu0 }
 0x43c   :  { %6707 = vst.msk [vmem:[#allocation2 + $0x44] sm:$0xf] %vm21_vm3, %v12527_v39  ;;  %v12528_v43 = vpack.c.bf16 %v6388_v57, %v6388_v57  ;;  %v6097_v45 = vadd.f32 %v16720_v34, %v6096_v49  ;;  %v13128_v36 = vpop.f32.mrb[10].mxu0  ;;  %v13938_v6 = vld [vmem:[#allocation2 + $0x30] sm:$0xff]  }
 0x43d   :  { %6710 = vst.msk [vmem:[#allocation2 + $0x5c] sm:$0xf] %vm21_vm3, %v12530_v22  ;;  %v6329_v46 = vmul.f32 0.1, %v6105_v63  ;;  %v6108_v8 = vadd.f32 %v13128_v36, %v16720_v34  ;;  %v6099_v11 = vpop.f32.mrb[11].mxu0  ;;  %v13939_v38 = vld [vmem:[#allocation2 + $0x30] sm:$0xff]   ;;  %8689 = vrot.lane.b32.xlu0 %v13938_v6, %s14235_s27 }
 0x43e   :  { %6708 = vst.msk [vmem:[#allocation2 + $0x48] sm:$0xf] %vm21_vm3, %v12528_v43  ;;  %v6327_v60 = vmul.f32 0.1, %v6097_v45  ;;  %v6100_v44 = vadd.f32 %v16720_v34, %v6099_v11  ;;  %8087 = vrot.lane.b32.xlu1 %v13939_v38, %s14236_s28  ;;  %v13940_v35 = vld [vmem:[#allocation2 + $0x1c] sm:$0xff]  }
 0x43f   :  { %v6393_v27 = vmax.f32 %v6105_v63, %v6329_v46  ;;  %v6330_v16 = vmul.f32 0.1, %v6108_v8 }
 0x440   :  { %v6391_v41 = vmax.f32 %v6097_v45, %v6327_v60  ;;  %v6328_v17 = vmul.f32 0.1, %v6100_v44 }
 0x441   :  { %v12533_v24 = vpack.c.bf16 %v6393_v27, %v6393_v27  ;;  %v6394_v51 = vmax.f32 %v6108_v8, %v6330_v16  ;;  %8081 = vrot.lane.b32.xlu0 %v13940_v35, %s14236_s28 }
 0x442   :  { %v12531_v30 = vpack.c.bf16 %v6391_v41, %v6391_v41  ;;  %v6392_v0 = vmax.f32 %v6100_v44, %v6328_v17  ;;  %v13131_v21 = vpop.f32.mrb[12].mxu0 }
 0x443   :  { %6713 = vst.msk [vmem:[#allocation2 + $0x80] sm:$0xf] %vm21_vm3, %v12533_v24  ;;  %v12534_v26 = vpack.c.bf16 %v6394_v51, %v6394_v51  ;;  %v6121_v62 = vadd.f32 %v13131_v21, %v16720_v34  ;;  %v6112_v5 = vpop.f32.mrb[13].mxu0 }
 0x444   :  { %6711 = vst.msk [vmem:[#allocation2 + $0x6c] sm:$0xf] %vm21_vm3, %v12531_v30  ;;  %v12532_v47 = vpack.c.bf16 %v6392_v0, %v6392_v0  ;;  %v6113_v56 = vadd.f32 %v16720_v34, %v6112_v5  ;;  %v13132_v23 = vpop.f32.mrb[14].mxu0  ;;  %v13941_v18 = vld [vmem:[#allocation2 + $0x58] sm:$0xff]  }
 0x445   :  { %6714 = vst.msk [vmem:[#allocation2 + $0x84] sm:$0xf] %vm21_vm3, %v12534_v26  ;;  %v6333_v7 = vmul.f32 0.1, %v6121_v62  ;;  %v6124_v42 = vadd.f32 %v13132_v23, %v16720_v34  ;;  %v6115_v31 = vpop.f32.mrb[15].mxu0  ;;  %v13942_v32 = vld [vmem:[#allocation2 + $0x58] sm:$0xff]   ;;  %8701 = vrot.lane.b32.xlu0 %v13941_v18, %s14235_s27 }
 0x446   :  { %6712 = vst.msk [vmem:[#allocation2 + $0x70] sm:$0xf] %vm21_vm3, %v12532_v47  ;;  %v6331_v2 = vmul.f32 0.1, %v6113_v56  ;;  %v6116_v55 = vadd.f32 %v16720_v34, %v6115_v31  ;;  %8099 = vrot.lane.b32.xlu1 %v13942_v32, %s14236_s28  ;;  %v13944_v59 = vld [vmem:[#allocation2 + $0x44] sm:$0xff]  }
 0x447   :  { %v6397_v12 = vmax.f32 %v6121_v62, %v6333_v7  ;;  %v6334_v1 = vmul.f32 0.1, %v6124_v42  ;;  %v13943_v25 = vld [vmem:[#allocation2 + $0x44] sm:$0xff]  }
 0x448   :  { %v6395_v58 = vmax.f32 %v6113_v56, %v6331_v2  ;;  %v6332_v4 = vmul.f32 0.1, %v6116_v55 }
 0x449   :  { %v12537_v29 = vpack.c.bf16 %v6397_v12, %v6397_v12  ;;  %v6398_v61 = vmax.f32 %v6124_v42, %v6334_v1  ;;  %8093 = vrot.lane.b32.xlu0 %v13944_v59, %s14236_s28 }
 0x44a   :  { %v12535_v20 = vpack.c.bf16 %v6395_v58, %v6395_v58  ;;  %v6396_v15 = vmax.f32 %v6116_v55, %v6332_v4  ;;  %v13135_v40 = vpop.f32.mrb[16].mxu0  ;;  %8695 = vrot.lane.b32.xlu1 %v13943_v25, %s14235_s27 }
 0x44b   :  { %6717 = vst.msk [vmem:[#allocation2 + $0xa8] sm:$0xf] %vm21_vm3, %v12537_v29  ;;  %v12538_v28 = vpack.c.bf16 %v6398_v61, %v6398_v61  ;;  %v6137_v14 = vadd.f32 %v13135_v40, %v16720_v34  ;;  %v6128_v3 = vpop.f32.mrb[17].mxu0 }
 0x44c   :  { %6715 = vst.msk [vmem:[#allocation2 + $0x94] sm:$0xf] %vm21_vm3, %v12535_v20  ;;  %v12536_v52 = vpack.c.bf16 %v6396_v15, %v6396_v15  ;;  %v6129_v53 = vadd.f32 %v16720_v34, %v6128_v3  ;;  %v13136_v13 = vpop.f32.mrb[18].mxu0  ;;  %v13945_v9 = vld [vmem:[#allocation2 + $0x80] sm:$0xff]  }
 0x44d   :  { %6718 = vst.msk [vmem:[#allocation2 + $0xac] sm:$0xf] %vm21_vm3, %v12538_v28  ;;  %v6337_v54 = vmul.f32 0.1, %v6137_v14  ;;  %v6140_v10 = vadd.f32 %v13136_v13, %v16720_v34  ;;  %v6131_v50 = vpop.f32.mrb[19].mxu0  ;;  %v13946_v37 = vld [vmem:[#allocation2 + $0x80] sm:$0xff]   ;;  %8713 = vrot.lane.b32.xlu0 %v13945_v9, %s14235_s27 }
 0x44e   :  { %6716 = vst.msk [vmem:[#allocation2 + $0x98] sm:$0xf] %vm21_vm3, %v12536_v52  ;;  %v6335_v33 = vmul.f32 0.1, %v6129_v53  ;;  %v6132_v39 = vadd.f32 %v16720_v34, %v6131_v50  ;;  %8111 = vrot.lane.b32.xlu1 %v13946_v37, %s14236_s28  ;;  %v13948_v49 = vld [vmem:[#allocation2 + $0x6c] sm:$0xff]  }
 0x44f   :  { %v6401_v57 = vmax.f32 %v6137_v14, %v6337_v54  ;;  %v6338_v19 = vmul.f32 0.1, %v6140_v10  ;;  %v13947_v36 = vld [vmem:[#allocation2 + $0x6c] sm:$0xff]  }
 0x450   :  { %v6399_v22 = vmax.f32 %v6129_v53, %v6335_v33  ;;  %v6336_v63 = vmul.f32 0.1, %v6132_v39 }
 0x451   :  { %v12541_v43 = vpack.c.bf16 %v6401_v57, %v6401_v57  ;;  %v6402_v45 = vmax.f32 %v6140_v10, %v6338_v19  ;;  %8105 = vrot.lane.b32.xlu0 %v13948_v49, %s14236_s28 }
 0x452   :  { %v12539_v6 = vpack.c.bf16 %v6399_v22, %v6399_v22  ;;  %v6400_v46 = vmax.f32 %v6132_v39, %v6336_v63  ;;  %v13139_v8 = vpop.f32.mrb[20].mxu0  ;;  %8707 = vrot.lane.b32.xlu1 %v13947_v36, %s14235_s27 }
 0x453   :  { %6721 = vst.msk [vmem:[#allocation2 + $0xd0] sm:$0xf] %vm21_vm3, %v12541_v43  ;;  %v12542_v11 = vpack.c.bf16 %v6402_v45, %v6402_v45  ;;  %v6153_v38 = vadd.f32 %v13139_v8, %v16720_v34  ;;  %v6144_v60 = vpop.f32.mrb[21].mxu0 }
 0x454   :  { %6719 = vst.msk [vmem:[#allocation2 + $0xbc] sm:$0xf] %vm21_vm3, %v12539_v6  ;;  %v12540_v44 = vpack.c.bf16 %v6400_v46, %v6400_v46  ;;  %v6145_v27 = vadd.f32 %v16720_v34, %v6144_v60  ;;  %v13140_v16 = vpop.f32.mrb[22].mxu0  ;;  %v13949_v41 = vld [vmem:[#allocation2 + $0xa8] sm:$0xff]  }
 0x455   :  { %6722 = vst.msk [vmem:[#allocation2 + $0xd4] sm:$0xf] %vm21_vm3, %v12542_v11  ;;  %v6341_v17 = vmul.f32 0.1, %v6153_v38  ;;  %v6156_v35 = vadd.f32 %v13140_v16, %v16720_v34  ;;  %v6147_v24 = vpop.f32.mrb[23].mxu0  ;;  %v13950_v51 = vld [vmem:[#allocation2 + $0xa8] sm:$0xff]   ;;  %8725 = vrot.lane.b32.xlu0 %v13949_v41, %s14235_s27 }
 0x456   :  { %6720 = vst.msk [vmem:[#allocation2 + $0xc0] sm:$0xf] %vm21_vm3, %v12540_v44  ;;  %v6339_v30 = vmul.f32 0.1, %v6145_v27  ;;  %v6148_v0 = vadd.f32 %v16720_v34, %v6147_v24  ;;  %8123 = vrot.lane.b32.xlu1 %v13950_v51, %s14236_s28  ;;  %v13952_v47 = vld [vmem:[#allocation2 + $0x94] sm:$0xff]  }
 0x457   :  { %v6405_v21 = vmax.f32 %v6153_v38, %v6341_v17  ;;  %v6342_v26 = vmul.f32 0.1, %v6156_v35  ;;  %v13951_v18 = vld [vmem:[#allocation2 + $0x94] sm:$0xff]  }
 0x458   :  { %v6403_v62 = vmax.f32 %v6145_v27, %v6339_v30  ;;  %v6340_v5 = vmul.f32 0.1, %v6148_v0 }
 0x459   :  { %v12545_v56 = vpack.c.bf16 %v6405_v21, %v6405_v21  ;;  %v6406_v23 = vmax.f32 %v6156_v35, %v6342_v26  ;;  %8117 = vrot.lane.b32.xlu0 %v13952_v47, %s14236_s28 }
 0x45a   :  { %v12543_v7 = vpack.c.bf16 %v6403_v62, %v6403_v62  ;;  %v6404_v42 = vmax.f32 %v6148_v0, %v6340_v5  ;;  %v13143_v31 = vpop.f32.mrb[24].mxu0  ;;  %8719 = vrot.lane.b32.xlu1 %v13951_v18, %s14235_s27 }
 0x45b   :  { %6725 = vst.msk [vmem:[#allocation2 + $0xf8] sm:$0xf] %vm21_vm3, %v12545_v56  ;;  %v12546_v32 = vpack.c.bf16 %v6406_v23, %v6406_v23  ;;  %v6169_v2 = vadd.f32 %v13143_v31, %v16720_v34  ;;  %v6160_v55 = vpop.f32.mrb[25].mxu0 }
 0x45c   :  { %6723 = vst.msk [vmem:[#allocation2 + $0xe4] sm:$0xf] %vm21_vm3, %v12543_v7  ;;  %v12544_v12 = vpack.c.bf16 %v6404_v42, %v6404_v42  ;;  %v6161_v1 = vadd.f32 %v16720_v34, %v6160_v55  ;;  %v13144_v58 = vpop.f32.mrb[26].mxu0  ;;  %v13953_v4 = vld [vmem:[#allocation2 + $0xd0] sm:$0xff]  }
 0x45d   :  { %6726 = vst.msk [vmem:[#allocation2 + $0xfc] sm:$0xf] %vm21_vm3, %v12546_v32  ;;  %v6345_v59 = vmul.f32 0.1, %v6169_v2  ;;  %v6172_v48 = vadd.f32 %v13144_v58, %v16720_v34  ;;  %v6163_v29 = vpop.f32.mrb[27].mxu0  ;;  %v13954_v61 = vld [vmem:[#allocation2 + $0xd0] sm:$0xff]   ;;  %8737 = vrot.lane.b32.xlu0 %v13953_v4, %s14235_s27 }
 0x45e   :  { %6724 = vst.msk [vmem:[#allocation2 + $0xe8] sm:$0xf] %vm21_vm3, %v12544_v12  ;;  %v6343_v25 = vmul.f32 0.1, %v6161_v1  ;;  %v6164_v20 = vadd.f32 %v16720_v34, %v6163_v29  ;;  %8135 = vrot.lane.b32.xlu1 %v13954_v61, %s14236_s28  ;;  %v13956_v3 = vld [vmem:[#allocation2 + $0xbc] sm:$0xff]  }
 0x45f   :  { %v6409_v15 = vmax.f32 %v6169_v2, %v6345_v59  ;;  %v6346_v40 = vmul.f32 0.1, %v6172_v48  ;;  %v13955_v13 = vld [vmem:[#allocation2 + $0xbc] sm:$0xff]  }
 0x460   :  { %v6407_v28 = vmax.f32 %v6161_v1, %v6343_v25  ;;  %v6344_v14 = vmul.f32 0.1, %v6164_v20 }
 0x461   :  { %v12549_v52 = vpack.c.bf16 %v6409_v15, %v6409_v15  ;;  %v6410_v53 = vmax.f32 %v6172_v48, %v6346_v40  ;;  %8129 = vrot.lane.b32.xlu0 %v13956_v3, %s14236_s28 }
 0x462   :  { %v12547_v9 = vpack.c.bf16 %v6407_v28, %v6407_v28  ;;  %v6408_v54 = vmax.f32 %v6164_v20, %v6344_v14  ;;  %v13147_v10 = vpop.f32.mrb[28].mxu0  ;;  %8731 = vrot.lane.b32.xlu1 %v13955_v13, %s14235_s27 }
 0x463   :  { %6729 = vst.msk [vmem:[#allocation2 + $0x120] sm:$0xf] %vm21_vm3, %v12549_v52  ;;  %v12550_v50 = vpack.c.bf16 %v6410_v53, %v6410_v53  ;;  %v6185_v37 = vadd.f32 %v13147_v10, %v16720_v34  ;;  %v6176_v33 = vpop.f32.mrb[29].mxu0 }
 0x464   :  { %6727 = vst.msk [vmem:[#allocation2 + $0x10c] sm:$0xf] %vm21_vm3, %v12547_v9  ;;  %v12548_v39 = vpack.c.bf16 %v6408_v54, %v6408_v54  ;;  %v6177_v57 = vadd.f32 %v16720_v34, %v6176_v33  ;;  %v13148_v19 = vpop.f32.mrb[30].mxu0  ;;  %v13957_v22 = vld [vmem:[#allocation2 + $0xf8] sm:$0xff]  }
 0x465   :  { %6730 = vst.msk [vmem:[#allocation2 + $0x124] sm:$0xf] %vm21_vm3, %v12550_v50  ;;  %v6349_v63 = vmul.f32 0.1, %v6185_v37  ;;  %v6188_v49 = vadd.f32 %v13148_v19, %v16720_v34  ;;  %v6179_v43 = vpop.f32.mrb[31].mxu0  ;;  %v13958_v45 = vld [vmem:[#allocation2 + $0xf8] sm:$0xff]   ;;  %8749 = vrot.lane.b32.xlu0 %v13957_v22, %s14235_s27 }
 0x466   :  { %6728 = vst.msk [vmem:[#allocation2 + $0x110] sm:$0xf] %vm21_vm3, %v12548_v39  ;;  %v6347_v36 = vmul.f32 0.1, %v6177_v57  ;;  %v6180_v6 = vadd.f32 %v16720_v34, %v6179_v43  ;;  %8147 = vrot.lane.b32.xlu1 %v13958_v45, %s14236_s28  ;;  %v13960_v60 = vld [vmem:[#allocation2 + $0xe4] sm:$0xff]  }
 0x467   :  { %v6413_v46 = vmax.f32 %v6185_v37, %v6349_v63  ;;  %v6350_v8 = vmul.f32 0.1, %v6188_v49  ;;  %v13959_v16 = vld [vmem:[#allocation2 + $0xe4] sm:$0xff]  }
 0x468   :  { %v6411_v11 = vmax.f32 %v6177_v57, %v6347_v36  ;;  %v6348_v38 = vmul.f32 0.1, %v6180_v6 }
 0x469   :  { %v12553_v44 = vpack.c.bf16 %v6413_v46, %v6413_v46  ;;  %v6414_v27 = vmax.f32 %v6188_v49, %v6350_v8  ;;  %8141 = vrot.lane.b32.xlu0 %v13960_v60, %s14236_s28 }
 0x46a   :  { %v12551_v41 = vpack.c.bf16 %v6411_v11, %v6411_v11  ;;  %v6412_v17 = vmax.f32 %v6180_v6, %v6348_v38  ;;  %v13151_v35 = vpop.f32.mrb[32].mxu0  ;;  %8743 = vrot.lane.b32.xlu1 %v13959_v16, %s14235_s27  ;;  %v13969_v6 = vld [vmem:[#allocation2 + $0x15c] sm:$0xff]  }
 0x46b   :  { %6733 = vst.msk [vmem:[#allocation2 + $0x148] sm:$0xf] %vm21_vm3, %v12553_v44  ;;  %v12554_v24 = vpack.c.bf16 %v6414_v27, %v6414_v27  ;;  %v6201_v51 = vadd.f32 %v13151_v35, %v16720_v34  ;;  %v6192_v30 = vpop.f32.mrb[33].mxu0 }
 0x46c   :  { %6731 = vst.msk [vmem:[#allocation2 + $0x134] sm:$0xf] %vm21_vm3, %v12551_v41  ;;  %v12552_v0 = vpack.c.bf16 %v6412_v17, %v6412_v17  ;;  %v6193_v21 = vadd.f32 %v16720_v34, %v6192_v30  ;;  %v13152_v26 = vpop.f32.mrb[34].mxu0  ;;  %v13961_v62 = vld [vmem:[#allocation2 + $0x120] sm:$0xff]  }
 0x46d   :  { %6734 = vst.msk [vmem:[#allocation2 + $0x14c] sm:$0xf] %vm21_vm3, %v12554_v24  ;;  %v6353_v5 = vmul.f32 0.1, %v6201_v51  ;;  %v6204_v47 = vadd.f32 %v13152_v26, %v16720_v34  ;;  %v6195_v56 = vpop.f32.mrb[35].mxu0  ;;  %v13962_v23 = vld [vmem:[#allocation2 + $0x120] sm:$0xff]   ;;  %8761 = vrot.lane.b32.xlu0 %v13961_v62, %s14235_s27 }
 0x46e   :  { %6732 = vst.msk [vmem:[#allocation2 + $0x138] sm:$0xf] %vm21_vm3, %v12552_v0  ;;  %v6351_v18 = vmul.f32 0.1, %v6193_v21  ;;  %v6196_v7 = vadd.f32 %v16720_v34, %v6195_v56  ;;  %8159 = vrot.lane.b32.xlu1 %v13962_v23, %s14236_s28  ;;  %v13964_v55 = vld [vmem:[#allocation2 + $0x10c] sm:$0xff]  }
 0x46f   :  { %v6417_v42 = vmax.f32 %v6201_v51, %v6353_v5  ;;  %v6354_v31 = vmul.f32 0.1, %v6204_v47  ;;  %v13963_v58 = vld [vmem:[#allocation2 + $0x10c] sm:$0xff]  }
 0x470   :  { %v6415_v32 = vmax.f32 %v6193_v21, %v6351_v18  ;;  %v6352_v2 = vmul.f32 0.1, %v6196_v7 }
 0x471   :  { %v12557_v12 = vpack.c.bf16 %v6417_v42, %v6417_v42  ;;  %v6418_v1 = vmax.f32 %v6204_v47, %v6354_v31  ;;  %8153 = vrot.lane.b32.xlu0 %v13964_v55, %s14236_s28 }
 0x472   :  { %v12555_v4 = vpack.c.bf16 %v6415_v32, %v6415_v32  ;;  %v6416_v59 = vmax.f32 %v6196_v7, %v6352_v2  ;;  %v13155_v48 = vpop.f32.mrb[36].mxu0  ;;  %8755 = vrot.lane.b32.xlu1 %v13963_v58, %s14235_s27 }
 0x473   :  { %6737 = vst.msk [vmem:[#allocation2 + $0x198] sm:$0xf] %vm21_vm3, %v12557_v12  ;;  %v12558_v29 = vpack.c.bf16 %v6418_v1, %v6418_v1  ;;  %v6217_v61 = vadd.f32 %v13155_v48, %v16720_v34  ;;  %v6208_v25 = vpop.f32.mrb[37].mxu0 }
 0x474   :  { %6735 = vst.msk [vmem:[#allocation2 + $0x184] sm:$0xf] %vm21_vm3, %v12555_v4  ;;  %v12556_v20 = vpack.c.bf16 %v6416_v59, %v6416_v59  ;;  %v6209_v15 = vadd.f32 %v16720_v34, %v6208_v25  ;;  %v13156_v40 = vpop.f32.mrb[38].mxu0  ;;  %v13965_v28 = vld [vmem:[#allocation2 + $0x148] sm:$0xff]  }
 0x475   :  { %6738 = vst.msk [vmem:[#allocation2 + $0x19c] sm:$0xf] %vm21_vm3, %v12558_v29  ;;  %v6357_v14 = vmul.f32 0.1, %v6217_v61  ;;  %v6220_v3 = vadd.f32 %v13156_v40, %v16720_v34  ;;  %v6211_v52 = vpop.f32.mrb[39].mxu0  ;;  %v13966_v53 = vld [vmem:[#allocation2 + $0x148] sm:$0xff]   ;;  %8773 = vrot.lane.b32.xlu0 %v13965_v28, %s14235_s27 }
 0x476   :  { %6736 = vst.msk [vmem:[#allocation2 + $0x188] sm:$0xf] %vm21_vm3, %v12556_v20  ;;  %v6355_v13 = vmul.f32 0.1, %v6209_v15  ;;  %v6212_v9 = vadd.f32 %v16720_v34, %v6211_v52  ;;  %8171 = vrot.lane.b32.xlu1 %v13966_v53, %s14236_s28  ;;  %v13968_v33 = vld [vmem:[#allocation2 + $0x134] sm:$0xff]  }
 0x477   :  { %v6421_v54 = vmax.f32 %v6217_v61, %v6357_v14  ;;  %v6358_v10 = vmul.f32 0.1, %v6220_v3  ;;  %v13967_v19 = vld [vmem:[#allocation2 + $0x134] sm:$0xff]  }
 0x478   :  { %v6419_v50 = vmax.f32 %v6209_v15, %v6355_v13  ;;  %v6356_v37 = vmul.f32 0.1, %v6212_v9 }
 0x479   :  { %v12561_v39 = vpack.c.bf16 %v6421_v54, %v6421_v54  ;;  %v6422_v57 = vmax.f32 %v6220_v3, %v6358_v10  ;;  %8165 = vrot.lane.b32.xlu0 %v13968_v33, %s14236_s28 }
 0x47a   :  { %v12559_v22 = vpack.c.bf16 %v6419_v50, %v6419_v50  ;;  %v6420_v63 = vmax.f32 %v6212_v9, %v6356_v37  ;;  %v13159_v49 = vpop.f32.mrb[40].mxu0  ;;  %8767 = vrot.lane.b32.xlu1 %v13967_v19, %s14235_s27 }
 0x47b   :  { %6741 = vst.msk [vmem:[#allocation2 + $0x1c0] sm:$0xf] %vm21_vm3, %v12561_v39  ;;  %v12562_v43 = vpack.c.bf16 %v6422_v57, %v6422_v57  ;;  %v6233_v45 = vadd.f32 %v13159_v49, %v16720_v34  ;;  %v6224_v36 = vpop.f32.mrb[41].mxu0 }
 0x47c   :  { %6739 = vst.msk [vmem:[#allocation2 + $0x1ac] sm:$0xf] %vm21_vm3, %v12559_v22  ;;  %v12560_v46 = vpack.c.bf16 %v6420_v63, %v6420_v63  ;;  %v6225_v8 = vadd.f32 %v16720_v34, %v6224_v36  ;;  %v13160_v11 = vpop.f32.mrb[42].mxu0  ;;  %v13970_v38 = vld [vmem:[#allocation2 + $0x198] sm:$0xff]  }
 0x47d   :  { %6742 = vst.msk [vmem:[#allocation2 + $0x1c4] sm:$0xf] %vm21_vm3, %v12562_v43  ;;  %v6361_v60 = vmul.f32 0.1, %v6233_v45  ;;  %v6236_v44 = vadd.f32 %v13160_v11, %v16720_v34  ;;  %v6227_v27 = vpop.f32.mrb[43].mxu0  ;;  %8785 = vrot.lane.b32.xlu0 %v13970_v38, %s14235_s27  ;;  %v13972_v30 = vld [vmem:[#allocation2 + $0x184] sm:$0xff]  }
 0x47e   :  { %6740 = vst.msk [vmem:[#allocation2 + $0x1b0] sm:$0xf] %vm21_vm3, %v12560_v46  ;;  %v6359_v16 = vmul.f32 0.1, %v6225_v8  ;;  %v6228_v41 = vadd.f32 %v16720_v34, %v6227_v27  ;;  %8779 = vrot.lane.b32.xlu1 %v13969_v6, %s14235_s27  ;;  %v13971_v26 = vld [vmem:[#allocation2 + $0x198] sm:$0xff]  }
 0x47f   :  { %v6425_v17 = vmax.f32 %v6233_v45, %v6361_v60  ;;  %v6362_v35 = vmul.f32 0.1, %v6236_v44 }
 0x480   :  { %v6423_v24 = vmax.f32 %v6225_v8, %v6359_v16  ;;  %v6360_v51 = vmul.f32 0.1, %v6228_v41 }
 0x481   :  { %v12565_v0 = vpack.c.bf16 %v6425_v17, %v6425_v17  ;;  %v6426_v21 = vmax.f32 %v6236_v44, %v6362_v35  ;;  %8177 = vrot.lane.b32.xlu0 %v13972_v30, %s14236_s28  ;;  %v16872_v44 = vld [vmem:[%s18448_s2 + $0x1] ss:$0 sm:$0xff] }
 0x482   :  { %v12563_v62 = vpack.c.bf16 %v6423_v24, %v6423_v24  ;;  %v6424_v5 = vmax.f32 %v6228_v41, %v6360_v51  ;;  %v13163_v47 = vpop.f32.mrb[44].mxu0  ;;  %8183 = vrot.lane.b32.xlu1 %v13971_v26, %s14236_s28 }
 0x483   :  { %6745 = vst.msk [vmem:[#allocation2 + $0x1e8] sm:$0xf] %vm21_vm3, %v12565_v0  ;;  %v12566_v56 = vpack.c.bf16 %v6426_v21, %v6426_v21  ;;  %v6249_v23 = vadd.f32 %v13163_v47, %v16720_v34  ;;  %v6240_v18 = vpop.f32.mrb[45].mxu0 }
 0x484   :  { %6743 = vst.msk [vmem:[#allocation2 + $0x1d4] sm:$0xf] %vm21_vm3, %v12563_v62  ;;  %v12564_v7 = vpack.c.bf16 %v6424_v5, %v6424_v5  ;;  %v6241_v42 = vadd.f32 %v16720_v34, %v6240_v18  ;;  %v13164_v31 = vpop.f32.mrb[46].mxu0  ;;  %v13973_v32 = vld [vmem:[#allocation2 + $0x1c0] sm:$0xff]  }
 0x485   :  { %6746 = vst.msk [vmem:[#allocation2 + $0x1ec] sm:$0xf] %vm21_vm3, %v12566_v56  ;;  %v6365_v2 = vmul.f32 0.1, %v6249_v23  ;;  %v6252_v55 = vadd.f32 %v13164_v31, %v16720_v34  ;;  %v6243_v12 = vpop.f32.mrb[47].mxu0  ;;  %v13974_v1 = vld [vmem:[#allocation2 + $0x1c0] sm:$0xff]   ;;  %8797 = vrot.lane.b32.xlu0 %v13973_v32, %s14235_s27 }
 0x486   :  { %6744 = vst.msk [vmem:[#allocation2 + $0x1d8] sm:$0xf] %vm21_vm3, %v12564_v7  ;;  %v6363_v58 = vmul.f32 0.1, %v6241_v42  ;;  %v6244_v4 = vadd.f32 %v16720_v34, %v6243_v12  ;;  %8195 = vrot.lane.b32.xlu1 %v13974_v1, %s14236_s28  ;;  %v13976_v25 = vld [vmem:[#allocation2 + $0x1ac] sm:$0xff]  }
 0x487   :  { %v6429_v59 = vmax.f32 %v6249_v23, %v6365_v2  ;;  %v6366_v48 = vmul.f32 0.1, %v6252_v55  ;;  %v13975_v40 = vld [vmem:[#allocation2 + $0x1ac] sm:$0xff]  }
 0x488   :  { %v6427_v29 = vmax.f32 %v6241_v42, %v6363_v58  ;;  %v6364_v61 = vmul.f32 0.1, %v6244_v4 }
 0x489   :  { %v12569_v20 = vpack.c.bf16 %v6429_v59, %v6429_v59  ;;  %v6430_v15 = vmax.f32 %v6252_v55, %v6366_v48  ;;  %8189 = vrot.lane.b32.xlu0 %v13976_v25, %s14236_s28 }
 0x48a   :  { %v12567_v28 = vpack.c.bf16 %v6427_v29, %v6427_v29  ;;  %v6428_v14 = vmax.f32 %v6244_v4, %v6364_v61  ;;  %v13167_v3 = vpop.f32.mrb[48].mxu0  ;;  %8791 = vrot.lane.b32.xlu1 %v13975_v40, %s14235_s27 }
 0x48b   :  { %6749 = vst.msk [vmem:[#allocation2 + $0x210] sm:$0xf] %vm21_vm3, %v12569_v20  ;;  %v12570_v52 = vpack.c.bf16 %v6430_v15, %v6430_v15  ;;  %v6265_v53 = vadd.f32 %v13167_v3, %v16720_v34  ;;  %v6256_v13 = vpop.f32.mrb[49].mxu0 }
 0x48c   :  { %6747 = vst.msk [vmem:[#allocation2 + $0x1fc] sm:$0xf] %vm21_vm3, %v12567_v28  ;;  %v12568_v9 = vpack.c.bf16 %v6428_v14, %v6428_v14  ;;  %v6257_v54 = vadd.f32 %v16720_v34, %v6256_v13  ;;  %v13168_v10 = vpop.f32.mrb[50].mxu0  ;;  %v13977_v50 = vld [vmem:[#allocation2 + $0x1e8] sm:$0xff]  }
 0x48d   :  { %6750 = vst.msk [vmem:[#allocation2 + $0x214] sm:$0xf] %vm21_vm3, %v12570_v52  ;;  %v6369_v37 = vmul.f32 0.1, %v6265_v53  ;;  %v6268_v33 = vadd.f32 %v13168_v10, %v16720_v34  ;;  %v6259_v39 = vpop.f32.mrb[51].mxu0  ;;  %v13978_v57 = vld [vmem:[#allocation2 + $0x1e8] sm:$0xff]   ;;  %8809 = vrot.lane.b32.xlu0 %v13977_v50, %s14235_s27 }
 0x48e   :  { %6748 = vst.msk [vmem:[#allocation2 + $0x200] sm:$0xf] %vm21_vm3, %v12568_v9  ;;  %v6367_v19 = vmul.f32 0.1, %v6257_v54  ;;  %v6260_v22 = vadd.f32 %v16720_v34, %v6259_v39  ;;  %8207 = vrot.lane.b32.xlu1 %v13978_v57, %s14236_s28  ;;  %v13980_v36 = vld [vmem:[#allocation2 + $0x1d4] sm:$0xff]  }
 0x48f   :  { %v6433_v63 = vmax.f32 %v6265_v53, %v6369_v37  ;;  %v6370_v49 = vmul.f32 0.1, %v6268_v33  ;;  %v13979_v8 = vld [vmem:[#allocation2 + $0x1d4] sm:$0xff]  }
 0x490   :  { %v6431_v43 = vmax.f32 %v6257_v54, %v6367_v19  ;;  %v6368_v45 = vmul.f32 0.1, %v6260_v22 }
 0x491   :  { %v12573_v6 = vpack.c.bf16 %v6433_v63, %v6433_v63  ;;  %v6434_v46 = vmax.f32 %v6268_v33, %v6370_v49  ;;  %8201 = vrot.lane.b32.xlu0 %v13980_v36, %s14236_s28 }
 0x492   :  { %v12571_v11 = vpack.c.bf16 %v6431_v43, %v6431_v43  ;;  %v6432_v38 = vmax.f32 %v6260_v22, %v6368_v45  ;;  %v13171_v60 = vpop.f32.mrb[52].mxu0  ;;  %8803 = vrot.lane.b32.xlu1 %v13979_v8, %s14235_s27 }
 0x493   :  { %6753 = vst.msk [vmem:[#allocation2 + $0x238] sm:$0xf] %vm21_vm3, %v12573_v6  ;;  %v12574_v34 = vpack.c.bf16 %v6434_v46, %v6434_v46  ;;  %v6281_v27 = vadd.f32 %v16872_v44, %v13171_v60  ;;  %v6272_v16 = vpop.f32.mrb[53].mxu0 }
 0x494   :  { %6751 = vst.msk [vmem:[#allocation2 + $0x224] sm:$0xf] %vm21_vm3, %v12571_v11  ;;  %v12572_v41 = vpack.c.bf16 %v6432_v38, %v6432_v38  ;;  %v6273_v17 = vadd.f32 %v16872_v44, %v6272_v16  ;;  %v13172_v35 = vpop.f32.mrb[54].mxu0  ;;  %v13981_v24 = vld [vmem:[#allocation2 + $0x210] sm:$0xff]  }
 0x495   :  { %6754 = vst.msk [vmem:[#allocation2 + $0x23c] sm:$0xf] %vm21_vm3, %v12574_v34  ;;  %v6373_v51 = vmul.f32 0.1, %v6281_v27  ;;  %v6284_v30 = vadd.f32 %v16872_v44, %v13172_v35  ;;  %v6275_v0 = vpop.f32.mrb[55].mxu0  ;;  %v13982_v21 = vld [vmem:[#allocation2 + $0x210] sm:$0xff]   ;;  %8821 = vrot.lane.b32.xlu0 %v13981_v24, %s14235_s27 }
 0x496   :  { %6752 = vst.msk [vmem:[#allocation2 + $0x228] sm:$0xf] %vm21_vm3, %v12572_v41  ;;  %v6371_v26 = vmul.f32 0.1, %v6273_v17  ;;  %v6276_v62 = vadd.f32 %v16872_v44, %v6275_v0  ;;  %8219 = vrot.lane.b32.xlu1 %v13982_v21, %s14236_s28  ;;  %v13984_v18 = vld [vmem:[#allocation2 + $0x1fc] sm:$0xff]  }
 0x497   :  { %v6437_v5 = vmax.f32 %v6281_v27, %v6373_v51  ;;  %v6374_v47 = vmul.f32 0.1, %v6284_v30  ;;  %v13983_v31 = vld [vmem:[#allocation2 + $0x1fc] sm:$0xff]  }
 0x498   :  { %v6435_v56 = vmax.f32 %v6273_v17, %v6371_v26  ;;  %v6372_v23 = vmul.f32 0.1, %v6276_v62 }
 0x499   :  { %v12577_v7 = vpack.c.bf16 %v6437_v5, %v6437_v5  ;;  %v6438_v42 = vmax.f32 %v6284_v30, %v6374_v47  ;;  %8213 = vrot.lane.b32.xlu0 %v13984_v18, %s14236_s28  ;;  %v13998_v5 = vld [vmem:[#allocation2 + $0x8] sm:$0xff]  }
 0x49a   :  { %v12575_v32 = vpack.c.bf16 %v6435_v56, %v6435_v56  ;;  %v6436_v2 = vmax.f32 %v6276_v62, %v6372_v23  ;;  %v13175_v55 = vpop.f32.mrb[56].mxu0  ;;  %8815 = vrot.lane.b32.xlu1 %v13983_v31, %s14235_s27 }
 0x49b   :  { %6757 = vst.msk [vmem:[#allocation2 + $0x260] sm:$0xf] %vm21_vm3, %v12577_v7  ;;  %v12578_v12 = vpack.c.bf16 %v6438_v42, %v6438_v42  ;;  %v6297_v1 = vadd.f32 %v16872_v44, %v13175_v55  ;;  %v6288_v58 = vpop.f32.mrb[57].mxu0 }
 0x49c   :  { %6755 = vst.msk [vmem:[#allocation2 + $0x24c] sm:$0xf] %vm21_vm3, %v12575_v32  ;;  %v12576_v4 = vpack.c.bf16 %v6436_v2, %v6436_v2  ;;  %v6289_v59 = vadd.f32 %v16872_v44, %v6288_v58  ;;  %v13176_v48 = vpop.f32.mrb[58].mxu0  ;;  %v13985_v29 = vld [vmem:[#allocation2 + $0x238] sm:$0xff]  }
 0x49d   :  { %6758 = vst.msk [vmem:[#allocation2 + $0x264] sm:$0xf] %vm21_vm3, %v12578_v12  ;;  %v6377_v61 = vmul.f32 0.1, %v6297_v1  ;;  %v6300_v25 = vadd.f32 %v16872_v44, %v13176_v48  ;;  %v6291_v20 = vpop.f32.mrb[59].mxu0  ;;  %v13986_v15 = vld [vmem:[#allocation2 + $0x238] sm:$0xff]   ;;  %8833 = vrot.lane.b32.xlu0 %v13985_v29, %s14235_s27 }
 0x49e   :  { %6756 = vst.msk [vmem:[#allocation2 + $0x250] sm:$0xf] %vm21_vm3, %v12576_v4  ;;  %v6375_v40 = vmul.f32 0.1, %v6289_v59  ;;  %v6292_v28 = vadd.f32 %v16872_v44, %v6291_v20  ;;  %8231 = vrot.lane.b32.xlu1 %v13986_v15, %s14236_s28  ;;  %v13988_v13 = vld [vmem:[#allocation2 + $0x224] sm:$0xff]   ;;  %v14002_v32 = vld [vmem:[#allocation2 + $0x14] sm:$0xff]  }
 0x49f   :  { %v6441_v14 = vmax.f32 %v6297_v1, %v6377_v61  ;;  %v6378_v3 = vmul.f32 0.1, %v6300_v25  ;;  %v13987_v10 = vld [vmem:[#allocation2 + $0x224] sm:$0xff]   ;;  %v14004_v29 = vld [vmem:[#allocation2 + $0x30] sm:$0xff]  }
 0x4a0   :  { %v6439_v52 = vmax.f32 %v6289_v59, %v6375_v40  ;;  %v6376_v53 = vmul.f32 0.1, %v6292_v28  ;;  %v13995_v59 = vld [vmem:[#allocation2 + $0x1c] sm:$0xff]   ;;  %v14006_v61 = vld [vmem:[#allocation2 + $0x2c4] sm:$0xff]  }
 0x4a1   :  { %v12581_v9 = vpack.c.bf16 %v6441_v14, %v6441_v14  ;;  %v6442_v54 = vmax.f32 %v6300_v25, %v6378_v3  ;;  %8225 = vrot.lane.b32.xlu0 %v13988_v13, %s14236_s28  ;;  %v14233_v14 = vld [vmem:[%s18447_s3 + $0x18] sm:$0x3f]   ;;  %v14010_v13 = vld [vmem:[#allocation2 + $0x28] sm:$0xff]  }
 0x4a2   :  { %v12579_v50 = vpack.c.bf16 %v6439_v52, %v6439_v52  ;;  %v6440_v37 = vmax.f32 %v6292_v28, %v6376_v53  ;;  %v13179_v33 = vpop.f32.mrb[60].mxu0  ;;  %8827 = vrot.lane.b32.xlu1 %v13987_v10, %s14235_s27  ;;  %v10142_v3 = vsel %vm4088_vm2, %v14233_v14, 0  ;;  %v14009_v10 = vld [vmem:[#allocation2 + $0x28] sm:$0xff]   ;;  %v14014_v14 = vld [vmem:[#allocation2 + $0x94] sm:$0xff]  }
 0x4a3   :  { %6761 = vst.msk [vmem:[#allocation2 + $0x288] sm:$0xf] %vm21_vm3, %v12581_v9  ;;  %v12582_v39 = vpack.c.bf16 %v6442_v54, %v6442_v54  ;;  %v6313_v57 = vadd.f32 %v16872_v44, %v13179_v33  ;;  %v6304_v19 = vpop.f32.mrb[61].mxu0 }
 0x4a4   :  { %6759 = vst.msk [vmem:[#allocation2 + $0x274] sm:$0xf] %vm21_vm3, %v12579_v50  ;;  %v12580_v22 = vpack.c.bf16 %v6440_v37, %v6440_v37  ;;  %v6305_v63 = vadd.f32 %v16872_v44, %v6304_v19  ;;  %v13180_v49 = vpop.f32.mrb[62].mxu0  ;;  %v13989_v43 = vld [vmem:[#allocation2 + $0x260] sm:$0xff]   ;;  %v16959_v37 = vld [vmem:[%s18447_s3 + $0x28] sm:$0x3f]  }
 0x4a5   :  { %6762 = vst.msk [vmem:[#allocation2 + $0x28c] sm:$0xf] %vm21_vm3, %v12582_v39  ;;  %v6381_v45 = vmul.f32 0.1, %v6313_v57  ;;  %v6316_v36 = vadd.f32 %v16872_v44, %v13180_v49  ;;  %v6307_v6 = vpop.f32.mrb[63].mxu0  ;;  %v13990_v46 = vld [vmem:[#allocation2 + $0x260] sm:$0xff]   ;;  %8845 = vrot.lane.b32.xlu0 %v13989_v43, %s14235_s27 }
 0x4a6   :  { %6760 = vst.msk [vmem:[#allocation2 + $0x278] sm:$0xf] %vm21_vm3, %v12580_v22  ;;  %v6379_v8 = vmul.f32 0.1, %v6305_v63  ;;  %v6308_v11 = vadd.f32 %v16872_v44, %v6307_v6  ;;  %8243 = vrot.lane.b32.xlu1 %v13990_v46, %s14236_s28  ;;  %v13992_v16 = vld [vmem:[#allocation2 + $0x24c] sm:$0xff]   ;;  %v14001_v49 = vld [vmem:[#allocation2 + $0x44] sm:$0xff]  }
 0x4a7   :  { %v6445_v38 = vmax.f32 %v6313_v57, %v6381_v45  ;;  %v6382_v60 = vmul.f32 0.1, %v6316_v36  ;;  %v13991_v35 = vld [vmem:[#allocation2 + $0x24c] sm:$0xff]   ;;  %v14012_v6 = vld [vmem:[#allocation2 + $0x3c] sm:$0xff]  }
 0x4a8   :  { %v6443_v34 = vmax.f32 %v6305_v63, %v6379_v8  ;;  %v6380_v27 = vmul.f32 0.1, %v6308_v11  ;;  %v14013_v63 = vld [vmem:[#allocation2 + $0x3c] sm:$0xff]  }
 0x4a9   :  { %v12585_v41 = vpack.c.bf16 %v6445_v38, %v6445_v38  ;;  %v6446_v17 = vmax.f32 %v6316_v36, %v6382_v60  ;;  %8237 = vrot.lane.b32.xlu0 %v13992_v16, %s14236_s28  ;;  %v14011_v36 = vld [vmem:[#allocation2 + $0x58] sm:$0xff]  }
 0x4aa   :  { %v12583_v24 = vpack.c.bf16 %v6443_v34, %v6443_v34  ;;  %v6444_v51 = vmax.f32 %v6308_v11, %v6380_v27  ;;  %8839 = vrot.lane.b32.xlu1 %v13991_v35, %s14235_s27  ;;  %v14016_v27 = vld [vmem:[#allocation2 + $0x50] sm:$0xff]  }
 0x4ab   :  { %6765 = vst.msk [vmem:[#allocation2 + $0x2b0] sm:$0xf] %vm21_vm3, %v12585_v41  ;;  %v12586_v30 = vpack.c.bf16 %v6446_v17, %v6446_v17  ;;  %v14015_v17 = vld [vmem:[#allocation2 + $0x50] sm:$0xff]  }
 0x4ac   :  { %6763 = vst.msk [vmem:[#allocation2 + $0x29c] sm:$0xf] %vm21_vm3, %v12583_v24  ;;  %v12584_v44 = vpack.c.bf16 %v6444_v51, %v6444_v51  ;;  %v13993_v0 = vld [vmem:[#allocation2 + $0x288] sm:$0xff]  }
 0x4ad   :  { %6766 = vst.msk [vmem:[#allocation2 + $0x2b4] sm:$0xf] %vm21_vm3, %v12586_v30  ;;  %v13994_v21 = vld [vmem:[#allocation2 + $0x288] sm:$0xff]   ;;  %8857 = vrot.lane.b32.xlu0 %v13993_v0, %s14235_s27  ;;  %v13997_v62 = vld [vmem:[#allocation2 + $0x274] sm:$0xff]  }
 0x4ae   :  { %6764 = vst.msk [vmem:[#allocation2 + $0x2a0] sm:$0xf] %vm21_vm3, %v12584_v44  ;;  %8255 = vrot.lane.b32.xlu1 %v13994_v21, %s14236_s28  ;;  %v13996_v47 = vld [vmem:[#allocation2 + $0x274] sm:$0xff]   ;;  %v14019_v21 = vld [vmem:[#allocation2 + $0x64] sm:$0xff]  }
 0x4af   :  { %v8690_v26 = vpop.permute.xlu0 %8689 }
 0x4b0   :  { %v8088_v18 = vpop.permute.xlu1 %8087 }
 0x4b1   :  { %8249 = vrot.lane.b32.xlu0 %v13997_v62, %s14236_s28  ;;  %v8893_v15 = vsel %vm3216_vm4, %v13995_v59, %v8088_v18  ;;  %v14021_v59 = vld [vmem:[#allocation2 + $0x78] sm:$0xff]  }
 0x4b2   :  { %8851 = vrot.lane.b32.xlu1 %v13996_v47, %s14235_s27  ;;  %v14017_v47 = vld [vmem:[#allocation2 + $0x80] sm:$0xff]  }
 0x4b3   :  { %v8082_v56 = vpop.permute.xlu0 %8081 }
 0x4b4   :  { %v13999_v23 = vld [vmem:[#allocation2 + $0x2b0] sm:$0xff]   ;;  %v8884_v7 = vsel %vm3216_vm4, %v13998_v5, %v8082_v56  ;;  %v14018_v56 = vld [vmem:[#allocation2 + $0x64] sm:$0xff]  }
 0x4b5   :  { %v14000_v42 = vld [vmem:[#allocation2 + $0x2b0] sm:$0xff]   ;;  %8869 = vrot.lane.b32.xlu0 %v13999_v23, %s14235_s27  ;;  %v16921_v31 = vsel %vm264_vm1, %v8884_v7, %v8690_v26  ;;  %v14003_v4 = vld [vmem:[#allocation2 + $0x29c] sm:$0xff]  }
 0x4b6   :  { %8267 = vrot.lane.b32.xlu1 %v14000_v42, %s14236_s28  ;;  %v18555_v2 = vshll.u32 %v16921_v31, 16  ;;  %13183 = vmatprep.mubr.msk.bf16.mxu0 %vm4023_vm5, %v16921_v31  ;;  %v18556_v12 = vshrl.u32 %v16921_v31, 16  ;;  %v14007_v20 = vld [vmem:[#allocation2 + $0x29c] sm:$0xff]   ;;  %v14008_v26 = vld [vmem:[#allocation2 + $0x6c] sm:$0xff]  }
 0x4b7   :  { %v8702_v55 = vpop.permute.xlu0 %8701 }
 0x4b8   :  { %v10433_v1 = vrot.slane %v18555_v2, 1  ;;  %v8100_v58 = vpop.permute.xlu1 %8099 }
 0x4b9   :  { %8079 = vrot.lane.b32.xlu0 %v14002_v32, %s14236_s28  ;;  %v8911_v8 = vsel %vm3216_vm4, %v14001_v49, %v8100_v58 }
 0x4ba   :  { %v16933_v48 = vor.u32 %v10433_v1, %v18556_v12  ;;  %8863 = vrot.lane.b32.xlu1 %v14003_v4, %s14235_s27  ;;  %v14022_v1 = vld [vmem:[#allocation2 + $0x78] sm:$0xff]  }
 0x4bb   :  { %v8094_v25 = vpop.permute.xlu0 %8093 }
 0x4bc   :  { %v8696_v40 = vpop.permute.xlu1 %8695  ;;  %v8902_v28 = vsel %vm3216_vm4, %v14004_v29, %v8094_v25 }
 0x4bd   :  { %v16943_v52 = vsel %vm264_vm1, %v8893_v15, %v8696_v40  ;;  %8261 = vrot.lane.b32.xlu0 %v14007_v20, %s14236_s28  ;;  %v16947_v53 = vsel %vm264_vm1, %v8902_v28, %v8702_v55  ;;  %v14025_v28 = vld [vmem:[#allocation2 + $0x8c] sm:$0xff]  }
 0x4be   :  { %v18548_v9 = vshll.u32 %v16943_v52, 16  ;;  %13184 = vmatmul.mubr.msk.bf16.vlgmr.msra.gmra.mrb[64].mxu0 %vm4023_vm5, %v16943_v52  ;;  %8875 = vrot.lane.b32.xlu1 %v14006_v61, %s14235_s27  ;;  %v18547_v54 = vshll.u32 %v16947_v53, 16  ;;  %v18553_v33 = vshrl.u32 %v16943_v52, 16  ;;  %v18552_v57 = vshrl.u32 %v16947_v53, 16 }
 0x4bf   :  { %13187 = vmatprep.mubr.msk.bf16.mxu0 %vm4023_vm5, %v16947_v53  ;;  %13248 = vmatpush3.bf16.msra.mxu0 %v10142_v3  ;;  %v8714_v50 = vpop.permute.xlu0 %8713 }
 0x4c0   :  { %v10439_v39 = vrot.slane %v18548_v9, 1  ;;  %v10445_v19 = vrot.slane %v18547_v54, 1  ;;  %v8112_v22 = vpop.permute.xlu1 %8111  ;;  %13642 = vmatprep.subr.msk.bf16.mxu0 %vm4088_vm2, %v16959_v37 }
 0x4c1   :  { %8687 = vrot.lane.b32.xlu0 %v14010_v13, %s14235_s27  ;;  %v8929_v18 = vsel %vm3216_vm4, %v14008_v26, %v8112_v22 }
 0x4c2   :  { %v16972_v43 = vor.u32 %v10439_v39, %v18553_v33  ;;  %v16976_v45 = vor.u32 %v10445_v19, %v18552_v57  ;;  %8085 = vrot.lane.b32.xlu1 %v14009_v10, %s14236_s28  ;;  %v14023_v10 = vld [vmem:[#allocation2 + $0xa8] sm:$0xff]   ;;  %v14072_v57 = vld [vmem:[#allocation2 + $0x1f4] sm:$0xff]  }
 0x4c3   :  { %v8106_v46 = vpop.permute.xlu0 %8105 }
 0x4c4   :  { %v8708_v11 = vpop.permute.xlu1 %8707  ;;  %v8920_v38 = vsel %vm3216_vm4, %v14011_v36, %v8106_v46 }
 0x4c5   :  { %v16982_v60 = vsel %vm264_vm1, %v8911_v8, %v8708_v11  ;;  %8091 = vrot.lane.b32.xlu0 %v14013_v63, %s14236_s28  ;;  %v16986_v34 = vsel %vm264_vm1, %v8920_v38, %v8714_v50  ;;  %v14024_v50 = vld [vmem:[#allocation2 + $0x8c] sm:$0xff]   ;;  %v14027_v11 = vld [vmem:[#allocation2 + $0xa0] sm:$0xff]  }
 0x4c6   :  { %v18540_v16 = vshll.u32 %v16982_v60, 16  ;;  %13188 = vmatmul.mubr.msk.bf16.gmra.mrb[68].mxu0 %vm4023_vm5, %v16982_v60  ;;  %8693 = vrot.lane.b32.xlu1 %v14012_v6, %s14235_s27  ;;  %v18539_v41 = vshll.u32 %v16986_v34, 16  ;;  %v18545_v24 = vshrl.u32 %v16982_v60, 16  ;;  %v18544_v30 = vshrl.u32 %v16986_v34, 16  ;;  %v14028_v6 = vld [vmem:[#allocation2 + $0xa0] sm:$0xff]  }
 0x4c7   :  { %13191 = vmatprep.mubr.msk.bf16.mxu0 %vm4023_vm5, %v16986_v34  ;;  %v8726_v35 = vpop.permute.xlu0 %8725 }
 0x4c8   :  { %v10451_v51 = vrot.slane %v18540_v16, 1  ;;  %v10457_v44 = vrot.slane %v18539_v41, 1  ;;  %v8124_v0 = vpop.permute.xlu1 %8123 }
 0x4c9   :  { %8699 = vrot.lane.b32.xlu0 %v14016_v27, %s14235_s27  ;;  %v8947_v19 = vsel %vm3216_vm4, %v14014_v14, %v8124_v0  ;;  %v14031_v0 = vld [vmem:[#allocation2 + $0xb4] sm:$0xff]  }
 0x4ca   :  { %v17004_v62 = vor.u32 %v10451_v51, %v18545_v24  ;;  %v17008_v5 = vor.u32 %v10457_v44, %v18544_v30  ;;  %8097 = vrot.lane.b32.xlu1 %v14015_v17, %s14236_s28  ;;  %v14066_v30 = vld [vmem:[#allocation2 + $0x1cc] sm:$0xff]  }
 0x4cb   :  { %v8118_v23 = vpop.permute.xlu0 %8117 }
 0x4cc   :  { %v8720_v7 = vpop.permute.xlu1 %8719  ;;  %v8938_v42 = vsel %vm3216_vm4, %v14017_v47, %v8118_v23  ;;  %v14030_v23 = vld [vmem:[#allocation2 + $0xb4] sm:$0xff]  }
 0x4cd   :  { %v17014_v32 = vsel %vm264_vm1, %v8929_v18, %v8720_v7  ;;  %8103 = vrot.lane.b32.xlu0 %v14019_v21, %s14236_s28  ;;  %v17018_v55 = vsel %vm264_vm1, %v8938_v42, %v8726_v35  ;;  %v14020_v21 = vld [vmem:[#allocation2 + $0xbc] sm:$0xff]  }
 0x4ce   :  { %v18534_v58 = vshll.u32 %v17014_v32, 16  ;;  %13192 = vmatmul.mubr.msk.bf16.gmra.mrb[72].mxu0 %vm4023_vm5, %v17014_v32  ;;  %8705 = vrot.lane.b32.xlu1 %v14018_v56, %s14235_s27  ;;  %v18531_v4 = vshll.u32 %v17018_v55, 16  ;;  %v18537_v61 = vshrl.u32 %v17014_v32, 16  ;;  %v18536_v20 = vshrl.u32 %v17018_v55, 16  ;;  %v14029_v56 = vld [vmem:[#allocation2 + $0xd0] sm:$0xff]  }
 0x4cf   :  { %13195 = vmatprep.mubr.msk.bf16.mxu0 %vm4023_vm5, %v17018_v55  ;;  %v8738_v29 = vpop.permute.xlu0 %8737 }
 0x4d0   :  { %v10463_v25 = vrot.slane %v18534_v58, 1  ;;  %v10469_v15 = vrot.slane %v18531_v4, 1  ;;  %v8136_v40 = vpop.permute.xlu1 %8135 }
 0x4d1   :  { %8711 = vrot.lane.b32.xlu0 %v14022_v1, %s14235_s27  ;;  %v8965_v7 = vsel %vm3216_vm4, %v14020_v21, %v8136_v40 }
 0x4d2   :  { %v17036_v3 = vor.u32 %v10463_v25, %v18537_v61  ;;  %v17040_v13 = vor.u32 %v10469_v15, %v18536_v20  ;;  %8109 = vrot.lane.b32.xlu1 %v14021_v59, %s14236_s28  ;;  %v14034_v25 = vld [vmem:[#allocation2 + $0xc8] sm:$0xff]  }
 0x4d3   :  { %v8130_v39 = vpop.permute.xlu0 %8129  ;;  %v14060_v20 = vld [vmem:[#allocation2 + $0x1a4] sm:$0xff]  }
 0x4d4   :  { %v8732_v22 = vpop.permute.xlu1 %8731  ;;  %v8956_v63 = vsel %vm3216_vm4, %v14023_v10, %v8130_v39 }
 0x4d5   :  { %v17046_v49 = vsel %vm264_vm1, %v8947_v19, %v8732_v22  ;;  %8115 = vrot.lane.b32.xlu0 %v14025_v28, %s14236_s28  ;;  %v17050_v36 = vsel %vm264_vm1, %v8956_v63, %v8738_v29  ;;  %v14033_v28 = vld [vmem:[#allocation2 + $0xc8] sm:$0xff]   ;;  %v14037_v63 = vld [vmem:[#allocation2 + $0xdc] sm:$0xff]  }
 0x4d6   :  { %v18528_v46 = vshll.u32 %v17046_v49, 16  ;;  %13196 = vmatmul.mubr.msk.bf16.gmra.mrb[76].mxu0 %vm4023_vm5, %v17046_v49  ;;  %8717 = vrot.lane.b32.xlu1 %v14024_v50, %s14235_s27  ;;  %v18523_v8 = vshll.u32 %v17050_v36, 16  ;;  %v18530_v27 = vshrl.u32 %v17046_v49, 16  ;;  %v18529_v35 = vshrl.u32 %v17050_v36, 16 }
 0x4d7   :  { %13199 = vmatprep.mubr.msk.bf16.mxu0 %vm4023_vm5, %v17050_v36  ;;  %v8750_v38 = vpop.permute.xlu0 %8749 }
 0x4d8   :  { %v10475_v17 = vrot.slane %v18528_v46, 1  ;;  %v10481_v51 = vrot.slane %v18523_v8, 1  ;;  %v8148_v44 = vpop.permute.xlu1 %8147 }
 0x4d9   :  { %8723 = vrot.lane.b32.xlu0 %v14028_v6, %s14235_s27  ;;  %v14026_v6 = vld [vmem:[#allocation2 + $0xe4] sm:$0xff]  }
 0x4da   :  { %v17068_v26 = vor.u32 %v10475_v17, %v18530_v27  ;;  %v17072_v47 = vor.u32 %v10481_v51, %v18529_v35  ;;  %8121 = vrot.lane.b32.xlu1 %v14027_v11, %s14236_s28  ;;  %v14035_v17 = vld [vmem:[#allocation2 + $0xf8] sm:$0xff]   ;;  %v8983_v21 = vsel %vm3216_vm4, %v14026_v6, %v8148_v44 }
 0x4db   :  { %v8142_v18 = vpop.permute.xlu0 %8141  ;;  %v14036_v51 = vld [vmem:[#allocation2 + $0xdc] sm:$0xff]  }
 0x4dc   :  { %v8744_v42 = vpop.permute.xlu1 %8743  ;;  %v8974_v1 = vsel %vm3216_vm4, %v14029_v56, %v8142_v18 }
 0x4dd   :  { %v17078_v59 = vsel %vm264_vm1, %v8965_v7, %v8744_v42  ;;  %8127 = vrot.lane.b32.xlu0 %v14031_v0, %s14236_s28  ;;  %v17082_v29 = vsel %vm264_vm1, %v8974_v1, %v8750_v38  ;;  %v14040_v42 = vld [vmem:[#allocation2 + $0xf0] sm:$0xff]  }
 0x4de   :  { %v18516_v15 = vshll.u32 %v17078_v59, 16  ;;  %13200 = vmatmul.mubr.msk.bf16.gmra.mrb[80].mxu0 %vm4023_vm5, %v17078_v59  ;;  %8729 = vrot.lane.b32.xlu1 %v14030_v23, %s14235_s27  ;;  %v18515_v40 = vshll.u32 %v17082_v29, 16  ;;  %v18522_v10 = vshrl.u32 %v17078_v59, 16  ;;  %v18517_v39 = vshrl.u32 %v17082_v29, 16 }
 0x4df   :  { %13203 = vmatprep.mubr.msk.bf16.mxu0 %vm4023_vm5, %v17082_v29  ;;  %v8762_v14 = vpop.permute.xlu0 %8761 }
 0x4e0   :  { %v10487_v50 = vrot.slane %v18516_v15, 1  ;;  %v10493_v19 = vrot.slane %v18515_v40, 1  ;;  %v8160_v22 = vpop.permute.xlu1 %8159  ;;  %v14038_v15 = vld [vmem:[#allocation2 + $0x134] sm:$0xff]  }
 0x4e1   :  { %8735 = vrot.lane.b32.xlu0 %v14034_v25, %s14235_s27  ;;  %v14039_v25 = vld [vmem:[#allocation2 + $0xf0] sm:$0xff]  }
 0x4e2   :  { %v17100_v11 = vor.u32 %v10487_v50, %v18522_v10  ;;  %v17104_v38 = vor.u32 %v10493_v19, %v18517_v39  ;;  %8133 = vrot.lane.b32.xlu1 %v14033_v28, %s14236_s28 }
 0x4e3   :  { %v8154_v0 = vpop.permute.xlu0 %8153 }
 0x4e4   :  { %v8756_v56 = vpop.permute.xlu1 %8755  ;;  %v8992_v23 = vsel %vm3216_vm4, %v14035_v17, %v8154_v0  ;;  %v14043_v17 = vld [vmem:[#allocation2 + $0x104] sm:$0xff]  }
 0x4e5   :  { %v17110_v18 = vsel %vm264_vm1, %v8983_v21, %v8756_v56  ;;  %8139 = vrot.lane.b32.xlu0 %v14037_v63, %s14236_s28  ;;  %v17114_v7 = vsel %vm264_vm1, %v8992_v23, %v8762_v14  ;;  %v14041_v56 = vld [vmem:[#allocation2 + $0x120] sm:$0xff]  }
 0x4e6   :  { %v18513_v1 = vshll.u32 %v17110_v18, 16  ;;  %13204 = vmatmul.mubr.msk.bf16.gmra.mrb[84].mxu0 %vm4023_vm5, %v17110_v18  ;;  %8741 = vrot.lane.b32.xlu1 %v14036_v51, %s14235_s27  ;;  %v18514_v44 = vshll.u32 %v17114_v7, 16  ;;  %v18520_v50 = vshrl.u32 %v17110_v18, 16  ;;  %v18518_v19 = vshrl.u32 %v17114_v7, 16  ;;  %v14032_v51 = vld [vmem:[#allocation2 + $0x10c] sm:$0xff]   ;;  %v14042_v23 = vld [vmem:[#allocation2 + $0x104] sm:$0xff]  }
 0x4e7   :  { %13207 = vmatprep.mubr.msk.bf16.mxu0 %vm4023_vm5, %v17114_v7  ;;  %v8774_v28 = vpop.permute.xlu0 %8773 }
 0x4e8   :  { %v10499_v14 = vrot.slane %v18513_v1, 1  ;;  %v10505_v63 = vrot.slane %v18514_v44, 1  ;;  %v8172_v6 = vpop.permute.xlu1 %8171  ;;  %v9001_v44 = vsel %vm3216_vm4, %v14032_v51, %v8160_v22 }
 0x4e9   :  { %8747 = vrot.lane.b32.xlu0 %v14040_v42, %s14235_s27  ;;  %v9019_v51 = vsel %vm3216_vm4, %v14038_v15, %v8172_v6  ;;  %v14049_v15 = vld [vmem:[#allocation2 + $0x12c] sm:$0xff]  }
 0x4ea   :  { %v17132_v0 = vor.u32 %v10499_v14, %v18520_v50  ;;  %v17136_v21 = vor.u32 %v10505_v63, %v18518_v19  ;;  %8145 = vrot.lane.b32.xlu1 %v14039_v25, %s14236_s28  ;;  %v14045_v63 = vld [vmem:[#allocation2 + $0x118] sm:$0xff]   ;;  %v14048_v50 = vld [vmem:[#allocation2 + $0x12c] sm:$0xff]  }
 0x4eb   :  { %v8166_v1 = vpop.permute.xlu0 %8165 }
 0x4ec   :  { %18684 = vst [vmem:[#allocation3_spill] sm:$0xff] %v17132_v0  ;;  %18685 = vst [vmem:[#allocation4_spill] sm:$0xff] %v17136_v21  ;;  %v8768_v40 = vpop.permute.xlu1 %8767  ;;  %v9010_v42 = vsel %vm3216_vm4, %v14041_v56, %v8166_v1  ;;  %v14044_v1 = vld [vmem:[#allocation2 + $0x118] sm:$0xff]   ;;  %v18706_v21 = vshrl.u32 %v16943_v52, 16 }
 0x4ed   :  { %v17142_v39 = vsel %vm264_vm1, %v9001_v44, %v8768_v40  ;;  %8151 = vrot.lane.b32.xlu0 %v14043_v17, %s14236_s28  ;;  %v17146_v14 = vsel %vm264_vm1, %v9010_v42, %v8774_v28  ;;  %v14047_v42 = vld [vmem:[#allocation2 + $0x170] sm:$0xff]  }
 0x4ee   :  { %v18519_v25 = vshll.u32 %v17142_v39, 16  ;;  %13208 = vmatmul.mubr.msk.bf16.gmra.mrb[88].mxu0 %vm4023_vm5, %v17142_v39  ;;  %8753 = vrot.lane.b32.xlu1 %v14042_v23, %s14235_s27  ;;  %v18521_v22 = vshll.u32 %v17146_v14, 16  ;;  %v18526_v44 = vshrl.u32 %v17142_v39, 16  ;;  %v18524_v17 = vshrl.u32 %v17146_v14, 16 }
 0x4ef   :  { %13211 = vmatprep.mubr.msk.bf16.mxu0 %vm4023_vm5, %v17146_v14  ;;  %v8786_v40 = vpop.permute.xlu0 %8785  ;;  %v9374_v0 = vrot.slane %v18706_v21, 7  ;;  %v18707_v21 = vshrl.u32 %v16947_v53, 16 }
 0x4f0   :  { %v10511_v28 = vrot.slane %v18519_v25, 1  ;;  %v10517_v56 = vrot.slane %v18521_v22, 1  ;;  %v8780_v23 = vpop.permute.xlu1 %8779 }
 0x4f1   :  { %v17163_v19 = vsel %vm264_vm1, %v9019_v51, %v8780_v23  ;;  %8759 = vrot.lane.b32.xlu0 %v14045_v63, %s14235_s27 }
 0x4f2   :  { %v17168_v6 = vor.u32 %v10511_v28, %v18526_v44  ;;  %v17172_v25 = vor.u32 %v10517_v56, %v18524_v17  ;;  %8157 = vrot.lane.b32.xlu1 %v14044_v1, %s14236_s28  ;;  %v18525_v22 = vshll.u32 %v17163_v19, 16  ;;  %v18527_v63 = vshrl.u32 %v17163_v19, 16  ;;  %v14052_v56 = vld [vmem:[#allocation2 + $0x140] sm:$0xff]  }
 0x4f3   :  { %v8178_v10 = vpop.permute.xlu0 %8177  ;;  %v14051_v17 = vld [vmem:[#allocation2 + $0x140] sm:$0xff]  }
 0x4f4   :  { %18686 = vst [vmem:[#allocation5_spill] sm:$0xff] %v17168_v6  ;;  %18687 = vst [vmem:[#allocation6_spill] sm:$0xff] %v17172_v25  ;;  %v8184_v8 = vpop.permute.xlu1 %8183  ;;  %v9028_v51 = vsel %vm3216_vm4, %v14047_v42, %v8178_v10  ;;  %v10523_v23 = vrot.slane %v18525_v22, 1  ;;  %v14046_v22 = vld [vmem:[#allocation2 + $0x184] sm:$0xff]  }
 0x4f5   :  { %8163 = vrot.lane.b32.xlu0 %v14049_v15, %s14236_s28  ;;  %v17182_v28 = vsel %vm264_vm1, %v9028_v51, %v8786_v40  ;;  %v9037_v35 = vsel %vm3216_vm4, %v14046_v22, %v8184_v8  ;;  %v14057_v22 = vld [vmem:[#allocation2 + $0x190] sm:$0xff]  }
 0x4f6   :  { %13212 = vmatmul.mubr.msk.bf16.gmra.mrb[92].mxu0 %vm4023_vm5, %v17163_v19  ;;  %8765 = vrot.lane.b32.xlu1 %v14048_v50, %s14235_s27  ;;  %v18532_v1 = vshll.u32 %v17182_v28, 16  ;;  %v17190_v10 = vor.u32 %v10523_v23, %v18527_v63  ;;  %v18533_v40 = vshrl.u32 %v17182_v28, 16  ;;  %v14055_v50 = vld [vmem:[#allocation2 + $0x17c] sm:$0xff]   ;;  %v14054_v63 = vld [vmem:[#allocation2 + $0x154] sm:$0xff]  }
 0x4f7   :  { %13215 = vmatprep.mubr.msk.bf16.mxu0 %vm4023_vm5, %v17182_v28  ;;  %v8798_v42 = vpop.permute.xlu0 %8797  ;;  %v14053_v23 = vld [vmem:[#allocation2 + $0x198] sm:$0xff]  }
 0x4f8   :  { %18688 = vst [vmem:[#allocation7_spill] sm:$0xff] %v17190_v10  ;;  %v10529_v15 = vrot.slane %v18532_v1, 1  ;;  %v8196_v51 = vpop.permute.xlu1 %8195  ;;  %v14086_v10 = vld [vmem:[#allocation2 + $0x29c] sm:$0xff]  }
 0x4f9   :  { %8771 = vrot.lane.b32.xlu0 %v14052_v56, %s14235_s27 }
 0x4fa   :  { %v17200_v44 = vor.u32 %v10529_v15, %v18533_v40  ;;  %8169 = vrot.lane.b32.xlu1 %v14051_v17, %s14236_s28  ;;  %v14058_v15 = vld [vmem:[#allocation2 + $0x190] sm:$0xff]  }
 0x4fb   :  { %v8190_v46 = vpop.permute.xlu0 %8189 }
 0x4fc   :  { %18689 = vst [vmem:[#allocation8_spill] sm:$0xff] %v17200_v44  ;;  %v8792_v27 = vpop.permute.xlu1 %8791  ;;  %v9046_v4 = vsel %vm3216_vm4, %v14053_v23, %v8190_v46 }
 0x4fd   :  { %v17206_v1 = vsel %vm264_vm1, %v9037_v35, %v8792_v27  ;;  %8175 = vrot.lane.b32.xlu0 %v14055_v50, %s14236_s28  ;;  %v17210_v56 = vsel %vm264_vm1, %v9046_v4, %v8798_v42  ;;  %v14050_v50 = vld [vmem:[#allocation2 + $0x1ac] sm:$0xff]  }
 0x4fe   :  { %v18535_v40 = vshll.u32 %v17206_v1, 16  ;;  %13216 = vmatmul.mubr.msk.bf16.gmra.mrb[96].mxu0 %vm4023_vm5, %v17206_v1  ;;  %8777 = vrot.lane.b32.xlu1 %v14054_v63, %s14235_s27  ;;  %v18538_v8 = vshll.u32 %v17210_v56, 16  ;;  %v18542_v27 = vshrl.u32 %v17206_v1, 16  ;;  %v18541_v35 = vshrl.u32 %v17210_v56, 16  ;;  %v14061_v63 = vld [vmem:[#allocation2 + $0x1a4] sm:$0xff]  }
 0x4ff   :  { %13219 = vmatprep.mubr.msk.bf16.mxu0 %vm4023_vm5, %v17210_v56  ;;  %v8810_v46 = vpop.permute.xlu0 %8809 }
 0x500   :  { %v10535_v4 = vrot.slane %v18535_v40, 1  ;;  %v10541_v17 = vrot.slane %v18538_v8, 1  ;;  %v8208_v42 = vpop.permute.xlu1 %8207  ;;  %v14059_v40 = vld [vmem:[#allocation2 + $0x1c0] sm:$0xff]   ;;  %v9055_v8 = vsel %vm3216_vm4, %v14050_v50, %v8196_v51  ;;  %v14056_v50 = vld [vmem:[#allocation2 + $0x1d4] sm:$0xff]  }
 0x501   :  { %8783 = vrot.lane.b32.xlu0 %v14058_v15, %s14235_s27 }
 0x502   :  { %v17228_v23 = vor.u32 %v10535_v4, %v18542_v27  ;;  %v17232_v58 = vor.u32 %v10541_v17, %v18541_v35  ;;  %8181 = vrot.lane.b32.xlu1 %v14057_v22, %s14236_s28  ;;  %v14064_v17 = vld [vmem:[#allocation2 + $0x1b8] sm:$0xff]  }
 0x503   :  { %v8202_v61 = vpop.permute.xlu0 %8201  ;;  %v14063_v22 = vld [vmem:[#allocation2 + $0x1b8] sm:$0xff]  }
 0x504   :  { %18690 = vst [vmem:[#allocation9_spill] sm:$0xff] %v17228_v23  ;;  %18691 = vst [vmem:[#allocation10_spill] sm:$0xff] %v17232_v58  ;;  %v8804_v41 = vpop.permute.xlu1 %8803  ;;  %v9064_v15 = vsel %vm3216_vm4, %v14059_v40, %v8202_v61 }
 0x505   :  { %v17238_v16 = vsel %vm264_vm1, %v9055_v8, %v8804_v41  ;;  %8187 = vrot.lane.b32.xlu0 %v14061_v63, %s14236_s28  ;;  %v17242_v4 = vsel %vm264_vm1, %v9064_v15, %v8810_v46 }
 0x506   :  { %v18543_v35 = vshll.u32 %v17238_v16, 16  ;;  %13220 = vmatmul.mubr.msk.bf16.gmra.mrb[100].mxu0 %vm4023_vm5, %v17238_v16  ;;  %8789 = vrot.lane.b32.xlu1 %v14060_v20, %s14235_s27  ;;  %v18546_v51 = vshll.u32 %v17242_v4, 16  ;;  %v18550_v61 = vshrl.u32 %v17238_v16, 16  ;;  %v18549_v8 = vshrl.u32 %v17242_v4, 16  ;;  %v14067_v20 = vld [vmem:[#allocation2 + $0x1cc] sm:$0xff]  }
 0x507   :  { %13223 = vmatprep.mubr.msk.bf16.mxu0 %vm4023_vm5, %v17242_v4  ;;  %v8822_v41 = vpop.permute.xlu0 %8821 }
 0x508   :  { %v10547_v40 = vrot.slane %v18543_v35, 1  ;;  %v10553_v46 = vrot.slane %v18546_v51, 1  ;;  %v8220_v63 = vpop.permute.xlu1 %8219  ;;  %v14065_v35 = vld [vmem:[#allocation2 + $0x1e8] sm:$0xff]   ;;  %v9073_v51 = vsel %vm3216_vm4, %v14056_v50, %v8208_v42  ;;  %v14062_v50 = vld [vmem:[#allocation2 + $0x1fc] sm:$0xff]  }
 0x509   :  { %8795 = vrot.lane.b32.xlu0 %v14064_v17, %s14235_s27 }
 0x50a   :  { %v17260_v15 = vor.u32 %v10547_v40, %v18550_v61  ;;  %v17264_v27 = vor.u32 %v10553_v46, %v18549_v8  ;;  %8193 = vrot.lane.b32.xlu1 %v14063_v22, %s14236_s28  ;;  %v14070_v46 = vld [vmem:[#allocation2 + $0x1e0] sm:$0xff]  }
 0x50b   :  { %v8214_v24 = vpop.permute.xlu0 %8213  ;;  %v14069_v22 = vld [vmem:[#allocation2 + $0x1e0] sm:$0xff]  }
 0x50c   :  { %18692 = vst [vmem:[#allocation11_spill] sm:$0xff] %v17260_v15  ;;  %18693 = vst [vmem:[#allocation12_spill] sm:$0xff] %v17264_v27  ;;  %v8816_v54 = vpop.permute.xlu1 %8815  ;;  %v9082_v17 = vsel %vm3216_vm4, %v14065_v35, %v8214_v24 }
 0x50d   :  { %v17270_v9 = vsel %vm264_vm1, %v9073_v51, %v8816_v54  ;;  %8199 = vrot.lane.b32.xlu0 %v14067_v20, %s14236_s28  ;;  %v17274_v40 = vsel %vm264_vm1, %v9082_v17, %v8822_v41 }
 0x50e   :  { %v18551_v8 = vshll.u32 %v17270_v9, 16  ;;  %13224 = vmatmul.mubr.msk.bf16.gmra.mrb[104].mxu0 %vm4023_vm5, %v17270_v9  ;;  %8801 = vrot.lane.b32.xlu1 %v14066_v30, %s14235_s27  ;;  %v18554_v42 = vshll.u32 %v17274_v40, 16  ;;  %v18558_v24 = vshrl.u32 %v17270_v9, 16  ;;  %v18557_v51 = vshrl.u32 %v17274_v40, 16  ;;  %v14073_v30 = vld [vmem:[#allocation2 + $0x1f4] sm:$0xff]  }
 0x50f   :  { %13227 = vmatprep.mubr.msk.bf16.mxu0 %vm4023_vm5, %v17274_v40  ;;  %v8834_v54 = vpop.permute.xlu0 %8833 }
 0x510   :  { %v10559_v35 = vrot.slane %v18551_v8, 1  ;;  %v10565_v41 = vrot.slane %v18554_v42, 1  ;;  %v8232_v20 = vpop.permute.xlu1 %8231  ;;  %v14071_v8 = vld [vmem:[#allocation2 + $0x210] sm:$0xff]   ;;  %v9091_v42 = vsel %vm3216_vm4, %v14062_v50, %v8220_v63  ;;  %v14068_v50 = vld [vmem:[#allocation2 + $0x224] sm:$0xff]  }
 0x511   :  { %8807 = vrot.lane.b32.xlu0 %v14070_v46, %s14235_s27 }
 0x512   :  { %v17292_v17 = vor.u32 %v10559_v35, %v18558_v24  ;;  %v17296_v61 = vor.u32 %v10565_v41, %v18557_v51  ;;  %8205 = vrot.lane.b32.xlu1 %v14069_v22, %s14236_s28  ;;  %v14076_v41 = vld [vmem:[#allocation2 + $0x208] sm:$0xff]  }
 0x513   :  { %v8226_v33 = vpop.permute.xlu0 %8225  ;;  %v14075_v22 = vld [vmem:[#allocation2 + $0x208] sm:$0xff]  }
 0x514   :  { %18694 = vst [vmem:[#allocation13_spill] sm:$0xff] %v17292_v17  ;;  %18695 = vst [vmem:[#allocation14_spill] sm:$0xff] %v17296_v61  ;;  %v8828_v2 = vpop.permute.xlu1 %8827  ;;  %v9100_v46 = vsel %vm3216_vm4, %v14071_v8, %v8226_v33  ;;  %v14078_v61 = vld [vmem:[#allocation2 + $0x21c] sm:$0xff]  }
 0x515   :  { %v17302_v12 = vsel %vm264_vm1, %v9091_v42, %v8828_v2  ;;  %8211 = vrot.lane.b32.xlu0 %v14073_v30, %s14236_s28  ;;  %v17306_v35 = vsel %vm264_vm1, %v9100_v46, %v8834_v54 }
 0x516   :  { %v18559_v51 = vshll.u32 %v17302_v12, 16  ;;  %13228 = vmatmul.mubr.msk.bf16.gmra.mrb[108].mxu0 %vm4023_vm5, %v17302_v12  ;;  %8813 = vrot.lane.b32.xlu1 %v14072_v57, %s14235_s27  ;;  %v18560_v63 = vshll.u32 %v17306_v35, 16  ;;  %v18562_v33 = vshrl.u32 %v17302_v12, 16  ;;  %v18561_v42 = vshrl.u32 %v17306_v35, 16  ;;  %v14079_v57 = vld [vmem:[#allocation2 + $0x21c] sm:$0xff]  }
 0x517   :  { %13231 = vmatprep.mubr.msk.bf16.mxu0 %vm4023_vm5, %v17306_v35  ;;  %v8846_v2 = vpop.permute.xlu0 %8845 }
 0x518   :  { %v10571_v8 = vrot.slane %v18559_v51, 1  ;;  %v10577_v54 = vrot.slane %v18560_v63, 1  ;;  %v8244_v30 = vpop.permute.xlu1 %8243  ;;  %v14077_v51 = vld [vmem:[#allocation2 + $0x238] sm:$0xff]   ;;  %v9109_v63 = vsel %vm3216_vm4, %v14068_v50, %v8232_v20  ;;  %v14074_v50 = vld [vmem:[#allocation2 + $0x24c] sm:$0xff]  }
 0x519   :  { %8819 = vrot.lane.b32.xlu0 %v14076_v41, %s14235_s27 }
 0x51a   :  { %v17324_v46 = vor.u32 %v10571_v8, %v18562_v33  ;;  %v17328_v24 = vor.u32 %v10577_v54, %v18561_v42  ;;  %8217 = vrot.lane.b32.xlu1 %v14075_v22, %s14236_s28  ;;  %v14082_v54 = vld [vmem:[#allocation2 + $0x230] sm:$0xff]  }
 0x51b   :  { %v8238_v17 = vpop.permute.xlu0 %8237  ;;  %v14081_v22 = vld [vmem:[#allocation2 + $0x230] sm:$0xff]  }
 0x51c   :  { %18696 = vst [vmem:[#allocation15_spill] sm:$0xff] %v17324_v46  ;;  %18697 = vst [vmem:[#allocation16_spill] sm:$0xff] %v17328_v24  ;;  %v8840_v27 = vpop.permute.xlu1 %8839  ;;  %v9118_v41 = vsel %vm3216_vm4, %v14077_v51, %v8238_v17  ;;  %v14084_v24 = vld [vmem:[#allocation2 + $0x244] sm:$0xff]  }
 0x51d   :  { %v17334_v15 = vsel %vm264_vm1, %v9109_v63, %v8840_v27  ;;  %8223 = vrot.lane.b32.xlu0 %v14079_v57, %s14236_s28  ;;  %v17338_v8 = vsel %vm264_vm1, %v9118_v41, %v8846_v2 }
 0x51e   :  { %v18563_v42 = vshll.u32 %v17334_v15, 16  ;;  %13232 = vmatmul.mubr.msk.bf16.gmra.mrb[112].mxu0 %vm4023_vm5, %v17334_v15  ;;  %8825 = vrot.lane.b32.xlu1 %v14078_v61, %s14235_s27  ;;  %v18564_v20 = vshll.u32 %v17338_v8, 16  ;;  %v18566_v51 = vshrl.u32 %v17334_v15, 16  ;;  %v18565_v63 = vshrl.u32 %v17338_v8, 16  ;;  %v14085_v61 = vld [vmem:[#allocation2 + $0x244] sm:$0xff]  }
 0x51f   :  { %13235 = vmatprep.mubr.msk.bf16.mxu0 %vm4023_vm5, %v17338_v8  ;;  %v8858_v27 = vpop.permute.xlu0 %8857 }
 0x520   :  { %v10583_v17 = vrot.slane %v18563_v42, 1  ;;  %v10589_v2 = vrot.slane %v18564_v20, 1  ;;  %v8256_v57 = vpop.permute.xlu1 %8255  ;;  %v14083_v42 = vld [vmem:[#allocation2 + $0x260] sm:$0xff]   ;;  %v9127_v20 = vsel %vm3216_vm4, %v14074_v50, %v8244_v30  ;;  %v14080_v50 = vld [vmem:[#allocation2 + $0x274] sm:$0xff]  }
 0x521   :  { %8831 = vrot.lane.b32.xlu0 %v14082_v54, %s14235_s27 }
 0x522   :  { %v17356_v41 = vor.u32 %v10583_v17, %v18566_v51  ;;  %v17360_v33 = vor.u32 %v10589_v2, %v18565_v63  ;;  %8229 = vrot.lane.b32.xlu1 %v14081_v22, %s14236_s28  ;;  %v14088_v2 = vld [vmem:[#allocation2 + $0x258] sm:$0xff]  }
 0x523   :  { %v8250_v46 = vpop.permute.xlu0 %8249  ;;  %v14087_v22 = vld [vmem:[#allocation2 + $0x258] sm:$0xff]  }
 0x524   :  { %18698 = vst [vmem:[#allocation17_spill] sm:$0xff] %v17356_v41  ;;  %18699 = vst [vmem:[#allocation18_spill] sm:$0xff] %v17360_v33  ;;  %v8852_v58 = vpop.permute.xlu1 %8851  ;;  %v9136_v54 = vsel %vm3216_vm4, %v14083_v42, %v8250_v46  ;;  %v9145_v41 = vsel %vm3216_vm4, %v14080_v50, %v8256_v57 }
 0x525   :  { %v17366_v23 = vsel %vm264_vm1, %v9127_v20, %v8852_v58  ;;  %8235 = vrot.lane.b32.xlu0 %v14085_v61, %s14236_s28  ;;  %v17370_v17 = vsel %vm264_vm1, %v9136_v54, %v8858_v27 }
 0x526   :  { %v18567_v63 = vshll.u32 %v17366_v23, 16  ;;  %13236 = vmatmul.mubr.msk.bf16.gmra.mrb[116].mxu0 %vm4023_vm5, %v17366_v23  ;;  %8837 = vrot.lane.b32.xlu1 %v14084_v24, %s14235_s27  ;;  %v18568_v30 = vshll.u32 %v17370_v17, 16  ;;  %v18570_v42 = vshrl.u32 %v17366_v23, 16  ;;  %v18569_v20 = vshrl.u32 %v17370_v17, 16  ;;  %v14091_v24 = vld [vmem:[#allocation2 + $0x26c] sm:$0xff]  }
 0x527   :  { %13239 = vmatprep.mubr.msk.bf16.mxu0 %vm4023_vm5, %v17370_v17  ;;  %v8870_v58 = vpop.permute.xlu0 %8869 }
 0x528   :  { %v10595_v46 = vrot.slane %v18567_v63, 1  ;;  %v10601_v27 = vrot.slane %v18568_v30, 1  ;;  %v8268_v61 = vpop.permute.xlu1 %8267  ;;  %v14090_v63 = vld [vmem:[#allocation2 + $0x26c] sm:$0xff]  }
 0x529   :  { %8843 = vrot.lane.b32.xlu0 %v14088_v2, %s14235_s27  ;;  %v14094_v2 = vld [vmem:[#allocation2 + $0x280] sm:$0xff]   ;;  %v9163_v57 = vsel %vm3216_vm4, %v14086_v10, %v8268_v61 }
 0x52a   :  { %v17388_v54 = vor.u32 %v10595_v46, %v18570_v42  ;;  %v17392_v51 = vor.u32 %v10601_v27, %v18569_v20  ;;  %8241 = vrot.lane.b32.xlu1 %v14087_v22, %s14236_s28  ;;  %v14092_v22 = vld [vmem:[#allocation2 + $0x288] sm:$0xff]   ;;  %v14093_v27 = vld [vmem:[#allocation2 + $0x280] sm:$0xff]  }
 0x52b   :  { %v8080_v33 = vpop.permute.xlu0 %8079  ;;  %v14089_v20 = vld [vmem:[#allocation2] sm:$0xff]  }
 0x52c   :  { %18700 = vst [vmem:[#allocation19_spill] sm:$0xff] %v17388_v54  ;;  %18701 = vst [vmem:[#allocation20_spill] sm:$0xff] %v17392_v51  ;;  %v8864_v30 = vpop.permute.xlu1 %8863  ;;  %v14097_v54 = vld [vmem:[#allocation2 + $0x294] sm:$0xff]  }
 0x52d   :  { %v17397_v44 = vsel %vm264_vm1, %v9145_v41, %v8864_v30  ;;  %8247 = vrot.lane.b32.xlu0 %v14091_v24, %s14236_s28 }
 0x52e   :  { %v18571_v46 = vshll.u32 %v17397_v44, 16  ;;  %8849 = vrot.lane.b32.xlu1 %v14090_v63, %s14235_s27  ;;  %13240 = vmatmul.mubr.msk.bf16.gmra.mrb[120].mxu0 %vm4023_vm5, %v17397_v44  ;;  %v18572_v41 = vshrl.u32 %v17397_v44, 16 }
 0x52f   :  { %v8262_v42 = vpop.permute.xlu0 %8261 }
 0x530   :  { %v10607_v30 = vrot.slane %v18571_v46, 1  ;;  %v8876_v24 = vpop.permute.xlu1 %8875  ;;  %v9154_v50 = vsel %vm3216_vm4, %v14092_v22, %v8262_v42  ;;  %v14096_v42 = vld [vmem:[#allocation2 + $0x294] sm:$0xff]   ;;  %v18703_v22 = vshrl.u32 %v16921_v31, 16 }
 0x531   :  { %v17410_v51 = vsel %vm264_vm1, %v9163_v57, %v8876_v24  ;;  %8855 = vrot.lane.b32.xlu0 %v14094_v2, %s14235_s27  ;;  %v17414_v63 = vsel %vm264_vm1, %v9154_v50, %v8870_v58  ;;  %v8881_v2 = vsel %vm3216_vm4, %v14089_v20, %v8080_v33  ;;  %v14095_v46 = vld [vmem:[#allocation2 + $0x14] sm:$0xff]   ;;  %v14098_v33 = vld [vmem:[#allocation2 + $0x28] sm:$0xff]  }
 0x532   :  { %v17418_v10 = vor.u32 %v10607_v30, %v18572_v41  ;;  %v18573_v61 = vshll.u32 %v17410_v51, 16  ;;  %8253 = vrot.lane.b32.xlu1 %v14093_v27, %s14236_s28  ;;  %13243 = vmatprep.mubr.msk.bf16.mxu0 %vm4023_vm5, %v17414_v63  ;;  %v9364_v57 = vrot.slane %v18703_v22, 7  ;;  %v18574_v58 = vshll.u32 %v17414_v63, 16  ;;  %v14100_v20 = vld [vmem:[#allocation2 + $0x2a8] sm:$0xff]  }
 0x533   :  { %v8688_v24 = vpop.permute.xlu0 %8687  ;;  %v18575_v50 = vshrl.u32 %v17410_v51, 16 }
 0x534   :  { %18702 = vst [vmem:[#allocation21_spill] sm:$0xff] %v17418_v10  ;;  %v10619_v30 = vrot.slane %v18573_v61, 1  ;;  %v8086_v41 = vpop.permute.xlu1 %8085  ;;  %v9168_v27 = vsel %vm264_vm1, %v8881_v2, %v8688_v24  ;;  %v9662_v10 = vshrl.u32 %v17414_v63, 16  ;;  %v10613_v25 = vrot.slane %v18574_v58, 1  ;;  %v14099_v2 = vld [vmem:[#allocation2 + $0x2a8] sm:$0xff]  }
 0x535   :  { %v9359_v22 = vshrl.u32 %v9168_v27, 16  ;;  %8259 = vrot.lane.b32.xlu0 %v14097_v54, %s14236_s28  ;;  %v18705_v24 = vshll.u32 %v16921_v31, 16 }
 0x536   :  { %v17438_v6 = vor.u32 %v10619_v30, %v18575_v50  ;;  %8861 = vrot.lane.b32.xlu1 %v14096_v42, %s14235_s27  ;;  %13244 = vmatmul.mubr.msk.bf16.gmra.mrb[124].mxu0 %vm4023_vm5, %v17410_v51  ;;  %v17447_v27 = vor.u32 %v10613_v25, %v9662_v10  ;;  %v8890_v30 = vsel %vm3216_vm4, %v14095_v46, %v8086_v41  ;;  %v14103_v25 = vld [vmem:[#allocation2 + $0x2bc] sm:$0xff]   ;;  %v18708_v41 = vshll.u32 %v16943_v52, 16 }
 0x537   :  { %v9367_v61 = vor.u32 %v18705_v24, %v9364_v57  ;;  %v9361_v54 = vrot.slane %v9359_v22, 7  ;;  %v8092_v58 = vpop.permute.xlu0 %8091  ;;  %v14104_v57 = vld [vmem:[#allocation2 + $0x24] ss:$0 sps:$4 sm:$0xff]   ;;  %v9384_v22 = vrot.slane %v18707_v21, 7  ;;  %v14106_v21 = vld [vmem:[#allocation2 + $0x38] ss:$0 sps:$4 sm:$0xff]  }
 0x538   :  { %18704 = vst [vmem:[#allocation22_spill] sm:$0xff] %v17438_v6  ;;  %v8694_v50 = vpop.permute.xlu1 %8693  ;;  %v8899_v6 = vsel %vm3216_vm4, %v14098_v33, %v8092_v58  ;;  %v14101_v58 = vld [vmem:[#allocation2 + $0x3c] sm:$0xff]   ;;  %v18709_v52 = vshll.u32 %v16947_v53, 16 }
 0x539   :  { %v9174_v42 = vsel %vm264_vm1, %v8890_v30, %v8694_v50  ;;  %8867 = vrot.lane.b32.xlu0 %v14100_v20, %s14235_s27  ;;  %v9368_v31 = vsel %vm3697_vm6, %v9361_v54, %v9367_v61  ;;  %v9377_v50 = vor.u32 %v18708_v41, %v9374_v0  ;;  %v14105_v54 = vld [vmem:[#allocation2 + $0x50] sm:$0xff]  }
 0x53a   :  { %v9369_v24 = vshrl.u32 %v9174_v42, 16  ;;  %8265 = vrot.lane.b32.xlu1 %v14099_v2, %s14236_s28  ;;  %13249 = vmatprep.mubr.msk.bf16.mxu0 %vm4023_vm5, %v9368_v31  ;;  %v10727_v2 = vsel %vm4088_vm2, %v16959_v37, 0  ;;  %v14107_v42 = vld [vmem:[#allocation2 + $0x38] ss:$0 sps:$4 sm:$0xff]   ;;  %v9387_v0 = vor.u32 %v18709_v52, %v9384_v22 }
 0x53b   :  { %v8700_v46 = vpop.permute.xlu0 %8699 }
 0x53c   :  { %v9371_v30 = vrot.slane %v9369_v24, 7  ;;  %v8098_v33 = vpop.permute.xlu1 %8097  ;;  %v9180_v20 = vsel %vm264_vm1, %v8899_v6, %v8700_v46  ;;  %v18710_v46 = vshrl.u32 %v16982_v60, 16 }
 0x53d   :  { %v9379_v61 = vshrl.u32 %v9180_v20, 16  ;;  %8083 = vrot.lane.b32.xlu0 %v14104_v57, %s14236_s28  ;;  %v8908_v41 = vsel %vm3216_vm4, %v14101_v58, %v8098_v33 }
 0x53e   :  { %v9378_v31 = vsel %vm3697_vm6, %v9371_v30, %v9377_v50  ;;  %8873 = vrot.lane.b32.xlu1 %v14103_v25, %s14235_s27  ;;  %v9394_v57 = vrot.slane %v18710_v46, 7  ;;  %v14110_v25 = vld [vmem:[#allocation2 + $0x4c] ss:$0 sps:$4 sm:$0xff]  }
 0x53f   :  { %v9381_v24 = vrot.slane %v9379_v61, 7  ;;  %13250 = vmatmul.mubr.msk.bf16.vlgmr.msra.gmra.mrb[64].mxu0 %vm4023_vm5, %v9378_v31  ;;  %v8104_v6 = vpop.permute.xlu0 %8103  ;;  %v14109_v30 = vld [vmem:[#allocation2 + $0x4c] ss:$0 sps:$4 sm:$0xff]   ;;  %v18711_v61 = vshrl.u32 %v16986_v34, 16 }
 0x540   :  { %13314 = vmatpush3.bf16.msra.mxu0 %v10727_v2  ;;  %v8706_v37 = vpop.permute.xlu1 %8705  ;;  %v8917_v50 = vsel %vm3216_vm4, %v14105_v54, %v8104_v6  ;;  %v18712_v2 = vshll.u32 %v16982_v60, 16  ;;  %v14108_v54 = vld [vmem:[#allocation2 + $0x64] sm:$0xff]  }
 0x541   :  { %v9186_v20 = vsel %vm264_vm1, %v8908_v41, %v8706_v37  ;;  %8691 = vrot.lane.b32.xlu0 %v14107_v42, %s14235_s27  ;;  %v9388_v53 = vsel %vm3697_vm6, %v9381_v24, %v9387_v0  ;;  %v9404_v58 = vrot.slane %v18711_v61, 7  ;;  %v14111_v24 = vld [vmem:[#allocation2 + $0x78] sm:$0xff]   ;;  %v14112_v41 = vld [vmem:[#allocation2 + $0x60] ss:$0 sps:$4 sm:$0xff]   ;;  %v18713_v37 = vshll.u32 %v16986_v34, 16 }
 0x542   :  { %v9389_v22 = vshrl.u32 %v9186_v20, 16  ;;  %8089 = vrot.lane.b32.xlu1 %v14106_v21, %s14236_s28  ;;  %13253 = vmatprep.mubr.msk.bf16.mxu0 %vm4023_vm5, %v9388_v53  ;;  %v9397_v31 = vor.u32 %v18712_v2, %v9394_v57  ;;  %v14113_v21 = vld [vmem:[#allocation2 + $0x60] ss:$0 sps:$4 sm:$0xff]   ;;  %v18714_v53 = vshrl.u32 %v17014_v32, 16  ;;  %v14116_v34 = vld [vmem:[#allocation2 + $0x74] ss:$0 sps:$4 sm:$0xff]  }
 0x543   :  { %v8712_v33 = vpop.permute.xlu0 %8711  ;;  %v9407_v20 = vor.u32 %v18713_v37, %v9404_v58  ;;  %v14115_v2 = vld [vmem:[#allocation2 + $0x74] ss:$0 sps:$4 sm:$0xff]  }
 0x544   :  { %v9391_v52 = vrot.slane %v9389_v22, 7  ;;  %v8110_v6 = vpop.permute.xlu1 %8109  ;;  %v9192_v42 = vsel %vm264_vm1, %v8917_v50, %v8712_v33  ;;  %v9414_v50 = vrot.slane %v18714_v53, 7  ;;  %v18717_v53 = vshll.u32 %v17018_v55, 16 }
 0x545   :  { %v9399_v0 = vshrl.u32 %v9192_v42, 16  ;;  %8095 = vrot.lane.b32.xlu0 %v14110_v25, %s14236_s28  ;;  %v8926_v22 = vsel %vm3216_vm4, %v14108_v54, %v8110_v6  ;;  %v18716_v6 = vshll.u32 %v17014_v32, 16 }
 0x546   :  { %8697 = vrot.lane.b32.xlu1 %v14109_v30, %s14235_s27  ;;  %v9398_v46 = vsel %vm3697_vm6, %v9391_v52, %v9397_v31  ;;  %v18715_v31 = vshrl.u32 %v17018_v55, 16  ;;  %v14122_v55 = vld [vmem:[#allocation2 + $0x9c] ss:$0 sps:$4 sm:$0xff]  }
 0x547   :  { %v9401_v60 = vrot.slane %v9399_v0, 7  ;;  %13254 = vmatmul.mubr.msk.bf16.gmra.mrb[68].mxu0 %vm4023_vm5, %v9398_v46  ;;  %v8116_v57 = vpop.permute.xlu0 %8115  ;;  %v9417_v42 = vor.u32 %v18716_v6, %v9414_v50 }
 0x548   :  { %v8718_v25 = vpop.permute.xlu1 %8717  ;;  %v8935_v30 = vsel %vm3216_vm4, %v14111_v24, %v8116_v57  ;;  %v9424_v52 = vrot.slane %v18715_v31, 7  ;;  %v14114_v24 = vld [vmem:[#allocation2 + $0x8c] sm:$0xff]   ;;  %v14118_v57 = vld [vmem:[#allocation2 + $0x88] ss:$0 sps:$4 sm:$0xff]  }
 0x549   :  { %v9198_v61 = vsel %vm264_vm1, %v8926_v22, %v8718_v25  ;;  %8703 = vrot.lane.b32.xlu0 %v14113_v21, %s14235_s27  ;;  %v9408_v33 = vsel %vm3697_vm6, %v9401_v60, %v9407_v20  ;;  %v14117_v20 = vld [vmem:[#allocation2 + $0xa0] sm:$0xff]   ;;  %v18718_v25 = vshrl.u32 %v17046_v49, 16 }
 0x54a   :  { %v9409_v58 = vshrl.u32 %v9198_v61, 16  ;;  %8101 = vrot.lane.b32.xlu1 %v14112_v41, %s14236_s28  ;;  %13257 = vmatprep.mubr.msk.bf16.mxu0 %vm4023_vm5, %v9408_v33  ;;  %v14119_v41 = vld [vmem:[#allocation2 + $0x88] ss:$0 sps:$4 sm:$0xff]   ;;  %v9427_v22 = vor.u32 %v18717_v53, %v9424_v52  ;;  %v14121_v52 = vld [vmem:[#allocation2 + $0x9c] ss:$0 sps:$4 sm:$0xff]  }
 0x54b   :  { %v8724_v54 = vpop.permute.xlu0 %8723  ;;  %v9434_v61 = vrot.slane %v18718_v25, 7 }
 0x54c   :  { %v9411_v0 = vrot.slane %v9409_v58, 7  ;;  %v8122_v46 = vpop.permute.xlu1 %8121  ;;  %v9204_v21 = vsel %vm264_vm1, %v8935_v30, %v8724_v54  ;;  %v18719_v54 = vshrl.u32 %v17050_v36, 16 }
 0x54d   :  { %v9419_v37 = vshrl.u32 %v9204_v21, 16  ;;  %8107 = vrot.lane.b32.xlu0 %v14116_v34, %s14236_s28  ;;  %v8944_v30 = vsel %vm3216_vm4, %v14114_v24, %v8122_v46  ;;  %v14120_v21 = vld [vmem:[#allocation2 + $0xb4] sm:$0xff]  }
 0x54e   :  { %8709 = vrot.lane.b32.xlu1 %v14115_v2, %s14235_s27  ;;  %v9418_v60 = vsel %vm3697_vm6, %v9411_v0, %v9417_v42  ;;  %v9444_v6 = vrot.slane %v18719_v54, 7  ;;  %v18720_v0 = vshll.u32 %v17046_v49, 16  ;;  %v18723_v54 = vshrl.u32 %v17082_v29, 16 }
 0x54f   :  { %v9421_v32 = vrot.slane %v9419_v37, 7  ;;  %13258 = vmatmul.mubr.msk.bf16.gmra.mrb[72].mxu0 %vm4023_vm5, %v9418_v60  ;;  %v8128_v50 = vpop.permute.xlu0 %8127  ;;  %v14123_v60 = vld [vmem:[#allocation2 + $0xc8] sm:$0xff]  }
 0x550   :  { %v8730_v33 = vpop.permute.xlu1 %8729  ;;  %v8953_v58 = vsel %vm3216_vm4, %v14117_v20, %v8128_v50  ;;  %v9437_v24 = vor.u32 %v18720_v0, %v9434_v61  ;;  %v18722_v61 = vshrl.u32 %v17078_v59, 16  ;;  %v18724_v0 = vshll.u32 %v17078_v59, 16 }
 0x551   :  { %v9210_v34 = vsel %vm264_vm1, %v8944_v30, %v8730_v33  ;;  %8715 = vrot.lane.b32.xlu0 %v14119_v41, %s14235_s27  ;;  %v9428_v2 = vsel %vm3697_vm6, %v9421_v32, %v9427_v22  ;;  %v14124_v22 = vld [vmem:[#allocation2 + $0xb0] ss:$0 sps:$4 sm:$0xff]   ;;  %v18721_v32 = vshll.u32 %v17050_v36, 16  ;;  %v14128_v36 = vld [vmem:[#allocation2 + $0xc4] ss:$0 sps:$4 sm:$0xff]  }
 0x552   :  { %v9429_v31 = vshrl.u32 %v9210_v34, 16  ;;  %8113 = vrot.lane.b32.xlu1 %v14118_v57, %s14236_s28  ;;  %13261 = vmatprep.mubr.msk.bf16.mxu0 %vm4023_vm5, %v9428_v2  ;;  %v14125_v57 = vld [vmem:[#allocation2 + $0xb0] ss:$0 sps:$4 sm:$0xff]   ;;  %v9454_v30 = vrot.slane %v18722_v61, 7 }
 0x553   :  { %v8736_v42 = vpop.permute.xlu0 %8735  ;;  %v9447_v50 = vor.u32 %v18721_v32, %v9444_v6  ;;  %v9464_v6 = vrot.slane %v18723_v54, 7  ;;  %v18725_v32 = vshll.u32 %v17082_v29, 16  ;;  %v14134_v29 = vld [vmem:[#allocation2 + $0xec] ss:$0 sps:$4 sm:$0xff]  }
 0x554   :  { %v9431_v46 = vrot.slane %v9429_v31, 7  ;;  %v8134_v37 = vpop.permute.xlu1 %8133  ;;  %v9216_v20 = vsel %vm264_vm1, %v8953_v58, %v8736_v42 }
 0x555   :  { %v9439_v41 = vshrl.u32 %v9216_v20, 16  ;;  %8119 = vrot.lane.b32.xlu0 %v14122_v55, %s14236_s28  ;;  %v8962_v33 = vsel %vm3216_vm4, %v14120_v21, %v8134_v37  ;;  %v14126_v21 = vld [vmem:[#allocation2 + $0xdc] sm:$0xff]  }
 0x556   :  { %8721 = vrot.lane.b32.xlu1 %v14121_v52, %s14235_s27  ;;  %v9438_v53 = vsel %vm3697_vm6, %v9431_v46, %v9437_v24  ;;  %v14127_v52 = vld [vmem:[#allocation2 + $0xc4] ss:$0 sps:$4 sm:$0xff]   ;;  %v9457_v24 = vor.u32 %v18724_v0, %v9454_v30 }
 0x557   :  { %v9441_v49 = vrot.slane %v9439_v41, 7  ;;  %13262 = vmatmul.mubr.msk.bf16.gmra.mrb[76].mxu0 %vm4023_vm5, %v9438_v53  ;;  %v8140_v25 = vpop.permute.xlu0 %8139 }
 0x558   :  { %v8742_v34 = vpop.permute.xlu1 %8741  ;;  %v8971_v2 = vsel %vm3216_vm4, %v14123_v60, %v8140_v25  ;;  %v14129_v60 = vld [vmem:[#allocation2 + $0xf0] sm:$0xff]   ;;  %v18726_v25 = vshrl.u32 %v17110_v18, 16 }
 0x559   :  { %v9222_v58 = vsel %vm264_vm1, %v8962_v33, %v8742_v34  ;;  %8727 = vrot.lane.b32.xlu0 %v14125_v57, %s14235_s27  ;;  %v9448_v55 = vsel %vm3697_vm6, %v9441_v49, %v9447_v50  ;;  %v14131_v57 = vld [vmem:[#allocation2 + $0xd8] ss:$0 sps:$4 sm:$0xff]   ;;  %v9467_v50 = vor.u32 %v18725_v32, %v9464_v6  ;;  %v18728_v6 = vshll.u32 %v17110_v18, 16 }
 0x55a   :  { %v9449_v31 = vshrl.u32 %v9222_v58, 16  ;;  %8125 = vrot.lane.b32.xlu1 %v14124_v22, %s14236_s28  ;;  %13265 = vmatprep.mubr.msk.bf16.mxu0 %vm4023_vm5, %v9448_v55  ;;  %v14130_v22 = vld [vmem:[#allocation2 + $0xd8] ss:$0 sps:$4 sm:$0xff]   ;;  %v9474_v61 = vrot.slane %v18726_v25, 7 }
 0x55b   :  { %v8748_v42 = vpop.permute.xlu0 %8747 }
 0x55c   :  { %v9451_v46 = vrot.slane %v9449_v31, 7  ;;  %v8146_v37 = vpop.permute.xlu1 %8145  ;;  %v9228_v20 = vsel %vm264_vm1, %v8971_v2, %v8748_v42  ;;  %v18727_v31 = vshrl.u32 %v17114_v7, 16  ;;  %v9477_v42 = vor.u32 %v18728_v6, %v9474_v61 }
 0x55d   :  { %v9459_v41 = vshrl.u32 %v9228_v20, 16  ;;  %8131 = vrot.lane.b32.xlu0 %v14128_v36, %s14236_s28  ;;  %v8980_v30 = vsel %vm3216_vm4, %v14126_v21, %v8146_v37  ;;  %v14133_v36 = vld [vmem:[#allocation2 + $0xec] ss:$0 sps:$4 sm:$0xff]   ;;  %v14135_v20 = vld [vmem:[#allocation2 + $0x118] sm:$0xff]  }
 0x55e   :  { %8733 = vrot.lane.b32.xlu1 %v14127_v52, %s14235_s27  ;;  %v9458_v53 = vsel %vm3697_vm6, %v9451_v46, %v9457_v24  ;;  %v9484_v52 = vrot.slane %v18727_v31, 7  ;;  %v14132_v24 = vld [vmem:[#allocation2 + $0x104] sm:$0xff]  }
 0x55f   :  { %v9461_v59 = vrot.slane %v9459_v41, 7  ;;  %13266 = vmatmul.mubr.msk.bf16.gmra.mrb[80].mxu0 %vm4023_vm5, %v9458_v53  ;;  %v8152_v49 = vpop.permute.xlu0 %8151  ;;  %v14137_v41 = vld [vmem:[#allocation2 + $0x100] ss:$0 sps:$4 sm:$0xff]   ;;  %v18729_v53 = vshll.u32 %v17114_v7, 16  ;;  %v14140_v7 = vld [vmem:[#allocation2 + $0x114] ss:$0 sps:$4 sm:$0xff]  }
 0x560   :  { %v8754_v33 = vpop.permute.xlu1 %8753  ;;  %v8989_v58 = vsel %vm3216_vm4, %v14129_v60, %v8152_v49 }
 0x561   :  { %v9234_v34 = vsel %vm264_vm1, %v8980_v30, %v8754_v33  ;;  %8739 = vrot.lane.b32.xlu0 %v14131_v57, %s14235_s27  ;;  %v9468_v2 = vsel %vm3697_vm6, %v9461_v59, %v9467_v50  ;;  %v14136_v57 = vld [vmem:[#allocation2 + $0x100] ss:$0 sps:$4 sm:$0xff]   ;;  %v18730_v50 = vshrl.u32 %v17142_v39, 16 }
 0x562   :  { %v9469_v55 = vshrl.u32 %v9234_v34, 16  ;;  %8137 = vrot.lane.b32.xlu1 %v14130_v22, %s14236_s28  ;;  %13269 = vmatprep.mubr.msk.bf16.mxu0 %vm4023_vm5, %v9468_v2  ;;  %v9487_v22 = vor.u32 %v18729_v53, %v9484_v52  ;;  %v18731_v2 = vshrl.u32 %v17146_v14, 16 }
 0x563   :  { %v8760_v54 = vpop.permute.xlu0 %8759  ;;  %v9494_v59 = vrot.slane %v18730_v50, 7 }
 0x564   :  { %v9471_v0 = vrot.slane %v9469_v55, 7  ;;  %v8158_v46 = vpop.permute.xlu1 %8157  ;;  %v9240_v21 = vsel %vm264_vm1, %v8989_v58, %v8760_v54  ;;  %v14139_v58 = vld [vmem:[#allocation2 + $0x114] ss:$0 sps:$4 sm:$0xff]   ;;  %v14138_v54 = vld [vmem:[#allocation2 + $0x12c] sm:$0xff]  }
 0x565   :  { %v9479_v37 = vshrl.u32 %v9240_v21, 16  ;;  %8143 = vrot.lane.b32.xlu0 %v14134_v29, %s14236_s28  ;;  %v8998_v49 = vsel %vm3216_vm4, %v14132_v24, %v8158_v46  ;;  %v9504_v29 = vrot.slane %v18731_v2, 7  ;;  %v14141_v24 = vld [vmem:[#allocation2 + $0x168] sm:$0xff]   ;;  %v14144_v2 = vld [vmem:[#allocation2 + $0x17c] sm:$0xff]  }
 0x566   :  { %8745 = vrot.lane.b32.xlu1 %v14133_v36, %s14235_s27  ;;  %v9478_v60 = vsel %vm3697_vm6, %v9471_v0, %v9477_v42  ;;  %v18732_v36 = vshll.u32 %v17142_v39, 16  ;;  %v14143_v46 = vld [vmem:[#allocation2 + $0x128] ss:$0 sps:$4 sm:$0xff]  }
 0x567   :  { %v9481_v18 = vrot.slane %v9479_v37, 7  ;;  %13270 = vmatmul.mubr.msk.bf16.gmra.mrb[84].mxu0 %vm4023_vm5, %v9478_v60  ;;  %v8164_v32 = vpop.permute.xlu0 %8163  ;;  %v14142_v37 = vld [vmem:[#allocation2 + $0x128] ss:$0 sps:$4 sm:$0xff]  }
 0x568   :  { %v8766_v25 = vpop.permute.xlu1 %8765  ;;  %v9007_v30 = vsel %vm3216_vm4, %v14135_v20, %v8164_v32  ;;  %v9497_v31 = vor.u32 %v18732_v36, %v9494_v59  ;;  %v18733_v20 = vshll.u32 %v17146_v14, 16  ;;  %v14146_v14 = vld [vmem:[#allocation2 + $0x13c] ss:$0 sps:$4 sm:$0xff]  }
 0x569   :  { %v9246_v61 = vsel %vm264_vm1, %v8998_v49, %v8766_v25  ;;  %8751 = vrot.lane.b32.xlu0 %v14137_v41, %s14235_s27  ;;  %v9488_v33 = vsel %vm3697_vm6, %v9481_v18, %v9487_v22  ;;  %v14145_v25 = vld [vmem:[#allocation2 + $0x13c] ss:$0 sps:$4 sm:$0xff]  }
 0x56a   :  { %v9489_v34 = vshrl.u32 %v9246_v61, 16  ;;  %8149 = vrot.lane.b32.xlu1 %v14136_v57, %s14236_s28  ;;  %13273 = vmatprep.mubr.msk.bf16.mxu0 %vm4023_vm5, %v9488_v33  ;;  %v9507_v41 = vor.u32 %v18733_v20, %v9504_v29  ;;  %v18734_v57 = vshrl.u32 %v17163_v19, 16  ;;  %v18735_v61 = vshrl.u32 %v17182_v28, 16 }
 0x56b   :  { %v8772_v55 = vpop.permute.xlu0 %8771 }
 0x56c   :  { %v9491_v52 = vrot.slane %v9489_v34, 7  ;;  %v8170_v6 = vpop.permute.xlu1 %8169  ;;  %v9252_v42 = vsel %vm264_vm1, %v9007_v30, %v8772_v55  ;;  %v9514_v53 = vrot.slane %v18734_v57, 7  ;;  %v9524_v30 = vrot.slane %v18735_v61, 7 }
 0x56d   :  { %v9499_v0 = vshrl.u32 %v9252_v42, 16  ;;  %8155 = vrot.lane.b32.xlu0 %v14140_v7, %s14236_s28  ;;  %v9016_v22 = vsel %vm3216_vm4, %v14138_v54, %v8170_v6  ;;  %v18736_v7 = vshll.u32 %v17163_v19, 16  ;;  %v14148_v6 = vld [vmem:[#allocation2 + $0x150] ss:$0 sps:$4 sm:$0xff]   ;;  %v18737_v42 = vshll.u32 %v17182_v28, 16 }
 0x56e   :  { %8757 = vrot.lane.b32.xlu1 %v14139_v58, %s14235_s27  ;;  %v9498_v21 = vsel %vm3697_vm6, %v9491_v52, %v9497_v31  ;;  %v14147_v31 = vld [vmem:[#allocation2 + $0x190] sm:$0xff]   ;;  %v14152_v28 = vld [vmem:[#allocation2 + $0x18c] ss:$0 sps:$4 sm:$0xff]  }
 0x56f   :  { %v9501_v39 = vrot.slane %v9499_v0, 7  ;;  %13274 = vmatmul.mubr.msk.bf16.gmra.mrb[88].mxu0 %vm4023_vm5, %v9498_v21  ;;  %v8176_v60 = vpop.permute.xlu0 %8175  ;;  %v9517_v34 = vor.u32 %v18736_v7, %v9514_v53  ;;  %v14149_v52 = vld [vmem:[#allocation2 + $0x150] ss:$0 sps:$4 sm:$0xff]   ;;  %v9527_v0 = vor.u32 %v18737_v42, %v9524_v30  ;;  %v14151_v53 = vld [vmem:[#allocation2 + $0x164] ss:$0 sps:$4 sm:$0xff]  }
 0x570   :  { %v8778_v18 = vpop.permute.xlu1 %8777  ;;  %v9025_v50 = vsel %vm3216_vm4, %v14141_v24, %v8176_v60  ;;  %v14155_v7 = vld [vmem:[#allocation2 + $0x1a0] ss:$0 sps:$4 sm:$0xff]  }
 0x571   :  { %v9258_v32 = vsel %vm264_vm1, %v9016_v22, %v8778_v18  ;;  %8763 = vrot.lane.b32.xlu0 %v14143_v46, %s14235_s27  ;;  %v9508_v59 = vsel %vm3697_vm6, %v9501_v39, %v9507_v41  ;;  %v18738_v46 = vshrl.u32 %v17206_v1, 16  ;;  %v18739_v22 = vshrl.u32 %v17210_v56, 16 }
 0x572   :  { %v9509_v49 = vshrl.u32 %v9258_v32, 16  ;;  %8161 = vrot.lane.b32.xlu1 %v14142_v37, %s14236_s28  ;;  %13277 = vmatprep.mubr.msk.bf16.mxu0 %vm4023_vm5, %v9508_v59 }
 0x573   :  { %v8784_v33 = vpop.permute.xlu0 %8783  ;;  %v9534_v21 = vrot.slane %v18738_v46, 7  ;;  %v9544_v18 = vrot.slane %v18739_v22, 7  ;;  %v18743_v46 = vshrl.u32 %v17242_v4, 16  ;;  %v14159_v22 = vld [vmem:[#allocation2 + $0x1e0] sm:$0xff]  }
 0x574   :  { %v9511_v58 = vrot.slane %v9509_v49, 7  ;;  %v8182_v29 = vpop.permute.xlu1 %8181  ;;  %v9264_v55 = vsel %vm264_vm1, %v9025_v50, %v8784_v33  ;;  %v18740_v50 = vshll.u32 %v17206_v1, 16  ;;  %v14150_v49 = vld [vmem:[#allocation2 + $0x1a4] sm:$0xff]   ;;  %v14153_v33 = vld [vmem:[#allocation2 + $0x1b8] sm:$0xff]  }
 0x575   :  { %v9519_v36 = vshrl.u32 %v9264_v55, 16  ;;  %8167 = vrot.lane.b32.xlu0 %v14146_v14, %s14236_s28  ;;  %v9034_v37 = vsel %vm3216_vm4, %v14144_v2, %v8182_v29  ;;  %v18741_v2 = vshll.u32 %v17210_v56, 16  ;;  %v14158_v56 = vld [vmem:[#allocation2 + $0x1b4] ss:$0 sps:$4 sm:$0xff]  }
 0x576   :  { %8769 = vrot.lane.b32.xlu1 %v14145_v25, %s14235_s27  ;;  %v9518_v54 = vsel %vm3697_vm6, %v9511_v58, %v9517_v34  ;;  %v9537_v59 = vor.u32 %v18740_v50, %v9534_v21  ;;  %v14154_v58 = vld [vmem:[#allocation2 + $0x1a0] ss:$0 sps:$4 sm:$0xff]   ;;  %v9564_v21 = vrot.slane %v18743_v46, 7  ;;  %v14160_v50 = vld [vmem:[#allocation2 + $0x1c8] ss:$0 sps:$4 sm:$0xff]  }
 0x577   :  { %v9521_v19 = vrot.slane %v9519_v36, 7  ;;  %13278 = vmatmul.mubr.msk.bf16.gmra.mrb[92].mxu0 %vm4023_vm5, %v9518_v54  ;;  %v8188_v24 = vpop.permute.xlu0 %8187  ;;  %v9547_v29 = vor.u32 %v18741_v2, %v9544_v18  ;;  %v18742_v36 = vshrl.u32 %v17238_v16, 16  ;;  %v14161_v18 = vld [vmem:[#allocation2 + $0x1c8] ss:$0 sps:$4 sm:$0xff]  }
 0x578   :  { %v8790_v20 = vpop.permute.xlu1 %8789  ;;  %v9043_v39 = vsel %vm3216_vm4, %v14147_v31, %v8188_v24  ;;  %v14157_v24 = vld [vmem:[#allocation2 + $0x1b4] ss:$0 sps:$4 sm:$0xff]  }
 0x579   :  { %v9270_v41 = vsel %vm264_vm1, %v9034_v37, %v8790_v20  ;;  %8775 = vrot.lane.b32.xlu0 %v14149_v52, %s14235_s27  ;;  %v9528_v60 = vsel %vm3697_vm6, %v9521_v19, %v9527_v0  ;;  %v9554_v31 = vrot.slane %v18742_v36, 7  ;;  %v18744_v20 = vshll.u32 %v17238_v16, 16 }
 0x57a   :  { %v9529_v57 = vshrl.u32 %v9270_v41, 16  ;;  %8173 = vrot.lane.b32.xlu1 %v14148_v6, %s14236_s28  ;;  %13281 = vmatprep.mubr.msk.bf16.mxu0 %vm4023_vm5, %v9528_v60  ;;  %v14156_v60 = vld [vmem:[#allocation2 + $0x1cc] sm:$0xff]  }
 0x57b   :  { %v8796_v32 = vpop.permute.xlu0 %8795  ;;  %v9557_v41 = vor.u32 %v18744_v20, %v9554_v31  ;;  %v18748_v31 = vshll.u32 %v17270_v9, 16 }
 0x57c   :  { %v9531_v14 = vrot.slane %v9529_v57, 7  ;;  %v8194_v25 = vpop.permute.xlu1 %8193  ;;  %v9276_v61 = vsel %vm264_vm1, %v9043_v39, %v8796_v32 }
 0x57d   :  { %v9539_v30 = vshrl.u32 %v9276_v61, 16  ;;  %8179 = vrot.lane.b32.xlu0 %v14152_v28, %s14236_s28  ;;  %v9052_v52 = vsel %vm3216_vm4, %v14150_v49, %v8194_v25  ;;  %v18746_v25 = vshrl.u32 %v17270_v9, 16 }
 0x57e   :  { %8781 = vrot.lane.b32.xlu1 %v14151_v53, %s14235_s27  ;;  %v9538_v34 = vsel %vm3697_vm6, %v9531_v14, %v9537_v59  ;;  %v18745_v59 = vshll.u32 %v17242_v4, 16  ;;  %v14164_v4 = vld [vmem:[#allocation2 + $0x1dc] ss:$0 sps:$4 sm:$0xff]  }
 0x57f   :  { %v9541_v1 = vrot.slane %v9539_v30, 7  ;;  %13282 = vmatmul.mubr.msk.bf16.gmra.mrb[96].mxu0 %vm4023_vm5, %v9538_v34  ;;  %v8200_v55 = vpop.permute.xlu0 %8199  ;;  %v9574_v61 = vrot.slane %v18746_v25, 7 }
 0x580   :  { %v8802_v54 = vpop.permute.xlu1 %8801  ;;  %v9061_v42 = vsel %vm3216_vm4, %v14153_v33, %v8200_v55  ;;  %v9567_v14 = vor.u32 %v18745_v59, %v9564_v21  ;;  %v14166_v21 = vld [vmem:[#allocation2 + $0x1f0] ss:$0 sps:$4 sm:$0xff]   ;;  %v18751_v59 = vshrl.u32 %v17306_v35, 16 }
 0x581   :  { %v9282_v6 = vsel %vm264_vm1, %v9052_v52, %v8802_v54  ;;  %8787 = vrot.lane.b32.xlu0 %v14155_v7, %s14235_s27  ;;  %v9548_v0 = vsel %vm3697_vm6, %v9541_v1, %v9547_v29  ;;  %v14163_v29 = vld [vmem:[#allocation2 + $0x1dc] ss:$0 sps:$4 sm:$0xff]   ;;  %v18747_v1 = vshrl.u32 %v17274_v40, 16  ;;  %v9577_v52 = vor.u32 %v18748_v31, %v9574_v61 }
 0x582   :  { %v9549_v19 = vshrl.u32 %v9282_v6, 16  ;;  %8185 = vrot.lane.b32.xlu1 %v14154_v58, %s14236_s28  ;;  %13285 = vmatprep.mubr.msk.bf16.mxu0 %vm4023_vm5, %v9548_v0  ;;  %v14162_v6 = vld [vmem:[#allocation2 + $0x1f4] sm:$0xff]   ;;  %v18754_v31 = vshrl.u32 %v17334_v15, 16 }
 0x583   :  { %v8808_v37 = vpop.permute.xlu0 %8807  ;;  %v9584_v55 = vrot.slane %v18747_v1, 7  ;;  %v18753_v1 = vshll.u32 %v17306_v35, 16  ;;  %v14176_v35 = vld [vmem:[#allocation2 + $0x22c] ss:$0 sps:$4 sm:$0xff]  }
 0x584   :  { %v9551_v39 = vrot.slane %v9549_v19, 7  ;;  %v8206_v28 = vpop.permute.xlu1 %8205  ;;  %v9288_v57 = vsel %vm264_vm1, %v9061_v42, %v8808_v37  ;;  %v14165_v19 = vld [vmem:[#allocation2 + $0x208] sm:$0xff]   ;;  %v18749_v37 = vshll.u32 %v17274_v40, 16  ;;  %v14170_v40 = vld [vmem:[#allocation2 + $0x204] ss:$0 sps:$4 sm:$0xff]  }
 0x585   :  { %v9559_v53 = vshrl.u32 %v9288_v57, 16  ;;  %8191 = vrot.lane.b32.xlu0 %v14158_v56, %s14236_s28  ;;  %v9070_v30 = vsel %vm3216_vm4, %v14156_v60, %v8206_v28 }
 0x586   :  { %8793 = vrot.lane.b32.xlu1 %v14157_v24, %s14235_s27  ;;  %v9558_v32 = vsel %vm3697_vm6, %v9551_v39, %v9557_v41  ;;  %v14167_v24 = vld [vmem:[#allocation2 + $0x1f0] ss:$0 sps:$4 sm:$0xff]   ;;  %v9587_v20 = vor.u32 %v18749_v37, %v9584_v55  ;;  %v18750_v39 = vshrl.u32 %v17302_v12, 16 }
 0x587   :  { %v9561_v16 = vrot.slane %v9559_v53, 7  ;;  %13286 = vmatmul.mubr.msk.bf16.gmra.mrb[100].mxu0 %vm4023_vm5, %v9558_v32  ;;  %v8212_v49 = vpop.permute.xlu0 %8211 }
 0x588   :  { %v8814_v33 = vpop.permute.xlu1 %8813  ;;  %v9079_v34 = vsel %vm3216_vm4, %v14159_v22, %v8212_v49  ;;  %v9594_v60 = vrot.slane %v18750_v39, 7  ;;  %v18752_v49 = vshll.u32 %v17302_v12, 16  ;;  %v14174_v39 = vld [vmem:[#allocation2 + $0x244] sm:$0xff]  }
 0x589   :  { %v9294_v7 = vsel %vm264_vm1, %v9070_v30, %v8814_v33  ;;  %8799 = vrot.lane.b32.xlu0 %v14161_v18, %s14235_s27  ;;  %v9568_v58 = vsel %vm3697_vm6, %v9561_v16, %v9567_v14  ;;  %v9604_v14 = vrot.slane %v18751_v59, 7  ;;  %v14168_v30 = vld [vmem:[#allocation2 + $0x21c] sm:$0xff]  }
 0x58a   :  { %v9569_v2 = vshrl.u32 %v9294_v7, 16  ;;  %8197 = vrot.lane.b32.xlu1 %v14160_v50, %s14236_s28  ;;  %13289 = vmatprep.mubr.msk.bf16.mxu0 %vm4023_vm5, %v9568_v58  ;;  %v14169_v50 = vld [vmem:[#allocation2 + $0x204] ss:$0 sps:$4 sm:$0xff]   ;;  %v9597_v25 = vor.u32 %v18752_v49, %v9594_v60  ;;  %v14171_v58 = vld [vmem:[#allocation2 + $0x230] sm:$0xff]  }
 0x58b   :  { %v8820_v36 = vpop.permute.xlu0 %8819  ;;  %v9607_v55 = vor.u32 %v18753_v1, %v9604_v14  ;;  %v18758_v14 = vshrl.u32 %v17366_v23, 16 }
 0x58c   :  { %v9571_v54 = vrot.slane %v9569_v2, 7  ;;  %v8218_v42 = vpop.permute.xlu1 %8217  ;;  %v9300_v0 = vsel %vm264_vm1, %v9079_v34, %v8820_v36 }
 0x58d   :  { %v9579_v56 = vshrl.u32 %v9300_v0, 16  ;;  %8203 = vrot.lane.b32.xlu0 %v14164_v4, %s14236_s28  ;;  %v9088_v28 = vsel %vm3216_vm4, %v14162_v6, %v8218_v42  ;;  %v14173_v4 = vld [vmem:[#allocation2 + $0x218] ss:$0 sps:$4 sm:$0xff]  }
 0x58e   :  { %8805 = vrot.lane.b32.xlu1 %v14163_v29, %s14235_s27  ;;  %v9578_v46 = vsel %vm3697_vm6, %v9571_v54, %v9577_v52  ;;  %v14172_v29 = vld [vmem:[#allocation2 + $0x218] ss:$0 sps:$4 sm:$0xff]   ;;  %v9614_v52 = vrot.slane %v18754_v31, 7 }
 0x58f   :  { %v9581_v9 = vrot.slane %v9579_v56, 7  ;;  %13290 = vmatmul.mubr.msk.bf16.gmra.mrb[104].mxu0 %vm4023_vm5, %v9578_v46  ;;  %v8224_v41 = vpop.permute.xlu0 %8223  ;;  %v18755_v46 = vshrl.u32 %v17338_v8, 16 }
 0x590   :  { %v8826_v57 = vpop.permute.xlu1 %8825  ;;  %v9097_v22 = vsel %vm3216_vm4, %v14165_v19, %v8224_v41 }
 0x591   :  { %v9306_v53 = vsel %vm264_vm1, %v9088_v28, %v8826_v57  ;;  %8811 = vrot.lane.b32.xlu0 %v14167_v24, %s14235_s27  ;;  %v9588_v18 = vsel %vm3697_vm6, %v9581_v9, %v9587_v20  ;;  %v14175_v24 = vld [vmem:[#allocation2 + $0x22c] ss:$0 sps:$4 sm:$0xff]   ;;  %v18756_v20 = vshll.u32 %v17334_v15, 16 }
 0x592   :  { %v9589_v32 = vshrl.u32 %v9306_v53, 16  ;;  %8209 = vrot.lane.b32.xlu1 %v14166_v21, %s14236_s28  ;;  %13293 = vmatprep.mubr.msk.bf16.mxu0 %vm4023_vm5, %v9588_v18  ;;  %v9624_v21 = vrot.slane %v18755_v46, 7  ;;  %v14177_v53 = vld [vmem:[#allocation2 + $0x258] sm:$0xff]  }
 0x593   :  { %v8832_v16 = vpop.permute.xlu0 %8831  ;;  %v9617_v9 = vor.u32 %v18756_v20, %v9614_v52 }
 0x594   :  { %v9591_v61 = vrot.slane %v9589_v32, 7  ;;  %v8230_v33 = vpop.permute.xlu1 %8229  ;;  %v9312_v7 = vsel %vm264_vm1, %v9097_v22, %v8832_v16  ;;  %v14179_v22 = vld [vmem:[#allocation2 + $0x240] ss:$0 sps:$4 sm:$0xff]   ;;  %v18757_v32 = vshll.u32 %v17338_v8, 16  ;;  %v9634_v16 = vrot.slane %v18758_v14, 7 }
 0x595   :  { %v9599_v34 = vshrl.u32 %v9312_v7, 16  ;;  %8215 = vrot.lane.b32.xlu0 %v14170_v40, %s14236_s28  ;;  %v9106_v54 = vsel %vm3216_vm4, %v14168_v30, %v8230_v33  ;;  %v14178_v40 = vld [vmem:[#allocation2 + $0x240] ss:$0 sps:$4 sm:$0xff]   ;;  %v14182_v8 = vld [vmem:[#allocation2 + $0x254] ss:$0 sps:$4 sm:$0xff]  }
 0x596   :  { %8817 = vrot.lane.b32.xlu1 %v14169_v50, %s14235_s27  ;;  %v9598_v2 = vsel %vm3697_vm6, %v9591_v61, %v9597_v25  ;;  %v9627_v50 = vor.u32 %v18757_v32, %v9624_v21  ;;  %v14191_v14 = vld [vmem:[#allocation2 + $0x290] ss:$0 sps:$4 sm:$0xff]  }
 0x597   :  { %v9601_v12 = vrot.slane %v9599_v34, 7  ;;  %13294 = vmatmul.mubr.msk.bf16.gmra.mrb[108].mxu0 %vm4023_vm5, %v9598_v2  ;;  %v8236_v36 = vpop.permute.xlu0 %8235  ;;  %v14181_v34 = vld [vmem:[#allocation2 + $0x254] ss:$0 sps:$4 sm:$0xff]  }
 0x598   :  { %v8838_v6 = vpop.permute.xlu1 %8837  ;;  %v9115_v0 = vsel %vm3216_vm4, %v14171_v58, %v8236_v36  ;;  %v18759_v58 = vshrl.u32 %v17370_v17, 16 }
 0x599   :  { %v9318_v42 = vsel %vm264_vm1, %v9106_v54, %v8838_v6  ;;  %8823 = vrot.lane.b32.xlu0 %v14173_v4, %s14235_s27  ;;  %v9608_v56 = vsel %vm3697_vm6, %v9601_v12, %v9607_v55  ;;  %v14180_v12 = vld [vmem:[#allocation2 + $0x26c] sm:$0xff]   ;;  %v14183_v54 = vld [vmem:[#allocation2 + $0x280] sm:$0xff]   ;;  %v14185_v6 = vld [vmem:[#allocation2 + $0x268] ss:$0 sps:$4 sm:$0xff]  }
 0x59a   :  { %v9609_v19 = vshrl.u32 %v9318_v42, 16  ;;  %8221 = vrot.lane.b32.xlu1 %v14172_v29, %s14236_s28  ;;  %13297 = vmatprep.mubr.msk.bf16.mxu0 %vm4023_vm5, %v9608_v56  ;;  %v9644_v4 = vrot.slane %v18759_v58, 7  ;;  %v18760_v29 = vshll.u32 %v17366_v23, 16  ;;  %v18761_v56 = vshll.u32 %v17370_v17, 16  ;;  %v14188_v17 = vld [vmem:[#allocation2 + $0x27c] ss:$0 sps:$4 sm:$0xff]  }
 0x59b   :  { %v8844_v37 = vpop.permute.xlu0 %8843 }
 0x59c   :  { %v9611_v41 = vrot.slane %v9609_v19, 7  ;;  %v8242_v60 = vpop.permute.xlu1 %8241  ;;  %v9324_v28 = vsel %vm264_vm1, %v9115_v0, %v8844_v37  ;;  %v9637_v1 = vor.u32 %v18760_v29, %v9634_v16  ;;  %v14184_v0 = vld [vmem:[#allocation2 + $0x268] ss:$0 sps:$4 sm:$0xff]   ;;  %v14193_v29 = vld [vmem:[#allocation2 + $0x2a4] ss:$0 sps:$4 sm:$0xff]  }
 0x59d   :  { %v9619_v57 = vshrl.u32 %v9324_v28, 16  ;;  %8227 = vrot.lane.b32.xlu0 %v14176_v35, %s14236_s28  ;;  %v9124_v49 = vsel %vm3216_vm4, %v14174_v39, %v8242_v60  ;;  %v9647_v35 = vor.u32 %v18761_v56, %v9644_v4  ;;  %v14187_v60 = vld [vmem:[#allocation2 + $0x27c] ss:$0 sps:$4 sm:$0xff]   ;;  %v9664_v28 = vrot.slane %v9662_v10, 7 }
 0x59e   :  { %8829 = vrot.lane.b32.xlu1 %v14175_v24, %s14235_s27  ;;  %v9618_v18 = vsel %vm3697_vm6, %v9611_v41, %v9617_v9  ;;  %v18762_v24 = vshrl.u32 %v17397_v44, 16  ;;  %v18764_v10 = vshll.u32 %v17414_v63, 16  ;;  %v14194_v63 = vld [vmem:[#allocation2 + $0x2a4] ss:$0 sps:$4 sm:$0xff]  }
 0x59f   :  { %v9621_v15 = vrot.slane %v9619_v57, 7  ;;  %13298 = vmatmul.mubr.msk.bf16.gmra.mrb[112].mxu0 %vm4023_vm5, %v9618_v18  ;;  %v8248_v59 = vpop.permute.xlu0 %8247 }
 0x5a0   :  { %v8850_v25 = vpop.permute.xlu1 %8849  ;;  %v9133_v30 = vsel %vm3216_vm4, %v14177_v53, %v8248_v59  ;;  %v9654_v46 = vrot.slane %v18762_v24, 7  ;;  %v18763_v53 = vshll.u32 %v17397_v44, 16  ;;  %v14189_v59 = vld [vmem:[#allocation2 + $0x10] ss:$0 sps:$4 sm:$0xff]  }
 0x5a1   :  { %v9330_v61 = vsel %vm264_vm1, %v9124_v49, %v8850_v25  ;;  %8835 = vrot.lane.b32.xlu0 %v14179_v22, %s14235_s27  ;;  %v9628_v33 = vsel %vm3697_vm6, %v9621_v15, %v9627_v50  ;;  %v14190_v49 = vld [vmem:[#allocation2 + $0x290] ss:$0 sps:$4 sm:$0xff]   ;;  %v9667_v25 = vor.u32 %v18764_v10, %v9664_v28 }
 0x5a2   :  { %v9629_v7 = vshrl.u32 %v9330_v61, 16  ;;  %8233 = vrot.lane.b32.xlu1 %v14178_v40, %s14236_s28  ;;  %13301 = vmatprep.mubr.msk.bf16.mxu0 %vm4023_vm5, %v9628_v33  ;;  %v9657_v22 = vor.u32 %v18763_v53, %v9654_v46  ;;  %v14186_v40 = vld [vmem:[#allocation2 + $0x294] sm:$0xff]   ;;  %v14200_v53 = vld [vmem:[#allocation2 + $0x60] ss:$0 sps:$4 sm:$0xff]  }
 0x5a3   :  { %v8856_v2 = vpop.permute.xlu0 %8855 }
 0x5a4   :  { %v9631_v55 = vrot.slane %v9629_v7, 7  ;;  %v8254_v36 = vpop.permute.xlu1 %8253  ;;  %v9336_v31 = vsel %vm264_vm1, %v9133_v30, %v8856_v2  ;;  %v18765_v30 = vshrl.u32 %v17410_v51, 16 }
 0x5a5   :  { %v9639_v52 = vshrl.u32 %v9336_v31, 16  ;;  %8239 = vrot.lane.b32.xlu0 %v14182_v8, %s14236_s28  ;;  %v9142_v21 = vsel %vm3216_vm4, %v14180_v12, %v8254_v36  ;;  %v14192_v31 = vld [vmem:[#allocation2 + $0x24] ss:$0 sps:$4 sm:$0xff]  }
 0x5a6   :  { %8841 = vrot.lane.b32.xlu1 %v14181_v34, %s14235_s27  ;;  %v9638_v42 = vsel %vm3697_vm6, %v9631_v55, %v9637_v1  ;;  %v9674_v33 = vrot.slane %v18765_v30, 7  ;;  %v18766_v55 = vshll.u32 %v17410_v51, 16 }
 0x5a7   :  { %v9641_v23 = vrot.slane %v9639_v52, 7  ;;  %13302 = vmatmul.mubr.msk.bf16.gmra.mrb[116].mxu0 %vm4023_vm5, %v9638_v42  ;;  %v8260_v19 = vpop.permute.xlu0 %8259  ;;  %v14195_v42 = vld [vmem:[#allocation2 + $0x38] ss:$0 sps:$4 sm:$0xff]  }
 0x5a8   :  { %v8862_v37 = vpop.permute.xlu1 %8861  ;;  %v9151_v9 = vsel %vm3216_vm4, %v14183_v54, %v8260_v19  ;;  %v9677_v12 = vor.u32 %v18766_v55, %v9674_v33 }
 0x5a9   :  { %v9342_v20 = vsel %vm264_vm1, %v9142_v21, %v8862_v37  ;;  %8847 = vrot.lane.b32.xlu0 %v14185_v6, %s14235_s27  ;;  %v9648_v41 = vsel %vm3697_vm6, %v9641_v23, %v9647_v35  ;;  %v14196_v35 = vld [vmem:[#allocation2 + $0x2b8] ss:$0 sps:$4 sm:$0xff]  }
 0x5aa   :  { %v9649_v39 = vshrl.u32 %v9342_v20, 16  ;;  %8245 = vrot.lane.b32.xlu1 %v14184_v0, %s14236_s28  ;;  %13305 = vmatprep.mubr.msk.bf16.mxu0 %vm4023_vm5, %v9648_v41  ;;  %v14197_v0 = vld [vmem:[#allocation2 + $0x2b8] ss:$0 sps:$4 sm:$0xff]  }
 0x5ab   :  { %v8868_v57 = vpop.permute.xlu0 %8867 }
 0x5ac   :  { %v9651_v18 = vrot.slane %v9649_v39, 7  ;;  %v8266_v32 = vpop.permute.xlu1 %8265  ;;  %v9348_v50 = vsel %vm264_vm1, %v9151_v9, %v8868_v57  ;;  %v14199_v9 = vld [vmem:[#allocation2 + $0x2cc] ss:$0 sps:$4 sm:$0xff]  }
 0x5ad   :  { %v9659_v15 = vshrl.u32 %v9348_v50, 16  ;;  %8251 = vrot.lane.b32.xlu0 %v14188_v17, %s14236_s28  ;;  %v9160_v8 = vsel %vm3216_vm4, %v14186_v40, %v8266_v32  ;;  %v14198_v39 = vld [vmem:[#allocation2 + $0x4c] ss:$0 sps:$4 sm:$0xff]  }
 0x5ae   :  { %8853 = vrot.lane.b32.xlu1 %v14187_v60, %s14235_s27  ;;  %v9658_v16 = vsel %vm3697_vm6, %v9651_v18, %v9657_v22 }
 0x5af   :  { %v9661_v44 = vrot.slane %v9659_v15, 7  ;;  %13306 = vmatmul.mubr.msk.bf16.gmra.mrb[120].mxu0 %vm4023_vm5, %v9658_v16  ;;  %v8084_v61 = vpop.permute.xlu0 %8083 }
 0x5b0   :  { %v8874_v7 = vpop.permute.xlu1 %8873  ;;  %v8887_v58 = vsel %vm3216_vm4, %v14189_v59, %v8084_v61  ;;  %v14202_v61 = vld [vmem:[#allocation2 + $0x88] ss:$0 sps:$4 sm:$0xff]  }
 0x5b1   :  { %v9354_v34 = vsel %vm264_vm1, %v9160_v8, %v8874_v7  ;;  %8859 = vrot.lane.b32.xlu0 %v14191_v14, %s14235_s27  ;;  %v9668_v4 = vsel %vm3697_vm6, %v9661_v44, %v9667_v25 }
 0x5b2   :  { %v9669_v2 = vshrl.u32 %v9354_v34, 16  ;;  %8257 = vrot.lane.b32.xlu1 %v14190_v49, %s14236_s28  ;;  %13309 = vmatprep.mubr.msk.bf16.mxu0 %vm4023_vm5, %v9668_v4  ;;  %v14201_v49 = vld [vmem:[#allocation2 + $0x74] ss:$0 sps:$4 sm:$0xff]  }
 0x5b3   :  { %v8692_v1 = vpop.permute.xlu0 %8691 }
 0x5b4   :  { %v9671_v36 = vrot.slane %v9669_v2, 7  ;;  %v8090_v52 = vpop.permute.xlu1 %8089  ;;  %v9172_v54 = vsel %vm264_vm1, %v8887_v58, %v8692_v1 }
 0x5b5   :  { %v10435_v6 = vshll.u32 %v9172_v54, 16  ;;  %8263 = vrot.lane.b32.xlu0 %v14194_v63, %s14236_s28  ;;  %v8896_v19 = vsel %vm3216_vm4, %v14192_v31, %v8090_v52 }
 0x5b6   :  { %8865 = vrot.lane.b32.xlu1 %v14193_v29, %s14235_s27  ;;  %v9678_v56 = vsel %vm3697_vm6, %v9671_v36, %v9677_v12  ;;  %v14204_v36 = vld [vmem:[#allocation2 + $0xb0] ss:$0 sps:$4 sm:$0xff]  }
 0x5b7   :  { %v10437_v23 = vrot.slane %v10435_v6, 1  ;;  %13310 = vmatmul.mubr.msk.bf16.gmra.mrb[124].mxu0 %vm4023_vm5, %v9678_v56  ;;  %v8096_v51 = vpop.permute.xlu0 %8095 }
 0x5b8   :  { %v8698_v24 = vpop.permute.xlu1 %8697  ;;  %v8905_v21 = vsel %vm3216_vm4, %v14195_v42, %v8096_v51 }
 0x5b9   :  { %v9178_v46 = vsel %vm264_vm1, %v8896_v19, %v8698_v24  ;;  %8871 = vrot.lane.b32.xlu0 %v14197_v0, %s14235_s27  ;;  %v10438_v37 = vsel %vm4774_vm7, %v16933_v48, %v10437_v23 }
 0x5ba   :  { %v10441_v20 = vshll.u32 %v9178_v46, 16  ;;  %8269 = vrot.lane.b32.xlu1 %v14196_v35, %s14236_s28  ;;  %13315 = vmatprep.mubr.msk.bf16.mxu0 %vm4023_vm5, %v10438_v37 }
 0x5bb   :  { %v8704_v41 = vpop.permute.xlu0 %8703 }
 0x5bc   :  { %v10443_v17 = vrot.slane %v10441_v20, 1  ;;  %v8102_v60 = vpop.permute.xlu1 %8101  ;;  %v9184_v28 = vsel %vm264_vm1, %v8905_v21, %v8704_v41  ;;  %v14206_v21 = vld [vmem:[#allocation2 + $0xd8] ss:$0 sps:$4 sm:$0xff]  }
 0x5bd   :  { %v10447_v57 = vshll.u32 %v9184_v28, 16  ;;  %v8914_v40 = vsel %vm3216_vm4, %v14198_v39, %v8102_v60 }
 0x5be   :  { %v10444_v22 = vsel %vm4774_vm7, %v16972_v43, %v10443_v17  ;;  %8877 = vrot.lane.b32.xlu1 %v14199_v9, %s14235_s27 }
 0x5bf   :  { %v10449_v48 = vrot.slane %v10447_v57, 1  ;;  %13316 = vmatmul.mubr.msk.bf16.vlgmr.msra.gmra.mrb[64].mxu0 %vm4023_vm5, %v10444_v22  ;;  %v8108_v18 = vpop.permute.xlu0 %8107 }
 0x5c0   :  { %v8710_v32 = vpop.permute.xlu1 %8709  ;;  %v8923_v15 = vsel %vm3216_vm4, %v14200_v53, %v8108_v18 }
 0x5c1   :  { %v9190_v50 = vsel %vm264_vm1, %v8914_v40, %v8710_v32  ;;  %v10450_v59 = vsel %vm4774_vm7, %v16976_v45, %v10449_v48  ;;  %v14208_v40 = vld [vmem:[#allocation2 + $0x100] ss:$0 sps:$4 sm:$0xff]  }
 0x5c2   :  { %v10453_v14 = vshll.u32 %v9190_v50, 16  ;;  %13319 = vmatprep.mubr.msk.bf16.mxu0 %vm4023_vm5, %v10450_v59 }
 0x5c3   :  { %v8716_v43 = vpop.permute.xlu0 %8715 }
 0x5c4   :  { %v10455_v16 = vrot.slane %v10453_v14, 1  ;;  %v8114_v10 = vpop.permute.xlu1 %8113  ;;  %v9196_v25 = vsel %vm264_vm1, %v8923_v15, %v8716_v43 }
 0x5c5   :  { %v10459_v44 = vshll.u32 %v9196_v25, 16  ;;  %v8932_v45 = vsel %vm3216_vm4, %v14201_v49, %v8114_v10 }
 0x5c6   :  { %v10456_v30 = vsel %vm4774_vm7, %v17004_v62, %v10455_v16  ;;  %v14203_v62 = vld [vmem:[#allocation2 + $0x9c] ss:$0 sps:$4 sm:$0xff]  }
 0x5c7   :  { %v10461_v33 = vrot.slane %v10459_v44, 1  ;;  %13320 = vmatmul.mubr.msk.bf16.gmra.mrb[68].mxu0 %vm4023_vm5, %v10456_v30  ;;  %v8120_v8 = vpop.permute.xlu0 %8119 }
 0x5c8   :  { %v8722_v7 = vpop.permute.xlu1 %8721  ;;  %v8941_v58 = vsel %vm3216_vm4, %v14202_v61, %v8120_v8  ;;  %v18767_v8 = vld [vmem:[#allocation3_spill] sm:$0xff] }
 0x5c9   :  { %v9202_v34 = vsel %vm264_vm1, %v8932_v45, %v8722_v7  ;;  %v10462_v4 = vsel %vm4774_vm7, %v17008_v5, %v10461_v33  ;;  %v14210_v33 = vld [vmem:[#allocation2 + $0x128] ss:$0 sps:$4 sm:$0xff]  }
 0x5ca   :  { %v10465_v63 = vshll.u32 %v9202_v34, 16  ;;  %13323 = vmatprep.mubr.msk.bf16.mxu0 %vm4023_vm5, %v10462_v4 }
 0x5cb   :  { %v8728_v2 = vpop.permute.xlu0 %8727 }
 0x5cc   :  { %v10467_v29 = vrot.slane %v10465_v63, 1  ;;  %v8126_v1 = vpop.permute.xlu1 %8125  ;;  %v9208_v55 = vsel %vm264_vm1, %v8941_v58, %v8728_v2  ;;  %v18768_v2 = vld [vmem:[#allocation4_spill] sm:$0xff] }
 0x5cd   :  { %v10471_v12 = vshll.u32 %v9208_v55, 16  ;;  %v8950_v5 = vsel %vm3216_vm4, %v14203_v62, %v8126_v1 }
 0x5ce   :  { %v10468_v31 = vsel %vm4774_vm7, %v17036_v3, %v10467_v29  ;;  %v14205_v3 = vld [vmem:[#allocation2 + $0xc4] ss:$0 sps:$4 sm:$0xff]  }
 0x5cf   :  { %v10473_v52 = vrot.slane %v10471_v12, 1  ;;  %13324 = vmatmul.mubr.msk.bf16.gmra.mrb[72].mxu0 %vm4023_vm5, %v10468_v31  ;;  %v8132_v54 = vpop.permute.xlu0 %8131  ;;  %v14211_v12 = vld [vmem:[#allocation2 + $0x13c] ss:$0 sps:$4 sm:$0xff]  }
 0x5d0   :  { %v8734_v6 = vpop.permute.xlu1 %8733  ;;  %v8959_v0 = vsel %vm3216_vm4, %v14204_v36, %v8132_v54  ;;  %v14212_v54 = vld [vmem:[#allocation2 + $0x178] ss:$0 sps:$4 sm:$0xff]  }
 0x5d1   :  { %v9214_v42 = vsel %vm264_vm1, %v8950_v5, %v8734_v6  ;;  %v10474_v56 = vsel %vm4774_vm7, %v17040_v13, %v10473_v52  ;;  %v18769_v5 = vld [vmem:[#allocation5_spill] sm:$0xff] }
 0x5d2   :  { %v10477_v35 = vshll.u32 %v9214_v42, 16  ;;  %13327 = vmatprep.mubr.msk.bf16.mxu0 %vm4023_vm5, %v10474_v56 }
 0x5d3   :  { %v8740_v23 = vpop.permute.xlu0 %8739 }
 0x5d4   :  { %v10479_v51 = vrot.slane %v10477_v35, 1  ;;  %v8138_v19 = vpop.permute.xlu1 %8137  ;;  %v9220_v24 = vsel %vm264_vm1, %v8959_v0, %v8740_v23 }
 0x5d5   :  { %v10483_v46 = vshll.u32 %v9220_v24, 16  ;;  %v8968_v13 = vsel %vm3216_vm4, %v14205_v3, %v8138_v19  ;;  %v18770_v3 = vld [vmem:[#allocation6_spill] sm:$0xff] }
 0x5d6   :  { %v10480_v37 = vsel %vm4774_vm7, %v17068_v26, %v10479_v51  ;;  %v14207_v26 = vld [vmem:[#allocation2 + $0xec] ss:$0 sps:$4 sm:$0xff]  }
 0x5d7   :  { %v10485_v20 = vrot.slane %v10483_v46, 1  ;;  %13328 = vmatmul.mubr.msk.bf16.gmra.mrb[76].mxu0 %vm4023_vm5, %v10480_v37  ;;  %v8144_v9 = vpop.permute.xlu0 %8143  ;;  %v14213_v37 = vld [vmem:[#allocation2 + $0x18c] ss:$0 sps:$4 sm:$0xff]  }
 0x5d8   :  { %v8746_v41 = vpop.permute.xlu1 %8745  ;;  %v8977_v39 = vsel %vm3216_vm4, %v14206_v21, %v8144_v9 }
 0x5d9   :  { %v9226_v17 = vsel %vm264_vm1, %v8968_v13, %v8746_v41  ;;  %v10486_v60 = vsel %vm4774_vm7, %v17072_v47, %v10485_v20  ;;  %v14214_v41 = vld [vmem:[#allocation2 + $0x1a0] ss:$0 sps:$4 sm:$0xff]  }
 0x5da   :  { %v10489_v28 = vshll.u32 %v9226_v17, 16  ;;  %13331 = vmatprep.mubr.msk.bf16.mxu0 %vm4023_vm5, %v10486_v60  ;;  %v18771_v17 = vld [vmem:[#allocation7_spill] sm:$0xff] }
 0x5db   :  { %v8752_v57 = vpop.permute.xlu0 %8751 }
 0x5dc   :  { %v10491_v53 = vrot.slane %v10489_v28, 1  ;;  %v8150_v22 = vpop.permute.xlu1 %8149  ;;  %v9232_v48 = vsel %vm264_vm1, %v8977_v39, %v8752_v57 }
 0x5dd   :  { %v10495_v18 = vshll.u32 %v9232_v48, 16  ;;  %v8986_v47 = vsel %vm3216_vm4, %v14207_v26, %v8150_v22  ;;  %v18772_v48 = vld [vmem:[#allocation8_spill] sm:$0xff] }
 0x5de   :  { %v10492_v32 = vsel %vm4774_vm7, %v17100_v11, %v10491_v53  ;;  %v14209_v11 = vld [vmem:[#allocation2 + $0x114] ss:$0 sps:$4 sm:$0xff]  }
 0x5df   :  { %v10497_v50 = vrot.slane %v10495_v18, 1  ;;  %13332 = vmatmul.mubr.msk.bf16.gmra.mrb[80].mxu0 %vm4023_vm5, %v10492_v32  ;;  %v8156_v15 = vpop.permute.xlu0 %8155 }
 0x5e0   :  { %v8758_v59 = vpop.permute.xlu1 %8757  ;;  %v8995_v43 = vsel %vm3216_vm4, %v14208_v40, %v8156_v15  ;;  %v14215_v15 = vld [vmem:[#allocation2 + $0x1b4] ss:$0 sps:$4 sm:$0xff]  }
 0x5e1   :  { %v9238_v14 = vsel %vm264_vm1, %v8986_v47, %v8758_v59  ;;  %v10498_v16 = vsel %vm4774_vm7, %v17104_v38, %v10497_v50 }
 0x5e2   :  { %v10501_v49 = vshll.u32 %v9238_v14, 16  ;;  %13335 = vmatprep.mubr.msk.bf16.mxu0 %vm4023_vm5, %v10498_v16  ;;  %v18773_v16 = vld [vmem:[#allocation9_spill] sm:$0xff] }
 0x5e3   :  { %v8764_v10 = vpop.permute.xlu0 %8763 }
 0x5e4   :  { %v10503_v25 = vrot.slane %v10501_v49, 1  ;;  %v8162_v44 = vpop.permute.xlu1 %8161  ;;  %v9244_v61 = vsel %vm264_vm1, %v8995_v43, %v8764_v10  ;;  %v14216_v43 = vld [vmem:[#allocation2 + $0x1c8] ss:$0 sps:$4 sm:$0xff]  }
 0x5e5   :  { %v10507_v30 = vshll.u32 %v9244_v61, 16  ;;  %v9004_v38 = vsel %vm3216_vm4, %v14209_v11, %v8162_v44 }
 0x5e6   :  { %v10504_v45 = vsel %vm4774_vm7, %v18767_v8, %v10503_v25 }
 0x5e7   :  { %v10509_v7 = vrot.slane %v10507_v30, 1  ;;  %13336 = vmatmul.mubr.msk.bf16.gmra.mrb[84].mxu0 %vm4023_vm5, %v10504_v45  ;;  %v8168_v34 = vpop.permute.xlu0 %8167 }
 0x5e8   :  { %v8770_v58 = vpop.permute.xlu1 %8769  ;;  %v9013_v63 = vsel %vm3216_vm4, %v14210_v33, %v8168_v34  ;;  %v18774_v33 = vld [vmem:[#allocation10_spill] sm:$0xff] }
 0x5e9   :  { %v9250_v4 = vsel %vm264_vm1, %v9004_v38, %v8770_v58  ;;  %v10510_v29 = vsel %vm4774_vm7, %v18768_v2, %v10509_v7  ;;  %v14217_v38 = vld [vmem:[#allocation2 + $0x1dc] ss:$0 sps:$4 sm:$0xff]   ;;  %v14218_v2 = vld [vmem:[#allocation2 + $0x1f0] ss:$0 sps:$4 sm:$0xff]  }
 0x5ea   :  { %v10513_v62 = vshll.u32 %v9250_v4, 16  ;;  %13339 = vmatprep.mubr.msk.bf16.mxu0 %vm4023_vm5, %v10510_v29  ;;  %v18775_v29 = vld [vmem:[#allocation11_spill] sm:$0xff] }
 0x5eb   :  { %v8776_v1 = vpop.permute.xlu0 %8775 }
 0x5ec   :  { %v10515_v55 = vrot.slane %v10513_v62, 1  ;;  %v8174_v36 = vpop.permute.xlu1 %8173  ;;  %v9256_v31 = vsel %vm264_vm1, %v9013_v63, %v8776_v1 }
 0x5ed   :  { %v10519_v52 = vshll.u32 %v9256_v31, 16  ;;  %v9022_v56 = vsel %vm3216_vm4, %v14211_v12, %v8174_v36 }
 0x5ee   :  { %v10516_v6 = vsel %vm4774_vm7, %v18769_v5, %v10515_v55 }
 0x5ef   :  { %v10521_v42 = vrot.slane %v10519_v52, 1  ;;  %13340 = vmatmul.mubr.msk.bf16.gmra.mrb[88].mxu0 %vm4023_vm5, %v10516_v6  ;;  %v8180_v0 = vpop.permute.xlu0 %8179 }
 0x5f0   :  { %v8782_v35 = vpop.permute.xlu1 %8781  ;;  %v9031_v51 = vsel %vm3216_vm4, %v14212_v54, %v8180_v0  ;;  %v18776_v54 = vld [vmem:[#allocation12_spill] sm:$0xff] }
 0x5f1   :  { %v9262_v23 = vsel %vm264_vm1, %v9022_v56, %v8782_v35  ;;  %v10522_v19 = vsel %vm4774_vm7, %v18770_v3, %v10521_v42  ;;  %v14219_v56 = vld [vmem:[#allocation2 + $0x204] ss:$0 sps:$4 sm:$0xff]   ;;  %v14220_v3 = vld [vmem:[#allocation2 + $0x218] ss:$0 sps:$4 sm:$0xff]  }
 0x5f2   :  { %v10525_v24 = vshll.u32 %v9262_v23, 16  ;;  %13343 = vmatprep.mubr.msk.bf16.mxu0 %vm4023_vm5, %v10522_v19  ;;  %v18777_v19 = vld [vmem:[#allocation13_spill] sm:$0xff] }
 0x5f3   :  { %v8788_v46 = vpop.permute.xlu0 %8787 }
 0x5f4   :  { %v10527_v21 = vrot.slane %v10525_v24, 1  ;;  %v8186_v20 = vpop.permute.xlu1 %8185  ;;  %v9268_v9 = vsel %vm264_vm1, %v9031_v51, %v8788_v46 }
 0x5f5   :  { %v10531_v13 = vshll.u32 %v9268_v9, 16  ;;  %v9040_v57 = vsel %vm3216_vm4, %v14213_v37, %v8186_v20 }
 0x5f6   :  { %v10528_v39 = vsel %vm4774_vm7, %v18771_v17, %v10527_v21 }
 0x5f7   :  { %v10533_v60 = vrot.slane %v10531_v13, 1  ;;  %13344 = vmatmul.mubr.msk.bf16.gmra.mrb[92].mxu0 %vm4023_vm5, %v10528_v39  ;;  %v8192_v28 = vpop.permute.xlu0 %8191 }
 0x5f8   :  { %v8794_v53 = vpop.permute.xlu1 %8793  ;;  %v9049_v22 = vsel %vm3216_vm4, %v14214_v41, %v8192_v28  ;;  %v18778_v41 = vld [vmem:[#allocation14_spill] sm:$0xff] }
 0x5f9   :  { %v9274_v26 = vsel %vm264_vm1, %v9040_v57, %v8794_v53  ;;  %v10534_v18 = vsel %vm4774_vm7, %v18772_v48, %v10533_v60  ;;  %v14221_v57 = vld [vmem:[#allocation2 + $0x22c] ss:$0 sps:$4 sm:$0xff]   ;;  %v14222_v48 = vld [vmem:[#allocation2 + $0x240] ss:$0 sps:$4 sm:$0xff]  }
 0x5fa   :  { %v10537_v40 = vshll.u32 %v9274_v26, 16  ;;  %13347 = vmatprep.mubr.msk.bf16.mxu0 %vm4023_vm5, %v10534_v18  ;;  %v18779_v18 = vld [vmem:[#allocation15_spill] sm:$0xff] }
 0x5fb   :  { %v8800_v32 = vpop.permute.xlu0 %8799 }
 0x5fc   :  { %v10539_v50 = vrot.slane %v10537_v40, 1  ;;  %v8198_v47 = vpop.permute.xlu1 %8197  ;;  %v9280_v59 = vsel %vm264_vm1, %v9049_v22, %v8800_v32 }
 0x5fd   :  { %v10543_v14 = vshll.u32 %v9280_v59, 16  ;;  %v9058_v11 = vsel %vm3216_vm4, %v14215_v15, %v8198_v47 }
 0x5fe   :  { %v10540_v49 = vsel %vm4774_vm7, %v18773_v16, %v10539_v50 }
 0x5ff   :  { %v10545_v10 = vrot.slane %v10543_v14, 1  ;;  %13348 = vmatmul.mubr.msk.bf16.gmra.mrb[96].mxu0 %vm4023_vm5, %v10540_v49  ;;  %v8204_v25 = vpop.permute.xlu0 %8203 }
 0x600   :  { %v8806_v44 = vpop.permute.xlu1 %8805  ;;  %v9067_v30 = vsel %vm3216_vm4, %v14216_v43, %v8204_v25  ;;  %v18780_v43 = vld [vmem:[#allocation16_spill] sm:$0xff] }
 0x601   :  { %v9286_v61 = vsel %vm264_vm1, %v9058_v11, %v8806_v44  ;;  %v10546_v8 = vsel %vm4774_vm7, %v18774_v33, %v10545_v10  ;;  %v14223_v11 = vld [vmem:[#allocation2 + $0x254] ss:$0 sps:$4 sm:$0xff]   ;;  %v14224_v33 = vld [vmem:[#allocation2 + $0x268] ss:$0 sps:$4 sm:$0xff]  }
 0x602   :  { %v10549_v45 = vshll.u32 %v9286_v61, 16  ;;  %13351 = vmatprep.mubr.msk.bf16.mxu0 %vm4023_vm5, %v10546_v8  ;;  %v18781_v8 = vld [vmem:[#allocation17_spill] sm:$0xff] }
 0x603   :  { %v8812_v7 = vpop.permute.xlu0 %8811 }
 0x604   :  { %v10551_v34 = vrot.slane %v10549_v45, 1  ;;  %v8210_v58 = vpop.permute.xlu1 %8209  ;;  %v9292_v4 = vsel %vm264_vm1, %v9067_v30, %v8812_v7 }
 0x605   :  { %v10555_v63 = vshll.u32 %v9292_v4, 16  ;;  %v9076_v12 = vsel %vm3216_vm4, %v14217_v38, %v8210_v58 }
 0x606   :  { %v10552_v62 = vsel %vm4774_vm7, %v18775_v29, %v10551_v34 }
 0x607   :  { %v10557_v1 = vrot.slane %v10555_v63, 1  ;;  %13352 = vmatmul.mubr.msk.bf16.gmra.mrb[100].mxu0 %vm4023_vm5, %v10552_v62  ;;  %v8216_v55 = vpop.permute.xlu0 %8215 }
 0x608   :  { %v8818_v36 = vpop.permute.xlu1 %8817  ;;  %v9085_v52 = vsel %vm3216_vm4, %v14218_v2, %v8216_v55  ;;  %v18782_v2 = vld [vmem:[#allocation18_spill] sm:$0xff] }
 0x609   :  { %v9298_v31 = vsel %vm264_vm1, %v9076_v12, %v8818_v36  ;;  %v10558_v5 = vsel %vm4774_vm7, %v18776_v54, %v10557_v1  ;;  %v14225_v12 = vld [vmem:[#allocation2 + $0x27c] ss:$0 sps:$4 sm:$0xff]   ;;  %v14226_v54 = vld [vmem:[#allocation2 + $0x290] ss:$0 sps:$4 sm:$0xff]  }
 0x60a   :  { %v10561_v6 = vshll.u32 %v9298_v31, 16  ;;  %13355 = vmatprep.mubr.msk.bf16.mxu0 %vm4023_vm5, %v10558_v5  ;;  %v18783_v5 = vld [vmem:[#allocation19_spill] sm:$0xff] }
 0x60b   :  { %v8824_v42 = vpop.permute.xlu0 %8823 }
 0x60c   :  { %v10563_v0 = vrot.slane %v10561_v6, 1  ;;  %v8222_v35 = vpop.permute.xlu1 %8221  ;;  %v9304_v23 = vsel %vm264_vm1, %v9085_v52, %v8824_v42 }
 0x60d   :  { %v10567_v51 = vshll.u32 %v9304_v23, 16  ;;  %v9094_v37 = vsel %vm3216_vm4, %v14219_v56, %v8222_v35 }
 0x60e   :  { %v10564_v24 = vsel %vm4774_vm7, %v18777_v19, %v10563_v0 }
 0x60f   :  { %v10569_v46 = vrot.slane %v10567_v51, 1  ;;  %13356 = vmatmul.mubr.msk.bf16.gmra.mrb[104].mxu0 %vm4023_vm5, %v10564_v24  ;;  %v8228_v21 = vpop.permute.xlu0 %8227 }
 0x610   :  { %v8830_v20 = vpop.permute.xlu1 %8829  ;;  %v9103_v13 = vsel %vm3216_vm4, %v14220_v3, %v8228_v21  ;;  %v18784_v3 = vld [vmem:[#allocation20_spill] sm:$0xff] }
 0x611   :  { %v9310_v9 = vsel %vm264_vm1, %v9094_v37, %v8830_v20  ;;  %v10570_v17 = vsel %vm4774_vm7, %v18778_v41, %v10569_v46  ;;  %v14227_v37 = vld [vmem:[#allocation2 + $0x2a4] ss:$0 sps:$4 sm:$0xff]  }
 0x612   :  { %v10573_v39 = vshll.u32 %v9310_v9, 16  ;;  %13359 = vmatprep.mubr.msk.bf16.mxu0 %vm4023_vm5, %v10570_v17  ;;  %v18785_v41 = vld [vmem:[#allocation21_spill] sm:$0xff] }
 0x613   :  { %v8836_v60 = vpop.permute.xlu0 %8835 }
 0x614   :  { %v10575_v28 = vrot.slane %v10573_v39, 1  ;;  %v8234_v53 = vpop.permute.xlu1 %8233  ;;  %v9316_v26 = vsel %vm264_vm1, %v9103_v13, %v8836_v60 }
 0x615   :  { %v10579_v22 = vshll.u32 %v9316_v26, 16  ;;  %v9112_v15 = vsel %vm3216_vm4, %v14221_v57, %v8234_v53 }
 0x616   :  { %v10576_v40 = vsel %vm4774_vm7, %v18779_v18, %v10575_v28 }
 0x617   :  { %v10581_v32 = vrot.slane %v10579_v22, 1  ;;  %13360 = vmatmul.mubr.msk.bf16.gmra.mrb[108].mxu0 %vm4023_vm5, %v10576_v40  ;;  %v8240_v50 = vpop.permute.xlu0 %8239  ;;  %v17931_v40 = vld [vmem:[%s18449_s4 + $0x1] ss:$0 sm:$0xff] }
 0x618   :  { %v8842_v47 = vpop.permute.xlu1 %8841  ;;  %v9121_v14 = vsel %vm3216_vm4, %v14222_v48, %v8240_v50  ;;  %v18786_v48 = vld [vmem:[#allocation22_spill] sm:$0xff] }
 0x619   :  { %v9322_v59 = vsel %vm264_vm1, %v9112_v15, %v8842_v47  ;;  %v10582_v16 = vsel %vm4774_vm7, %v18780_v43, %v10581_v32 }
 0x61a   :  { %v10585_v49 = vshll.u32 %v9322_v59, 16  ;;  %13363 = vmatprep.mubr.msk.bf16.mxu0 %vm4023_vm5, %v10582_v16 }
 0x61b   :  { %v8848_v10 = vpop.permute.xlu0 %8847 }
 0x61c   :  { %v10587_v25 = vrot.slane %v10585_v49, 1  ;;  %v8246_v44 = vpop.permute.xlu1 %8245  ;;  %v9328_v61 = vsel %vm264_vm1, %v9121_v14, %v8848_v10 }
 0x61d   :  { %v10591_v30 = vshll.u32 %v9328_v61, 16  ;;  %v9130_v38 = vsel %vm3216_vm4, %v14223_v11, %v8246_v44  ;;  %v11282_v11 = vld [vmem:[%s18450_s5 + $0x10] sm:$0xff] }
 0x61e   :  { %v10588_v45 = vsel %vm4774_vm7, %v18781_v8, %v10587_v25 }
 0x61f   :  { %v10593_v7 = vrot.slane %v10591_v30, 1  ;;  %13364 = vmatmul.mubr.msk.bf16.gmra.mrb[112].mxu0 %vm4023_vm5, %v10588_v45  ;;  %v8252_v34 = vpop.permute.xlu0 %8251 }
 0x620   :  { %v8854_v58 = vpop.permute.xlu1 %8853  ;;  %v9139_v63 = vsel %vm3216_vm4, %v14224_v33, %v8252_v34  ;;  %v11280_v33 = vld [vmem:[%s18450_s5] sm:$0xff] }
 0x621   :  { %v9334_v4 = vsel %vm264_vm1, %v9130_v38, %v8854_v58  ;;  %v10594_v29 = vsel %vm4774_vm7, %v18782_v2, %v10593_v7  ;;  %v11283_v7 = vld [vmem:[%s18450_s5 + $0x18] sm:$0xff] }
 0x622   :  { %v10597_v62 = vshll.u32 %v9334_v4, 16  ;;  %13367 = vmatprep.mubr.msk.bf16.mxu0 %vm4023_vm5, %v10594_v29  ;;  %v11281_v4 = vld [vmem:[%s18450_s5 + $0x8] sm:$0xff] }
 0x623   :  { %v8860_v1 = vpop.permute.xlu0 %8859 }
 0x624   :  { %v10599_v55 = vrot.slane %v10597_v62, 1  ;;  %v8258_v36 = vpop.permute.xlu1 %8257  ;;  %v9340_v31 = vsel %vm264_vm1, %v9139_v63, %v8860_v1 }
 0x625   :  { %v10603_v52 = vshll.u32 %v9340_v31, 16  ;;  %v9148_v56 = vsel %vm3216_vm4, %v14225_v12, %v8258_v36 }
 0x626   :  { %v10600_v6 = vsel %vm4774_vm7, %v18783_v5, %v10599_v55 }
 0x627   :  { %v10605_v42 = vrot.slane %v10603_v52, 1  ;;  %13368 = vmatmul.mubr.msk.bf16.gmra.mrb[116].mxu0 %vm4023_vm5, %v10600_v6  ;;  %v8264_v0 = vpop.permute.xlu0 %8263  ;;  %v11286_v6 = vld [vmem:[%s18450_s5 + $0x30] sm:$0xff] }
 0x628   :  { %v8866_v35 = vpop.permute.xlu1 %8865  ;;  %v9157_v51 = vsel %vm3216_vm4, %v14226_v54, %v8264_v0 }
 0x629   :  { %v9346_v23 = vsel %vm264_vm1, %v9148_v56, %v8866_v35  ;;  %v10606_v19 = vsel %vm4774_vm7, %v18784_v3, %v10605_v42  ;;  %v11284_v35 = vld [vmem:[%s18450_s5 + $0x20] sm:$0xff]  ;;  %v11287_v3 = vld [vmem:[%s18450_s5 + $0x38] sm:$0xff] }
 0x62a   :  { %v10609_v24 = vshll.u32 %v9346_v23, 16  ;;  %13371 = vmatprep.mubr.msk.bf16.mxu0 %vm4023_vm5, %v10606_v19 }
 0x62b   :  { %v8872_v46 = vpop.permute.xlu0 %8871 }
 0x62c   :  { %v10611_v21 = vrot.slane %v10609_v24, 1  ;;  %v8270_v20 = vpop.permute.xlu1 %8269  ;;  %v9352_v9 = vsel %vm264_vm1, %v9157_v51, %v8872_v46 }
 0x62d   :  { %v10615_v13 = vshll.u32 %v9352_v9, 16  ;;  %v9166_v60 = vsel %vm3216_vm4, %v14227_v37, %v8270_v20 }
 0x62e   :  { %v10612_v17 = vsel %vm4774_vm7, %v18785_v41, %v10611_v21  ;;  %v11285_v21 = vld [vmem:[%s18450_s5 + $0x28] sm:$0xff] }
 0x62f   :  { %v10617_v39 = vrot.slane %v10615_v13, 1  ;;  %13372 = vmatmul.mubr.msk.bf16.gmra.mrb[120].mxu0 %vm4023_vm5, %v10612_v17 }
 0x630   :  { %v8878_v28 = vpop.permute.xlu1 %8877 }
 0x631   :  { %v9358_v57 = vsel %vm264_vm1, %v9166_v60, %v8878_v28  ;;  %v10618_v53 = vsel %vm4774_vm7, %v17447_v27, %v10617_v39 }
 0x632   :  { %v10621_v26 = vshll.u32 %v9358_v57, 16  ;;  %13375 = vmatprep.mubr.msk.bf16.mxu0 %vm4023_vm5, %v10618_v53 }
 0x634   :  { %v10623_v22 = vrot.slane %v10621_v26, 1 }
 0x636   :  { %v10624_v18 = vsel %vm4774_vm7, %v18786_v48, %v10623_v22  ;;  %v11290_v22 = vld [vmem:[%s18450_s5 + $0x50] sm:$0xff] }
 0x637   :  { %13376 = vmatmul.mubr.msk.bf16.gmra.mrb[124].mxu0 %vm4023_vm5, %v10624_v18 }
 0x692   :  { %v13317_v32 = vpop.f32.mrb[64].mxu0 }
 0x693   :  { %v11090_v50 = vadd.f32 %v13317_v32, %v17931_v40  ;;  %v10763_v15 = vpop.f32.mrb[65].mxu0 }
 0x694   :  { %v11088_v27 = vadd.f32 %v17931_v40, %v10763_v15  ;;  %v13318_v47 = vpop.f32.mrb[66].mxu0 }
 0x695   :  { %v11154_v59 = vmul.f32 0.1, %v11090_v50  ;;  %v11091_v14 = vadd.f32 %v13318_v47, %v17931_v40  ;;  %v10766_v43 = vpop.f32.mrb[67].mxu0  ;;  %v11291_v47 = vld [vmem:[%s18450_s5 + $0x58] sm:$0xff] }
 0x696   :  { %v11152_v16 = vmul.f32 0.1, %v11088_v27  ;;  %v11089_v49 = vadd.f32 %v17931_v40, %v10766_v43 }
 0x697   :  { %v11218_v10 = vmax.f32 %v11090_v50, %v11154_v59  ;;  %v11155_v25 = vmul.f32 0.1, %v11091_v14  ;;  %v11288_v50 = vld [vmem:[%s18450_s5 + $0x40] sm:$0xff] }
 0x698   :  { %v11216_v44 = vmax.f32 %v11088_v27, %v11152_v16  ;;  %v11153_v61 = vmul.f32 0.1, %v11089_v49  ;;  %v11289_v16 = vld [vmem:[%s18450_s5 + $0x48] sm:$0xff] }
 0x699   :  { %v11346_v30 = vadd.f32 %v11282_v11, %v11218_v10  ;;  %v11219_v8 = vmax.f32 %v11091_v14, %v11155_v25 }
 0x69a   :  { %v11344_v45 = vadd.f32 %v11280_v33, %v11216_v44  ;;  %v11217_v34 = vmax.f32 %v11089_v49, %v11153_v61  ;;  %v13321_v38 = vpop.f32.mrb[68].mxu0 }
 0x69b   :  { %11410 = vst.msk [vmem:[%s18450_s5 + $0x10] sm:$0xff] %vm264_vm1, %v11346_v30  ;;  %v11347_v58 = vadd.f32 %v11283_v7, %v11219_v8  ;;  %v11094_v63 = vadd.f32 %v13321_v38, %v17931_v40  ;;  %v10779_v2 = vpop.f32.mrb[69].mxu0  ;;  %v11294_v38 = vld [vmem:[%s18450_s5 + $0x70] sm:$0xff] }
 0x69c   :  { %11408 = vst.msk [vmem:[%s18450_s5] sm:$0xff] %vm264_vm1, %v11344_v45  ;;  %v11345_v29 = vadd.f32 %v11281_v4, %v11217_v34  ;;  %v11092_v62 = vadd.f32 %v17931_v40, %v10779_v2  ;;  %v13322_v1 = vpop.f32.mrb[70].mxu0  ;;  %v11292_v2 = vld [vmem:[%s18450_s5 + $0x60] sm:$0xff] }
 0x69d   :  { %11411 = vst.msk [vmem:[%s18450_s5 + $0x18] sm:$0xff] %vm264_vm1, %v11347_v58  ;;  %v11158_v55 = vmul.f32 0.1, %v11094_v63  ;;  %v11095_v12 = vadd.f32 %v13322_v1, %v17931_v40  ;;  %v10782_v36 = vpop.f32.mrb[71].mxu0  ;;  %v11295_v1 = vld [vmem:[%s18450_s5 + $0x78] sm:$0xff] }
 0x69e   :  { %11409 = vst.msk [vmem:[%s18450_s5 + $0x8] sm:$0xff] %vm264_vm1, %v11345_v29  ;;  %v11156_v31 = vmul.f32 0.1, %v11092_v62  ;;  %v11093_v52 = vadd.f32 %v17931_v40, %v10782_v36 }
 0x69f   :  { %v11222_v54 = vmax.f32 %v11094_v63, %v11158_v55  ;;  %v11159_v5 = vmul.f32 0.1, %v11095_v12 }
 0x6a0   :  { %v11220_v42 = vmax.f32 %v11092_v62, %v11156_v31  ;;  %v11157_v0 = vmul.f32 0.1, %v11093_v52  ;;  %v11293_v31 = vld [vmem:[%s18450_s5 + $0x68] sm:$0xff] }
 0x6a1   :  { %v11350_v56 = vadd.f32 %v11286_v6, %v11222_v54  ;;  %v11223_v23 = vmax.f32 %v11095_v12, %v11159_v5 }
 0x6a2   :  { %v11348_v51 = vadd.f32 %v11284_v35, %v11220_v42  ;;  %v11221_v19 = vmax.f32 %v11093_v52, %v11157_v0  ;;  %v13325_v24 = vpop.f32.mrb[72].mxu0 }
 0x6a3   :  { %11414 = vst.msk [vmem:[%s18450_s5 + $0x30] sm:$0xff] %vm264_vm1, %v11350_v56  ;;  %v11351_v46 = vadd.f32 %v11287_v3, %v11223_v23  ;;  %v11098_v37 = vadd.f32 %v13325_v24, %v17931_v40  ;;  %v10795_v20 = vpop.f32.mrb[73].mxu0  ;;  %v11298_v24 = vld [vmem:[%s18450_s5 + $0x90] sm:$0xff] }
 0x6a4   :  { %11412 = vst.msk [vmem:[%s18450_s5 + $0x20] sm:$0xff] %vm264_vm1, %v11348_v51  ;;  %v11349_v9 = vadd.f32 %v11285_v21, %v11221_v19  ;;  %v11096_v13 = vadd.f32 %v17931_v40, %v10795_v20  ;;  %v13326_v41 = vpop.f32.mrb[74].mxu0  ;;  %v11296_v20 = vld [vmem:[%s18450_s5 + $0x80] sm:$0xff] }
 0x6a5   :  { %11415 = vst.msk [vmem:[%s18450_s5 + $0x38] sm:$0xff] %vm264_vm1, %v11351_v46  ;;  %v11162_v17 = vmul.f32 0.1, %v11098_v37  ;;  %v11099_v39 = vadd.f32 %v13326_v41, %v17931_v40  ;;  %v10798_v60 = vpop.f32.mrb[75].mxu0  ;;  %v11299_v41 = vld [vmem:[%s18450_s5 + $0x98] sm:$0xff] }
 0x6a6   :  { %11413 = vst.msk [vmem:[%s18450_s5 + $0x28] sm:$0xff] %vm264_vm1, %v11349_v9  ;;  %v11160_v28 = vmul.f32 0.1, %v11096_v13  ;;  %v11097_v57 = vadd.f32 %v17931_v40, %v10798_v60 }
 0x6a7   :  { %v11226_v53 = vmax.f32 %v11098_v37, %v11162_v17  ;;  %v11163_v26 = vmul.f32 0.1, %v11099_v39 }
 0x6a8   :  { %v11224_v48 = vmax.f32 %v11096_v13, %v11160_v28  ;;  %v11161_v18 = vmul.f32 0.1, %v11097_v57  ;;  %v11297_v28 = vld [vmem:[%s18450_s5 + $0x88] sm:$0xff] }
 0x6a9   :  { %v11354_v32 = vadd.f32 %v11290_v22, %v11226_v53  ;;  %v11227_v15 = vmax.f32 %v11099_v39, %v11163_v26 }
 0x6aa   :  { %v11352_v27 = vadd.f32 %v11288_v50, %v11224_v48  ;;  %v11225_v59 = vmax.f32 %v11097_v57, %v11161_v18  ;;  %v13329_v14 = vpop.f32.mrb[76].mxu0 }
 0x6ab   :  { %11418 = vst.msk [vmem:[%s18450_s5 + $0x50] sm:$0xff] %vm264_vm1, %v11354_v32  ;;  %v11355_v43 = vadd.f32 %v11291_v47, %v11227_v15  ;;  %v11102_v49 = vadd.f32 %v13329_v14, %v17931_v40  ;;  %v10811_v10 = vpop.f32.mrb[77].mxu0  ;;  %v11302_v14 = vld [vmem:[%s18450_s5 + $0xb0] sm:$0xff] }
 0x6ac   :  { %11416 = vst.msk [vmem:[%s18450_s5 + $0x40] sm:$0xff] %vm264_vm1, %v11352_v27  ;;  %v11353_v25 = vadd.f32 %v11289_v16, %v11225_v59  ;;  %v11100_v11 = vadd.f32 %v17931_v40, %v10811_v10  ;;  %v13330_v44 = vpop.f32.mrb[78].mxu0  ;;  %v11300_v10 = vld [vmem:[%s18450_s5 + $0xa0] sm:$0xff] }
 0x6ad   :  { %11419 = vst.msk [vmem:[%s18450_s5 + $0x58] sm:$0xff] %vm264_vm1, %v11355_v43  ;;  %v11166_v61 = vmul.f32 0.1, %v11102_v49  ;;  %v11103_v30 = vadd.f32 %v13330_v44, %v17931_v40  ;;  %v10814_v33 = vpop.f32.mrb[79].mxu0  ;;  %v11303_v44 = vld [vmem:[%s18450_s5 + $0xb8] sm:$0xff] }
 0x6ae   :  { %11417 = vst.msk [vmem:[%s18450_s5 + $0x48] sm:$0xff] %vm264_vm1, %v11353_v25  ;;  %v11164_v8 = vmul.f32 0.1, %v11100_v11  ;;  %v11101_v45 = vadd.f32 %v17931_v40, %v10814_v33 }
 0x6af   :  { %v11230_v7 = vmax.f32 %v11102_v49, %v11166_v61  ;;  %v11167_v34 = vmul.f32 0.1, %v11103_v30 }
 0x6b0   :  { %v11228_v58 = vmax.f32 %v11100_v11, %v11164_v8  ;;  %v11165_v4 = vmul.f32 0.1, %v11101_v45  ;;  %v11301_v8 = vld [vmem:[%s18450_s5 + $0xa8] sm:$0xff] }
 0x6b1   :  { %v11358_v63 = vadd.f32 %v11294_v38, %v11230_v7  ;;  %v11231_v29 = vmax.f32 %v11103_v30, %v11167_v34 }
 0x6b2   :  { %v11356_v62 = vadd.f32 %v11292_v2, %v11228_v58  ;;  %v11229_v55 = vmax.f32 %v11101_v45, %v11165_v4  ;;  %v13333_v12 = vpop.f32.mrb[80].mxu0 }
 0x6b3   :  { %11422 = vst.msk [vmem:[%s18450_s5 + $0x70] sm:$0xff] %vm264_vm1, %v11358_v63  ;;  %v11359_v36 = vadd.f32 %v11295_v1, %v11231_v29  ;;  %v11106_v52 = vadd.f32 %v13333_v12, %v17931_v40  ;;  %v10827_v54 = vpop.f32.mrb[81].mxu0  ;;  %v11306_v12 = vld [vmem:[%s18450_s5 + $0xd0] sm:$0xff] }
 0x6b4   :  { %11420 = vst.msk [vmem:[%s18450_s5 + $0x60] sm:$0xff] %vm264_vm1, %v11356_v62  ;;  %v11357_v5 = vadd.f32 %v11293_v31, %v11229_v55  ;;  %v11104_v6 = vadd.f32 %v17931_v40, %v10827_v54  ;;  %v13334_v42 = vpop.f32.mrb[82].mxu0  ;;  %v11304_v54 = vld [vmem:[%s18450_s5 + $0xc0] sm:$0xff] }
 0x6b5   :  { %11423 = vst.msk [vmem:[%s18450_s5 + $0x78] sm:$0xff] %vm264_vm1, %v11359_v36  ;;  %v11170_v0 = vmul.f32 0.1, %v11106_v52  ;;  %v11107_v56 = vadd.f32 %v13334_v42, %v17931_v40  ;;  %v10830_v35 = vpop.f32.mrb[83].mxu0  ;;  %v11307_v42 = vld [vmem:[%s18450_s5 + $0xd8] sm:$0xff] }
 0x6b6   :  { %11421 = vst.msk [vmem:[%s18450_s5 + $0x68] sm:$0xff] %vm264_vm1, %v11357_v5  ;;  %v11168_v23 = vmul.f32 0.1, %v11104_v6  ;;  %v11105_v51 = vadd.f32 %v17931_v40, %v10830_v35 }
 0x6b7   :  { %v11234_v3 = vmax.f32 %v11106_v52, %v11170_v0  ;;  %v11171_v19 = vmul.f32 0.1, %v11107_v56 }
 0x6b8   :  { %v11232_v46 = vmax.f32 %v11104_v6, %v11168_v23  ;;  %v11169_v21 = vmul.f32 0.1, %v11105_v51  ;;  %v11305_v23 = vld [vmem:[%s18450_s5 + $0xc8] sm:$0xff] }
 0x6b9   :  { %v11362_v37 = vadd.f32 %v11298_v24, %v11234_v3  ;;  %v11235_v9 = vmax.f32 %v11107_v56, %v11171_v19 }
 0x6ba   :  { %v11360_v13 = vadd.f32 %v11296_v20, %v11232_v46  ;;  %v11233_v17 = vmax.f32 %v11105_v51, %v11169_v21  ;;  %v13337_v39 = vpop.f32.mrb[84].mxu0 }
 0x6bb   :  { %11426 = vst.msk [vmem:[%s18450_s5 + $0x90] sm:$0xff] %vm264_vm1, %v11362_v37  ;;  %v11363_v60 = vadd.f32 %v11299_v41, %v11235_v9  ;;  %v11110_v57 = vadd.f32 %v13337_v39, %v17931_v40  ;;  %v10843_v53 = vpop.f32.mrb[85].mxu0  ;;  %v11310_v39 = vld [vmem:[%s18450_s5 + $0xf0] sm:$0xff] }
 0x6bc   :  { %11424 = vst.msk [vmem:[%s18450_s5 + $0x80] sm:$0xff] %vm264_vm1, %v11360_v13  ;;  %v11361_v26 = vadd.f32 %v11297_v28, %v11233_v17  ;;  %v11108_v22 = vadd.f32 %v17931_v40, %v10843_v53  ;;  %v13338_v48 = vpop.f32.mrb[86].mxu0  ;;  %v11308_v53 = vld [vmem:[%s18450_s5 + $0xe0] sm:$0xff] }
 0x6bd   :  { %11427 = vst.msk [vmem:[%s18450_s5 + $0x98] sm:$0xff] %vm264_vm1, %v11363_v60  ;;  %v11174_v18 = vmul.f32 0.1, %v11110_v57  ;;  %v11111_v32 = vadd.f32 %v13338_v48, %v17931_v40  ;;  %v10846_v50 = vpop.f32.mrb[87].mxu0  ;;  %v11311_v48 = vld [vmem:[%s18450_s5 + $0xf8] sm:$0xff] }
 0x6be   :  { %11425 = vst.msk [vmem:[%s18450_s5 + $0x88] sm:$0xff] %vm264_vm1, %v11361_v26  ;;  %v11172_v15 = vmul.f32 0.1, %v11108_v22  ;;  %v11109_v27 = vadd.f32 %v17931_v40, %v10846_v50 }
 0x6bf   :  { %v11238_v47 = vmax.f32 %v11110_v57, %v11174_v18  ;;  %v11175_v59 = vmul.f32 0.1, %v11111_v32 }
 0x6c0   :  { %v11236_v43 = vmax.f32 %v11108_v22, %v11172_v15  ;;  %v11173_v16 = vmul.f32 0.1, %v11109_v27  ;;  %v11309_v15 = vld [vmem:[%s18450_s5 + $0xe8] sm:$0xff] }
 0x6c1   :  { %v11366_v49 = vadd.f32 %v11302_v14, %v11238_v47  ;;  %v11239_v25 = vmax.f32 %v11111_v32, %v11175_v59 }
 0x6c2   :  { %v11364_v11 = vadd.f32 %v11300_v10, %v11236_v43  ;;  %v11237_v61 = vmax.f32 %v11109_v27, %v11173_v16  ;;  %v13341_v30 = vpop.f32.mrb[88].mxu0 }
 0x6c3   :  { %11430 = vst.msk [vmem:[%s18450_s5 + $0xb0] sm:$0xff] %vm264_vm1, %v11366_v49  ;;  %v11367_v33 = vadd.f32 %v11303_v44, %v11239_v25  ;;  %v11114_v45 = vadd.f32 %v13341_v30, %v17931_v40  ;;  %v10859_v7 = vpop.f32.mrb[89].mxu0  ;;  %v11314_v30 = vld [vmem:[%s18450_s5 + $0x110] sm:$0xff] }
 0x6c4   :  { %11428 = vst.msk [vmem:[%s18450_s5 + $0xa0] sm:$0xff] %vm264_vm1, %v11364_v11  ;;  %v11365_v34 = vadd.f32 %v11301_v8, %v11237_v61  ;;  %v11112_v38 = vadd.f32 %v17931_v40, %v10859_v7  ;;  %v13342_v58 = vpop.f32.mrb[90].mxu0  ;;  %v11312_v7 = vld [vmem:[%s18450_s5 + $0x100] sm:$0xff] }
 0x6c5   :  { %11431 = vst.msk [vmem:[%s18450_s5 + $0xb8] sm:$0xff] %vm264_vm1, %v11367_v33  ;;  %v11178_v4 = vmul.f32 0.1, %v11114_v45  ;;  %v11115_v63 = vadd.f32 %v13342_v58, %v17931_v40  ;;  %v10862_v2 = vpop.f32.mrb[91].mxu0  ;;  %v11315_v58 = vld [vmem:[%s18450_s5 + $0x118] sm:$0xff] }
 0x6c6   :  { %11429 = vst.msk [vmem:[%s18450_s5 + $0xa8] sm:$0xff] %vm264_vm1, %v11365_v34  ;;  %v11176_v29 = vmul.f32 0.1, %v11112_v38  ;;  %v11113_v62 = vadd.f32 %v17931_v40, %v10862_v2 }
 0x6c7   :  { %v11242_v1 = vmax.f32 %v11114_v45, %v11178_v4  ;;  %v11179_v55 = vmul.f32 0.1, %v11115_v63 }
 0x6c8   :  { %v11240_v36 = vmax.f32 %v11112_v38, %v11176_v29  ;;  %v11177_v31 = vmul.f32 0.1, %v11113_v62  ;;  %v11313_v29 = vld [vmem:[%s18450_s5 + $0x108] sm:$0xff] }
 0x6c9   :  { %v11370_v52 = vadd.f32 %v11306_v12, %v11242_v1  ;;  %v11243_v5 = vmax.f32 %v11115_v63, %v11179_v55 }
 0x6ca   :  { %v11368_v6 = vadd.f32 %v11304_v54, %v11240_v36  ;;  %v11241_v0 = vmax.f32 %v11113_v62, %v11177_v31  ;;  %v13345_v56 = vpop.f32.mrb[92].mxu0 }
 0x6cb   :  { %11434 = vst.msk [vmem:[%s18450_s5 + $0xd0] sm:$0xff] %vm264_vm1, %v11370_v52  ;;  %v11371_v35 = vadd.f32 %v11307_v42, %v11243_v5  ;;  %v11118_v51 = vadd.f32 %v13345_v56, %v17931_v40  ;;  %v10875_v3 = vpop.f32.mrb[93].mxu0  ;;  %v11318_v56 = vld [vmem:[%s18450_s5 + $0x130] sm:$0xff] }
 0x6cc   :  { %11432 = vst.msk [vmem:[%s18450_s5 + $0xc0] sm:$0xff] %vm264_vm1, %v11368_v6  ;;  %v11369_v19 = vadd.f32 %v11305_v23, %v11241_v0  ;;  %v11116_v24 = vadd.f32 %v17931_v40, %v10875_v3  ;;  %v13346_v46 = vpop.f32.mrb[94].mxu0  ;;  %v11316_v3 = vld [vmem:[%s18450_s5 + $0x120] sm:$0xff] }
 0x6cd   :  { %11435 = vst.msk [vmem:[%s18450_s5 + $0xd8] sm:$0xff] %vm264_vm1, %v11371_v35  ;;  %v11182_v21 = vmul.f32 0.1, %v11118_v51  ;;  %v11119_v37 = vadd.f32 %v13346_v46, %v17931_v40  ;;  %v10878_v20 = vpop.f32.mrb[95].mxu0  ;;  %v11319_v46 = vld [vmem:[%s18450_s5 + $0x138] sm:$0xff] }
 0x6ce   :  { %11433 = vst.msk [vmem:[%s18450_s5 + $0xc8] sm:$0xff] %vm264_vm1, %v11369_v19  ;;  %v11180_v9 = vmul.f32 0.1, %v11116_v24  ;;  %v11117_v13 = vadd.f32 %v17931_v40, %v10878_v20 }
 0x6cf   :  { %v11246_v41 = vmax.f32 %v11118_v51, %v11182_v21  ;;  %v11183_v17 = vmul.f32 0.1, %v11119_v37 }
 0x6d0   :  { %v11244_v60 = vmax.f32 %v11116_v24, %v11180_v9  ;;  %v11181_v28 = vmul.f32 0.1, %v11117_v13  ;;  %v11317_v9 = vld [vmem:[%s18450_s5 + $0x128] sm:$0xff] }
 0x6d1   :  { %v11374_v57 = vadd.f32 %v11310_v39, %v11246_v41  ;;  %v11247_v26 = vmax.f32 %v11119_v37, %v11183_v17 }
 0x6d2   :  { %v11372_v22 = vadd.f32 %v11308_v53, %v11244_v60  ;;  %v11245_v18 = vmax.f32 %v11117_v13, %v11181_v28  ;;  %v13349_v32 = vpop.f32.mrb[96].mxu0 }
 0x6d3   :  { %11438 = vst.msk [vmem:[%s18450_s5 + $0xf0] sm:$0xff] %vm264_vm1, %v11374_v57  ;;  %v11375_v50 = vadd.f32 %v11311_v48, %v11247_v26  ;;  %v11122_v27 = vadd.f32 %v13349_v32, %v17931_v40  ;;  %v10891_v47 = vpop.f32.mrb[97].mxu0  ;;  %v11322_v32 = vld [vmem:[%s18450_s5 + $0x150] sm:$0xff] }
 0x6d4   :  { %11436 = vst.msk [vmem:[%s18450_s5 + $0xe0] sm:$0xff] %vm264_vm1, %v11372_v22  ;;  %v11373_v59 = vadd.f32 %v11309_v15, %v11245_v18  ;;  %v11120_v14 = vadd.f32 %v17931_v40, %v10891_v47  ;;  %v13350_v43 = vpop.f32.mrb[98].mxu0  ;;  %v11320_v47 = vld [vmem:[%s18450_s5 + $0x140] sm:$0xff] }
 0x6d5   :  { %11439 = vst.msk [vmem:[%s18450_s5 + $0xf8] sm:$0xff] %vm264_vm1, %v11375_v50  ;;  %v11186_v16 = vmul.f32 0.1, %v11122_v27  ;;  %v11123_v49 = vadd.f32 %v13350_v43, %v17931_v40  ;;  %v10894_v10 = vpop.f32.mrb[99].mxu0  ;;  %v11323_v43 = vld [vmem:[%s18450_s5 + $0x158] sm:$0xff] }
 0x6d6   :  { %11437 = vst.msk [vmem:[%s18450_s5 + $0xe8] sm:$0xff] %vm264_vm1, %v11373_v59  ;;  %v11184_v25 = vmul.f32 0.1, %v11120_v14  ;;  %v11121_v11 = vadd.f32 %v17931_v40, %v10894_v10 }
 0x6d7   :  { %v11250_v44 = vmax.f32 %v11122_v27, %v11186_v16  ;;  %v11187_v61 = vmul.f32 0.1, %v11123_v49 }
 0x6d8   :  { %v11248_v33 = vmax.f32 %v11120_v14, %v11184_v25  ;;  %v11185_v8 = vmul.f32 0.1, %v11121_v11  ;;  %v11321_v25 = vld [vmem:[%s18450_s5 + $0x148] sm:$0xff] }
 0x6d9   :  { %v11378_v45 = vadd.f32 %v11314_v30, %v11250_v44  ;;  %v11251_v34 = vmax.f32 %v11123_v49, %v11187_v61 }
 0x6da   :  { %v11376_v38 = vadd.f32 %v11312_v7, %v11248_v33  ;;  %v11249_v4 = vmax.f32 %v11121_v11, %v11185_v8  ;;  %v13353_v63 = vpop.f32.mrb[100].mxu0 }
 0x6db   :  { %11442 = vst.msk [vmem:[%s18450_s5 + $0x110] sm:$0xff] %vm264_vm1, %v11378_v45  ;;  %v11379_v2 = vadd.f32 %v11315_v58, %v11251_v34  ;;  %v11126_v62 = vadd.f32 %v13353_v63, %v17931_v40  ;;  %v10907_v1 = vpop.f32.mrb[101].mxu0  ;;  %v11326_v63 = vld [vmem:[%s18450_s5 + $0x170] sm:$0xff] }
 0x6dc   :  { %11440 = vst.msk [vmem:[%s18450_s5 + $0x100] sm:$0xff] %vm264_vm1, %v11376_v38  ;;  %v11377_v55 = vadd.f32 %v11313_v29, %v11249_v4  ;;  %v11124_v12 = vadd.f32 %v17931_v40, %v10907_v1  ;;  %v13354_v36 = vpop.f32.mrb[102].mxu0  ;;  %v11324_v1 = vld [vmem:[%s18450_s5 + $0x160] sm:$0xff] }
 0x6dd   :  { %11443 = vst.msk [vmem:[%s18450_s5 + $0x118] sm:$0xff] %vm264_vm1, %v11379_v2  ;;  %v11190_v31 = vmul.f32 0.1, %v11126_v62  ;;  %v11127_v52 = vadd.f32 %v13354_v36, %v17931_v40  ;;  %v10910_v54 = vpop.f32.mrb[103].mxu0  ;;  %v11327_v36 = vld [vmem:[%s18450_s5 + $0x178] sm:$0xff] }
 0x6de   :  { %11441 = vst.msk [vmem:[%s18450_s5 + $0x108] sm:$0xff] %vm264_vm1, %v11377_v55  ;;  %v11188_v5 = vmul.f32 0.1, %v11124_v12  ;;  %v11125_v6 = vadd.f32 %v17931_v40, %v10910_v54 }
 0x6df   :  { %v11254_v42 = vmax.f32 %v11126_v62, %v11190_v31  ;;  %v11191_v0 = vmul.f32 0.1, %v11127_v52 }
 0x6e0   :  { %v11252_v35 = vmax.f32 %v11124_v12, %v11188_v5  ;;  %v11189_v23 = vmul.f32 0.1, %v11125_v6  ;;  %v11325_v5 = vld [vmem:[%s18450_s5 + $0x168] sm:$0xff] }
 0x6e1   :  { %v11382_v51 = vadd.f32 %v11318_v56, %v11254_v42  ;;  %v11255_v19 = vmax.f32 %v11127_v52, %v11191_v0 }
 0x6e2   :  { %v11380_v24 = vadd.f32 %v11316_v3, %v11252_v35  ;;  %v11253_v21 = vmax.f32 %v11125_v6, %v11189_v23  ;;  %v13357_v37 = vpop.f32.mrb[104].mxu0 }
 0x6e3   :  { %11446 = vst.msk [vmem:[%s18450_s5 + $0x130] sm:$0xff] %vm264_vm1, %v11382_v51  ;;  %v11383_v20 = vadd.f32 %v11319_v46, %v11255_v19  ;;  %v11130_v13 = vadd.f32 %v13357_v37, %v17931_v40  ;;  %v10923_v41 = vpop.f32.mrb[105].mxu0  ;;  %v11330_v37 = vld [vmem:[%s18450_s5 + $0x190] sm:$0xff] }
 0x6e4   :  { %11444 = vst.msk [vmem:[%s18450_s5 + $0x120] sm:$0xff] %vm264_vm1, %v11380_v24  ;;  %v11381_v17 = vadd.f32 %v11317_v9, %v11253_v21  ;;  %v11128_v39 = vadd.f32 %v17931_v40, %v10923_v41  ;;  %v13358_v60 = vpop.f32.mrb[106].mxu0  ;;  %v11328_v41 = vld [vmem:[%s18450_s5 + $0x180] sm:$0xff] }
 0x6e5   :  { %11447 = vst.msk [vmem:[%s18450_s5 + $0x138] sm:$0xff] %vm264_vm1, %v11383_v20  ;;  %v11194_v28 = vmul.f32 0.1, %v11130_v13  ;;  %v11131_v57 = vadd.f32 %v13358_v60, %v17931_v40  ;;  %v10926_v53 = vpop.f32.mrb[107].mxu0  ;;  %v11331_v60 = vld [vmem:[%s18450_s5 + $0x198] sm:$0xff] }
 0x6e6   :  { %11445 = vst.msk [vmem:[%s18450_s5 + $0x128] sm:$0xff] %vm264_vm1, %v11381_v17  ;;  %v11192_v26 = vmul.f32 0.1, %v11128_v39  ;;  %v11129_v22 = vadd.f32 %v17931_v40, %v10926_v53 }
 0x6e7   :  { %v11258_v48 = vmax.f32 %v11130_v13, %v11194_v28  ;;  %v11195_v18 = vmul.f32 0.1, %v11131_v57 }
 0x6e8   :  { %v11256_v50 = vmax.f32 %v11128_v39, %v11192_v26  ;;  %v11193_v15 = vmul.f32 0.1, %v11129_v22  ;;  %v11329_v26 = vld [vmem:[%s18450_s5 + $0x188] sm:$0xff] }
 0x6e9   :  { %v11386_v27 = vadd.f32 %v11322_v32, %v11258_v48  ;;  %v11259_v59 = vmax.f32 %v11131_v57, %v11195_v18 }
 0x6ea   :  { %v11384_v14 = vadd.f32 %v11320_v47, %v11256_v50  ;;  %v11257_v16 = vmax.f32 %v11129_v22, %v11193_v15  ;;  %v13361_v49 = vpop.f32.mrb[108].mxu0 }
 0x6eb   :  { %11450 = vst.msk [vmem:[%s18450_s5 + $0x150] sm:$0xff] %vm264_vm1, %v11386_v27  ;;  %v11387_v10 = vadd.f32 %v11323_v43, %v11259_v59  ;;  %v11134_v11 = vadd.f32 %v13361_v49, %v17931_v40  ;;  %v10939_v44 = vpop.f32.mrb[109].mxu0  ;;  %v11334_v49 = vld [vmem:[%s18450_s5 + $0x1b0] sm:$0xff] }
 0x6ec   :  { %11448 = vst.msk [vmem:[%s18450_s5 + $0x140] sm:$0xff] %vm264_vm1, %v11384_v14  ;;  %v11385_v61 = vadd.f32 %v11321_v25, %v11257_v16  ;;  %v11132_v30 = vadd.f32 %v17931_v40, %v10939_v44  ;;  %v13362_v33 = vpop.f32.mrb[110].mxu0  ;;  %v11332_v44 = vld [vmem:[%s18450_s5 + $0x1a0] sm:$0xff] }
 0x6ed   :  { %11451 = vst.msk [vmem:[%s18450_s5 + $0x158] sm:$0xff] %vm264_vm1, %v11387_v10  ;;  %v11198_v8 = vmul.f32 0.1, %v11134_v11  ;;  %v11135_v45 = vadd.f32 %v13362_v33, %v17931_v40  ;;  %v10942_v7 = vpop.f32.mrb[111].mxu0  ;;  %v11335_v33 = vld [vmem:[%s18450_s5 + $0x1b8] sm:$0xff] }
 0x6ee   :  { %11449 = vst.msk [vmem:[%s18450_s5 + $0x148] sm:$0xff] %vm264_vm1, %v11385_v61  ;;  %v11196_v34 = vmul.f32 0.1, %v11132_v30  ;;  %v11133_v38 = vadd.f32 %v17931_v40, %v10942_v7 }
 0x6ef   :  { %v11262_v58 = vmax.f32 %v11134_v11, %v11198_v8  ;;  %v11199_v4 = vmul.f32 0.1, %v11135_v45 }
 0x6f0   :  { %v11260_v2 = vmax.f32 %v11132_v30, %v11196_v34  ;;  %v11197_v29 = vmul.f32 0.1, %v11133_v38  ;;  %v11333_v34 = vld [vmem:[%s18450_s5 + $0x1a8] sm:$0xff] }
 0x6f1   :  { %v11390_v62 = vadd.f32 %v11326_v63, %v11262_v58  ;;  %v11263_v55 = vmax.f32 %v11135_v45, %v11199_v4 }
 0x6f2   :  { %v11388_v12 = vadd.f32 %v11324_v1, %v11260_v2  ;;  %v11261_v31 = vmax.f32 %v11133_v38, %v11197_v29  ;;  %v13365_v52 = vpop.f32.mrb[112].mxu0 }
 0x6f3   :  { %11454 = vst.msk [vmem:[%s18450_s5 + $0x170] sm:$0xff] %vm264_vm1, %v11390_v62  ;;  %v11391_v54 = vadd.f32 %v11327_v36, %v11263_v55  ;;  %v11138_v6 = vadd.f32 %v13365_v52, %v17931_v40  ;;  %v10955_v42 = vpop.f32.mrb[113].mxu0  ;;  %v11338_v52 = vld [vmem:[%s18450_s5 + $0x1d0] sm:$0xff] }
 0x6f4   :  { %11452 = vst.msk [vmem:[%s18450_s5 + $0x160] sm:$0xff] %vm264_vm1, %v11388_v12  ;;  %v11389_v0 = vadd.f32 %v11325_v5, %v11261_v31  ;;  %v11136_v56 = vadd.f32 %v17931_v40, %v10955_v42  ;;  %v13366_v35 = vpop.f32.mrb[114].mxu0  ;;  %v11336_v42 = vld [vmem:[%s18450_s5 + $0x1c0] sm:$0xff] }
 0x6f5   :  { %11455 = vst.msk [vmem:[%s18450_s5 + $0x178] sm:$0xff] %vm264_vm1, %v11391_v54  ;;  %v11202_v23 = vmul.f32 0.1, %v11138_v6  ;;  %v11139_v51 = vadd.f32 %v13366_v35, %v17931_v40  ;;  %v10958_v3 = vpop.f32.mrb[115].mxu0  ;;  %v11339_v35 = vld [vmem:[%s18450_s5 + $0x1d8] sm:$0xff] }
 0x6f6   :  { %11453 = vst.msk [vmem:[%s18450_s5 + $0x168] sm:$0xff] %vm264_vm1, %v11389_v0  ;;  %v11200_v19 = vmul.f32 0.1, %v11136_v56  ;;  %v11137_v24 = vadd.f32 %v17931_v40, %v10958_v3 }
 0x6f7   :  { %v11266_v46 = vmax.f32 %v11138_v6, %v11202_v23  ;;  %v11203_v21 = vmul.f32 0.1, %v11139_v51 }
 0x6f8   :  { %v11264_v20 = vmax.f32 %v11136_v56, %v11200_v19  ;;  %v11201_v9 = vmul.f32 0.1, %v11137_v24  ;;  %v11337_v19 = vld [vmem:[%s18450_s5 + $0x1c8] sm:$0xff] }
 0x6f9   :  { %v11394_v13 = vadd.f32 %v11330_v37, %v11266_v46  ;;  %v11267_v17 = vmax.f32 %v11139_v51, %v11203_v21 }
 0x6fa   :  { %v11392_v39 = vadd.f32 %v11328_v41, %v11264_v20  ;;  %v11265_v28 = vmax.f32 %v11137_v24, %v11201_v9  ;;  %v13369_v57 = vpop.f32.mrb[116].mxu0 }
 0x6fb   :  { %11458 = vst.msk [vmem:[%s18450_s5 + $0x190] sm:$0xff] %vm264_vm1, %v11394_v13  ;;  %v11395_v53 = vadd.f32 %v11331_v60, %v11267_v17  ;;  %v11142_v22 = vadd.f32 %v13369_v57, %v17931_v40  ;;  %v10971_v48 = vpop.f32.mrb[117].mxu0  ;;  %v11342_v57 = vld [vmem:[%s18450_s5 + $0x1f0] sm:$0xff] }
 0x6fc   :  { %11456 = vst.msk [vmem:[%s18450_s5 + $0x180] sm:$0xff] %vm264_vm1, %v11392_v39  ;;  %v11393_v18 = vadd.f32 %v11329_v26, %v11265_v28  ;;  %v11140_v32 = vadd.f32 %v17931_v40, %v10971_v48  ;;  %v13370_v50 = vpop.f32.mrb[118].mxu0  ;;  %v11340_v48 = vld [vmem:[%s18450_s5 + $0x1e0] sm:$0xff] }
 0x6fd   :  { %11459 = vst.msk [vmem:[%s18450_s5 + $0x198] sm:$0xff] %vm264_vm1, %v11395_v53  ;;  %v11206_v15 = vmul.f32 0.1, %v11142_v22  ;;  %v11143_v27 = vadd.f32 %v13370_v50, %v17931_v40  ;;  %v10974_v47 = vpop.f32.mrb[119].mxu0  ;;  %v11343_v50 = vld [vmem:[%s18450_s5 + $0x1f8] sm:$0xff] }
 0x6fe   :  { %11457 = vst.msk [vmem:[%s18450_s5 + $0x188] sm:$0xff] %vm264_vm1, %v11393_v18  ;;  %v11204_v59 = vmul.f32 0.1, %v11140_v32  ;;  %v11141_v14 = vadd.f32 %v17931_v40, %v10974_v47 }
 0x6ff   :  { %v11270_v43 = vmax.f32 %v11142_v22, %v11206_v15  ;;  %v11207_v16 = vmul.f32 0.1, %v11143_v27 }
 0x700   :  { %v11268_v10 = vmax.f32 %v11140_v32, %v11204_v59  ;;  %v11205_v25 = vmul.f32 0.1, %v11141_v14 }
 0x701   :  { %v11398_v11 = vadd.f32 %v11334_v49, %v11270_v43  ;;  %v11271_v61 = vmax.f32 %v11143_v27, %v11207_v16  ;;  %v11341_v27 = vld [vmem:[%s18450_s5 + $0x1e8] sm:$0xff] }
 0x702   :  { %v11396_v30 = vadd.f32 %v11332_v44, %v11268_v10  ;;  %v11269_v8 = vmax.f32 %v11141_v14, %v11205_v25  ;;  %v13373_v45 = vpop.f32.mrb[120].mxu0 }
 0x703   :  { %11462 = vst.msk [vmem:[%s18450_s5 + $0x1b0] sm:$0xff] %vm264_vm1, %v11398_v11  ;;  %v11399_v7 = vadd.f32 %v11335_v33, %v11271_v61  ;;  %v11146_v38 = vadd.f32 %v13373_v45, %v17931_v40  ;;  %v10987_v58 = vpop.f32.mrb[121].mxu0 }
 0x704   :  { %11460 = vst.msk [vmem:[%s18450_s5 + $0x1a0] sm:$0xff] %vm264_vm1, %v11396_v30  ;;  %v11397_v4 = vadd.f32 %v11333_v34, %v11269_v8  ;;  %v11144_v63 = vadd.f32 %v17931_v40, %v10987_v58  ;;  %v13374_v2 = vpop.f32.mrb[122].mxu0 }
 0x705   :  { %11463 = vst.msk [vmem:[%s18450_s5 + $0x1b8] sm:$0xff] %vm264_vm1, %v11399_v7  ;;  %v11210_v29 = vmul.f32 0.1, %v11146_v38  ;;  %v11147_v62 = vadd.f32 %v13374_v2, %v17931_v40  ;;  %v10990_v1 = vpop.f32.mrb[123].mxu0 }
 0x706   :  { %11461 = vst.msk [vmem:[%s18450_s5 + $0x1a8] sm:$0xff] %vm264_vm1, %v11397_v4  ;;  %v11208_v55 = vmul.f32 0.1, %v11144_v63  ;;  %v11145_v12 = vadd.f32 %v17931_v40, %v10990_v1 }
 0x707   :  { %v11274_v36 = vmax.f32 %v11146_v38, %v11210_v29  ;;  %v11211_v31 = vmul.f32 0.1, %v11147_v62 }
 0x708   :  { %v11272_v54 = vmax.f32 %v11144_v63, %v11208_v55  ;;  %v11209_v5 = vmul.f32 0.1, %v11145_v12 }
 0x709   :  { %v11402_v6 = vadd.f32 %v11338_v52, %v11274_v36  ;;  %v11275_v0 = vmax.f32 %v11147_v62, %v11211_v31 }
 0x70a   :  { %v11400_v56 = vadd.f32 %v11336_v42, %v11272_v54  ;;  %v11273_v23 = vmax.f32 %v11145_v12, %v11209_v5  ;;  %v13377_v51 = vpop.f32.mrb[124].mxu0 }
 0x70b   :  { %11466 = vst.msk [vmem:[%s18450_s5 + $0x1d0] sm:$0xff] %vm264_vm1, %v11402_v6  ;;  %v11403_v3 = vadd.f32 %v11339_v35, %v11275_v0  ;;  %v11150_v24 = vadd.f32 %v13377_v51, %v17931_v40  ;;  %v11003_v46 = vpop.f32.mrb[125].mxu0 }
 0x70c   :  { %11464 = vst.msk [vmem:[%s18450_s5 + $0x1c0] sm:$0xff] %vm264_vm1, %v11400_v56  ;;  %v11401_v21 = vadd.f32 %v11337_v19, %v11273_v23  ;;  %v11148_v37 = vadd.f32 %v17931_v40, %v11003_v46  ;;  %v13378_v20 = vpop.f32.mrb[126].mxu0 }
 0x70d   :  { %11467 = vst.msk [vmem:[%s18450_s5 + $0x1d8] sm:$0xff] %vm264_vm1, %v11403_v3  ;;  %v11214_v9 = vmul.f32 0.1, %v11150_v24  ;;  %v11151_v13 = vadd.f32 %v13378_v20, %v17931_v40  ;;  %v11006_v41 = vpop.f32.mrb[127].mxu0 }
 0x70e   :  { %11465 = vst.msk [vmem:[%s18450_s5 + $0x1c8] sm:$0xff] %vm264_vm1, %v11401_v21  ;;  %v11212_v17 = vmul.f32 0.1, %v11148_v37  ;;  %v11149_v39 = vadd.f32 %v17931_v40, %v11006_v41 }
 0x70f   :  { %v11278_v60 = vmax.f32 %v11150_v24, %v11214_v9  ;;  %v11215_v28 = vmul.f32 0.1, %v11151_v13 }
 0x710   :  { %v11276_v53 = vmax.f32 %v11148_v37, %v11212_v17  ;;  %v11213_v26 = vmul.f32 0.1, %v11149_v39 }
 0x711   :  { %v11406_v22 = vadd.f32 %v11342_v57, %v11278_v60  ;;  %v11279_v18 = vmax.f32 %v11151_v13, %v11215_v28 }
 0x712   :  { %v11404_v32 = vadd.f32 %v11340_v48, %v11276_v53  ;;  %v11277_v40 = vmax.f32 %v11149_v39, %v11213_v26 }
 0x713   :  { %11470 = vst.msk [vmem:[%s18450_s5 + $0x1f0] sm:$0xff] %vm264_vm1, %v11406_v22  ;;  %v11407_v15 = vadd.f32 %v11343_v50, %v11279_v18 }
 0x714   :  { %11468 = vst.msk [vmem:[%s18450_s5 + $0x1e0] sm:$0xff] %vm264_vm1, %v11404_v32  ;;  %v11405_v47 = vadd.f32 %v11341_v27, %v11277_v40 }
 0x715   :  { %11471 = vst.msk [vmem:[%s18450_s5 + $0x1f8] sm:$0xff] %vm264_vm1, %v11407_v15 }
 0x716   :  { %11469 = vst.msk [vmem:[%s18450_s5 + $0x1e8] sm:$0xff] %vm264_vm1, %v11405_v47 }

</bundles_post_ra>
